<compile_context>
chip_gen: v7x
topology: tpu7x:2x2x1
jax: 0.10.0
libtpu: 0.0.40
codegen_flags: <defaults>
</compile_context>

<pallas_src>
import functools

import jax
import jax.numpy as jnp
from jax import lax
from jax.experimental import pallas as pl
from jax.experimental.pallas import tpu as pltpu


def _lowmixer_kernel(hsel_ref, x1_ref, x2_ref, w_ref, o1_ref, o2_ref, *,
                     num_heads, head_dim, tokens, batch_tile, c_pad, scale):
    N, nh, hd, Bt, Cp = tokens, num_heads, head_dim, batch_tile, c_pad
    C = nh * hd

    hsel = hsel_ref[...]                       # (nh, 1, C) bf16 in {0, 1}
    hself = hsel.astype(jnp.float32)
    w = w_ref[...]                             # (C, 3*Cp) bf16, segments k|v|q

    x1 = x1_ref[...].reshape(Bt * N, C)        # bf16 tokens, both batch rows
    x2 = x2_ref[...].reshape(Bt * N, C)

    # One projection matmul per stream (M = Bt*N), f32 accumulation on the MXU.
    y1 = jnp.dot(x1, w, preferred_element_type=jnp.float32)      # (Bt*N, 3*Cp)
    y2 = jnp.dot(x2, w, preferred_element_type=jnp.float32)

    # k/v/q segments start at multiples of 128 lanes (Cp-padded weight), so
    # these column slices fall on vreg boundaries.
    k1 = y1[:, 0:C].astype(jnp.bfloat16)
    v1 = y1[:, Cp:Cp + C].astype(jnp.bfloat16)
    k2 = y2[:, 0:C].astype(jnp.bfloat16)
    v2 = y2[:, Cp:Cp + C].astype(jnp.bfloat16)
    qp1 = y1[:, 2 * Cp:2 * Cp + C]
    qp2 = y2[:, 2 * Cp:2 * Cp + C]

    # channel(q1, q2) in the reference collapses to an elementwise product; the
    # softmax scale is folded into the shared gate.  Kept in f32 (v5e VPU/EUP).
    gate = (1.0 - jax.nn.sigmoid(qp1 * qp2)) * scale              # (Bt*N, C)

    def _softmax(s):
        m = jnp.max(s, axis=-1, keepdims=True)
        e = jnp.exp(s - m)
        return e * pl.reciprocal(jnp.sum(e, axis=-1, keepdims=True), approx=True)

    # TODO(synk): for large N, add a KV grid axis ("arbitrary") with an
    # online-softmax accumulator so the (nh*N, N) scores never exceed VMEM
    # (matters first on v7x's 64 MiB VMEM / v5e's 16 MiB scoped default).
    #
    # Per-batch attention.  Bt is tiny and static, so the loop is fully
    # unrolled with compile-time slices and stores.
    for i in range(Bt):
        rows = slice(i * N, (i + 1) * N)
        # Shared gate replicated per head and masked to that head's channels:
        # one full-width matmul per stream yields every head's scores exactly
        # (off-head channels contribute literal zeros).  The nh-fold FLOP
        # inflation is fine while the MXU has slack at these dims; switch to a
        # head-blocked contraction once C / head_dim are production sized.
        qm = (gate[rows].astype(jnp.bfloat16)[None, :, :] * hsel).reshape(nh * N, C)
        k1i, v1i = k1[rows], v1[rows]
        k2i, v2i = k2[rows], v2[rows]

        s1 = lax.dot_general(qm, k1i, (((1,), (1,)), ((), ())),
                             preferred_element_type=jnp.float32)  # (nh*N, N)
        s2 = lax.dot_general(qm, k2i, (((1,), (1,)), ((), ())),
                             preferred_element_type=jnp.float32)
        p1 = _softmax(s1).astype(jnp.bfloat16)
        p2 = _softmax(s2).astype(jnp.bfloat16)

        # Candidate outputs against full-width v; the head-select sum extracts
        # head h's columns from row-block h (exact, no extra error).
        o1c = jnp.dot(p1, v1i, preferred_element_type=jnp.float32).reshape(nh, N, C)
        o2c = jnp.dot(p2, v2i, preferred_element_type=jnp.float32).reshape(nh, N, C)
        o1_ref[i] = jnp.sum(o1c * hself, axis=0).astype(o1_ref.dtype)
        o2_ref[i] = jnp.sum(o2c * hself, axis=0).astype(o2_ref.dtype)


def low_mixer_forward(x1, x2, w_qkv, w_q, *, num_heads=8, pool_size=2,
                      batch_tile=2):
    """x1, x2: (B, C, H, W) NCHW float32.  Returns (xa1, xa2), each (B, C, H, W) f32."""
    B, C, H, W = x1.shape
    assert C % num_heads == 0
    nh = num_heads
    head_dim = C // nh
    scale = head_dim ** (-0.5)
    if pool_size > 1:
        assert H % pool_size == 0 and W % pool_size == 0
        Hp, Wp = H // pool_size, W // pool_size
    else:
        Hp, Wp = H, W
    # The module reshapes the pooled grid to (sqrt(N), sqrt(N)) -> square only.
    assert Hp == Wp
    N = Hp * Wp

    # Batch elements per grid step (must divide B); amortizes per-step cost.
    Bt = max(1, min(batch_tile, B))
    while B % Bt:
        Bt -= 1

    # Pool + NCHW->token permute stay as a single-pass XLA fusion per stream
    # (no cross-stream concat in HBM any more).
    # TODO(synk): fuse the avg-pool + permute into the kernel (read NCHW blocks,
    # pool on the VPU) to drop the remaining tokens-slab HBM round trip.
    def tokens(x):
        if pool_size > 1:  # AvgPool2d(pool, stride=pool, padding=0)
            x = x.reshape(B, C, Hp, pool_size, Wp, pool_size).mean(axis=(3, 5))
        return x.transpose(0, 2, 3, 1).reshape(B, N, C).astype(jnp.bfloat16)

    t1, t2 = tokens(x1), tokens(x2)

    # Fused, pre-transposed projection weight with each k/v/q segment padded to
    # a 128-lane boundary.  nn.Linear stores (out, in); qkv rows [0,C)->k,
    # [C,2C)->v.  At C % 128 == 0 there is no padding at all.
    Cp = ((C + 127) // 128) * 128
    w_fused = jnp.zeros((C, 3 * Cp), jnp.float32)
    w_fused = w_fused.at[:, 0:C].set(w_qkv[:C].T)
    w_fused = w_fused.at[:, Cp:Cp + C].set(w_qkv[C:].T)
    w_fused = w_fused.at[:, 2 * Cp:2 * Cp + C].set(w_q.T)
    w_fused = w_fused.astype(jnp.bfloat16)

    # Head-select mask: hsel[h, 0, c] = 1 iff channel c belongs to head h.
    hsel = (jnp.arange(C)[None, :] // head_dim == jnp.arange(nh)[:, None])
    hsel = hsel.astype(jnp.bfloat16).reshape(nh, 1, C)

    kernel = functools.partial(_lowmixer_kernel, num_heads=nh, head_dim=head_dim,
                               tokens=N, batch_tile=Bt, c_pad=Cp, scale=scale)

    flops = 2 * B * N * (2 * C * 3 * Cp      # projections (both streams)
                         + 2 * nh * C * N    # scores  (both streams)
                         + 2 * nh * N * C)   # attn @ v (both streams)
    cost = pl.CostEstimate(
        flops=int(flops),
        transcendentals=int(B * (2 * nh * N * N + N * C)),   # exp + sigmoid
        bytes_accessed=int(2 * 2 * B * N * C * 2             # token in + out, bf16
                           + C * 3 * Cp * 2 + nh * C * 2))   # weights + mask

    out_sds = jax.ShapeDtypeStruct((B, N, C), jnp.bfloat16)
    o1, o2 = pl.pallas_call(
        kernel,
        out_shape=(out_sds, out_sds),
        grid=(B // Bt,),
        in_specs=[
            pl.BlockSpec((nh, 1, C), lambda b: (0, 0, 0)),     # head mask (once)
            pl.BlockSpec((Bt, N, C), lambda b: (b, 0, 0)),     # stream-1 tokens
            pl.BlockSpec((Bt, N, C), lambda b: (b, 0, 0)),     # stream-2 tokens
            pl.BlockSpec((C, 3 * Cp), lambda b: (0, 0)),       # fused weight
        ],
        out_specs=(pl.BlockSpec((Bt, N, C), lambda b: (b, 0, 0)),
                   pl.BlockSpec((Bt, N, C), lambda b: (b, 0, 0))),
        compiler_params=pltpu.CompilerParams(
            dimension_semantics=("parallel",),
            vmem_limit_bytes=32 * 1024 * 1024),
        cost_estimate=cost,
    )(hsel, t1, t2, w_fused)

    def unpool(o):
        # torch: (attn @ v).transpose(2, 3).reshape(B, C, N) is a raw row-major
        # reinterpretation of the per-batch head-major (N, C) slab as (C, N);
        # on the contiguous kernel output this reshape is free.
        o = o.reshape(B, C, Hp, Wp)
        if pool_size > 1:  # nn.Upsample(scale_factor=pool), default mode='nearest'
            o = jnp.repeat(jnp.repeat(o, pool_size, axis=2), pool_size, axis=3)
        return o.astype(jnp.float32)

    return unpool(o1), unpool(o2)


def low_mixer_reference(x1, x2, w_qkv, w_q, *, num_heads=8, pool_size=2):
    """Pure-JAX f32 transcription of the PyTorch forward, for correctness check."""
    B, C, H, W = x1.shape
    hd = C // num_heads
    scale = hd ** (-0.5)

    def pool(x):
        if pool_size == 1:
            return x
        return x.reshape(B, C, H // pool_size, pool_size,
                         W // pool_size, pool_size).mean(axis=(3, 5))

    xa1 = pool(x1).transpose(0, 2, 3, 1).reshape(B, -1, C)
    xa2 = pool(x2).transpose(0, 2, 3, 1).reshape(B, -1, C)
    N = xa1.shape[1]

    def lin(x, w):
        return jnp.einsum('bnc,oc->bno', x, w)

    qkv1 = lin(xa1, w_qkv).reshape(B, N, 2, num_heads, hd).transpose(2, 0, 3, 1, 4)
    qkv2 = lin(xa2, w_qkv).reshape(B, N, 2, num_heads, hd).transpose(2, 0, 3, 1, 4)
    k1, v1 = qkv1[0], qkv1[1]
    k2, v2 = qkv2[0], qkv2[1]
    q1 = lin(xa1, w_q).reshape(B, N, 1, num_heads, hd)
    q2 = lin(xa2, w_q).reshape(B, N, 1, num_heads, hd)
    q = (1.0 - jax.nn.sigmoid(q1 * q2)).transpose(2, 0, 3, 1, 4)   # (1,B,nh,N,hd)

    def att(qq, k, v):
        a = jnp.einsum('obhnd,bhmd->obhnm', qq, k) * scale
        a = jax.nn.softmax(a, axis=-1)
        x = jnp.einsum('obhnm,bhmd->obhnd', a, v)
        return x.transpose(0, 1, 3, 2, 4).reshape(B, C, N)

    sr = int(N ** 0.5)

    def up(x):
        x = x.reshape(B, C, sr, sr)
        if pool_size > 1:
            x = jnp.repeat(jnp.repeat(x, pool_size, 2), pool_size, 3)
        return x

    return up(att(q, k1, v1)), up(att(q, k2, v2))


if __name__ == "__main__":
    # dim = 128 (divisible by num_heads=8 and by 128 lanes -> lane-dense I/O,
    # per the review); pooled token grid 8x8 -> N=64.  B=8 with Bt=2 gives a
    # 4-step parallel grid, so the pipeline / both v7x TensorCores have work.
    B, dim, H, W = 8, 128, 16, 16
    num_heads, pool_size = 8, 2

    key = jax.random.PRNGKey(0)
    k1, k2, k3, k4 = jax.random.split(key, 4)
    x1 = jax.random.normal(k1, (B, dim, H, W), dtype=jnp.float32)
    x2 = jax.random.normal(k2, (B, dim, H, W), dtype=jnp.float32)
    # qkv_bias=False -> no biases; attn_drop=0 -> identity dropout.
    w_qkv = 0.05 * jax.random.normal(k3, (2 * dim, dim), dtype=jnp.float32)
    w_q = 0.05 * jax.random.normal(k4, (dim, dim), dtype=jnp.float32)

    fwd = jax.jit(functools.partial(low_mixer_forward, num_heads=num_heads,
                                    pool_size=pool_size, batch_tile=2))
    out1, out2 = fwd(x1, x2, w_qkv, w_q)
    out1 = jax.block_until_ready(out1)
    out2 = jax.block_until_ready(out2)

    ref1, ref2 = low_mixer_reference(x1, x2, w_qkv, w_q,
                                     num_heads=num_heads, pool_size=pool_size)
    assert out1.shape == (B, dim, H, W) and out2.shape == (B, dim, H, W)
    # bf16 matmul operands, bf16 kernel output and the approximate softmax
    # reciprocal => looser tolerance than the pure-f32 reference.
    assert jnp.allclose(out1, ref1, atol=3e-2, rtol=3e-2)
    assert jnp.allclose(out2, ref2, atol=3e-2, rtol=3e-2)
    print("KERNEL_OK")
</pallas_src>

<mosaic_0001>
module attributes {stable_mosaic.version = 11 : i64} {
  func.func @_lowmixer_kernel(%arg0: i32, %arg1: memref<8x1x128xbf16, #tpu.memory_space<vmem>>, %arg2: memref<2x64x128xbf16, #tpu.memory_space<vmem>>, %arg3: memref<2x64x128xbf16, #tpu.memory_space<vmem>>, %arg4: memref<128x384xbf16, #tpu.memory_space<vmem>>, %arg5: memref<2x64x128xbf16, #tpu.memory_space<vmem>>, %arg6: memref<2x64x128xbf16, #tpu.memory_space<vmem>>) attributes {dimension_semantics = [#tpu.dimension_semantics<parallel>], iteration_bounds = array<i64: 4>, scalar_prefetch = 0 : i64, scratch_operands = 0 : i64, tpu.core_type = #tpu.core_type<tc>, window_params = [{pipeline_mode = #tpu.pipeline_mode<synchronous>, transform_indices = @transform_0, window_bounds = array<i64: 8, 1, 128>}, {transform_indices = @transform_1, window_bounds = array<i64: 2, 64, 128>}, {transform_indices = @transform_2, window_bounds = array<i64: 2, 64, 128>}, {pipeline_mode = #tpu.pipeline_mode<synchronous>, transform_indices = @transform_3, window_bounds = array<i64: 128, 384>}, {transform_indices = @transform_4, window_bounds = array<i64: 2, 64, 128>}, {transform_indices = @transform_5, window_bounds = array<i64: 2, 64, 128>}]} {
    %c0 = arith.constant 0 : index
    %c0_0 = arith.constant 0 : index
    %c0_1 = arith.constant 0 : index
    %0 = vector.load %arg1[%c0, %c0_0, %c0_1] : memref<8x1x128xbf16, #tpu.memory_space<vmem>>, vector<8x1x128xbf16>
    %1 = arith.extf %0 : vector<8x1x128xbf16> to vector<8x1x128xf32>
    %c0_2 = arith.constant 0 : index
    %c0_3 = arith.constant 0 : index
    %2 = vector.load %arg4[%c0_2, %c0_3] : memref<128x384xbf16, #tpu.memory_space<vmem>>, vector<128x384xbf16>
    %c0_4 = arith.constant 0 : index
    %c0_5 = arith.constant 0 : index
    %c0_6 = arith.constant 0 : index
    %3 = vector.load %arg2[%c0_4, %c0_5, %c0_6] : memref<2x64x128xbf16, #tpu.memory_space<vmem>>, vector<2x64x128xbf16>
    %4 = vector.shape_cast %3 : vector<2x64x128xbf16> to vector<128x128xbf16>
    %c0_7 = arith.constant 0 : index
    %c0_8 = arith.constant 0 : index
    %c0_9 = arith.constant 0 : index
    %5 = vector.load %arg3[%c0_7, %c0_8, %c0_9] : memref<2x64x128xbf16, #tpu.memory_space<vmem>>, vector<2x64x128xbf16>
    %6 = vector.shape_cast %5 : vector<2x64x128xbf16> to vector<128x128xbf16>
    %cst = arith.constant dense<0.000000e+00> : vector<128x384xf32>
    %7 = tpu.matmul %4, %2, %cst {dimension_numbers = #tpu.dot_dimension_numbers<[1], [0], [0], [1], [0, 0, 1, 1], [], []>} : vector<128x128xbf16>, vector<128x384xbf16>, vector<128x384xf32> -> vector<128x384xf32>
    %cst_10 = arith.constant dense<0.000000e+00> : vector<128x384xf32>
    %8 = tpu.matmul %6, %2, %cst_10 {dimension_numbers = #tpu.dot_dimension_numbers<[1], [0], [0], [1], [0, 0, 1, 1], [], []>} : vector<128x128xbf16>, vector<128x384xbf16>, vector<128x384xf32> -> vector<128x384xf32>
    %9 = vector.extract_strided_slice %7 {offsets = [0, 0], sizes = [128, 128], strides = [1, 1]} : vector<128x384xf32> to vector<128x128xf32>
    %10 = arith.truncf %9 : vector<128x128xf32> to vector<128x128xbf16>
    %11 = vector.extract_strided_slice %7 {offsets = [0, 128], sizes = [128, 128], strides = [1, 1]} : vector<128x384xf32> to vector<128x128xf32>
    %12 = arith.truncf %11 : vector<128x128xf32> to vector<128x128xbf16>
    %13 = vector.extract_strided_slice %8 {offsets = [0, 0], sizes = [128, 128], strides = [1, 1]} : vector<128x384xf32> to vector<128x128xf32>
    %14 = arith.truncf %13 : vector<128x128xf32> to vector<128x128xbf16>
    %15 = vector.extract_strided_slice %8 {offsets = [0, 128], sizes = [128, 128], strides = [1, 1]} : vector<128x384xf32> to vector<128x128xf32>
    %16 = arith.truncf %15 : vector<128x128xf32> to vector<128x128xbf16>
    %17 = vector.extract_strided_slice %7 {offsets = [0, 256], sizes = [128, 128], strides = [1, 1]} : vector<128x384xf32> to vector<128x128xf32>
    %18 = vector.extract_strided_slice %8 {offsets = [0, 256], sizes = [128, 128], strides = [1, 1]} : vector<128x384xf32> to vector<128x128xf32>
    %19 = arith.mulf %17, %18 : vector<128x128xf32>
    %20 = arith.negf %19 : vector<128x128xf32>
    %21 = math.exp %20 : vector<128x128xf32>
    %cst_11 = arith.constant 1.000000e+00 : f32
    %22 = vector.broadcast %cst_11 : f32 to vector<128x128xf32>
    %23 = arith.addf %22, %21 : vector<128x128xf32>
    %24 = arith.divf %22, %23 : vector<128x128xf32>
    %cst_12 = arith.constant 1.000000e+00 : f32
    %25 = vector.broadcast %cst_12 : f32 to vector<128x128xf32>
    %26 = arith.subf %25, %24 : vector<128x128xf32>
    %cst_13 = arith.constant 2.500000e-01 : f32
    %27 = vector.broadcast %cst_13 : f32 to vector<128x128xf32>
    %28 = arith.mulf %26, %27 : vector<128x128xf32>
    %29 = vector.extract_strided_slice %28 {offsets = [0, 0], sizes = [64, 128], strides = [1, 1]} : vector<128x128xf32> to vector<64x128xf32>
    %30 = arith.truncf %29 : vector<64x128xf32> to vector<64x128xbf16>
    %31 = vector.shape_cast %30 : vector<64x128xbf16> to vector<1x64x128xbf16>
    %32 = vector.broadcast %31 : vector<1x64x128xbf16> to vector<8x64x128xbf16>
    %33 = vector.broadcast %0 : vector<8x1x128xbf16> to vector<8x64x128xbf16>
    %34 = arith.mulf %32, %33 : vector<8x64x128xbf16>
    %35 = vector.shape_cast %34 : vector<8x64x128xbf16> to vector<512x128xbf16>
    %36 = vector.extract_strided_slice %10 {offsets = [0, 0], sizes = [64, 128], strides = [1, 1]} : vector<128x128xbf16> to vector<64x128xbf16>
    %37 = vector.extract_strided_slice %12 {offsets = [0, 0], sizes = [64, 128], strides = [1, 1]} : vector<128x128xbf16> to vector<64x128xbf16>
    %38 = vector.extract_strided_slice %14 {offsets = [0, 0], sizes = [64, 128], strides = [1, 1]} : vector<128x128xbf16> to vector<64x128xbf16>
    %39 = vector.extract_strided_slice %16 {offsets = [0, 0], sizes = [64, 128], strides = [1, 1]} : vector<128x128xbf16> to vector<64x128xbf16>
    %cst_14 = arith.constant dense<0.000000e+00> : vector<512x64xf32>
    %40 = tpu.matmul %35, %36, %cst_14 {dimension_numbers = #tpu.dot_dimension_numbers<[1], [1], [0], [0], [0, 0, 1, 0], [], []>} : vector<512x128xbf16>, vector<64x128xbf16>, vector<512x64xf32> -> vector<512x64xf32>
    %cst_15 = arith.constant dense<0.000000e+00> : vector<512x64xf32>
    %41 = tpu.matmul %35, %38, %cst_15 {dimension_numbers = #tpu.dot_dimension_numbers<[1], [1], [0], [0], [0, 0, 1, 0], [], []>} : vector<512x128xbf16>, vector<64x128xbf16>, vector<512x64xf32> -> vector<512x64xf32>
    %cst_16 = arith.constant dense<0xFF800000> : vector<512xf32>
    %42 = vector.multi_reduction <maximumf>, %40, %cst_16 [1] : vector<512x64xf32> to vector<512xf32>
    %43 = vector.shape_cast %42 : vector<512xf32> to vector<512x1xf32>
    %44 = vector.broadcast %43 : vector<512x1xf32> to vector<512x64xf32>
    %45 = arith.subf %40, %44 : vector<512x64xf32>
    %46 = math.exp %45 : vector<512x64xf32>
    %cst_17 = arith.constant dense<0.000000e+00> : vector<512xf32>
    %47 = vector.multi_reduction <add>, %46, %cst_17 [1] : vector<512x64xf32> to vector<512xf32>
    %48 = vector.shape_cast %47 : vector<512xf32> to vector<512x1xf32>
    %49 = tpu.reciprocal %48 {approx = true} : vector<512x1xf32> -> vector<512x1xf32>
    %50 = vector.broadcast %49 : vector<512x1xf32> to vector<512x64xf32>
    %51 = arith.mulf %46, %50 : vector<512x64xf32>
    %52 = arith.truncf %51 : vector<512x64xf32> to vector<512x64xbf16>
    %cst_18 = arith.constant dense<0xFF800000> : vector<512xf32>
    %53 = vector.multi_reduction <maximumf>, %41, %cst_18 [1] : vector<512x64xf32> to vector<512xf32>
    %54 = vector.shape_cast %53 : vector<512xf32> to vector<512x1xf32>
    %55 = vector.broadcast %54 : vector<512x1xf32> to vector<512x64xf32>
    %56 = arith.subf %41, %55 : vector<512x64xf32>
    %57 = math.exp %56 : vector<512x64xf32>
    %cst_19 = arith.constant dense<0.000000e+00> : vector<512xf32>
    %58 = vector.multi_reduction <add>, %57, %cst_19 [1] : vector<512x64xf32> to vector<512xf32>
    %59 = vector.shape_cast %58 : vector<512xf32> to vector<512x1xf32>
    %60 = tpu.reciprocal %59 {approx = true} : vector<512x1xf32> -> vector<512x1xf32>
    %61 = vector.broadcast %60 : vector<512x1xf32> to vector<512x64xf32>
    %62 = arith.mulf %57, %61 : vector<512x64xf32>
    %63 = arith.truncf %62 : vector<512x64xf32> to vector<512x64xbf16>
    %cst_20 = arith.constant dense<0.000000e+00> : vector<512x128xf32>
    %64 = tpu.matmul %52, %37, %cst_20 {dimension_numbers = #tpu.dot_dimension_numbers<[1], [0], [0], [1], [0, 0, 1, 1], [], []>} : vector<512x64xbf16>, vector<64x128xbf16>, vector<512x128xf32> -> vector<512x128xf32>
    %65 = vector.shape_cast %64 : vector<512x128xf32> to vector<8x64x128xf32>
    %cst_21 = arith.constant dense<0.000000e+00> : vector<512x128xf32>
    %66 = tpu.matmul %63, %39, %cst_21 {dimension_numbers = #tpu.dot_dimension_numbers<[1], [0], [0], [1], [0, 0, 1, 1], [], []>} : vector<512x64xbf16>, vector<64x128xbf16>, vector<512x128xf32> -> vector<512x128xf32>
    %67 = vector.shape_cast %66 : vector<512x128xf32> to vector<8x64x128xf32>
    %68 = vector.broadcast %1 : vector<8x1x128xf32> to vector<8x64x128xf32>
    %69 = arith.mulf %65, %68 : vector<8x64x128xf32>
    %cst_22 = arith.constant dense<0.000000e+00> : vector<64x128xf32>
    %70 = vector.multi_reduction <add>, %69, %cst_22 [0] : vector<8x64x128xf32> to vector<64x128xf32>
    %71 = arith.truncf %70 : vector<64x128xf32> to vector<64x128xbf16>
    %c0_23 = arith.constant 0 : index
    %c0_24 = arith.constant 0 : index
    %c0_25 = arith.constant 0 : index
    %72 = vector.load %arg5[%c0_23, %c0_24, %c0_25] : memref<2x64x128xbf16, #tpu.memory_space<vmem>>, vector<1x64x128xbf16>
    %73 = vector.shape_cast %72 : vector<1x64x128xbf16> to vector<64x128xbf16>
    %74 = vector.shape_cast %71 : vector<64x128xbf16> to vector<1x64x128xbf16>
    tpu.vector_store %arg5[%c0_23, %c0_24, %c0_25], %74 {strides = array<i32>} : memref<2x64x128xbf16, #tpu.memory_space<vmem>>, vector<1x64x128xbf16>,
    %75 = vector.broadcast %1 : vector<8x1x128xf32> to vector<8x64x128xf32>
    %76 = arith.mulf %67, %75 : vector<8x64x128xf32>
    %cst_26 = arith.constant dense<0.000000e+00> : vector<64x128xf32>
    %77 = vector.multi_reduction <add>, %76, %cst_26 [0] : vector<8x64x128xf32> to vector<64x128xf32>
    %78 = arith.truncf %77 : vector<64x128xf32> to vector<64x128xbf16>
    %c0_27 = arith.constant 0 : index
    %c0_28 = arith.constant 0 : index
    %c0_29 = arith.constant 0 : index
    %79 = vector.load %arg6[%c0_27, %c0_28, %c0_29] : memref<2x64x128xbf16, #tpu.memory_space<vmem>>, vector<1x64x128xbf16>
    %80 = vector.shape_cast %79 : vector<1x64x128xbf16> to vector<64x128xbf16>
    %81 = vector.shape_cast %78 : vector<64x128xbf16> to vector<1x64x128xbf16>
    tpu.vector_store %arg6[%c0_27, %c0_28, %c0_29], %81 {strides = array<i32>} : memref<2x64x128xbf16, #tpu.memory_space<vmem>>, vector<1x64x128xbf16>,
    %82 = vector.extract_strided_slice %28 {offsets = [64, 0], sizes = [64, 128], strides = [1, 1]} : vector<128x128xf32> to vector<64x128xf32>
    %83 = arith.truncf %82 : vector<64x128xf32> to vector<64x128xbf16>
    %84 = vector.shape_cast %83 : vector<64x128xbf16> to vector<1x64x128xbf16>
    %85 = vector.broadcast %84 : vector<1x64x128xbf16> to vector<8x64x128xbf16>
    %86 = vector.broadcast %0 : vector<8x1x128xbf16> to vector<8x64x128xbf16>
    %87 = arith.mulf %85, %86 : vector<8x64x128xbf16>
    %88 = vector.shape_cast %87 : vector<8x64x128xbf16> to vector<512x128xbf16>
    %89 = vector.extract_strided_slice %10 {offsets = [64, 0], sizes = [64, 128], strides = [1, 1]} : vector<128x128xbf16> to vector<64x128xbf16>
    %90 = vector.extract_strided_slice %12 {offsets = [64, 0], sizes = [64, 128], strides = [1, 1]} : vector<128x128xbf16> to vector<64x128xbf16>
    %91 = vector.extract_strided_slice %14 {offsets = [64, 0], sizes = [64, 128], strides = [1, 1]} : vector<128x128xbf16> to vector<64x128xbf16>
    %92 = vector.extract_strided_slice %16 {offsets = [64, 0], sizes = [64, 128], strides = [1, 1]} : vector<128x128xbf16> to vector<64x128xbf16>
    %cst_30 = arith.constant dense<0.000000e+00> : vector<512x64xf32>
    %93 = tpu.matmul %88, %89, %cst_30 {dimension_numbers = #tpu.dot_dimension_numbers<[1], [1], [0], [0], [0, 0, 1, 0], [], []>} : vector<512x128xbf16>, vector<64x128xbf16>, vector<512x64xf32> -> vector<512x64xf32>
    %cst_31 = arith.constant dense<0.000000e+00> : vector<512x64xf32>
    %94 = tpu.matmul %88, %91, %cst_31 {dimension_numbers = #tpu.dot_dimension_numbers<[1], [1], [0], [0], [0, 0, 1, 0], [], []>} : vector<512x128xbf16>, vector<64x128xbf16>, vector<512x64xf32> -> vector<512x64xf32>
    %cst_32 = arith.constant dense<0xFF800000> : vector<512xf32>
    %95 = vector.multi_reduction <maximumf>, %93, %cst_32 [1] : vector<512x64xf32> to vector<512xf32>
    %96 = vector.shape_cast %95 : vector<512xf32> to vector<512x1xf32>
    %97 = vector.broadcast %96 : vector<512x1xf32> to vector<512x64xf32>
    %98 = arith.subf %93, %97 : vector<512x64xf32>
    %99 = math.exp %98 : vector<512x64xf32>
    %cst_33 = arith.constant dense<0.000000e+00> : vector<512xf32>
    %100 = vector.multi_reduction <add>, %99, %cst_33 [1] : vector<512x64xf32> to vector<512xf32>
    %101 = vector.shape_cast %100 : vector<512xf32> to vector<512x1xf32>
    %102 = tpu.reciprocal %101 {approx = true} : vector<512x1xf32> -> vector<512x1xf32>
    %103 = vector.broadcast %102 : vector<512x1xf32> to vector<512x64xf32>
    %104 = arith.mulf %99, %103 : vector<512x64xf32>
    %105 = arith.truncf %104 : vector<512x64xf32> to vector<512x64xbf16>
    %cst_34 = arith.constant dense<0xFF800000> : vector<512xf32>
    %106 = vector.multi_reduction <maximumf>, %94, %cst_34 [1] : vector<512x64xf32> to vector<512xf32>
    %107 = vector.shape_cast %106 : vector<512xf32> to vector<512x1xf32>
    %108 = vector.broadcast %107 : vector<512x1xf32> to vector<512x64xf32>
    %109 = arith.subf %94, %108 : vector<512x64xf32>
    %110 = math.exp %109 : vector<512x64xf32>
    %cst_35 = arith.constant dense<0.000000e+00> : vector<512xf32>
    %111 = vector.multi_reduction <add>, %110, %cst_35 [1] : vector<512x64xf32> to vector<512xf32>
    %112 = vector.shape_cast %111 : vector<512xf32> to vector<512x1xf32>
    %113 = tpu.reciprocal %112 {approx = true} : vector<512x1xf32> -> vector<512x1xf32>
    %114 = vector.broadcast %113 : vector<512x1xf32> to vector<512x64xf32>
    %115 = arith.mulf %110, %114 : vector<512x64xf32>
    %116 = arith.truncf %115 : vector<512x64xf32> to vector<512x64xbf16>
    %cst_36 = arith.constant dense<0.000000e+00> : vector<512x128xf32>
    %117 = tpu.matmul %105, %90, %cst_36 {dimension_numbers = #tpu.dot_dimension_numbers<[1], [0], [0], [1], [0, 0, 1, 1], [], []>} : vector<512x64xbf16>, vector<64x128xbf16>, vector<512x128xf32> -> vector<512x128xf32>
    %118 = vector.shape_cast %117 : vector<512x128xf32> to vector<8x64x128xf32>
    %cst_37 = arith.constant dense<0.000000e+00> : vector<512x128xf32>
    %119 = tpu.matmul %116, %92, %cst_37 {dimension_numbers = #tpu.dot_dimension_numbers<[1], [0], [0], [1], [0, 0, 1, 1], [], []>} : vector<512x64xbf16>, vector<64x128xbf16>, vector<512x128xf32> -> vector<512x128xf32>
    %120 = vector.shape_cast %119 : vector<512x128xf32> to vector<8x64x128xf32>
    %121 = vector.broadcast %1 : vector<8x1x128xf32> to vector<8x64x128xf32>
    %122 = arith.mulf %118, %121 : vector<8x64x128xf32>
    %cst_38 = arith.constant dense<0.000000e+00> : vector<64x128xf32>
    %123 = vector.multi_reduction <add>, %122, %cst_38 [0] : vector<8x64x128xf32> to vector<64x128xf32>
    %124 = arith.truncf %123 : vector<64x128xf32> to vector<64x128xbf16>
    %c1 = arith.constant 1 : index
    %c0_39 = arith.constant 0 : index
    %c0_40 = arith.constant 0 : index
    %125 = vector.load %arg5[%c1, %c0_39, %c0_40] : memref<2x64x128xbf16, #tpu.memory_space<vmem>>, vector<1x64x128xbf16>
    %126 = vector.shape_cast %125 : vector<1x64x128xbf16> to vector<64x128xbf16>
    %127 = vector.shape_cast %124 : vector<64x128xbf16> to vector<1x64x128xbf16>
    tpu.vector_store %arg5[%c1, %c0_39, %c0_40], %127 {strides = array<i32>} : memref<2x64x128xbf16, #tpu.memory_space<vmem>>, vector<1x64x128xbf16>,
    %128 = vector.broadcast %1 : vector<8x1x128xf32> to vector<8x64x128xf32>
    %129 = arith.mulf %120, %128 : vector<8x64x128xf32>
    %cst_41 = arith.constant dense<0.000000e+00> : vector<64x128xf32>
    %130 = vector.multi_reduction <add>, %129, %cst_41 [0] : vector<8x64x128xf32> to vector<64x128xf32>
    %131 = arith.truncf %130 : vector<64x128xf32> to vector<64x128xbf16>
    %c1_42 = arith.constant 1 : index
    %c0_43 = arith.constant 0 : index
    %c0_44 = arith.constant 0 : index
    %132 = vector.load %arg6[%c1_42, %c0_43, %c0_44] : memref<2x64x128xbf16, #tpu.memory_space<vmem>>, vector<1x64x128xbf16>
    %133 = vector.shape_cast %132 : vector<1x64x128xbf16> to vector<64x128xbf16>
    %134 = vector.shape_cast %131 : vector<64x128xbf16> to vector<1x64x128xbf16>
    tpu.vector_store %arg6[%c1_42, %c0_43, %c0_44], %134 {strides = array<i32>} : memref<2x64x128xbf16, #tpu.memory_space<vmem>>, vector<1x64x128xbf16>,
    return
  }
  func.func @transform_0(%arg0: i32) -> (i32, i32, i32) {
    %c0_i32 = arith.constant 0 : i32
    %c0_i32_0 = arith.constant 0 : i32
    %c0_i32_1 = arith.constant 0 : i32
    %c0_i32_2 = arith.constant 0 : i32
    return %c0_i32, %c0_i32_0, %c0_i32_1 : i32, i32, i32
  }
  func.func @transform_1(%arg0: i32) -> (i32, i32, i32) {
    %c0_i32 = arith.constant 0 : i32
    %c0_i32_0 = arith.constant 0 : i32
    %c0_i32_1 = arith.constant 0 : i32
    return %arg0, %c0_i32, %c0_i32_0 : i32, i32, i32
  }
  func.func @transform_2(%arg0: i32) -> (i32, i32, i32) {
    %c0_i32 = arith.constant 0 : i32
    %c0_i32_0 = arith.constant 0 : i32
    %c0_i32_1 = arith.constant 0 : i32
    return %arg0, %c0_i32, %c0_i32_0 : i32, i32, i32
  }
  func.func @transform_3(%arg0: i32) -> (i32, i32) {
    %c0_i32 = arith.constant 0 : i32
    %c0_i32_0 = arith.constant 0 : i32
    %c0_i32_1 = arith.constant 0 : i32
    return %c0_i32, %c0_i32_0 : i32, i32
  }
  func.func @transform_4(%arg0: i32) -> (i32, i32, i32) {
    %c0_i32 = arith.constant 0 : i32
    %c0_i32_0 = arith.constant 0 : i32
    %c0_i32_1 = arith.constant 0 : i32
    return %arg0, %c0_i32, %c0_i32_0 : i32, i32, i32
  }
  func.func @transform_5(%arg0: i32) -> (i32, i32, i32) {
    %c0_i32 = arith.constant 0 : i32
    %c0_i32_0 = arith.constant 0 : i32
    %c0_i32_1 = arith.constant 0 : i32
    return %arg0, %c0_i32, %c0_i32_0 : i32, i32, i32
  }
}

</mosaic_0001>

<bundles_post_ra>
// kernel: low_mixer_forward.1
= control target key start
LH: loop header
LB: loop body
LE: loop exit
PB: predicated region body
PF: predicated region fallthrough
CT: control target
= control target key end

     0   :  { %s10257_s18 = smov 0   ;;  %s15766_s0 = inlined_call_operand.vmem [shape: bf16[8,1,128], index: 0, kind: input, shape index: {}]   ;;  %s15767_s1 = inlined_call_operand.vmem [shape: bf16[8,64,128], index: 1, kind: input, shape index: {}]   ;;  %s15768_s2 = inlined_call_operand.vmem [shape: bf16[8,64,128], index: 2, kind: input, shape index: {}]   ;;  %s15769_s3 = inlined_call_operand.vmem [shape: bf16[128,384], index: 3, kind: input, shape index: {}]   ;;  %s15770_s4 = inlined_call_operand.vmem [shape: bf16[8,64,128], index: 4, kind: output, shape index: {0}]   ;;  %s15771_s5 = inlined_call_operand.vmem [shape: bf16[8,64,128], index: 5, kind: output, shape index: {1}]  }
   0x1 LB: > { %s7724_s19 = sadd.s32 4294967295, %s10224_s18   ;;  %p7728_p0 = scmp.ge.s32.totalorder %s10224_s18, 1  ;;  %s10224_s18 = sphi %s10257_s18, %s16_s18  }
   0x2   : > { %p204_p1 = scmp.lt.s32.totalorder %s10224_s18, 5 }
   0x4   : > { %p205_p2 = pnand %p7728_p0, %p204_p1 }
   0x6   : > { %208 = sbr.rel (%p205_p2) target bundleno = 2349 (0x92d), region = 36 }
   0xd   : > { %v10268_v0 = vld [vmem:[%s15769_s3 + $0x4] ss:$12 sps:$4 sm:$0xff]   ;;  %v10273_v1 = vld [vmem:[%s15769_s3 + $0x8] ss:$12 sps:$4 sm:$0xff]   ;;  %v10226_v2 = vmov 0   ;;  %s7729_s26 = sshll.u32 %s7724_s19, 1 }
   0xe   : > { %563 = vmatprep.mubr.bf16.mxu0 %v10226_v2  ;;  %531 = vmatprep.subr.bf16.mxu0 %v10268_v0  ;;  %v10280_v3 = vld [vmem:[%s15769_s3] ss:$12 sps:$4 sm:$0xff]   ;;  %v10286_v4 = vld [vmem:[%s15769_s3 + $0x1c] ss:$12 sps:$4 sm:$0xff]   ;;  %v10298_v6 = vld [vmem:[%s15769_s3 + $0x18] ss:$12 sps:$4 sm:$0xff]  }
   0xf   : > { %8425 = vmatprep.subr.bf16.mxu1 %v10273_v1  ;;  %532 = vmatpush1.bf16.msra.mxu0 %v10280_v3  ;;  %v10293_v5 = vld [vmem:[%s15769_s3 + $0x20] ss:$12 sps:$4 sm:$0xff]   ;;  %v10310_v8 = vld [vmem:[%s15769_s3 + $0x38] ss:$12 sps:$4 sm:$0xff]   ;;  %p247_p3 = scmp.lt.s32.totalorder %s7729_s26, 7  ;;  %vm1845_vm0 = vcmask 523264  }
  0x10   : > { %8426 = vmatpush3.bf16.msra.mxu1 %v10273_v1  ;;  %533 = vmatprep.subr.bf16.mxu0 %v10286_v4  ;;  %v10304_v7 = vld [vmem:[%s15769_s3 + $0x34] ss:$12 sps:$4 sm:$0xff]   ;;  %v10315_v9 = vld [vmem:[%s15769_s3 + $0x30] ss:$12 sps:$4 sm:$0xff]   ;;  %v10322_v10 = vld [vmem:[%s15769_s3 + $0x4c] ss:$12 sps:$4 sm:$0xff]  }
  0x11   : > { %8427 = vmatprep.subr.bf16.mxu1 %v10293_v5  ;;  %v10329_v11 = vld [vmem:[%s15769_s3 + $0x50] ss:$12 sps:$4 sm:$0xff]   ;;  %s18250_s26 = smov (!%p247_p3, %s7729_s26), 7  ;;  %v10336_v12 = vld [vmem:[%s15769_s3 + $0x48] ss:$12 sps:$4 sm:$0xff]  }
  0x12   : > { %v9090_v13 = vld [vmem:[%s15769_s3 + $0x64] ss:$12 sps:$4 sm:$0xff]   ;;  %v10346_v14 = vld [vmem:[%s15769_s3 + $0x68] ss:$12 sps:$4 sm:$0xff]   ;;  %s10348_s25 = sshll.u32 %s18250_s26, 5 }
  0x13   : > { %534 = vmatpush1.bf16.msra.mxu0 %v10298_v6  ;;  %v10353_v15 = vld [vmem:[%s15769_s3 + $0x60] ss:$12 sps:$4 sm:$0xff]   ;;  %v10360_v16 = vld [vmem:[%s15769_s3 + $0x7c] ss:$12 sps:$4 sm:$0xff]   ;;  %s10372_s9 = scalar_lea.vmem %s15767_s1, %s10348_s25  ;;  %v10377_v18 = vld [vmem:[%s15769_s3 + $0x78] ss:$12 sps:$4 sm:$0xff]   ;;  %s10413_s27 = scalar_lea.vmem %s15768_s2, %s10348_s25 }
  0x14   : > { %8428 = vmatpush3.bf16.msra.mxu1 %v10293_v5  ;;  %535 = vmatprep.subr.bf16.mxu0 %v10304_v7  ;;  %v10366_v17 = vld [vmem:[%s15769_s3 + $0x80] ss:$12 sps:$4 sm:$0xff]   ;;  %v10392_v21 = vld [vmem:[%s15769_s3 + $0x98] ss:$12 sps:$4 sm:$0xff]   ;;  %v9101_v22 = vld [vmem:[%s15769_s3 + $0x90] ss:$12 sps:$4 sm:$0xff]   ;;  %s13436_s15 = scalar_lea.vmem %s15770_s4, %s10348_s25  ;;  %s13447_s19 = scalar_lea.vmem %s15771_s5, %s10348_s25 }
  0x15   : > { %8429 = vmatprep.subr.bf16.mxu1 %v10310_v8  ;;  %v10382_v19 = vld [vmem:[%s15769_s3 + $0x94] ss:$12 sps:$4 sm:$0xff]   ;;  %v9102_v23 = vld [vmem:[%s15769_s3 + $0xac] ss:$12 sps:$4 sm:$0xff]   ;;  %v10407_v24 = vld [vmem:[%s15769_s3 + $0xb0] ss:$12 sps:$4 sm:$0xff]  }
  0x16   : > { %v9106_v20 = vld [vmem:[%s10372_s9] sm:$0xff]   ;;  %v9105_v25 = vld [vmem:[%s15769_s3 + $0xa8] ss:$12 sps:$4 sm:$0xff]   ;;  %v9109_v28 = vld [vmem:[%s10372_s9 + $0x18] sm:$0xff]  }
  0x17   : > { %536 = vmatpush1.bf16.msra.mxu0 %v10315_v9  ;;  %8441 = vmatprep.mubr.bf16.mxu1 %v9106_v20  ;;  %v9107_v26 = vld [vmem:[%s10372_s9 + $0x8] sm:$0xff]   ;;  %v9108_v27 = vld [vmem:[%s10372_s9 + $0x10] sm:$0xff]   ;;  %v9110_v29 = vld [vmem:[%s10372_s9 + $0x20] sm:$0xff]  }
  0x18   : > { %8430 = vmatpush3.bf16.msra.mxu1 %v10310_v8  ;;  %537 = vmatprep.subr.bf16.mxu0 %v10322_v10  ;;  %v9111_v30 = vld [vmem:[%s10372_s9 + $0x28] sm:$0xff]   ;;  %v9112_v31 = vld [vmem:[%s10372_s9 + $0x30] sm:$0xff]   ;;  %v9113_v32 = vld [vmem:[%s10372_s9 + $0x38] sm:$0xff]  }
  0x19   : > { %8431 = vmatprep.subr.bf16.mxu1 %v10329_v11  ;;  %v9114_v33 = vld [vmem:[%s10413_s27] sm:$0xff]   ;;  %v9115_v34 = vld [vmem:[%s10413_s27 + $0x8] sm:$0xff]   ;;  %v9116_v35 = vld [vmem:[%s10413_s27 + $0x10] sm:$0xff]  }
  0x1a   : > { %v9117_v36 = vld [vmem:[%s10413_s27 + $0x18] sm:$0xff]   ;;  %v9118_v37 = vld [vmem:[%s10413_s27 + $0x20] sm:$0xff]   ;;  %v9119_v38 = vld [vmem:[%s10413_s27 + $0x28] sm:$0xff]  }
  0x1b   : > { %538 = vmatpush1.bf16.msra.mxu0 %v10336_v12  ;;  %v9120_v39 = vld [vmem:[%s10413_s27 + $0x30] sm:$0xff]   ;;  %v9121_v40 = vld [vmem:[%s10413_s27 + $0x38] sm:$0xff]  }
  0x1c   : > { %8432 = vmatpush3.bf16.msra.mxu1 %v10329_v11  ;;  %539 = vmatprep.subr.bf16.mxu0 %v9090_v13 }
  0x1d   : > { %8433 = vmatprep.subr.bf16.mxu1 %v10346_v14 }
  0x1f   : > { %540 = vmatpush1.bf16.msra.mxu0 %v10353_v15 }
  0x20   : > { %8434 = vmatpush3.bf16.msra.mxu1 %v10346_v14  ;;  %541 = vmatprep.subr.bf16.mxu0 %v10360_v16 }
  0x21   : > { %8435 = vmatprep.subr.bf16.mxu1 %v10366_v17 }
  0x23   : > { %542 = vmatpush1.bf16.msra.mxu0 %v10377_v18 }
  0x24   : > { %8436 = vmatpush3.bf16.msra.mxu1 %v10366_v17  ;;  %543 = vmatprep.subr.bf16.mxu0 %v10382_v19 }
  0x25   : > { %8437 = vmatprep.subr.bf16.mxu1 %v10392_v21 }
  0x27   : > { %544 = vmatpush1.bf16.msra.mxu0 %v9101_v22 }
  0x28   : > { %8438 = vmatpush3.bf16.msra.mxu1 %v10392_v21  ;;  %545 = vmatprep.subr.bf16.mxu0 %v9102_v23 }
  0x29   : > { %8439 = vmatprep.subr.bf16.mxu1 %v10407_v24 }
  0x2b   : > { %546 = vmatpush1.bf16.msra.mxu0 %v9105_v25 }
  0x2c   : > { %8440 = vmatpush3.bf16.msra.mxu1 %v10407_v24  ;;  %8457 = vmatprep.subr.bf16.mxu0 %v10273_v1 }
  0x2d   : > { %789 = vmatprep.subr.bf16.mxu1 %v10268_v0 }
  0x2e   : > { %564 = vmatmul.mubr.bf16.vlgmr.msra.gmra.mrb[0].mxu0 %v9106_v20 }
  0x2f   : > { %8442 = vmatmul.mubr.bf16.vlgmr.msra.gmra.mrb[0].mxu1 %v9107_v26  ;;  %8458 = vmatpush3.bf16.msra.mxu0 %v10273_v1 }
  0x30   : > { %790 = vmatpush1.bf16.msra.mxu1 %v10280_v3  ;;  %573 = vmatprep.mubr.bf16.mxu0 %v10226_v2 }
  0x31   : > { %791 = vmatprep.subr.bf16.mxu1 %v10286_v4  ;;  %8445 = vmatprep.mubr.bf16.mxu1 %v9108_v27 }
  0x32   : > { %8459 = vmatprep.subr.bf16.mxu0 %v10293_v5 }
  0x33   : > { %8460 = vmatpush3.bf16.msra.mxu0 %v10293_v5 }
  0x34   : > { %792 = vmatpush1.bf16.msra.mxu1 %v10298_v6  ;;  %8461 = vmatprep.subr.bf16.mxu0 %v10310_v8 }
  0x35   : > { %793 = vmatprep.subr.bf16.mxu1 %v10304_v7 }
  0x36   : > { %574 = vmatmul.mubr.bf16.gmra.mrb[4].mxu0 %v9107_v26 }
  0x37   : > { %8446 = vmatmul.mubr.bf16.gmra.mrb[4].mxu1 %v9109_v28  ;;  %583 = vmatprep.mubr.bf16.mxu0 %v10226_v2 }
  0x38   : > { %794 = vmatpush1.bf16.msra.mxu1 %v10315_v9  ;;  %8449 = vmatprep.mubr.bf16.mxu1 %v9110_v29 }
  0x39   : > { %795 = vmatprep.subr.bf16.mxu1 %v10322_v10  ;;  %8462 = vmatpush3.bf16.msra.mxu0 %v10310_v8 }
  0x3a   : > { %8463 = vmatprep.subr.bf16.mxu0 %v10329_v11 }
  0x3c   : > { %796 = vmatpush1.bf16.msra.mxu1 %v10336_v12 }
  0x3d   : > { %797 = vmatprep.subr.bf16.mxu1 %v9090_v13  ;;  %8464 = vmatpush3.bf16.msra.mxu0 %v10329_v11 }
  0x3e   : > { %584 = vmatmul.mubr.bf16.gmra.mrb[8].mxu0 %v9108_v27  ;;  %8465 = vmatprep.subr.bf16.mxu0 %v10346_v14 }
  0x3f   : > { %8450 = vmatmul.mubr.bf16.gmra.mrb[8].mxu1 %v9111_v30  ;;  %593 = vmatprep.mubr.bf16.mxu0 %v10226_v2 }
  0x40   : > { %798 = vmatpush1.bf16.msra.mxu1 %v10353_v15  ;;  %8453 = vmatprep.mubr.bf16.mxu1 %v9112_v31 }
  0x41   : > { %799 = vmatprep.subr.bf16.mxu1 %v10360_v16  ;;  %8466 = vmatpush3.bf16.msra.mxu0 %v10346_v14 }
  0x42   : > { %8467 = vmatprep.subr.bf16.mxu0 %v10366_v17 }
  0x44   : > { %800 = vmatpush1.bf16.msra.mxu1 %v10377_v18 }
  0x45   : > { %801 = vmatprep.subr.bf16.mxu1 %v10382_v19  ;;  %8468 = vmatpush3.bf16.msra.mxu0 %v10366_v17 }
  0x46   : > { %594 = vmatmul.mubr.bf16.gmra.mrb[12].mxu0 %v9109_v28  ;;  %8469 = vmatprep.subr.bf16.mxu0 %v10392_v21 }
  0x47   : > { %8454 = vmatmul.mubr.bf16.gmra.mrb[12].mxu1 %v9113_v32  ;;  %603 = vmatprep.mubr.bf16.mxu0 %v10226_v2 }
  0x48   : > { %802 = vmatpush1.bf16.msra.mxu1 %v9101_v22  ;;  %821 = vmatprep.mubr.bf16.mxu1 %v10226_v2 }
  0x49   : > { %803 = vmatprep.subr.bf16.mxu1 %v9102_v23  ;;  %8470 = vmatpush3.bf16.msra.mxu0 %v10392_v21 }
  0x4a   : > { %8471 = vmatprep.subr.bf16.mxu0 %v10407_v24 }
  0x4c   : > { %804 = vmatpush1.bf16.msra.mxu1 %v9105_v25 }
  0x4d   : > { %8472 = vmatpush3.bf16.msra.mxu0 %v10407_v24 }
  0x4e   : > { %604 = vmatmul.mubr.bf16.gmra.mrb[16].mxu0 %v9110_v29 }
  0x4f   : > { %822 = vmatmul.mubr.bf16.vlgmr.msra.gmra.mrb[16].mxu1 %v9114_v33  ;;  %613 = vmatprep.mubr.bf16.mxu0 %v10226_v2 }
  0x50   : > { %831 = vmatprep.mubr.bf16.mxu1 %v10226_v2 }
  0x56   : > { %614 = vmatmul.mubr.bf16.gmra.mrb[20].mxu0 %v9111_v30 }
  0x57   : > { %832 = vmatmul.mubr.bf16.gmra.mrb[20].mxu1 %v9115_v34  ;;  %623 = vmatprep.mubr.bf16.mxu0 %v10226_v2 }
  0x58   : > { %841 = vmatprep.mubr.bf16.mxu1 %v10226_v2 }
  0x5e   : > { %624 = vmatmul.mubr.bf16.gmra.mrb[24].mxu0 %v9112_v31 }
  0x5f   : > { %842 = vmatmul.mubr.bf16.gmra.mrb[24].mxu1 %v9116_v35  ;;  %633 = vmatprep.mubr.bf16.mxu0 %v10226_v2 }
  0x60   : > { %851 = vmatprep.mubr.bf16.mxu1 %v10226_v2 }
  0x66   : > { %634 = vmatmul.mubr.bf16.gmra.mrb[28].mxu0 %v9113_v32 }
  0x67   : > { %852 = vmatmul.mubr.bf16.gmra.mrb[28].mxu1 %v9117_v36  ;;  %8473 = vmatprep.mubr.bf16.mxu0 %v9114_v33 }
  0x68   : > { %861 = vmatprep.mubr.bf16.mxu1 %v10226_v2 }
  0x6e   : > { %8474 = vmatmul.mubr.bf16.vlgmr.msra.gmra.mrb[32].mxu0 %v9115_v34 }
  0x6f   : > { %862 = vmatmul.mubr.bf16.gmra.mrb[32].mxu1 %v9118_v37  ;;  %8477 = vmatprep.mubr.bf16.mxu0 %v9116_v35 }
  0x70   : > { %871 = vmatprep.mubr.bf16.mxu1 %v10226_v2 }
  0x76   : > { %8478 = vmatmul.mubr.bf16.gmra.mrb[36].mxu0 %v9117_v36 }
  0x77   : > { %872 = vmatmul.mubr.bf16.gmra.mrb[36].mxu1 %v9119_v38  ;;  %8481 = vmatprep.mubr.bf16.mxu0 %v9118_v37 }
  0x78   : > { %881 = vmatprep.mubr.bf16.mxu1 %v10226_v2 }
  0x7e   : > { %8482 = vmatmul.mubr.bf16.gmra.mrb[40].mxu0 %v9119_v38 }
  0x7f   : > { %882 = vmatmul.mubr.bf16.gmra.mrb[40].mxu1 %v9120_v39  ;;  %8485 = vmatprep.mubr.bf16.mxu0 %v9120_v39 }
  0x80   : > { %891 = vmatprep.mubr.bf16.mxu1 %v10226_v2 }
  0x86   : > { %8486 = vmatmul.mubr.bf16.gmra.mrb[44].mxu0 %v9121_v40 }
  0x87   : > { %892 = vmatmul.mubr.bf16.gmra.mrb[44].mxu1 %v9121_v40 }
 0x101   : > { %v565_v41 = vpop.f32.mrb[0].mxu0 }
 0x102   : > { %v10479_v42 = vpop.f32.mrb[0].mxu1  ;;  %v567_v43 = vpop.f32.mrb[1].mxu0 }
 0x103   : > { %v10481_v44 = vpop.f32.mrb[1].mxu1  ;;  %v569_v45 = vpop.f32.mrb[2].mxu0 }
 0x104   : > { %v10483_v46 = vpop.f32.mrb[2].mxu1  ;;  %v999_v47 = vpack.c.bf16 %v569_v45, %v565_v41  ;;  %v571_v48 = vpop.f32.mrb[3].mxu0 }
 0x105   : > { %v10485_v49 = vpop.f32.mrb[3].mxu1  ;;  %v10487_v50 = vpack.c.bf16 %v571_v48, %v567_v43 }
 0x106   : > { %8489 = vmatprep.subr.bf16.mxu0 %v999_v47 }
 0x107   : > { %8490 = vmatpush3.bf16.xpose.msra.mxu0 %v999_v47 }
 0x109   : > { %v575_v51 = vpop.f32.mrb[4].mxu0 }
 0x10a   : > { %v10489_v52 = vpop.f32.mrb[4].mxu1  ;;  %v577_v53 = vpop.f32.mrb[5].mxu0 }
 0x10b   : > { %v10491_v54 = vpop.f32.mrb[5].mxu1  ;;  %v579_v55 = vpop.f32.mrb[6].mxu0 }
 0x10c   : > { %v10493_v56 = vpop.f32.mrb[6].mxu1  ;;  %v1000_v57 = vpack.c.bf16 %v579_v55, %v575_v51  ;;  %v581_v58 = vpop.f32.mrb[7].mxu0 }
 0x10d   : > { %v10495_v59 = vpop.f32.mrb[7].mxu1  ;;  %v10497_v60 = vpack.c.bf16 %v581_v58, %v577_v53 }
 0x10e   : > { %8491 = vmatprep.subr.bf16.mxu0 %v1000_v57 }
 0x10f   : > { %8492 = vmatpush3.bf16.xpose.msra.mxu0 %v1000_v57 }
 0x111   : > { %v585_v61 = vpop.f32.mrb[8].mxu0 }
 0x112   : > { %v10499_v62 = vpop.f32.mrb[8].mxu1  ;;  %v587_v63 = vpop.f32.mrb[9].mxu0 }
 0x113   : > { %v10501_v0 = vpop.f32.mrb[9].mxu1  ;;  %v589_v1 = vpop.f32.mrb[10].mxu0 }
 0x114   : > { %v10503_v2 = vpop.f32.mrb[10].mxu1  ;;  %v1001_v3 = vpack.c.bf16 %v589_v1, %v585_v61  ;;  %v591_v4 = vpop.f32.mrb[11].mxu0 }
 0x115   : > { %v10505_v5 = vpop.f32.mrb[11].mxu1  ;;  %v10507_v6 = vpack.c.bf16 %v591_v4, %v587_v63 }
 0x116   : > { %8493 = vmatprep.subr.bf16.mxu0 %v1001_v3 }
 0x117   : > { %8494 = vmatpush3.bf16.xpose.msra.mxu0 %v1001_v3 }
 0x119   : > { %v595_v7 = vpop.f32.mrb[12].mxu0 }
 0x11a   : > { %v10509_v8 = vpop.f32.mrb[12].mxu1  ;;  %v597_v9 = vpop.f32.mrb[13].mxu0 }
 0x11b   : > { %v10511_v10 = vpop.f32.mrb[13].mxu1  ;;  %v599_v11 = vpop.f32.mrb[14].mxu0 }
 0x11c   : > { %v10513_v12 = vpop.f32.mrb[14].mxu1  ;;  %v1002_v13 = vpack.c.bf16 %v599_v11, %v595_v7  ;;  %v601_v14 = vpop.f32.mrb[15].mxu0 }
 0x11d   : > { %v10515_v15 = vpop.f32.mrb[15].mxu1  ;;  %v10517_v16 = vpack.c.bf16 %v601_v14, %v597_v9 }
 0x11e   : > { %8495 = vmatprep.subr.bf16.mxu0 %v1002_v13 }
 0x11f   : > { %8496 = vmatpush3.bf16.xpose.msra.mxu0 %v1002_v13 }
 0x120   : > { %8633 = vmatprep.subr.bf16.mxu0 %v10487_v50 }
 0x121   : > { %v605_v17 = vpop.f32.mrb[16].mxu0 }
 0x122   : > { %v823_v18 = vpop.f32.mrb[16].mxu1  ;;  %v607_v19 = vpop.f32.mrb[17].mxu0 }
 0x123   : > { %v825_v20 = vpop.f32.mrb[17].mxu1  ;;  %v609_v21 = vpop.f32.mrb[18].mxu0 }
 0x124   : > { %v827_v22 = vpop.f32.mrb[18].mxu1  ;;  %v10520_v23 = vpack.c.bf16 %v609_v21, %v605_v17  ;;  %v611_v25 = vpop.f32.mrb[19].mxu0 }
 0x125   : > { %v1015_v24 = vpack.c.bf16 %v827_v22, %v823_v18  ;;  %v829_v26 = vpop.f32.mrb[19].mxu1  ;;  %v10522_v27 = vpack.c.bf16 %v611_v25, %v607_v19 }
 0x126   : > { %16595 = vst [vmem:[#allocation2_spill] sm:$0xff] %v10520_v23  ;;  %v10524_v28 = vpack.c.bf16 %v829_v26, %v825_v20 }
 0x127   : > { %16596 = vst [vmem:[#allocation3_spill] sm:$0xff] %v10522_v27  ;;  %8561 = vmatprep.subr.bf16.mxu1 %v1015_v24 }
 0x128   : > { %8562 = vmatpush3.bf16.xpose.msra.mxu1 %v1015_v24 }
 0x129   : > { %v615_v29 = vpop.f32.mrb[20].mxu0 }
 0x12a   : > { %v833_v30 = vpop.f32.mrb[20].mxu1  ;;  %v617_v31 = vpop.f32.mrb[21].mxu0 }
 0x12b   : > { %v835_v32 = vpop.f32.mrb[21].mxu1  ;;  %v619_v33 = vpop.f32.mrb[22].mxu0 }
 0x12c   : > { %v837_v34 = vpop.f32.mrb[22].mxu1  ;;  %v10526_v35 = vpack.c.bf16 %v619_v33, %v615_v29  ;;  %v621_v37 = vpop.f32.mrb[23].mxu0 }
 0x12d   : > { %v1016_v36 = vpack.c.bf16 %v837_v34, %v833_v30  ;;  %v839_v38 = vpop.f32.mrb[23].mxu1  ;;  %v10528_v39 = vpack.c.bf16 %v621_v37, %v617_v31 }
 0x12e   : > { %16597 = vst [vmem:[#allocation4_spill] sm:$0xff] %v10526_v35  ;;  %v10530_v40 = vpack.c.bf16 %v839_v38, %v835_v32 }
 0x12f   : > { %16598 = vst [vmem:[#allocation5_spill] sm:$0xff] %v10528_v39  ;;  %8563 = vmatprep.subr.bf16.mxu1 %v1016_v36 }
 0x130   : > { %8564 = vmatpush3.bf16.xpose.msra.mxu1 %v1016_v36 }
 0x131   : > { %v625_v41 = vpop.f32.mrb[24].mxu0 }
 0x132   : > { %v843_v43 = vpop.f32.mrb[24].mxu1  ;;  %v627_v45 = vpop.f32.mrb[25].mxu0 }
 0x133   : > { %v845_v47 = vpop.f32.mrb[25].mxu1  ;;  %v629_v48 = vpop.f32.mrb[26].mxu0 }
 0x134   : > { %v847_v51 = vpop.f32.mrb[26].mxu1  ;;  %v10532_v53 = vpack.c.bf16 %v629_v48, %v625_v41  ;;  %v631_v57 = vpop.f32.mrb[27].mxu0 }
 0x135   : > { %v1017_v55 = vpack.c.bf16 %v847_v51, %v843_v43  ;;  %v849_v58 = vpop.f32.mrb[27].mxu1  ;;  %v10534_v61 = vpack.c.bf16 %v631_v57, %v627_v45 }
 0x136   : > { %16599 = vst [vmem:[#allocation6_spill] sm:$0xff] %v10532_v53  ;;  %v10536_v63 = vpack.c.bf16 %v849_v58, %v845_v47 }
 0x137   : > { %16600 = vst [vmem:[#allocation7_spill] sm:$0xff] %v10534_v61  ;;  %8565 = vmatprep.subr.bf16.mxu1 %v1017_v55 }
 0x138   : > { %8566 = vmatpush3.bf16.xpose.msra.mxu1 %v1017_v55 }
 0x139   : > { %v635_v1 = vpop.f32.mrb[28].mxu0 }
 0x13a   : > { %v853_v3 = vpop.f32.mrb[28].mxu1  ;;  %v637_v4 = vpop.f32.mrb[29].mxu0 }
 0x13b   : > { %v855_v7 = vpop.f32.mrb[29].mxu1  ;;  %v639_v9 = vpop.f32.mrb[30].mxu0 }
 0x13c   : > { %v857_v11 = vpop.f32.mrb[30].mxu1  ;;  %v10538_v13 = vpack.c.bf16 %v639_v9, %v635_v1  ;;  %v641_v17 = vpop.f32.mrb[31].mxu0 }
 0x13d   : > { %v1018_v14 = vpack.c.bf16 %v857_v11, %v853_v3  ;;  %v859_v18 = vpop.f32.mrb[31].mxu1  ;;  %v10540_v19 = vpack.c.bf16 %v641_v17, %v637_v4 }
 0x13e   : > { %16601 = vst [vmem:[#allocation8_spill] sm:$0xff] %v10538_v13  ;;  %v10542_v20 = vpack.c.bf16 %v859_v18, %v855_v7 }
 0x13f   : > { %16602 = vst [vmem:[#allocation9_spill] sm:$0xff] %v10540_v19  ;;  %8567 = vmatprep.subr.bf16.mxu1 %v1018_v14 }
 0x140   : > { %8568 = vmatpush3.bf16.xpose.msra.mxu1 %v1018_v14 }
 0x141   : > { %8705 = vmatprep.subr.bf16.mxu1 %v10524_v28  ;;  %v8475_v21 = vpop.f32.mrb[32].mxu0 }
 0x142   : > { %v1033_v22 = vmul.f32 %v8475_v21, %v10479_v42  ;;  %v936_v24 = vpop.f32.mrb[33].mxu0 }
 0x143   : > { %v1031_v25 = vmul.f32 %v936_v24, %v10481_v44  ;;  %v8476_v26 = vpop.f32.mrb[34].mxu0 }
 0x144   : > { %v7783_v29 = vmul.f32 -1.442695, %v1033_v22  ;;  %v1034_v30 = vmul.f32 %v8476_v26, %v10483_v46  ;;  %v939_v31 = vpop.f32.mrb[35].mxu0 }
 0x145   : > { %v7781_v32 = vmul.f32 -1.442695, %v1031_v25  ;;  %v1032_v33 = vmul.f32 %v939_v31, %v10485_v49  ;;  %v1182_v25 = vlaneseq }
 0x146   : > { %9122 = vpow2.f32 %v7783_v29  ;;  %v7784_v34 = vmul.f32 -1.442695, %v1034_v30 }
 0x147   : > { %9124 = vpow2.f32 %v7781_v32  ;;  %v7782_v36 = vmul.f32 -1.442695, %v1032_v33 }
 0x148   : > { %9126 = vpow2.f32 %v7784_v34 }
 0x149   : > { %9128 = vpow2.f32 %v7782_v36  ;;  %v8479_v37 = vpop.f32.mrb[36].mxu0 }
 0x14a   : > { %v1037_v42 = vmul.f32 %v8479_v37, %v10489_v52  ;;  %v952_v38 = vpop.f32.mrb[37].mxu0 }
 0x14b   : > { %v1035_v44 = vmul.f32 %v952_v38, %v10491_v54  ;;  %v8480_v41 = vpop.f32.mrb[38].mxu0  ;;  %v1183_v38 = vshrl.u32 %v1182_v25, 7 }
 0x14c   : > { %v7787_v43 = vmul.f32 -1.442695, %v1037_v42  ;;  %v1038_v46 = vmul.f32 %v8480_v41, %v10493_v56  ;;  %v955_v45 = vpop.f32.mrb[39].mxu0  ;;  %v275_v42 = vld [vmem:[%s15766_s0] sm:$0x1] }
 0x14d   : > { %v7785_v47 = vmul.f32 -1.442695, %v1035_v44  ;;  %v1036_v49 = vmul.f32 %v955_v45, %v10495_v59 }
 0x14e   : > { %9130 = vpow2.f32 %v7787_v43  ;;  %v7788_v48 = vmul.f32 -1.442695, %v1038_v46 }
 0x14f   : > { %9132 = vpow2.f32 %v7785_v47  ;;  %v7786_v51 = vmul.f32 -1.442695, %v1036_v49 }
 0x150   : > { %v9123_v55 = vpop.eup %9122  ;;  %9134 = vpow2.f32 %v7788_v48 }
 0x151   : > { %v9125_v57 = vpop.eup %9124  ;;  %v1097_v58 = vadd.f32 1.0, %v9123_v55  ;;  %9136 = vpow2.f32 %v7786_v51  ;;  %v8483_v52 = vpop.f32.mrb[40].mxu0  ;;  %v1180_v51 = vpack.i.b16 %v275_v42, %v275_v42 }
 0x152   : > { %v9127_v1 = vpop.eup %9126  ;;  %v1095_v54 = vadd.f32 1.0, %v9125_v57  ;;  %v1041_v3 = vmul.f32 %v8483_v52, %v10499_v62  ;;  %v968_v4 = vpop.f32.mrb[41].mxu0  ;;  %v10564_v52 = vsub.s32 0, %v1183_v38 }
 0x153   : > { %v9129_v56 = vpop.eup %9128  ;;  %9138 = vrcp.f32 %v1097_v58  ;;  %v1098_v7 = vadd.f32 1.0, %v9127_v1  ;;  %v1039_v59 = vmul.f32 %v968_v4, %v10501_v0  ;;  %v8484_v9 = vpop.f32.mrb[42].mxu0 }
 0x154   : > { %9140 = vrcp.f32 %v1095_v54  ;;  %v1096_v11 = vadd.f32 1.0, %v9129_v56  ;;  %v7791_v14 = vmul.f32 -1.442695, %v1041_v3  ;;  %v1042_v17 = vmul.f32 %v8484_v9, %v10503_v2  ;;  %v971_v18 = vpop.f32.mrb[43].mxu0  ;;  %16603 = vst [vmem:[#allocation10_spill] sm:$0xff] %v10564_v52 }
 0x155   : > { %9142 = vrcp.f32 %v1098_v7  ;;  %v7789_v21 = vmul.f32 -1.442695, %v1039_v59  ;;  %v1040_v22 = vmul.f32 %v971_v18, %v10505_v5  ;;  %v863_v59 = vpop.f32.mrb[32].mxu1  ;;  %v10567_v18 = vrot.slane %v1180_v51, %v10564_v52 }
 0x156   : > { %9144 = vrcp.f32 %v1096_v11  ;;  %v7792_v24 = vmul.f32 -1.442695, %v1042_v17 }
 0x157   : > { %9146 = vpow2.f32 %v7791_v14  ;;  %v7790_v62 = vmul.f32 -1.442695, %v1040_v22 }
 0x158   : > { %v9131_v26 = vpop.eup %9130  ;;  %9148 = vpow2.f32 %v7789_v21  ;;  %v10569_v21 = vpop.f32.mrb[33].mxu1 }
 0x159   : > { %v9133_v29 = vpop.eup %9132  ;;  %v1101_v0 = vadd.f32 1.0, %v9131_v26  ;;  %9150 = vpow2.f32 %v7792_v24  ;;  %v8487_v30 = vpop.f32.mrb[44].mxu0 }
 0x15a   : > { %v9135_v31 = vpop.eup %9134  ;;  %v1099_v32 = vadd.f32 1.0, %v9133_v29  ;;  %9152 = vpow2.f32 %v7790_v62  ;;  %v1045_v2 = vmul.f32 %v8487_v30, %v10509_v8  ;;  %v984_v33 = vpop.f32.mrb[45].mxu0 }
 0x15b   : > { %v9137_v34 = vpop.eup %9136  ;;  %9154 = vrcp.f32 %v1101_v0  ;;  %v1102_v5 = vadd.f32 1.0, %v9135_v31  ;;  %v1043_v36 = vmul.f32 %v984_v33, %v10511_v10  ;;  %v8488_v37 = vpop.f32.mrb[46].mxu0  ;;  %v276_v33 = vld [vmem:[%s15766_s0 + $0x1] sm:$0x1] }
 0x15c   : > { %9156 = vrcp.f32 %v1099_v32  ;;  %v1100_v44 = vadd.f32 1.0, %v9137_v34  ;;  %v7795_v41 = vmul.f32 -1.442695, %v1045_v2  ;;  %v1046_v43 = vmul.f32 %v8488_v37, %v10513_v12  ;;  %v987_v46 = vpop.f32.mrb[47].mxu0  ;;  %v867_v25 = vpop.f32.mrb[34].mxu1 }
 0x15d   : > { %v9139_v45 = vpop.eup %9138  ;;  %9158 = vrcp.f32 %v1102_v5  ;;  %v7793_v8 = vmul.f32 -1.442695, %v1043_v36  ;;  %v1044_v47 = vmul.f32 %v987_v46, %v10515_v15  ;;  %v10575_v30 = vpack.c.bf16 %v867_v25, %v863_v59  ;;  %v10577_v31 = vpop.f32.mrb[35].mxu1 }
 0x15e   : > { %v9141_v49 = vpop.eup %9140  ;;  %v1145_v48 = vsub.f32 1.0, %v9139_v45  ;;  %9160 = vrcp.f32 %v1100_v44  ;;  %v7796_v10 = vmul.f32 -1.442695, %v1046_v43  ;;  %v10582_v34 = vpop.f32.mrb[36].mxu1  ;;  %v10593_v43 = vld [vmem:[%s15766_s0 + $0x2] sm:$0x1] }
 0x15f   : > { %v9143_v55 = vpop.eup %9142  ;;  %v1143_v57 = vsub.f32 1.0, %v9141_v49  ;;  %9162 = vpow2.f32 %v7795_v41  ;;  %v7794_v58 = vmul.f32 -1.442695, %v1044_v47  ;;  %16604 = vst [vmem:[#allocation11_spill] sm:$0xff] %v10575_v30  ;;  %v10586_v42 = vpop.f32.mrb[37].mxu1  ;;  %v1187_v47 = vpack.i.b16 %v276_v33, %v276_v33 }
 0x160   : > { %v9145_v1 = vpop.eup %9144  ;;  %v1146_v54 = vsub.f32 1.0, %v9143_v55  ;;  %9164 = vpow2.f32 %v7793_v8  ;;  %v1161_v56 = vmul.f32 0.25, %v1145_v48  ;;  %v10595_v46 = vpop.f32.mrb[38].mxu1  ;;  %v278_v49 = vld [vmem:[%s15766_s0 + $0x3] sm:$0x1] }
 0x161   : > { %v9147_v12 = vpop.eup %9146  ;;  %v1144_v3 = vsub.f32 1.0, %v9145_v1  ;;  %9166 = vpow2.f32 %v7796_v10  ;;  %v1159_v11 = vmul.f32 0.25, %v1143_v57  ;;  %v10603_v48 = vld [vmem:[%s15766_s0 + $0x4] sm:$0x1]  ;;  %v10605_v10 = vpop.f32.mrb[39].mxu1  ;;  %v10631_v25 = vrot.slane %v1187_v47, %v10564_v52 }
 0x162   : > { %v9149_v4 = vpop.eup %9148  ;;  %v1162_v15 = vmul.f32 0.25, %v1146_v54  ;;  %v1105_v7 = vadd.f32 1.0, %v9147_v12  ;;  %9168 = vpow2.f32 %v7794_v58  ;;  %v280_v1 = vld [vmem:[%s15766_s0 + $0x5] sm:$0x1]  ;;  %v10610_v54 = vpop.f32.mrb[40].mxu1 }
 0x163   : > { %v9151_v9 = vpop.eup %9150  ;;  %v1160_v14 = vmul.f32 0.25, %v1144_v3  ;;  %v1103_v17 = vadd.f32 1.0, %v9149_v4  ;;  %v10619_v59 = vpop.f32.mrb[41].mxu1 }
 0x164   : > { %v9153_v22 = vpop.eup %9152  ;;  %v10571_v24 = vpack.c.bf16 %v1162_v15, %v1161_v56  ;;  %9170 = vrcp.f32 %v1105_v7  ;;  %v1106_v62 = vadd.f32 1.0, %v9151_v9  ;;  %v1194_v15 = vpack.i.b16 %v10593_v43, %v10593_v43  ;;  %v281_v7 = vld [vmem:[%s15766_s0 + $0x6] sm:$0x1] }
 0x165   : > { %v9155_v26 = vpop.eup %9154  ;;  %v10573_v29 = vpack.c.bf16 %v1160_v14, %v1159_v11  ;;  %9172 = vrcp.f32 %v1103_v17  ;;  %v1104_v0 = vadd.f32 1.0, %v9153_v22  ;;  %v887_v17 = vpop.f32.mrb[42].mxu1  ;;  %v1222_v33 = vpack.i.b16 %v281_v7, %v281_v7 }
 0x166   : > { %v9157_v32 = vpop.eup %9156  ;;  %v1149_v2 = vsub.f32 1.0, %v9155_v26  ;;  %9174 = vrcp.f32 %v1106_v62  ;;  %v1236_v41 = vmul.bf16 %v10567_v18, %v10571_v24  ;;  %v889_v26 = vpop.f32.mrb[43].mxu1 }
 0x167   : > { %v9159_v5 = vpop.eup %9158  ;;  %v1147_v36 = vsub.f32 1.0, %v9157_v32  ;;  %9176 = vrcp.f32 %v1104_v0  ;;  %v1235_v37 = vmul.bf16 %v10567_v18, %v10573_v29  ;;  %v1208_v32 = vpack.i.b16 %v10603_v48, %v10603_v48 }
 0x168   : > { %v9161_v38 = vpop.eup %9160  ;;  %v1150_v44 = vsub.f32 1.0, %v9159_v5  ;;  %v1165_v55 = vmul.f32 0.25, %v1149_v2  ;;  %v1215_v2 = vpack.i.b16 %v280_v1, %v280_v1  ;;  %v893_v5 = vpop.f32.mrb[44].mxu1 }
 0x169   : > { %v9163_v45 = vpop.eup %9162  ;;  %v1148_v8 = vsub.f32 1.0, %v9161_v38  ;;  %8497 = vmatprep.mubr.bf16.mxu0 %v1235_v37  ;;  %8569 = vmatprep.mubr.bf16.mxu1 %v1235_v37  ;;  %v1163_v3 = vmul.f32 0.25, %v1147_v36 }
 0x16a   : > { %v9165_v51 = vpop.eup %9164  ;;  %v1166_v57 = vmul.f32 0.25, %v1150_v44  ;;  %v1109_v58 = vadd.f32 1.0, %v9163_v45  ;;  %8498 = vmatmul.mubr.bf16.vlgmr.msra.gmra.mrb[48].mxu0 %v1236_v41  ;;  %8570 = vmatmul.mubr.bf16.vlgmr.msra.gmra.mrb[48].mxu1 %v1236_v41  ;;  %v895_v41 = vpop.f32.mrb[45].mxu1  ;;  %v10655_v1 = vrot.slane %v1215_v2, %v10564_v52  ;;  %v10687_v2 = vpack.c.bf16 %v889_v26, %v10619_v59 }
 0x16b   : > { %v9167_v12 = vpop.eup %9166  ;;  %v1164_v4 = vmul.f32 0.25, %v1148_v8  ;;  %v1107_v56 = vadd.f32 1.0, %v9165_v51  ;;  %8634 = vmatpush3.bf16.msra.mxu0 %v10487_v50  ;;  %8706 = vmatpush3.bf16.msra.mxu1 %v10524_v28  ;;  %v1201_v50 = vpack.i.b16 %v278_v49, %v278_v49  ;;  %v282_v28 = vld [vmem:[%s15766_s0 + $0x7] sm:$0x1]  ;;  %v897_v47 = vpop.f32.mrb[46].mxu1 }
 0x16c   : > { %v9169_v9 = vpop.eup %9168  ;;  %v10621_v11 = vpack.c.bf16 %v1166_v57, %v1165_v55  ;;  %9178 = vrcp.f32 %v1109_v58  ;;  %v1110_v14 = vadd.f32 1.0, %v9167_v12  ;;  %8635 = vmatprep.subr.bf16.mxu0 %v10497_v60  ;;  %8707 = vmatprep.subr.bf16.mxu1 %v10530_v40  ;;  %v1229_v44 = vpack.i.b16 %v282_v28, %v282_v28  ;;  %v899_v51 = vpop.f32.mrb[47].mxu1  ;;  %16609 = vst [vmem:[#allocation16_spill] sm:$0xff] %v10687_v2 }
 0x16d   : > { %v10628_v22 = vpack.c.bf16 %v1164_v4, %v1163_v3  ;;  %9180 = vrcp.f32 %v1107_v56  ;;  %v1108_v62 = vadd.f32 1.0, %v9169_v9  ;;  %v1239_v57 = vmul.bf16 %v10631_v25, %v10573_v29 }
 0x16e   : > { %v9171_v0 = vpop.eup %9170  ;;  %9182 = vrcp.f32 %v1110_v14  ;;  %v1238_v8 = vmul.bf16 %v10567_v18, %v10621_v11  ;;  %v10652_v58 = vrot.slane %v1208_v32, %v10564_v52  ;;  %v10660_v4 = vrot.slane %v1222_v33, %v10564_v52 }
 0x16f   : > { %v9173_v36 = vpop.eup %9172  ;;  %v1153_v37 = vsub.f32 1.0, %v9171_v0  ;;  %9184 = vrcp.f32 %v1108_v62  ;;  %8636 = vmatpush3.bf16.msra.mxu0 %v10497_v60  ;;  %8708 = vmatpush3.bf16.msra.mxu1 %v10530_v40  ;;  %v1237_v38 = vmul.bf16 %v10567_v18, %v10628_v22  ;;  %v10644_v60 = vrot.slane %v1194_v15, %v10564_v52 }
 0x170   : > { %v9175_v43 = vpop.eup %9174  ;;  %v1151_v45 = vsub.f32 1.0, %v9173_v36  ;;  %8637 = vmatprep.subr.bf16.mxu0 %v10507_v6  ;;  %8709 = vmatprep.subr.bf16.mxu1 %v10536_v63  ;;  %v10647_v40 = vrot.slane %v1201_v50, %v10564_v52  ;;  %v10663_v56 = vrot.slane %v1229_v44, %v10564_v52  ;;  %v1240_v9 = vmul.bf16 %v10631_v25, %v10571_v24 }
 0x171   : > { %v9177_v49 = vpop.eup %9176  ;;  %v1154_v48 = vsub.f32 1.0, %v9175_v43  ;;  %8501 = vmatprep.mubr.bf16.mxu0 %v1237_v38  ;;  %8573 = vmatprep.mubr.bf16.mxu1 %v1237_v38  ;;  %v1169_v12 = vmul.f32 0.25, %v1153_v37  ;;  %v1241_v14 = vmul.bf16 %v10631_v25, %v10628_v22  ;;  %v10681_v0 = vpack.c.bf16 %v10605_v10, %v10586_v42 }
 0x172   : > { %v1152_v55 = vsub.f32 1.0, %v9177_v49  ;;  %8502 = vmatmul.mubr.bf16.gmra.mrb[52].mxu0 %v1238_v8  ;;  %8574 = vmatmul.mubr.bf16.gmra.mrb[52].mxu1 %v1238_v8  ;;  %v1167_v15 = vmul.f32 0.25, %v1151_v45  ;;  %v10684_v32 = vpack.c.bf16 %v887_v17, %v10610_v54 }
 0x173   : > { %v1170_v3 = vmul.f32 0.25, %v1154_v48  ;;  %8638 = vmatpush3.bf16.msra.mxu0 %v10507_v6  ;;  %8710 = vmatpush3.bf16.msra.mxu1 %v10536_v63  ;;  %v10673_v6 = vpack.c.bf16 %v10577_v31, %v10569_v21  ;;  %v10677_v63 = vpack.c.bf16 %v10595_v46, %v10582_v34  ;;  %16607 = vst [vmem:[#allocation14_spill] sm:$0xff] %v10681_v0 }
 0x174   : > { %v1168_v7 = vmul.f32 0.25, %v1152_v55  ;;  %8505 = vmatprep.mubr.bf16.mxu0 %v1239_v57  ;;  %8577 = vmatprep.mubr.bf16.mxu1 %v1239_v57  ;;  %16608 = vst [vmem:[#allocation15_spill] sm:$0xff] %v10684_v32  ;;  %v10691_v21 = vpack.c.bf16 %v897_v47, %v893_v5  ;;  %v10693_v31 = vpack.c.bf16 %v899_v51, %v895_v41 }
 0x175   : > { %v4441_v50 = vpack.c.bf16 %v1170_v3, %v1169_v12  ;;  %8639 = vmatprep.subr.bf16.mxu0 %v10517_v16  ;;  %8711 = vmatprep.subr.bf16.mxu1 %v10542_v20  ;;  %16605 = vst [vmem:[#allocation12_spill] sm:$0xff] %v10673_v6  ;;  %16606 = vst [vmem:[#allocation13_spill] sm:$0xff] %v10677_v63 }
 0x176   : > { %v9179_v28 = vpop.eup %9178  ;;  %v4440_v62 = vpack.c.bf16 %v1168_v7, %v1167_v15  ;;  %16610 = vst [vmem:[#allocation17_spill] sm:$0xff] %v10691_v21  ;;  %16611 = vst [vmem:[#allocation18_spill] sm:$0xff] %v10693_v31  ;;  %v1242_v7 = vmul.bf16 %v10631_v25, %v10621_v11 }
 0x177   : > { %v9181_v33 = vpop.eup %9180  ;;  %v1157_v36 = vsub.f32 1.0, %v9179_v28  ;;  %8640 = vmatpush3.bf16.msra.mxu0 %v10517_v16  ;;  %8712 = vmatpush3.bf16.msra.mxu1 %v10542_v20  ;;  %v10696_v34 = vmul.bf16 %v4441_v50, %v10567_v18  ;;  %v10707_v20 = vmul.bf16 %v4441_v50, %v10631_v25  ;;  %v10713_v5 = vmul.bf16 %v4441_v50, %v10644_v60 }
 0x178   : > { %v9183_v42 = vpop.eup %9182  ;;  %v1155_v46 = vsub.f32 1.0, %v9181_v33  ;;  %8777 = vmatprep.subr.bf16.mxu0 %v10520_v23  ;;  %8849 = vmatprep.subr.bf16.mxu1 %v10575_v30  ;;  %v10701_v10 = vmul.bf16 %v4440_v62, %v10567_v18  ;;  %v10704_v16 = vmul.bf16 %v4440_v62, %v10631_v25  ;;  %v10710_v26 = vmul.bf16 %v4440_v62, %v10644_v60 }
 0x179   : > { %16612 = vst [vmem:[#allocation19_spill] sm:$0xff] %v10696_v34  ;;  %16615 = vst [vmem:[#allocation22_spill] sm:$0xff] %v10707_v20  ;;  %v9185_v54 = vpop.eup %9184  ;;  %v1173_v59 = vmul.f32 0.25, %v1157_v36  ;;  %v1158_v17 = vsub.f32 1.0, %v9183_v42  ;;  %v10716_v44 = vmul.bf16 %v4440_v62, %v10647_v40  ;;  %v10719_v41 = vmul.bf16 %v4441_v50, %v10647_v40 }
 0x17a   : > { %16613 = vst [vmem:[#allocation20_spill] sm:$0xff] %v10701_v10  ;;  %16614 = vst [vmem:[#allocation21_spill] sm:$0xff] %v10704_v16  ;;  %v1171_v37 = vmul.f32 0.25, %v1155_v46  ;;  %v1156_v38 = vsub.f32 1.0, %v9185_v54  ;;  %8506 = vmatmul.mubr.bf16.gmra.mrb[56].mxu0 %v1240_v9  ;;  %8578 = vmatmul.mubr.bf16.gmra.mrb[56].mxu1 %v1240_v9  ;;  %v10722_v45 = vmul.bf16 %v4440_v62, %v10652_v58 }
 0x17b   : > { %16616 = vst [vmem:[#allocation23_spill] sm:$0xff] %v10710_v26  ;;  %16617 = vst [vmem:[#allocation24_spill] sm:$0xff] %v10713_v5  ;;  %v1174_v43 = vmul.f32 0.25, %v1158_v17  ;;  %8509 = vmatprep.mubr.bf16.mxu0 %v1241_v14  ;;  %8581 = vmatprep.mubr.bf16.mxu1 %v1241_v14  ;;  %v10725_v8 = vmul.bf16 %v4441_v50, %v10652_v58  ;;  %v10728_v47 = vmul.bf16 %v4440_v62, %v10655_v1 }
 0x17c   : > { %16618 = vst [vmem:[#allocation25_spill] sm:$0xff] %v10716_v44  ;;  %16619 = vst [vmem:[#allocation26_spill] sm:$0xff] %v10719_v41  ;;  %v1172_v49 = vmul.f32 0.25, %v1156_v38  ;;  %v10731_v48 = vmul.bf16 %v4441_v50, %v10655_v1  ;;  %v10734_v51 = vmul.bf16 %v4440_v62, %v10660_v4  ;;  %v10737_v55 = vmul.bf16 %v4441_v50, %v10660_v4 }
 0x17d   : > { %16620 = vst [vmem:[#allocation27_spill] sm:$0xff] %v10722_v45  ;;  %16621 = vst [vmem:[#allocation28_spill] sm:$0xff] %v10725_v8  ;;  %v4443_v57 = vpack.c.bf16 %v1174_v43, %v1173_v59  ;;  %v10740_v12 = vmul.bf16 %v4440_v62, %v10663_v56  ;;  %v10743_v3 = vmul.bf16 %v4441_v50, %v10663_v56 }
 0x17e   : > { %16622 = vst [vmem:[#allocation29_spill] sm:$0xff] %v10728_v47  ;;  %16623 = vst [vmem:[#allocation30_spill] sm:$0xff] %v10731_v48  ;;  %v4442_v15 = vpack.c.bf16 %v1172_v49, %v1171_v37  ;;  %v1243_v9 = vmul.bf16 %v10644_v60, %v10573_v29  ;;  %v1244_v49 = vmul.bf16 %v10644_v60, %v10571_v24 }
 0x17f   : > { %16624 = vst [vmem:[#allocation31_spill] sm:$0xff] %v10734_v51  ;;  %16625 = vst [vmem:[#allocation32_spill] sm:$0xff] %v10737_v55  ;;  %v10750_v14 = vmul.bf16 %v4443_v57, %v10567_v18  ;;  %v10753_v28 = vmul.bf16 %v4443_v57, %v10631_v25  ;;  %v10756_v33 = vmul.bf16 %v4443_v57, %v10644_v60 }
 0x180   : > { %16626 = vst [vmem:[#allocation33_spill] sm:$0xff] %v10740_v12  ;;  %16627 = vst [vmem:[#allocation34_spill] sm:$0xff] %v10743_v3  ;;  %v10759_v62 = vmul.bf16 %v4443_v57, %v10647_v40  ;;  %v10762_v50 = vmul.bf16 %v4442_v15, %v10567_v18  ;;  %v10765_v36 = vmul.bf16 %v4442_v15, %v10631_v25 }
 0x181   : > { %16628 = vst [vmem:[#allocation35_spill] sm:$0xff] %v10750_v14  ;;  %16629 = vst [vmem:[#allocation36_spill] sm:$0xff] %v10753_v28  ;;  %v10768_v42 = vmul.bf16 %v4442_v15, %v10644_v60  ;;  %v10771_v46 = vmul.bf16 %v4442_v15, %v10647_v40  ;;  %v10774_v54 = vmul.bf16 %v4442_v15, %v10652_v58 }
 0x182   : > { %16630 = vst [vmem:[#allocation37_spill] sm:$0xff] %v10756_v33  ;;  %16631 = vst [vmem:[#allocation38_spill] sm:$0xff] %v10759_v62  ;;  %v10777_v59 = vmul.bf16 %v4443_v57, %v10652_v58  ;;  %v10780_v17 = vmul.bf16 %v4442_v15, %v10655_v1  ;;  %v10783_v18 = vmul.bf16 %v4443_v57, %v10655_v1  ;;  %8510 = vmatmul.mubr.bf16.gmra.mrb[60].mxu0 %v1242_v7 }
 0x183   : > { %16632 = vst [vmem:[#allocation39_spill] sm:$0xff] %v10762_v50  ;;  %16633 = vst [vmem:[#allocation40_spill] sm:$0xff] %v10765_v36  ;;  %8582 = vmatmul.mubr.bf16.gmra.mrb[60].mxu1 %v1242_v7  ;;  %v10786_v25 = vmul.bf16 %v4442_v15, %v10660_v4  ;;  %v10789_v37 = vmul.bf16 %v4443_v57, %v10660_v4  ;;  %v10792_v38 = vmul.bf16 %v4442_v15, %v10663_v56 }
 0x184   : > { %16634 = vst [vmem:[#allocation41_spill] sm:$0xff] %v10768_v42  ;;  %16635 = vst [vmem:[#allocation42_spill] sm:$0xff] %v10771_v46  ;;  %8513 = vmatprep.mubr.bf16.mxu0 %v1243_v9  ;;  %8585 = vmatprep.mubr.bf16.mxu1 %v1243_v9  ;;  %v10795_v43 = vmul.bf16 %v4443_v57, %v10663_v56  ;;  %v1245_v7 = vmul.bf16 %v10644_v60, %v10628_v22 }
 0x185   : > { %16636 = vst [vmem:[#allocation43_spill] sm:$0xff] %v10774_v54  ;;  %16637 = vst [vmem:[#allocation44_spill] sm:$0xff] %v10777_v59  ;;  %v1246_v3 = vmul.bf16 %v10644_v60, %v10621_v11  ;;  %v1247_v15 = vmul.bf16 %v10647_v40, %v10573_v29  ;;  %v1248_v57 = vmul.bf16 %v10647_v40, %v10571_v24 }
 0x186   : > { %16638 = vst [vmem:[#allocation45_spill] sm:$0xff] %v10780_v17  ;;  %16639 = vst [vmem:[#allocation46_spill] sm:$0xff] %v10783_v18  ;;  %v1249_v9 = vmul.bf16 %v10647_v40, %v10628_v22  ;;  %v1250_v60 = vmul.bf16 %v10647_v40, %v10621_v11  ;;  %v1254_v40 = vmul.bf16 %v10652_v58, %v10621_v11 }
 0x187   : > { %16640 = vst [vmem:[#allocation47_spill] sm:$0xff] %v10786_v25  ;;  %16641 = vst [vmem:[#allocation48_spill] sm:$0xff] %v10789_v37 }
 0x188   : > { %16642 = vst [vmem:[#allocation49_spill] sm:$0xff] %v10792_v38  ;;  %16643 = vst [vmem:[#allocation50_spill] sm:$0xff] %v10795_v43 }
 0x18a   : > { %8514 = vmatmul.mubr.bf16.gmra.mrb[64].mxu0 %v1244_v49 }
 0x18b   : > { %8586 = vmatmul.mubr.bf16.gmra.mrb[64].mxu1 %v1244_v49  ;;  %8517 = vmatprep.mubr.bf16.mxu0 %v1245_v7  ;;  %v1251_v49 = vmul.bf16 %v10652_v58, %v10573_v29 }
 0x18c   : > { %8589 = vmatprep.mubr.bf16.mxu1 %v1245_v7  ;;  %v1253_v7 = vmul.bf16 %v10652_v58, %v10628_v22 }
 0x192   : > { %8518 = vmatmul.mubr.bf16.gmra.mrb[68].mxu0 %v1246_v3 }
 0x193   : > { %8590 = vmatmul.mubr.bf16.gmra.mrb[68].mxu1 %v1246_v3  ;;  %8521 = vmatprep.mubr.bf16.mxu0 %v1247_v15  ;;  %v1252_v3 = vmul.bf16 %v10652_v58, %v10571_v24  ;;  %v1258_v58 = vmul.bf16 %v10655_v1, %v10621_v11 }
 0x194   : > { %8593 = vmatprep.mubr.bf16.mxu1 %v1247_v15  ;;  %v1255_v15 = vmul.bf16 %v10655_v1, %v10573_v29 }
 0x19a   : > { %8522 = vmatmul.mubr.bf16.gmra.mrb[72].mxu0 %v1248_v57 }
 0x19b   : > { %8594 = vmatmul.mubr.bf16.gmra.mrb[72].mxu1 %v1248_v57  ;;  %8525 = vmatprep.mubr.bf16.mxu0 %v1249_v9  ;;  %v1256_v57 = vmul.bf16 %v10655_v1, %v10571_v24 }
 0x19c   : > { %8597 = vmatprep.mubr.bf16.mxu1 %v1249_v9  ;;  %v1257_v9 = vmul.bf16 %v10655_v1, %v10628_v22  ;;  %v1262_v1 = vmul.bf16 %v10660_v4, %v10621_v11 }
 0x1a2   : > { %8526 = vmatmul.mubr.bf16.gmra.mrb[76].mxu0 %v1250_v60 }
 0x1a3   : > { %8598 = vmatmul.mubr.bf16.gmra.mrb[76].mxu1 %v1250_v60  ;;  %8529 = vmatprep.mubr.bf16.mxu0 %v1251_v49  ;;  %v1259_v60 = vmul.bf16 %v10660_v4, %v10573_v29 }
 0x1a4   : > { %8601 = vmatprep.mubr.bf16.mxu1 %v1251_v49  ;;  %v1260_v49 = vmul.bf16 %v10660_v4, %v10571_v24 }
 0x1aa   : > { %8530 = vmatmul.mubr.bf16.gmra.mrb[80].mxu0 %v1252_v3 }
 0x1ab   : > { %8602 = vmatmul.mubr.bf16.gmra.mrb[80].mxu1 %v1252_v3  ;;  %8533 = vmatprep.mubr.bf16.mxu0 %v1253_v7  ;;  %v1261_v3 = vmul.bf16 %v10660_v4, %v10628_v22  ;;  %v1266_v4 = vmul.bf16 %v10663_v56, %v10621_v11 }
 0x1ac   : > { %8605 = vmatprep.mubr.bf16.mxu1 %v1253_v7  ;;  %v1263_v7 = vmul.bf16 %v10663_v56, %v10573_v29 }
 0x1b2   : > { %8534 = vmatmul.mubr.bf16.gmra.mrb[84].mxu0 %v1254_v40 }
 0x1b3   : > { %8606 = vmatmul.mubr.bf16.gmra.mrb[84].mxu1 %v1254_v40  ;;  %8537 = vmatprep.mubr.bf16.mxu0 %v1255_v15  ;;  %v1264_v40 = vmul.bf16 %v10663_v56, %v10571_v24 }
 0x1b4   : > { %8609 = vmatprep.mubr.bf16.mxu1 %v1255_v15  ;;  %v1265_v15 = vmul.bf16 %v10663_v56, %v10628_v22 }
 0x1ba   : > { %8538 = vmatmul.mubr.bf16.gmra.mrb[88].mxu0 %v1256_v57 }
 0x1bb   : > { %8610 = vmatmul.mubr.bf16.gmra.mrb[88].mxu1 %v1256_v57  ;;  %8541 = vmatprep.mubr.bf16.mxu0 %v1257_v9 }
 0x1bc   : > { %8613 = vmatprep.mubr.bf16.mxu1 %v1257_v9 }
 0x1c2   : > { %8542 = vmatmul.mubr.bf16.gmra.mrb[92].mxu0 %v1258_v58 }
 0x1c3   : > { %8614 = vmatmul.mubr.bf16.gmra.mrb[92].mxu1 %v1258_v58  ;;  %8545 = vmatprep.mubr.bf16.mxu0 %v1259_v60 }
 0x1c4   : > { %8617 = vmatprep.mubr.bf16.mxu1 %v1259_v60 }
 0x1ca   : > { %8546 = vmatmul.mubr.bf16.gmra.mrb[96].mxu0 %v1260_v49 }
 0x1cb   : > { %8618 = vmatmul.mubr.bf16.gmra.mrb[96].mxu1 %v1260_v49  ;;  %8549 = vmatprep.mubr.bf16.mxu0 %v1261_v3 }
 0x1cc   : > { %8621 = vmatprep.mubr.bf16.mxu1 %v1261_v3 }
 0x1d2   : > { %8550 = vmatmul.mubr.bf16.gmra.mrb[100].mxu0 %v1262_v1 }
 0x1d3   : > { %8622 = vmatmul.mubr.bf16.gmra.mrb[100].mxu1 %v1262_v1  ;;  %8553 = vmatprep.mubr.bf16.mxu0 %v1263_v7 }
 0x1d4   : > { %8625 = vmatprep.mubr.bf16.mxu1 %v1263_v7 }
 0x1da   : > { %8554 = vmatmul.mubr.bf16.gmra.mrb[104].mxu0 %v1264_v40 }
 0x1db   : > { %8626 = vmatmul.mubr.bf16.gmra.mrb[104].mxu1 %v1264_v40  ;;  %8557 = vmatprep.mubr.bf16.mxu0 %v1265_v15 }
 0x1dc   : > { %8629 = vmatprep.mubr.bf16.mxu1 %v1265_v15 }
 0x1e2   : > { %8558 = vmatmul.mubr.bf16.gmra.mrb[108].mxu0 %v1266_v4 }
 0x1e3   : > { %8630 = vmatmul.mubr.bf16.gmra.mrb[108].mxu1 %v1266_v4 }
 0x23d   : > { %v10843_v29 = vpop.f32.mrb[48].mxu0  ;;  %v10845_v57 = vpop.f32.mrb[48].mxu1 }
 0x23e   : > { %v10847_v9 = vpop.f32.mrb[49].mxu0  ;;  %v10849_v24 = vpop.f32.mrb[49].mxu1  ;;  %v1852_v22 = vsel %vm1845_vm0, %v10843_v29, -inf  ;;  %v2588_v3 = vsel %vm1845_vm0, %v10845_v57, -inf }
 0x23f   : > { %v10853_v58 = vpop.f32.mrb[50].mxu1  ;;  %1853 = vmax.xlane.f32.xlu0 %v1852_v22  ;;  %v10855_v60 = vpop.f32.mrb[50].mxu0  ;;  %v2582_v11 = vsel %vm1845_vm0, %v10849_v24, -inf  ;;  %v1846_v22 = vsel %vm1845_vm0, %v10847_v9, -inf }
 0x240   : > { %2583 = vmax.xlane.f32.xlu1 %v2582_v11  ;;  %v10859_v56 = vpop.f32.mrb[51].mxu0  ;;  %v10861_v49 = vpop.f32.mrb[51].mxu1  ;;  %v1855_v1 = vsel %vm1845_vm0, %v10855_v60, -inf }
 0x241   : > { %v1849_v12 = vsel %vm1845_vm0, %v10859_v56, -inf  ;;  %v2585_v37 = vsel %vm1845_vm0, %v10861_v49, -inf }
 0x243   : > { %2589 = vmax.xlane.f32.xlu0 %v2588_v3  ;;  %v2591_v3 = vsel %vm1845_vm0, %v10853_v58, -inf }
 0x244   : > { %1856 = vmax.xlane.f32.xlu1 %v1855_v1 }
 0x245   : > { %v10867_v7 = vpop.f32.mrb[52].mxu0  ;;  %v10869_v40 = vpop.f32.mrb[52].mxu1 }
 0x246   : > { %v10871_v15 = vpop.f32.mrb[53].mxu0  ;;  %v10873_v4 = vpop.f32.mrb[53].mxu1  ;;  %v2600_v47 = vsel %vm1845_vm0, %v10869_v40, -inf }
 0x247   : > { %16644 = vst [vmem:[#allocation51_spill] sm:$0xff] %v10873_v4  ;;  %v10877_v11 = vpop.f32.mrb[54].mxu1  ;;  %1847 = vmax.xlane.f32.xlu0 %v1846_v22  ;;  %v10879_v43 = vpop.f32.mrb[54].mxu0  ;;  %v2594_v44 = vsel %vm1845_vm0, %v10873_v4, -inf }
 0x248   : > { %v10883_v1 = vpop.f32.mrb[55].mxu1  ;;  %2592 = vmax.xlane.f32.xlu1 %v2591_v3  ;;  %v10885_v38 = vpop.f32.mrb[55].mxu0  ;;  %v1864_v3 = vsel %vm1845_vm0, %v10867_v7, -inf  ;;  %v2603_v59 = vsel %vm1845_vm0, %v10877_v11, -inf }
 0x249   : > { %16645 = vst [vmem:[#allocation52_spill] sm:$0xff] %v10883_v1  ;;  %16646 = vst [vmem:[#allocation53_spill] sm:$0xff] %v10885_v38  ;;  %v2597_v33 = vsel %vm1845_vm0, %v10883_v1, -inf }
 0x24b   : > { %1850 = vmax.xlane.f32.xlu0 %v1849_v12  ;;  %v1867_v12 = vsel %vm1845_vm0, %v10879_v43, -inf }
 0x24c   : > { %2586 = vmax.xlane.f32.xlu1 %v2585_v37 }
 0x24d   : > { %v10891_v25 = vpop.f32.mrb[56].mxu0  ;;  %v10893_v22 = vpop.f32.mrb[56].mxu1 }
 0x24e   : > { %16647 = vst [vmem:[#allocation54_spill] sm:$0xff] %v10891_v25  ;;  %16648 = vst [vmem:[#allocation55_spill] sm:$0xff] %v10893_v22  ;;  %v10895_v55 = vpop.f32.mrb[57].mxu0  ;;  %v10897_v51 = vpop.f32.mrb[57].mxu1  ;;  %v2612_v20 = vsel %vm1845_vm0, %v10893_v22, -inf }
 0x24f   : > { %16649 = vst [vmem:[#allocation56_spill] sm:$0xff] %v10895_v55  ;;  %16650 = vst [vmem:[#allocation57_spill] sm:$0xff] %v10897_v51  ;;  %v10901_v18 = vpop.f32.mrb[58].mxu1  ;;  %1865 = vmax.xlane.f32.xlu0 %v1864_v3  ;;  %v10903_v17 = vpop.f32.mrb[58].mxu0  ;;  %v2606_v50 = vsel %vm1845_vm0, %v10897_v51, -inf }
 0x250   : > { %16651 = vst [vmem:[#allocation58_spill] sm:$0xff] %v10901_v18  ;;  %16652 = vst [vmem:[#allocation59_spill] sm:$0xff] %v10903_v17  ;;  %v10907_v37 = vpop.f32.mrb[59].mxu1  ;;  %1868 = vmax.xlane.f32.xlu1 %v1867_v12  ;;  %v10909_v48 = vpop.f32.mrb[59].mxu0  ;;  %v1858_v12 = vsel %vm1845_vm0, %v10871_v15, -inf  ;;  %v2615_v2 = vsel %vm1845_vm0, %v10901_v18, -inf }
 0x251   : > { %16653 = vst [vmem:[#allocation60_spill] sm:$0xff] %v10907_v37  ;;  %16654 = vst [vmem:[#allocation61_spill] sm:$0xff] %v10909_v48  ;;  %v2609_v34 = vsel %vm1845_vm0, %v10907_v37, -inf }
 0x253   : > { %2601 = vmax.xlane.f32.xlu0 %v2600_v47  ;;  %v1861_v47 = vsel %vm1845_vm0, %v10885_v38, -inf }
 0x254   : > { %2604 = vmax.xlane.f32.xlu1 %v2603_v59 }
 0x255   : > { %v10915_v54 = vpop.f32.mrb[60].mxu0 }
 0x256   : > { %16655 = vst [vmem:[#allocation62_spill] sm:$0xff] %v10915_v54  ;;  %v10917_v3 = vpop.f32.mrb[60].mxu1  ;;  %v10919_v8 = vpop.f32.mrb[61].mxu0 }
 0x257   : > { %16656 = vst [vmem:[#allocation63_spill] sm:$0xff] %v10917_v3  ;;  %16657 = vst [vmem:[#allocation64_spill] sm:$0xff] %v10919_v8  ;;  %v10921_v45 = vpop.f32.mrb[61].mxu1  ;;  %1859 = vmax.xlane.f32.xlu0 %v1858_v12  ;;  %v10927_v46 = vpop.f32.mrb[62].mxu0  ;;  %v2624_v32 = vsel %vm1845_vm0, %v10917_v3, -inf }
 0x258   : > { %16658 = vst [vmem:[#allocation65_spill] sm:$0xff] %v10921_v45  ;;  %v10925_v62 = vpop.f32.mrb[62].mxu1  ;;  %16660 = vst [vmem:[#allocation67_spill] sm:$0xff] %v10927_v46  ;;  %1862 = vmax.xlane.f32.xlu1 %v1861_v47  ;;  %v10933_v41 = vpop.f32.mrb[63].mxu0  ;;  %v1876_v47 = vsel %vm1845_vm0, %v10891_v25, -inf }
 0x259   : > { %16659 = vst [vmem:[#allocation66_spill] sm:$0xff] %v10925_v62  ;;  %v10931_v59 = vpop.f32.mrb[63].mxu1  ;;  %16662 = vst [vmem:[#allocation69_spill] sm:$0xff] %v10933_v41  ;;  %v2627_v53 = vsel %vm1845_vm0, %v10925_v62, -inf }
 0x25a   : > { %16661 = vst [vmem:[#allocation68_spill] sm:$0xff] %v10931_v59 }
 0x25b   : > { %2595 = vmax.xlane.f32.xlu0 %v2594_v44  ;;  %v1879_v44 = vsel %vm1845_vm0, %v10903_v17, -inf }
 0x25c   : > { %2598 = vmax.xlane.f32.xlu1 %v2597_v33 }
 0x25d   : > { %v10939_v42 = vpop.f32.mrb[64].mxu0 }
 0x25e   : > { %16663 = vst [vmem:[#allocation70_spill] sm:$0xff] %v10939_v42  ;;  %v10941_v12 = vpop.f32.mrb[64].mxu1  ;;  %v10943_v5 = vpop.f32.mrb[65].mxu0 }
 0x25f   : > { %16664 = vst [vmem:[#allocation71_spill] sm:$0xff] %v10941_v12  ;;  %16665 = vst [vmem:[#allocation72_spill] sm:$0xff] %v10943_v5  ;;  %v10945_v26 = vpop.f32.mrb[65].mxu1  ;;  %1877 = vmax.xlane.f32.xlu0 %v1876_v47  ;;  %v10951_v36 = vpop.f32.mrb[66].mxu0 }
 0x260   : > { %16666 = vst [vmem:[#allocation73_spill] sm:$0xff] %v10945_v26  ;;  %v10949_v28 = vpop.f32.mrb[66].mxu1  ;;  %16668 = vst [vmem:[#allocation75_spill] sm:$0xff] %v10951_v36  ;;  %1880 = vmax.xlane.f32.xlu1 %v1879_v44  ;;  %v10957_v31 = vpop.f32.mrb[67].mxu0  ;;  %v1870_v44 = vsel %vm1845_vm0, %v10895_v55, -inf  ;;  %v2630_v17 = vsel %vm1845_vm0, %v10945_v26, -inf }
 0x261   : > { %16667 = vst [vmem:[#allocation74_spill] sm:$0xff] %v10949_v28  ;;  %v10955_v33 = vpop.f32.mrb[67].mxu1  ;;  %16670 = vst [vmem:[#allocation77_spill] sm:$0xff] %v10957_v31 }
 0x262   : > { %16669 = vst [vmem:[#allocation76_spill] sm:$0xff] %v10955_v33 }
 0x263   : > { %2613 = vmax.xlane.f32.xlu0 %v2612_v20  ;;  %v1873_v20 = vsel %vm1845_vm0, %v10909_v48, -inf  ;;  %v2636_v48 = vsel %vm1845_vm0, %v10941_v12, -inf }
 0x264   : > { %2616 = vmax.xlane.f32.xlu1 %v2615_v2 }
 0x265   : > { %v10963_v19 = vpop.f32.mrb[68].mxu0 }
 0x266   : > { %16671 = vst [vmem:[#allocation78_spill] sm:$0xff] %v10963_v19  ;;  %v10965_v47 = vpop.f32.mrb[68].mxu1  ;;  %v10967_v16 = vpop.f32.mrb[69].mxu0 }
 0x267   : > { %16672 = vst [vmem:[#allocation79_spill] sm:$0xff] %v10965_v47  ;;  %16673 = vst [vmem:[#allocation80_spill] sm:$0xff] %v10967_v16  ;;  %v10969_v0 = vpop.f32.mrb[69].mxu1  ;;  %1871 = vmax.xlane.f32.xlu0 %v1870_v44  ;;  %v10975_v61 = vpop.f32.mrb[70].mxu0 }
 0x268   : > { %16674 = vst [vmem:[#allocation81_spill] sm:$0xff] %v10969_v0  ;;  %v10973_v14 = vpop.f32.mrb[70].mxu1  ;;  %16676 = vst [vmem:[#allocation83_spill] sm:$0xff] %v10975_v61  ;;  %1874 = vmax.xlane.f32.xlu1 %v1873_v20  ;;  %v10981_v39 = vpop.f32.mrb[71].mxu0  ;;  %v1888_v20 = vsel %vm1845_vm0, %v10915_v54, -inf }
 0x269   : > { %16675 = vst [vmem:[#allocation82_spill] sm:$0xff] %v10973_v14  ;;  %v10979_v2 = vpop.f32.mrb[71].mxu1  ;;  %16678 = vst [vmem:[#allocation85_spill] sm:$0xff] %v10981_v39 }
 0x26a   : > { %16677 = vst [vmem:[#allocation84_spill] sm:$0xff] %v10979_v2 }
 0x26b   : > { %2607 = vmax.xlane.f32.xlu0 %v2606_v50  ;;  %v1891_v50 = vsel %vm1845_vm0, %v10927_v46, -inf  ;;  %v2618_v46 = vsel %vm1845_vm0, %v10921_v45, -inf }
 0x26c   : > { %2610 = vmax.xlane.f32.xlu1 %v2609_v34 }
 0x26d   : > { %v10987_v52 = vpop.f32.mrb[72].mxu0 }
 0x26e   : > { %16679 = vst [vmem:[#allocation86_spill] sm:$0xff] %v10987_v52  ;;  %v10989_v44 = vpop.f32.mrb[72].mxu1  ;;  %v10991_v10 = vpop.f32.mrb[73].mxu0 }
 0x26f   : > { %16680 = vst [vmem:[#allocation87_spill] sm:$0xff] %v10989_v44  ;;  %16681 = vst [vmem:[#allocation88_spill] sm:$0xff] %v10991_v10  ;;  %v10993_v6 = vpop.f32.mrb[73].mxu1  ;;  %1889 = vmax.xlane.f32.xlu0 %v1888_v20  ;;  %v10999_v21 = vpop.f32.mrb[74].mxu0 }
 0x270   : > { %16682 = vst [vmem:[#allocation89_spill] sm:$0xff] %v10993_v6  ;;  %v10997_v27 = vpop.f32.mrb[74].mxu1  ;;  %16684 = vst [vmem:[#allocation91_spill] sm:$0xff] %v10999_v21  ;;  %1892 = vmax.xlane.f32.xlu1 %v1891_v50  ;;  %v11005_v13 = vpop.f32.mrb[75].mxu0  ;;  %v1882_v50 = vsel %vm1845_vm0, %v10919_v8, -inf  ;;  %v2621_v8 = vsel %vm1845_vm0, %v10931_v59, -inf }
 0x271   : > { %16683 = vst [vmem:[#allocation90_spill] sm:$0xff] %v10997_v27  ;;  %v11003_v34 = vpop.f32.mrb[75].mxu1  ;;  %16686 = vst [vmem:[#allocation93_spill] sm:$0xff] %v11005_v13 }
 0x272   : > { %16685 = vst [vmem:[#allocation92_spill] sm:$0xff] %v11003_v34 }
 0x273   : > { %2625 = vmax.xlane.f32.xlu0 %v2624_v32  ;;  %v1885_v32 = vsel %vm1845_vm0, %v10933_v41, -inf }
 0x274   : > { %2628 = vmax.xlane.f32.xlu1 %v2627_v53 }
 0x275   : > { %v11011_v63 = vpop.f32.mrb[76].mxu0 }
 0x276   : > { %16687 = vst [vmem:[#allocation94_spill] sm:$0xff] %v11011_v63  ;;  %v11013_v20 = vpop.f32.mrb[76].mxu1  ;;  %v11015_v30 = vpop.f32.mrb[77].mxu0 }
 0x277   : > { %16688 = vst [vmem:[#allocation95_spill] sm:$0xff] %v11013_v20  ;;  %16689 = vst [vmem:[#allocation96_spill] sm:$0xff] %v11015_v30  ;;  %v11017_v35 = vpop.f32.mrb[77].mxu1  ;;  %1883 = vmax.xlane.f32.xlu0 %v1882_v50  ;;  %v11023_v3 = vpop.f32.mrb[78].mxu0 }
 0x278   : > { %16690 = vst [vmem:[#allocation97_spill] sm:$0xff] %v11017_v35  ;;  %v11021_v23 = vpop.f32.mrb[78].mxu1  ;;  %16692 = vst [vmem:[#allocation99_spill] sm:$0xff] %v11023_v3  ;;  %1886 = vmax.xlane.f32.xlu1 %v1885_v32  ;;  %v11029_v62 = vpop.f32.mrb[79].mxu0  ;;  %v1900_v32 = vsel %vm1845_vm0, %v10939_v42, -inf  ;;  %v2639_v42 = vsel %vm1845_vm0, %v10949_v28, -inf }
 0x279   : > { %16691 = vst [vmem:[#allocation98_spill] sm:$0xff] %v11021_v23  ;;  %v11027_v53 = vpop.f32.mrb[79].mxu1  ;;  %16694 = vst [vmem:[#allocation101_spill] sm:$0xff] %v11029_v62 }
 0x27a   : > { %16693 = vst [vmem:[#allocation100_spill] sm:$0xff] %v11027_v53 }
 0x27b   : > { %2619 = vmax.xlane.f32.xlu0 %v2618_v46  ;;  %v1903_v46 = vsel %vm1845_vm0, %v10951_v36, -inf }
 0x27c   : > { %2622 = vmax.xlane.f32.xlu1 %v2621_v8 }
 0x27d   : > { %v11035_v54 = vpop.f32.mrb[80].mxu0 }
 0x27e   : > { %16695 = vst [vmem:[#allocation102_spill] sm:$0xff] %v11035_v54  ;;  %v11037_v50 = vpop.f32.mrb[80].mxu1  ;;  %v11039_v37 = vpop.f32.mrb[81].mxu0 }
 0x27f   : > { %16696 = vst [vmem:[#allocation103_spill] sm:$0xff] %v11037_v50  ;;  %16697 = vst [vmem:[#allocation104_spill] sm:$0xff] %v11039_v37  ;;  %v11041_v41 = vpop.f32.mrb[81].mxu1  ;;  %1901 = vmax.xlane.f32.xlu0 %v1900_v32  ;;  %v11047_v45 = vpop.f32.mrb[82].mxu0 }
 0x280   : > { %16698 = vst [vmem:[#allocation105_spill] sm:$0xff] %v11041_v41  ;;  %v11045_v51 = vpop.f32.mrb[82].mxu1  ;;  %16700 = vst [vmem:[#allocation107_spill] sm:$0xff] %v11047_v45  ;;  %1904 = vmax.xlane.f32.xlu1 %v1903_v46  ;;  %v11053_v59 = vpop.f32.mrb[83].mxu0  ;;  %v1894_v46 = vsel %vm1845_vm0, %v10943_v5, -inf  ;;  %v2633_v5 = vsel %vm1845_vm0, %v10955_v33, -inf }
 0x281   : > { %16699 = vst [vmem:[#allocation106_spill] sm:$0xff] %v11045_v51  ;;  %v11051_v8 = vpop.f32.mrb[83].mxu1  ;;  %16702 = vst [vmem:[#allocation109_spill] sm:$0xff] %v11053_v59 }
 0x282   : > { %16701 = vst [vmem:[#allocation108_spill] sm:$0xff] %v11051_v8 }
 0x283   : > { %2637 = vmax.xlane.f32.xlu0 %v2636_v48  ;;  %v1897_v48 = vsel %vm1845_vm0, %v10957_v31, -inf }
 0x284   : > { %2640 = vmax.xlane.f32.xlu1 %v2639_v42 }
 0x285   : > { %v11059_v55 = vpop.f32.mrb[84].mxu0 }
 0x286   : > { %16703 = vst [vmem:[#allocation110_spill] sm:$0xff] %v11059_v55  ;;  %v11061_v32 = vpop.f32.mrb[84].mxu1  ;;  %v11063_v18 = vpop.f32.mrb[85].mxu0 }
 0x287   : > { %16704 = vst [vmem:[#allocation111_spill] sm:$0xff] %v11061_v32  ;;  %16705 = vst [vmem:[#allocation112_spill] sm:$0xff] %v11063_v18  ;;  %v11065_v36 = vpop.f32.mrb[85].mxu1  ;;  %1895 = vmax.xlane.f32.xlu0 %v1894_v46  ;;  %v11071_v12 = vpop.f32.mrb[86].mxu0 }
 0x288   : > { %16706 = vst [vmem:[#allocation113_spill] sm:$0xff] %v11065_v36  ;;  %v11069_v22 = vpop.f32.mrb[86].mxu1  ;;  %16708 = vst [vmem:[#allocation115_spill] sm:$0xff] %v11071_v12  ;;  %1898 = vmax.xlane.f32.xlu1 %v1897_v48  ;;  %v11077_v28 = vpop.f32.mrb[87].mxu0  ;;  %v1912_v48 = vsel %vm1845_vm0, %v10963_v19, -inf  ;;  %v2651_v19 = vsel %vm1845_vm0, %v10973_v14, -inf }
 0x289   : > { %16707 = vst [vmem:[#allocation114_spill] sm:$0xff] %v11069_v22  ;;  %v11075_v42 = vpop.f32.mrb[87].mxu1  ;;  %16710 = vst [vmem:[#allocation117_spill] sm:$0xff] %v11077_v28 }
 0x28a   : > { %16709 = vst [vmem:[#allocation116_spill] sm:$0xff] %v11075_v42 }
 0x28b   : > { %2631 = vmax.xlane.f32.xlu0 %v2630_v17  ;;  %v1915_v17 = vsel %vm1845_vm0, %v10975_v61, -inf }
 0x28c   : > { %2634 = vmax.xlane.f32.xlu1 %v2633_v5 }
 0x28d   : > { %v11083_v25 = vpop.f32.mrb[88].mxu0 }
 0x28e   : > { %16711 = vst [vmem:[#allocation118_spill] sm:$0xff] %v11083_v25  ;;  %v11085_v46 = vpop.f32.mrb[88].mxu1  ;;  %v11087_v1 = vpop.f32.mrb[89].mxu0 }
 0x28f   : > { %16712 = vst [vmem:[#allocation119_spill] sm:$0xff] %v11085_v46  ;;  %16713 = vst [vmem:[#allocation120_spill] sm:$0xff] %v11087_v1  ;;  %v11089_v31 = vpop.f32.mrb[89].mxu1  ;;  %1913 = vmax.xlane.f32.xlu0 %v1912_v48  ;;  %v11095_v26 = vpop.f32.mrb[90].mxu0  ;;  %v2648_v1 = vsel %vm1845_vm0, %v10965_v47, -inf }
 0x290   : > { %16714 = vst [vmem:[#allocation121_spill] sm:$0xff] %v11089_v31  ;;  %v11093_v4 = vpop.f32.mrb[90].mxu1  ;;  %16716 = vst [vmem:[#allocation123_spill] sm:$0xff] %v11095_v26  ;;  %1916 = vmax.xlane.f32.xlu1 %v1915_v17  ;;  %v11101_v33 = vpop.f32.mrb[91].mxu0  ;;  %v1906_v17 = vsel %vm1845_vm0, %v10967_v16, -inf  ;;  %v2645_v16 = vsel %vm1845_vm0, %v10979_v2, -inf }
 0x291   : > { %16715 = vst [vmem:[#allocation122_spill] sm:$0xff] %v11093_v4  ;;  %v11099_v5 = vpop.f32.mrb[91].mxu1  ;;  %16718 = vst [vmem:[#allocation125_spill] sm:$0xff] %v11101_v33 }
 0x292   : > { %16717 = vst [vmem:[#allocation124_spill] sm:$0xff] %v11099_v5 }
 0x293   : > { %2649 = vmax.xlane.f32.xlu0 %v2648_v1  ;;  %v1909_v1 = vsel %vm1845_vm0, %v10981_v39, -inf }
 0x294   : > { %2652 = vmax.xlane.f32.xlu1 %v2651_v19 }
 0x295   : > { %v11107_v31 = vpop.f32.mrb[92].mxu0 }
 0x296   : > { %16719 = vst [vmem:[#allocation126_spill] sm:$0xff] %v11107_v31  ;;  %v11109_v48 = vpop.f32.mrb[92].mxu1  ;;  %v11111_v38 = vpop.f32.mrb[93].mxu0 }
 0x297   : > { %16720 = vst [vmem:[#allocation127_spill] sm:$0xff] %v11109_v48  ;;  %16721 = vst [vmem:[#allocation128_spill] sm:$0xff] %v11111_v38  ;;  %v11113_v61 = vpop.f32.mrb[93].mxu1  ;;  %1907 = vmax.xlane.f32.xlu0 %v1906_v17  ;;  %v11119_v47 = vpop.f32.mrb[94].mxu0  ;;  %v2642_v38 = vsel %vm1845_vm0, %v10969_v0, -inf }
 0x298   : > { %16722 = vst [vmem:[#allocation129_spill] sm:$0xff] %v11113_v61  ;;  %v11117_v5 = vpop.f32.mrb[94].mxu1  ;;  %16724 = vst [vmem:[#allocation131_spill] sm:$0xff] %v11119_v47  ;;  %1910 = vmax.xlane.f32.xlu1 %v1909_v1  ;;  %v11125_v14 = vpop.f32.mrb[95].mxu0  ;;  %v1924_v1 = vsel %vm1845_vm0, %v10987_v52, -inf  ;;  %v2663_v52 = vsel %vm1845_vm0, %v10997_v27, -inf }
 0x299   : > { %16723 = vst [vmem:[#allocation130_spill] sm:$0xff] %v11117_v5  ;;  %v11123_v19 = vpop.f32.mrb[95].mxu1  ;;  %16726 = vst [vmem:[#allocation133_spill] sm:$0xff] %v11125_v14 }
 0x29a   : > { %16725 = vst [vmem:[#allocation132_spill] sm:$0xff] %v11123_v19 }
 0x29b   : > { %2643 = vmax.xlane.f32.xlu0 %v2642_v38  ;;  %v1927_v38 = vsel %vm1845_vm0, %v10999_v21, -inf }
 0x29c   : > { %2646 = vmax.xlane.f32.xlu1 %v2645_v16 }
 0x29d   : > { %v11131_v61 = vpop.f32.mrb[96].mxu0 }
 0x29e   : > { %16727 = vst [vmem:[#allocation134_spill] sm:$0xff] %v11131_v61  ;;  %v11133_v17 = vpop.f32.mrb[96].mxu1  ;;  %v11135_v5 = vpop.f32.mrb[97].mxu0 }
 0x29f   : > { %16728 = vst [vmem:[#allocation135_spill] sm:$0xff] %v11133_v17  ;;  %16729 = vst [vmem:[#allocation136_spill] sm:$0xff] %v11135_v5  ;;  %v11137_v39 = vpop.f32.mrb[97].mxu1  ;;  %1925 = vmax.xlane.f32.xlu0 %v1924_v1  ;;  %v11143_v0 = vpop.f32.mrb[98].mxu0  ;;  %v2660_v5 = vsel %vm1845_vm0, %v10989_v44, -inf }
 0x2a0   : > { %16730 = vst [vmem:[#allocation137_spill] sm:$0xff] %v11137_v39  ;;  %v11141_v19 = vpop.f32.mrb[98].mxu1  ;;  %16732 = vst [vmem:[#allocation139_spill] sm:$0xff] %v11143_v0  ;;  %1928 = vmax.xlane.f32.xlu1 %v1927_v38  ;;  %v11149_v2 = vpop.f32.mrb[99].mxu0  ;;  %v1918_v38 = vsel %vm1845_vm0, %v10991_v10, -inf  ;;  %v2657_v10 = vsel %vm1845_vm0, %v11003_v34, -inf }
 0x2a1   : > { %16731 = vst [vmem:[#allocation138_spill] sm:$0xff] %v11141_v19  ;;  %v11147_v16 = vpop.f32.mrb[99].mxu1  ;;  %16734 = vst [vmem:[#allocation141_spill] sm:$0xff] %v11149_v2 }
 0x2a2   : > { %16733 = vst [vmem:[#allocation140_spill] sm:$0xff] %v11147_v16 }
 0x2a3   : > { %2661 = vmax.xlane.f32.xlu0 %v2660_v5  ;;  %v1921_v5 = vsel %vm1845_vm0, %v11005_v13, -inf }
 0x2a4   : > { %2664 = vmax.xlane.f32.xlu1 %v2663_v52 }
 0x2a5   : > { %v11155_v39 = vpop.f32.mrb[100].mxu0 }
 0x2a6   : > { %16735 = vst [vmem:[#allocation142_spill] sm:$0xff] %v11155_v39  ;;  %v11157_v1 = vpop.f32.mrb[100].mxu1  ;;  %v11159_v19 = vpop.f32.mrb[101].mxu0 }
 0x2a7   : > { %16736 = vst [vmem:[#allocation143_spill] sm:$0xff] %v11157_v1  ;;  %16737 = vst [vmem:[#allocation144_spill] sm:$0xff] %v11159_v19  ;;  %v11161_v21 = vpop.f32.mrb[101].mxu1  ;;  %1919 = vmax.xlane.f32.xlu0 %v1918_v38  ;;  %v11167_v44 = vpop.f32.mrb[102].mxu0  ;;  %v2654_v19 = vsel %vm1845_vm0, %v10993_v6, -inf }
 0x2a8   : > { %16738 = vst [vmem:[#allocation145_spill] sm:$0xff] %v11161_v21  ;;  %v11165_v16 = vpop.f32.mrb[102].mxu1  ;;  %16740 = vst [vmem:[#allocation147_spill] sm:$0xff] %v11167_v44  ;;  %1922 = vmax.xlane.f32.xlu1 %v1921_v5  ;;  %v11173_v27 = vpop.f32.mrb[103].mxu0  ;;  %v1936_v5 = vsel %vm1845_vm0, %v11011_v63, -inf  ;;  %v2675_v63 = vsel %vm1845_vm0, %v11021_v23, -inf }
 0x2a9   : > { %16739 = vst [vmem:[#allocation146_spill] sm:$0xff] %v11165_v16  ;;  %v11171_v52 = vpop.f32.mrb[103].mxu1  ;;  %16742 = vst [vmem:[#allocation149_spill] sm:$0xff] %v11173_v27 }
 0x2aa   : > { %16741 = vst [vmem:[#allocation148_spill] sm:$0xff] %v11171_v52 }
 0x2ab   : > { %2655 = vmax.xlane.f32.xlu0 %v2654_v19  ;;  %v1939_v19 = vsel %vm1845_vm0, %v11023_v3, -inf }
 0x2ac   : > { %2658 = vmax.xlane.f32.xlu1 %v2657_v10 }
 0x2ad   : > { %v11179_v21 = vpop.f32.mrb[104].mxu0 }
 0x2ae   : > { %16743 = vst [vmem:[#allocation150_spill] sm:$0xff] %v11179_v21  ;;  %v11181_v38 = vpop.f32.mrb[104].mxu1  ;;  %v11183_v16 = vpop.f32.mrb[105].mxu0 }
 0x2af   : > { %16744 = vst [vmem:[#allocation151_spill] sm:$0xff] %v11181_v38  ;;  %16745 = vst [vmem:[#allocation152_spill] sm:$0xff] %v11183_v16  ;;  %v11185_v13 = vpop.f32.mrb[105].mxu1  ;;  %1937 = vmax.xlane.f32.xlu0 %v1936_v5  ;;  %v11191_v6 = vpop.f32.mrb[106].mxu0  ;;  %v2672_v16 = vsel %vm1845_vm0, %v11013_v20, -inf }
 0x2b0   : > { %16746 = vst [vmem:[#allocation153_spill] sm:$0xff] %v11185_v13  ;;  %v11189_v52 = vpop.f32.mrb[106].mxu1  ;;  %16748 = vst [vmem:[#allocation155_spill] sm:$0xff] %v11191_v6  ;;  %1940 = vmax.xlane.f32.xlu1 %v1939_v19  ;;  %v11197_v34 = vpop.f32.mrb[107].mxu0  ;;  %v1930_v19 = vsel %vm1845_vm0, %v11015_v30, -inf  ;;  %v2669_v30 = vsel %vm1845_vm0, %v11027_v53, -inf }
 0x2b1   : > { %16747 = vst [vmem:[#allocation154_spill] sm:$0xff] %v11189_v52  ;;  %v11195_v10 = vpop.f32.mrb[107].mxu1  ;;  %16750 = vst [vmem:[#allocation157_spill] sm:$0xff] %v11197_v34 }
 0x2b2   : > { %16749 = vst [vmem:[#allocation156_spill] sm:$0xff] %v11195_v10 }
 0x2b3   : > { %2673 = vmax.xlane.f32.xlu0 %v2672_v16  ;;  %v1933_v16 = vsel %vm1845_vm0, %v11029_v62, -inf  ;;  %v1951_v62 = vsel %vm1845_vm0, %v11047_v45, -inf  ;;  %v1984_v45 = vsel %vm1845_vm0, %v11107_v31, -inf  ;;  %v16776_v31 = vld [vmem:[#allocation130_spill] sm:$0xff] }
 0x2b4   : > { %2676 = vmax.xlane.f32.xlu1 %v2675_v63 }
 0x2b5   : > { %v11203_v13 = vpop.f32.mrb[108].mxu0 }
 0x2b6   : > { %16751 = vst [vmem:[#allocation158_spill] sm:$0xff] %v11203_v13  ;;  %v11205_v5 = vpop.f32.mrb[108].mxu1  ;;  %v11207_v52 = vpop.f32.mrb[109].mxu0 }
 0x2b7   : > { %16752 = vst [vmem:[#allocation159_spill] sm:$0xff] %v11205_v5  ;;  %16753 = vst [vmem:[#allocation160_spill] sm:$0xff] %v11207_v52  ;;  %v11209_v3 = vpop.f32.mrb[109].mxu1  ;;  %1931 = vmax.xlane.f32.xlu0 %v1930_v19  ;;  %v11215_v20 = vpop.f32.mrb[110].mxu0  ;;  %v2666_v52 = vsel %vm1845_vm0, %v11017_v35, -inf  ;;  %v1948_v19 = vsel %vm1845_vm0, %v11035_v54, -inf }
 0x2b8   : > { %16754 = vst [vmem:[#allocation161_spill] sm:$0xff] %v11209_v3  ;;  %v11213_v10 = vpop.f32.mrb[110].mxu1  ;;  %16756 = vst [vmem:[#allocation163_spill] sm:$0xff] %v11215_v20  ;;  %1934 = vmax.xlane.f32.xlu1 %v1933_v16  ;;  %v11221_v23 = vpop.f32.mrb[111].mxu0  ;;  %v2684_v16 = vsel %vm1845_vm0, %v11037_v50, -inf  ;;  %v2687_v35 = vsel %vm1845_vm0, %v11045_v51, -inf }
 0x2b9   : > { %16755 = vst [vmem:[#allocation162_spill] sm:$0xff] %v11213_v10  ;;  %v11219_v63 = vpop.f32.mrb[111].mxu1  ;;  %16758 = vst [vmem:[#allocation165_spill] sm:$0xff] %v11221_v23  ;;  %v16766_v54 = vld [vmem:[#allocation121_spill] sm:$0xff] }
 0x2ba   : > { %16757 = vst [vmem:[#allocation164_spill] sm:$0xff] %v11219_v63 }
 0x2bb   : > { %2667 = vmax.xlane.f32.xlu0 %v2666_v52  ;;  %v1942_v52 = vsel %vm1845_vm0, %v11039_v37, -inf  ;;  %v16761_v37 = vld [vmem:[#allocation120_spill] sm:$0xff] }
 0x2bc   : > { %2670 = vmax.xlane.f32.xlu1 %v2669_v30  ;;  %v1945_v30 = vsel %vm1845_vm0, %v11053_v59, -inf  ;;  %v2702_v59 = vsel %vm1845_vm0, %v16766_v54, -inf }
 0x2bf   : > { %1949 = vmax.xlane.f32.xlu0 %v1948_v19  ;;  %v2678_v19 = vsel %vm1845_vm0, %v11041_v41, -inf }
 0x2c0   : > { %1952 = vmax.xlane.f32.xlu1 %v1951_v62  ;;  %v2681_v62 = vsel %vm1845_vm0, %v11051_v8, -inf }
 0x2c3   : > { %2685 = vmax.xlane.f32.xlu0 %v2684_v16 }
 0x2c4   : > { %2688 = vmax.xlane.f32.xlu1 %v2687_v35  ;;  %v1954_v35 = vsel %vm1845_vm0, %v11063_v18, -inf }
 0x2c7   : > { %1943 = vmax.xlane.f32.xlu0 %v1942_v52  ;;  %v2696_v52 = vsel %vm1845_vm0, %v11061_v32, -inf }
 0x2c8   : > { %1946 = vmax.xlane.f32.xlu1 %v1945_v30  ;;  %v1960_v30 = vsel %vm1845_vm0, %v11059_v55, -inf }
 0x2cb   : > { %2679 = vmax.xlane.f32.xlu0 %v2678_v19  ;;  %v1963_v19 = vsel %vm1845_vm0, %v11071_v12, -inf }
 0x2cc   : > { %v11243_v16 = vpop.xlane.xlu0 %1853  ;;  %2682 = vmax.xlane.f32.xlu1 %v2681_v62  ;;  %v2690_v62 = vsel %vm1845_vm0, %v11065_v36, -inf }
 0x2cd   : > { %v11247_v51 = vpop.xlane.xlu1 %2583 }
 0x2cf   : > { %1961 = vmax.xlane.f32.xlu0 %v1960_v30  ;;  %v2699_v30 = vsel %vm1845_vm0, %v11069_v22, -inf }
 0x2d0   : > { %v11255_v41 = vpop.xlane.xlu0 %2589  ;;  %1964 = vmax.xlane.f32.xlu1 %v1963_v19  ;;  %v1972_v19 = vsel %vm1845_vm0, %v11083_v25, -inf }
 0x2d1   : > { %v11259_v8 = vpop.xlane.xlu1 %1856 }
 0x2d3   : > { %2697 = vmax.xlane.f32.xlu0 %v2696_v52  ;;  %v1957_v52 = vsel %vm1845_vm0, %v11077_v28, -inf }
 0x2d4   : > { %v11267_v55 = vpop.xlane.xlu0 %1847  ;;  %2700 = vmax.xlane.f32.xlu1 %v2699_v30  ;;  %v2708_v30 = vsel %vm1845_vm0, %v11085_v46, -inf }
 0x2d5   : > { %v11271_v12 = vpop.xlane.xlu1 %2592 }
 0x2d7   : > { %1955 = vmax.xlane.f32.xlu0 %v1954_v35  ;;  %v2693_v35 = vsel %vm1845_vm0, %v11075_v42, -inf }
 0x2d8   : > { %v11279_v32 = vpop.xlane.xlu0 %1850  ;;  %1958 = vmax.xlane.f32.xlu1 %v1957_v52  ;;  %v1966_v52 = vsel %vm1845_vm0, %v16761_v37, -inf  ;;  %v16767_v37 = vld [vmem:[#allocation124_spill] sm:$0xff] }
 0x2d9   : > { %v11283_v22 = vpop.xlane.xlu1 %2586 }
 0x2db   : > { %2691 = vmax.xlane.f32.xlu0 %v2690_v62  ;;  %v1975_v62 = vsel %vm1845_vm0, %v11095_v26, -inf }
 0x2dc   : > { %v11291_v18 = vpop.xlane.xlu0 %1865  ;;  %2694 = vmax.xlane.f32.xlu1 %v2693_v35  ;;  %v16760_v35 = vld [vmem:[#allocation53_spill] sm:$0xff] }
 0x2dd   : > { %v11295_v28 = vpop.xlane.xlu1 %1868 }
 0x2df   : > { %1973 = vmax.xlane.f32.xlu0 %v1972_v19  ;;  %v2711_v19 = vsel %vm1845_vm0, %v11093_v4, -inf }
 0x2e0   : > { %v11303_v36 = vpop.xlane.xlu0 %2601  ;;  %1976 = vmax.xlane.f32.xlu1 %v1975_v62  ;;  %v16765_v62 = vld [vmem:[#allocation52_spill] sm:$0xff] }
 0x2e1   : > { %v11307_v42 = vpop.xlane.xlu1 %2604 }
 0x2e3   : > { %2709 = vmax.xlane.f32.xlu0 %v2708_v30  ;;  %v1969_v30 = vsel %vm1845_vm0, %v11101_v33, -inf  ;;  %v16775_v33 = vld [vmem:[#allocation58_spill] sm:$0xff] }
 0x2e4   : > { %v11315_v25 = vpop.xlane.xlu0 %1859  ;;  %2712 = vmax.xlane.f32.xlu1 %v2711_v19  ;;  %v16763_v19 = vld [vmem:[#allocation51_spill] sm:$0xff] }
 0x2e5   : > { %v11319_v26 = vpop.xlane.xlu1 %1862 }
 0x2e6   : > { %16759 = vst [vmem:[#allocation166_spill] sm:$0xff] %v11319_v26 }
 0x2e7   : > { %1967 = vmax.xlane.f32.xlu0 %v1966_v52  ;;  %v2705_v52 = vsel %vm1845_vm0, %v16767_v37, -inf }
 0x2e8   : > { %v11327_v46 = vpop.xlane.xlu0 %2595  ;;  %1970 = vmax.xlane.f32.xlu1 %v1969_v30  ;;  %v16769_v30 = vld [vmem:[#allocation54_spill] sm:$0xff] }
 0x2e9   : > { %16762 = vst [vmem:[#allocation53_spill] sm:$0xff] %v11327_v46  ;;  %v11331_v50 = vpop.xlane.xlu1 %2598  ;;  %v2720_v46 = vsel %vm1845_vm0, %v11109_v48, -inf }
 0x2ea   : > { %16764 = vst [vmem:[#allocation51_spill] sm:$0xff] %v11331_v50 }
 0x2eb   : > { %2703 = vmax.xlane.f32.xlu0 %v2702_v59  ;;  %v1987_v59 = vsel %vm1845_vm0, %v11119_v47, -inf  ;;  %v16785_v47 = vld [vmem:[#allocation60_spill] sm:$0xff] }
 0x2ec   : > { %v11339_v53 = vpop.xlane.xlu0 %1877  ;;  %2706 = vmax.xlane.f32.xlu1 %v2705_v52  ;;  %v16781_v52 = vld [vmem:[#allocation128_spill] sm:$0xff] }
 0x2ed   : > { %16768 = vst [vmem:[#allocation52_spill] sm:$0xff] %v11339_v53  ;;  %v11343_v26 = vpop.xlane.xlu1 %1880  ;;  %v1978_v53 = vsel %vm1845_vm0, %v16781_v52, -inf  ;;  %v16787_v52 = vld [vmem:[#allocation132_spill] sm:$0xff] }
 0x2ee   : > { %16770 = vst [vmem:[#allocation54_spill] sm:$0xff] %v11343_v26 }
 0x2ef   : > { %1985 = vmax.xlane.f32.xlu0 %v1984_v45  ;;  %v2723_v45 = vsel %vm1845_vm0, %v16776_v31, -inf }
 0x2f0   : > { %v11351_v54 = vpop.xlane.xlu0 %2613  ;;  %1988 = vmax.xlane.f32.xlu1 %v1987_v59  ;;  %v16786_v59 = vld [vmem:[#allocation129_spill] sm:$0xff] }
 0x2f1   : > { %16772 = vst [vmem:[#allocation167_spill] sm:$0xff] %v11351_v54  ;;  %v11355_v50 = vpop.xlane.xlu1 %2616  ;;  %v2714_v54 = vsel %vm1845_vm0, %v16786_v59, -inf }
 0x2f2   : > { %16774 = vst [vmem:[#allocation168_spill] sm:$0xff] %v11355_v50 }
 0x2f3   : > { %2721 = vmax.xlane.f32.xlu0 %v2720_v46  ;;  %v1981_v46 = vsel %vm1845_vm0, %v11125_v14, -inf  ;;  %v16795_v14 = vld [vmem:[#allocation66_spill] sm:$0xff] }
 0x2f4   : > { %v11363_v26 = vpop.xlane.xlu0 %1871  ;;  %2724 = vmax.xlane.f32.xlu1 %v2723_v45  ;;  %v16783_v45 = vld [vmem:[#allocation57_spill] sm:$0xff] }
 0x2f5   : > { %16777 = vst [vmem:[#allocation58_spill] sm:$0xff] %v11363_v26  ;;  %v11367_v4 = vpop.xlane.xlu1 %1874  ;;  %v1996_v26 = vsel %vm1845_vm0, %v11131_v61, -inf  ;;  %v16796_v61 = vld [vmem:[#allocation138_spill] sm:$0xff] }
 0x2f6   : > { %16779 = vst [vmem:[#allocation169_spill] sm:$0xff] %v11367_v4 }
 0x2f7   : > { %1979 = vmax.xlane.f32.xlu0 %v1978_v53  ;;  %v2717_v53 = vsel %vm1845_vm0, %v16787_v52, -inf }
 0x2f8   : > { %v11375_v48 = vpop.xlane.xlu0 %2607  ;;  %1982 = vmax.xlane.f32.xlu1 %v1981_v46  ;;  %v16789_v46 = vld [vmem:[#allocation62_spill] sm:$0xff] }
 0x2f9   : > { %16782 = vst [vmem:[#allocation170_spill] sm:$0xff] %v11375_v48  ;;  %v11379_v50 = vpop.xlane.xlu1 %2610  ;;  %v2732_v48 = vsel %vm1845_vm0, %v11133_v17, -inf }
 0x2fa   : > { %16784 = vst [vmem:[#allocation57_spill] sm:$0xff] %v11379_v50 }
 0x2fb   : > { %2715 = vmax.xlane.f32.xlu0 %v2714_v54  ;;  %v1999_v54 = vsel %vm1845_vm0, %v11143_v0, -inf  ;;  %v16805_v0 = vld [vmem:[#allocation68_spill] sm:$0xff] }
 0x2fc   : > { %v11387_v4 = vpop.xlane.xlu0 %1889  ;;  %2718 = vmax.xlane.f32.xlu1 %v2717_v53  ;;  %v16801_v53 = vld [vmem:[#allocation136_spill] sm:$0xff] }
 0x2fd   : > { %16788 = vst [vmem:[#allocation60_spill] sm:$0xff] %v11387_v4  ;;  %v11391_v37 = vpop.xlane.xlu1 %1892  ;;  %v1990_v4 = vsel %vm1845_vm0, %v16801_v53, -inf  ;;  %v16807_v53 = vld [vmem:[#allocation140_spill] sm:$0xff] }
 0x2fe   : > { %16790 = vst [vmem:[#allocation62_spill] sm:$0xff] %v11391_v37 }
 0x2ff   : > { %1997 = vmax.xlane.f32.xlu0 %v1996_v26  ;;  %v2735_v26 = vsel %vm1845_vm0, %v16796_v61, -inf }
 0x300   : > { %v11399_v59 = vpop.xlane.xlu0 %2625  ;;  %2000 = vmax.xlane.f32.xlu1 %v1999_v54  ;;  %v16806_v54 = vld [vmem:[#allocation137_spill] sm:$0xff] }
 0x301   : > { %16792 = vst [vmem:[#allocation171_spill] sm:$0xff] %v11399_v59  ;;  %v11403_v50 = vpop.xlane.xlu1 %2628  ;;  %v2726_v59 = vsel %vm1845_vm0, %v16806_v54, -inf }
 0x302   : > { %16794 = vst [vmem:[#allocation172_spill] sm:$0xff] %v11403_v50 }
 0x303   : > { %2733 = vmax.xlane.f32.xlu0 %v2732_v48  ;;  %v1993_v48 = vsel %vm1845_vm0, %v11149_v2, -inf  ;;  %v16815_v2 = vld [vmem:[#allocation74_spill] sm:$0xff] }
 0x304   : > { %v11411_v37 = vpop.xlane.xlu0 %1883  ;;  %2736 = vmax.xlane.f32.xlu1 %v2735_v26  ;;  %v16803_v26 = vld [vmem:[#allocation65_spill] sm:$0xff] }
 0x305   : > { %16797 = vst [vmem:[#allocation66_spill] sm:$0xff] %v11411_v37  ;;  %v11415_v31 = vpop.xlane.xlu1 %1886  ;;  %v2008_v37 = vsel %vm1845_vm0, %v11155_v39, -inf  ;;  %v16816_v39 = vld [vmem:[#allocation146_spill] sm:$0xff] }
 0x306   : > { %16799 = vst [vmem:[#allocation173_spill] sm:$0xff] %v11415_v31 }
 0x307   : > { %1991 = vmax.xlane.f32.xlu0 %v1990_v4  ;;  %v2729_v4 = vsel %vm1845_vm0, %v16807_v53, -inf }
 0x308   : > { %v11423_v17 = vpop.xlane.xlu0 %2619  ;;  %1994 = vmax.xlane.f32.xlu1 %v1993_v48  ;;  %v16809_v48 = vld [vmem:[#allocation70_spill] sm:$0xff] }
 0x309   : > { %16802 = vst [vmem:[#allocation174_spill] sm:$0xff] %v11423_v17  ;;  %v11427_v50 = vpop.xlane.xlu1 %2622  ;;  %v2744_v17 = vsel %vm1845_vm0, %v11157_v1, -inf }
 0x30a   : > { %16804 = vst [vmem:[#allocation65_spill] sm:$0xff] %v11427_v50 }
 0x30b   : > { %2727 = vmax.xlane.f32.xlu0 %v2726_v59  ;;  %v2011_v59 = vsel %vm1845_vm0, %v11167_v44, -inf  ;;  %v16825_v44 = vld [vmem:[#allocation76_spill] sm:$0xff] }
 0x30c   : > { %v11435_v31 = vpop.xlane.xlu0 %1901  ;;  %2730 = vmax.xlane.f32.xlu1 %v2729_v4  ;;  %v16821_v4 = vld [vmem:[#allocation144_spill] sm:$0xff] }
 0x30d   : > { %16808 = vst [vmem:[#allocation68_spill] sm:$0xff] %v11435_v31  ;;  %v11439_v52 = vpop.xlane.xlu1 %1904  ;;  %v2002_v31 = vsel %vm1845_vm0, %v16821_v4, -inf  ;;  %v16827_v4 = vld [vmem:[#allocation148_spill] sm:$0xff] }
 0x30e   : > { %16810 = vst [vmem:[#allocation70_spill] sm:$0xff] %v11439_v52 }
 0x30f   : > { %2009 = vmax.xlane.f32.xlu0 %v2008_v37  ;;  %v2747_v37 = vsel %vm1845_vm0, %v16816_v39, -inf }
 0x310   : > { %v11447_v54 = vpop.xlane.xlu0 %2637  ;;  %2012 = vmax.xlane.f32.xlu1 %v2011_v59  ;;  %v16826_v59 = vld [vmem:[#allocation145_spill] sm:$0xff] }
 0x311   : > { %16812 = vst [vmem:[#allocation175_spill] sm:$0xff] %v11447_v54  ;;  %v11451_v50 = vpop.xlane.xlu1 %2640  ;;  %v2738_v54 = vsel %vm1845_vm0, %v16826_v59, -inf }
 0x312   : > { %16814 = vst [vmem:[#allocation176_spill] sm:$0xff] %v11451_v50 }
 0x313   : > { %2745 = vmax.xlane.f32.xlu0 %v2744_v17  ;;  %v2005_v17 = vsel %vm1845_vm0, %v11173_v27, -inf  ;;  %v16835_v27 = vld [vmem:[#allocation82_spill] sm:$0xff] }
 0x314   : > { %v11459_v52 = vpop.xlane.xlu0 %1895  ;;  %2748 = vmax.xlane.f32.xlu1 %v2747_v37  ;;  %v16823_v37 = vld [vmem:[#allocation73_spill] sm:$0xff] }
 0x315   : > { %16817 = vst [vmem:[#allocation74_spill] sm:$0xff] %v11459_v52  ;;  %v11463_v61 = vpop.xlane.xlu1 %1898  ;;  %v2020_v52 = vsel %vm1845_vm0, %v11179_v21, -inf  ;;  %v16836_v21 = vld [vmem:[#allocation154_spill] sm:$0xff] }
 0x316   : > { %16819 = vst [vmem:[#allocation177_spill] sm:$0xff] %v11463_v61 }
 0x317   : > { %2003 = vmax.xlane.f32.xlu0 %v2002_v31  ;;  %v2741_v31 = vsel %vm1845_vm0, %v16827_v4, -inf  ;;  %v16840_v4 = vld [vmem:[#allocation85_spill] sm:$0xff] }
 0x318   : > { %v11471_v1 = vpop.xlane.xlu0 %2631  ;;  %2006 = vmax.xlane.f32.xlu1 %v2005_v17  ;;  %v16829_v17 = vld [vmem:[#allocation78_spill] sm:$0xff] }
 0x319   : > { %16822 = vst [vmem:[#allocation178_spill] sm:$0xff] %v11471_v1  ;;  %v11475_v50 = vpop.xlane.xlu1 %2634  ;;  %v2756_v1 = vsel %vm1845_vm0, %v11181_v38, -inf }
 0x31a   : > { %16824 = vst [vmem:[#allocation73_spill] sm:$0xff] %v11475_v50 }
 0x31b   : > { %2739 = vmax.xlane.f32.xlu0 %v2738_v54  ;;  %v2023_v54 = vsel %vm1845_vm0, %v11191_v6, -inf  ;;  %v16845_v6 = vld [vmem:[#allocation84_spill] sm:$0xff] }
 0x31c   : > { %v11483_v61 = vpop.xlane.xlu0 %1913  ;;  %2742 = vmax.xlane.f32.xlu1 %v2741_v31  ;;  %v16841_v31 = vld [vmem:[#allocation152_spill] sm:$0xff] }
 0x31d   : > { %16828 = vst [vmem:[#allocation76_spill] sm:$0xff] %v11483_v61  ;;  %v11487_v53 = vpop.xlane.xlu1 %1916  ;;  %v2014_v61 = vsel %vm1845_vm0, %v16841_v31, -inf  ;;  %v16847_v31 = vld [vmem:[#allocation156_spill] sm:$0xff] }
 0x31e   : > { %16830 = vst [vmem:[#allocation78_spill] sm:$0xff] %v11487_v53 }
 0x31f   : > { %2021 = vmax.xlane.f32.xlu0 %v2020_v52  ;;  %v2759_v52 = vsel %vm1845_vm0, %v16836_v21, -inf  ;;  %v16849_v21 = vld [vmem:[#allocation86_spill] sm:$0xff] }
 0x320   : > { %v11495_v59 = vpop.xlane.xlu0 %2649  ;;  %2024 = vmax.xlane.f32.xlu1 %v2023_v54  ;;  %v16846_v54 = vld [vmem:[#allocation153_spill] sm:$0xff] }
 0x321   : > { %16832 = vst [vmem:[#allocation179_spill] sm:$0xff] %v11495_v59  ;;  %v11499_v50 = vpop.xlane.xlu1 %2652  ;;  %v2750_v59 = vsel %vm1845_vm0, %v16846_v54, -inf }
 0x322   : > { %16834 = vst [vmem:[#allocation180_spill] sm:$0xff] %v11499_v50 }
 0x323   : > { %2757 = vmax.xlane.f32.xlu0 %v2756_v1  ;;  %v2017_v1 = vsel %vm1845_vm0, %v11197_v34, -inf }
 0x324   : > { %v11507_v53 = vpop.xlane.xlu0 %1907  ;;  %2760 = vmax.xlane.f32.xlu1 %v2759_v52 }
 0x325   : > { %16837 = vst [vmem:[#allocation82_spill] sm:$0xff] %v11507_v53  ;;  %v11511_v39 = vpop.xlane.xlu1 %1910  ;;  %v16850_v53 = vsub.f32 %v10855_v60, %v11259_v8  ;;  %v16853_v60 = vld [vmem:[#allocation87_spill] sm:$0xff]  ;;  %v16864_v8 = vld [vmem:[#allocation92_spill] sm:$0xff] }
 0x326   : > { %16839 = vst [vmem:[#allocation181_spill] sm:$0xff] %v11511_v39 }
 0x327   : > { %2015 = vmax.xlane.f32.xlu0 %v2014_v61  ;;  %v2753_v61 = vsel %vm1845_vm0, %v16847_v31, -inf  ;;  %v2108_v54 = vmul.f32 1.442695, %v16850_v53  ;;  %v2032_v31 = vsel %vm1845_vm0, %v11203_v13, -inf }
 0x328   : > { %v11519_v38 = vpop.xlane.xlu0 %2643  ;;  %2018 = vmax.xlane.f32.xlu1 %v2017_v1  ;;  %v16848_v1 = vsub.f32 %v10843_v29, %v11243_v16  ;;  %v2035_v29 = vsel %vm1845_vm0, %v11215_v20, -inf  ;;  %v16859_v20 = vld [vmem:[#allocation93_spill] sm:$0xff] }
 0x329   : > { %16842 = vst [vmem:[#allocation85_spill] sm:$0xff] %v11519_v38  ;;  %v11523_v50 = vpop.xlane.xlu1 %2646  ;;  %v16855_v38 = vld [vmem:[#allocation90_spill] sm:$0xff] }
 0x32a   : > { %16844 = vst [vmem:[#allocation182_spill] sm:$0xff] %v11523_v50  ;;  %v2106_v34 = vmul.f32 1.442695, %v16848_v1 }
 0x32b   : > { %2751 = vmax.xlane.f32.xlu0 %v2750_v59  ;;  %v16851_v59 = vld [vmem:[#allocation91_spill] sm:$0xff] }
 0x32c   : > { %v11531_v39 = vpop.xlane.xlu0 %1925  ;;  %2754 = vmax.xlane.f32.xlu1 %v2753_v61  ;;  %9186 = vpow2.f32 %v2106_v34  ;;  %v16852_v61 = vsub.f32 %v10845_v57, %v11255_v41  ;;  %v2768_v34 = vsel %vm1845_vm0, %v11205_v5, -inf  ;;  %v2771_v41 = vsel %vm1845_vm0, %v11213_v10, -inf  ;;  %v16860_v10 = vld [vmem:[#allocation160_spill] sm:$0xff] }
 0x32d   : > { %v11538_v52 = vpop.xlane.xlu1 %1928  ;;  %9188 = vpow2.f32 %v2108_v54  ;;  %v16856_v54 = vsub.f32 %v10847_v9, %v11267_v55  ;;  %v2029_v55 = vsel %vm1845_vm0, %v11221_v23, -inf }
 0x32e   : > { %v2842_v1 = vmul.f32 1.442695, %v16852_v61 }
 0x32f   : > { %2033 = vmax.xlane.f32.xlu0 %v2032_v31  ;;  %v16854_v31 = vsub.f32 %v10853_v58, %v11271_v12  ;;  %v16857_v58 = vld [vmem:[#allocation88_spill] sm:$0xff] }
 0x330   : > { %v11549_v16 = vpop.xlane.xlu0 %2661  ;;  %2036 = vmax.xlane.f32.xlu1 %v2035_v29  ;;  %9190 = vpow2.f32 %v2842_v1  ;;  %v2102_v29 = vmul.f32 1.442695, %v16856_v54  ;;  %v2026_v1 = vsel %vm1845_vm0, %v16860_v10, -inf }
 0x331   : > { %v11556_v53 = vpop.xlane.xlu1 %2664  ;;  %v2844_v50 = vmul.f32 1.442695, %v16854_v31  ;;  %v16858_v31 = vsub.f32 %v10859_v56, %v11279_v32  ;;  %v16862_v56 = vld [vmem:[#allocation89_spill] sm:$0xff]  ;;  %v16870_v32 = vld [vmem:[#allocation99_spill] sm:$0xff] }
 0x333   : > { %2769 = vmax.xlane.f32.xlu0 %v2768_v34  ;;  %9192 = vpow2.f32 %v2844_v50  ;;  %v2104_v34 = vmul.f32 1.442695, %v16858_v31  ;;  %v16861_v50 = vsub.f32 %v10849_v24, %v11247_v51  ;;  %v16863_v31 = vsub.f32 %v10861_v49, %v11283_v22 }
 0x334   : > { %v11567_v57 = vpop.xlane.xlu0 %1919  ;;  %2772 = vmax.xlane.f32.xlu1 %v2771_v41  ;;  %9194 = vpow2.f32 %v2102_v29  ;;  %v2765_v51 = vsel %vm1845_vm0, %v11219_v63, -inf  ;;  %v16867_v49 = vsub.f32 %v10867_v7, %v11291_v18 }
 0x335   : > { %v11574_v61 = vpop.xlane.xlu1 %1922  ;;  %v2838_v41 = vmul.f32 1.442695, %v16861_v50  ;;  %9196 = vpow2.f32 %v2104_v34  ;;  %v16868_v34 = vld [vmem:[#allocation94_spill] sm:$0xff] }
 0x336   : > { %v11601_v23 = vpop.eup %9186  ;;  %v2114_v22 = vmul.f32 1.442695, %v16867_v49 }
 0x337   : > { %2027 = vmax.xlane.f32.xlu0 %v2026_v1  ;;  %v2840_v1 = vmul.f32 1.442695, %v16863_v31  ;;  %16865 = vst [vmem:[#allocation84_spill] sm:$0xff] %v11601_v23  ;;  %v11605_v24 = vpop.eup %9188  ;;  %9198 = vpow2.f32 %v2838_v41  ;;  %v2236_v41 = vsel %vm1845_vm0, %v11601_v23, 0.0 }
 0x338   : > { %v11585_v9 = vpop.xlane.xlu0 %2655  ;;  %2030 = vmax.xlane.f32.xlu1 %v2029_v55  ;;  %v2762_v55 = vsel %vm1845_vm0, %v11209_v3, -inf  ;;  %16866 = vst [vmem:[#allocation86_spill] sm:$0xff] %v11605_v24  ;;  %v2239_v18 = vsel %vm1845_vm0, %v11605_v24, 0.0  ;;  %v16876_v24 = vld [vmem:[#allocation98_spill] sm:$0xff] }
 0x339   : > { %v11592_v54 = vpop.xlane.xlu1 %2658  ;;  %9200 = vpow2.f32 %v2840_v1  ;;  %v16874_v1 = vld [vmem:[#allocation95_spill] sm:$0xff] }
 0x33a   : > { %9202 = vpow2.f32 %v2114_v22 }
 0x33b   : > { %2763 = vmax.xlane.f32.xlu0 %v2762_v55  ;;  %v16869_v55 = vsub.f32 %v10879_v43, %v11295_v28  ;;  %v16873_v28 = vsub.f32 %v10869_v40, %v11303_v36 }
 0x33c   : > { %v11607_v29 = vpop.xlane.xlu0 %1937  ;;  %2766 = vmax.xlane.f32.xlu1 %v2765_v51  ;;  %v11623_v51 = vpop.eup %9190 }
 0x33d   : > { %v11614_v31 = vpop.xlane.xlu1 %1940  ;;  %v2116_v12 = vmul.f32 1.442695, %v16869_v55  ;;  %16871 = vst [vmem:[#allocation91_spill] sm:$0xff] %v11623_v51  ;;  %v11627_v7 = vpop.eup %9192  ;;  %v2850_v43 = vmul.f32 1.442695, %v16873_v28  ;;  %v2972_v22 = vsel %vm1845_vm0, %v11623_v51, 0.0 }
 0x33e   : > { %16872 = vst [vmem:[#allocation87_spill] sm:$0xff] %v11627_v7  ;;  %v2975_v36 = vsel %vm1845_vm0, %v11627_v7, 0.0  ;;  %v16883_v51 = vld [vmem:[#allocation101_spill] sm:$0xff] }
 0x33f   : > { %2237 = vadd.xlane.f32.xlu0 %v2236_v41  ;;  %9204 = vpow2.f32 %v2116_v12  ;;  %v16875_v41 = vsub.f32 %v10877_v11, %v11307_v42  ;;  %v16879_v11 = vsub.f32 %v10871_v15, %v11315_v25  ;;  %v16880_v12 = vld [vmem:[#allocation96_spill] sm:$0xff] }
 0x340   : > { %v11629_v49 = vpop.xlane.xlu0 %2673  ;;  %2240 = vadd.xlane.f32.xlu1 %v2239_v18  ;;  %v11645_v18 = vpop.eup %9194  ;;  %9206 = vpow2.f32 %v2850_v43 }
 0x341   : > { %v11636_v63 = vpop.xlane.xlu1 %2676  ;;  %v2852_v50 = vmul.f32 1.442695, %v16875_v41  ;;  %16877 = vst [vmem:[#allocation90_spill] sm:$0xff] %v11645_v18  ;;  %v11649_v40 = vpop.eup %9196  ;;  %v2110_v42 = vmul.f32 1.442695, %v16879_v11  ;;  %v2230_v43 = vsel %vm1845_vm0, %v11645_v18, 0.0 }
 0x342   : > { %16878 = vst [vmem:[#allocation88_spill] sm:$0xff] %v11649_v40  ;;  %v2233_v25 = vsel %vm1845_vm0, %v11649_v40, 0.0 }
 0x343   : > { %2973 = vadd.xlane.f32.xlu0 %v2972_v22  ;;  %9208 = vpow2.f32 %v2852_v50  ;;  %v16881_v22 = vld [vmem:[#allocation166_spill] sm:$0xff] }
 0x344   : > { %v11651_v28 = vpop.xlane.xlu0 %1931  ;;  %2976 = vadd.xlane.f32.xlu1 %v2975_v36  ;;  %v16882_v55 = vsub.f32 %v16760_v35, %v16881_v22  ;;  %v11667_v36 = vpop.eup %9198  ;;  %9210 = vpow2.f32 %v2110_v42  ;;  %v16886_v35 = vld [vmem:[#allocation53_spill] sm:$0xff] }
 0x345   : > { %v11658_v23 = vpop.xlane.xlu1 %1934  ;;  %16884 = vst [vmem:[#allocation93_spill] sm:$0xff] %v11667_v36  ;;  %v11671_v15 = vpop.eup %9200  ;;  %v16887_v50 = vsub.f32 %v16763_v19, %v16886_v35  ;;  %v16888_v22 = vld [vmem:[#allocation97_spill] sm:$0xff]  ;;  %v2966_v42 = vsel %vm1845_vm0, %v11667_v36, 0.0  ;;  %v16901_v36 = vld [vmem:[#allocation54_spill] sm:$0xff] }
 0x346   : > { %v2112_v7 = vmul.f32 1.442695, %v16882_v55  ;;  %16885 = vst [vmem:[#allocation89_spill] sm:$0xff] %v11671_v15  ;;  %v2969_v19 = vsel %vm1845_vm0, %v11671_v15, 0.0 }
 0x347   : > { %2231 = vadd.xlane.f32.xlu0 %v2230_v43  ;;  %v2846_v55 = vmul.f32 1.442695, %v16887_v50  ;;  %v16890_v43 = vld [vmem:[#allocation51_spill] sm:$0xff] }
 0x348   : > { %v11673_v11 = vpop.xlane.xlu0 %2667  ;;  %2234 = vadd.xlane.f32.xlu1 %v2233_v25  ;;  %9212 = vpow2.f32 %v2112_v7  ;;  %v16891_v18 = vsub.f32 %v16765_v62, %v16890_v43  ;;  %v11689_v25 = vpop.eup %9202  ;;  %v16896_v62 = vld [vmem:[#allocation52_spill] sm:$0xff]  ;;  %v16898_v43 = vld [vmem:[#allocation102_spill] sm:$0xff] }
 0x349   : > { %v11680_v41 = vpop.xlane.xlu1 %2670  ;;  %16893 = vst [vmem:[#allocation94_spill] sm:$0xff] %v11689_v25  ;;  %v11693_v35 = vpop.eup %9204  ;;  %9214 = vpow2.f32 %v2846_v55  ;;  %v16897_v7 = vsub.f32 %v16769_v30, %v16896_v62  ;;  %v2248_v55 = vsel %vm1845_vm0, %v11689_v25, 0.0 }
 0x34a   : > { %16889 = vst [vmem:[#allocation92_spill] sm:$0xff] %v11680_v41  ;;  %v2848_v40 = vmul.f32 1.442695, %v16891_v18  ;;  %16894 = vst [vmem:[#allocation99_spill] sm:$0xff] %v11693_v35  ;;  %v2251_v30 = vsel %vm1845_vm0, %v11693_v35, 0.0 }
 0x34b   : > { %2967 = vadd.xlane.f32.xlu0 %v2966_v42  ;;  %v2122_v18 = vmul.f32 1.442695, %v16897_v7  ;;  %v16900_v42 = vld [vmem:[#allocation59_spill] sm:$0xff] }
 0x34c   : > { %v11695_v50 = vpop.xlane.xlu0 %1949  ;;  %2970 = vadd.xlane.f32.xlu1 %v2969_v19  ;;  %9216 = vpow2.f32 %v2848_v40  ;;  %v16902_v13 = vsub.f32 %v16900_v42, %v16901_v36  ;;  %v11711_v19 = vpop.eup %9206  ;;  %v16907_v40 = vld [vmem:[#allocation55_spill] sm:$0xff] }
 0x34d   : > { %16895 = vst [vmem:[#allocation95_spill] sm:$0xff] %v11695_v50  ;;  %v11702_v3 = vpop.xlane.xlu1 %1952  ;;  %16904 = vst [vmem:[#allocation96_spill] sm:$0xff] %v11711_v19  ;;  %v11715_v62 = vpop.eup %9208  ;;  %9218 = vpow2.f32 %v2122_v18  ;;  %v2984_v18 = vsel %vm1845_vm0, %v11711_v19, 0.0  ;;  %v16920_v50 = vld [vmem:[#allocation104_spill] sm:$0xff] }
 0x34e   : > { %16899 = vst [vmem:[#allocation98_spill] sm:$0xff] %v11702_v3  ;;  %v2124_v15 = vmul.f32 1.442695, %v16902_v13  ;;  %16905 = vst [vmem:[#allocation166_spill] sm:$0xff] %v11715_v62  ;;  %v16908_v13 = vld [vmem:[#allocation167_spill] sm:$0xff] }
 0x34f   : > { %2249 = vadd.xlane.f32.xlu0 %v2248_v55  ;;  %v16909_v36 = vsub.f32 %v16907_v40, %v16908_v13  ;;  %v16912_v55 = vld [vmem:[#allocation168_spill] sm:$0xff]  ;;  %v2987_v40 = vsel %vm1845_vm0, %v11715_v62, 0.0 }
 0x350   : > { %v11717_v7 = vpop.xlane.xlu0 %2685  ;;  %2252 = vadd.xlane.f32.xlu1 %v2251_v30  ;;  %9220 = vpow2.f32 %v2124_v15  ;;  %v16913_v3 = vsub.f32 %v16775_v33, %v16912_v55  ;;  %v11733_v30 = vpop.eup %9210  ;;  %v16917_v33 = vld [vmem:[#allocation56_spill] sm:$0xff] }
 0x351   : > { %16906 = vst [vmem:[#allocation101_spill] sm:$0xff] %v11717_v7  ;;  %v2858_v42 = vmul.f32 1.442695, %v16909_v36  ;;  %v11724_v25 = vpop.xlane.xlu1 %2688  ;;  %16915 = vst [vmem:[#allocation97_spill] sm:$0xff] %v11733_v30 }
 0x352   : > { %16911 = vst [vmem:[#allocation53_spill] sm:$0xff] %v11724_v25  ;;  %v2860_v35 = vmul.f32 1.442695, %v16913_v3  ;;  %v11737_v13 = vpop.eup %9212  ;;  %v16918_v3 = vld [vmem:[#allocation58_spill] sm:$0xff]  ;;  %v16923_v25 = vld [vmem:[#allocation169_spill] sm:$0xff] }
 0x353   : > { %2985 = vadd.xlane.f32.xlu0 %v2984_v18  ;;  %16916 = vst [vmem:[#allocation51_spill] sm:$0xff] %v11737_v13  ;;  %9222 = vpow2.f32 %v2858_v42  ;;  %v16919_v15 = vsub.f32 %v16917_v33, %v16918_v3  ;;  %v16922_v18 = vld [vmem:[#allocation61_spill] sm:$0xff]  ;;  %v2242_v42 = vsel %vm1845_vm0, %v11733_v30, 0.0  ;;  %v2245_v33 = vsel %vm1845_vm0, %v11737_v13, 0.0 }
 0x354   : > { %v11739_v36 = vpop.xlane.xlu0 %1943  ;;  %2988 = vadd.xlane.f32.xlu1 %v2987_v40  ;;  %9224 = vpow2.f32 %v2860_v35  ;;  %v16924_v41 = vsub.f32 %v16922_v18, %v16923_v25  ;;  %v11755_v40 = vpop.eup %9214  ;;  %v16931_v18 = vld [vmem:[#allocation105_spill] sm:$0xff] }
 0x355   : > { %v2118_v55 = vmul.f32 1.442695, %v16919_v15  ;;  %v11746_v19 = vpop.xlane.xlu1 %1946  ;;  %16926 = vst [vmem:[#allocation102_spill] sm:$0xff] %v11755_v40 }
 0x356   : > { %16921 = vst [vmem:[#allocation52_spill] sm:$0xff] %v11746_v19  ;;  %v2120_v62 = vmul.f32 1.442695, %v16924_v41  ;;  %v11759_v3 = vpop.eup %9216  ;;  %v16929_v41 = vld [vmem:[#allocation170_spill] sm:$0xff] }
 0x357   : > { %2243 = vadd.xlane.f32.xlu0 %v2242_v42  ;;  %16927 = vst [vmem:[#allocation59_spill] sm:$0xff] %v11759_v3  ;;  %9226 = vpow2.f32 %v2118_v55  ;;  %v16930_v25 = vsub.f32 %v16783_v45, %v16929_v41  ;;  %v16933_v42 = vld [vmem:[#allocation57_spill] sm:$0xff]  ;;  %v2978_v55 = vsel %vm1845_vm0, %v11755_v40, 0.0  ;;  %v2981_v45 = vsel %vm1845_vm0, %v11759_v3, 0.0  ;;  %v16944_v40 = vld [vmem:[#allocation62_spill] sm:$0xff] }
 0x358   : > { %v11761_v15 = vpop.xlane.xlu0 %2679  ;;  %2246 = vadd.xlane.f32.xlu1 %v2245_v33  ;;  %9228 = vpow2.f32 %v2120_v62  ;;  %v16934_v30 = vsub.f32 %v16785_v47, %v16933_v42  ;;  %v11777_v33 = vpop.eup %9218  ;;  %v16939_v47 = vld [vmem:[#allocation60_spill] sm:$0xff]  ;;  %v16941_v42 = vld [vmem:[#allocation110_spill] sm:$0xff] }
 0x359   : > { %16928 = vst [vmem:[#allocation54_spill] sm:$0xff] %v11761_v15  ;;  %v2854_v35 = vmul.f32 1.442695, %v16930_v25  ;;  %v11768_v5 = vpop.xlane.xlu1 %2682  ;;  %16936 = vst [vmem:[#allocation167_spill] sm:$0xff] %v11777_v33  ;;  %v16940_v62 = vsub.f32 %v16789_v46, %v16939_v47 }
 0x35a   : > { %16932 = vst [vmem:[#allocation55_spill] sm:$0xff] %v11768_v5  ;;  %v2856_v13 = vmul.f32 1.442695, %v16934_v30  ;;  %v11781_v41 = vpop.eup %9220 }
 0x35b   : > { %2979 = vadd.xlane.f32.xlu0 %v2978_v55  ;;  %16937 = vst [vmem:[#allocation168_spill] sm:$0xff] %v11781_v41  ;;  %9230 = vpow2.f32 %v2854_v35  ;;  %v2130_v30 = vmul.f32 1.442695, %v16940_v62  ;;  %v16943_v55 = vld [vmem:[#allocation67_spill] sm:$0xff]  ;;  %v2260_v35 = vsel %vm1845_vm0, %v11777_v33, 0.0  ;;  %v2263_v46 = vsel %vm1845_vm0, %v11781_v41, 0.0 }
 0x35c   : > { %v11783_v25 = vpop.xlane.xlu0 %1961  ;;  %2982 = vadd.xlane.f32.xlu1 %v2981_v45  ;;  %9232 = vpow2.f32 %v2856_v13  ;;  %v16945_v5 = vsub.f32 %v16943_v55, %v16944_v40  ;;  %v16950_v13 = vld [vmem:[#allocation63_spill] sm:$0xff] }
 0x35d   : > { %16938 = vst [vmem:[#allocation56_spill] sm:$0xff] %v11783_v25  ;;  %v11790_v10 = vpop.xlane.xlu1 %1964  ;;  %v11799_v45 = vpop.eup %9222  ;;  %9234 = vpow2.f32 %v2130_v30  ;;  %v16963_v25 = vld [vmem:[#allocation112_spill] sm:$0xff] }
 0x35e   : > { %16942 = vst [vmem:[#allocation58_spill] sm:$0xff] %v11790_v10  ;;  %v2132_v3 = vmul.f32 1.442695, %v16945_v5  ;;  %16947 = vst [vmem:[#allocation104_spill] sm:$0xff] %v11799_v45  ;;  %v11803_v47 = vpop.eup %9224  ;;  %v16951_v5 = vld [vmem:[#allocation171_spill] sm:$0xff]  ;;  %v2996_v30 = vsel %vm1845_vm0, %v11799_v45, 0.0 }
 0x35f   : > { %2261 = vadd.xlane.f32.xlu0 %v2260_v35  ;;  %16948 = vst [vmem:[#allocation61_spill] sm:$0xff] %v11803_v47  ;;  %v16952_v40 = vsub.f32 %v16950_v13, %v16951_v5  ;;  %v16955_v35 = vld [vmem:[#allocation172_spill] sm:$0xff]  ;;  %v2999_v13 = vsel %vm1845_vm0, %v11803_v47, 0.0 }
 0x360   : > { %v11805_v62 = vpop.xlane.xlu0 %2697  ;;  %2264 = vadd.xlane.f32.xlu1 %v2263_v46  ;;  %9236 = vpow2.f32 %v2132_v3  ;;  %v16956_v10 = vsub.f32 %v16795_v14, %v16955_v35  ;;  %v16960_v14 = vld [vmem:[#allocation64_spill] sm:$0xff] }
 0x361   : > { %16949 = vst [vmem:[#allocation169_spill] sm:$0xff] %v11805_v62  ;;  %v2866_v55 = vmul.f32 1.442695, %v16952_v40  ;;  %v11812_v33 = vpop.xlane.xlu1 %2700  ;;  %v11821_v46 = vpop.eup %9226 }
 0x362   : > { %16954 = vst [vmem:[#allocation170_spill] sm:$0xff] %v11812_v33  ;;  %v2868_v41 = vmul.f32 1.442695, %v16956_v10  ;;  %16958 = vst [vmem:[#allocation105_spill] sm:$0xff] %v11821_v46  ;;  %v11825_v5 = vpop.eup %9228  ;;  %v16961_v10 = vld [vmem:[#allocation66_spill] sm:$0xff]  ;;  %v16966_v33 = vld [vmem:[#allocation173_spill] sm:$0xff] }
 0x363   : > { %2997 = vadd.xlane.f32.xlu0 %v2996_v30  ;;  %16959 = vst [vmem:[#allocation57_spill] sm:$0xff] %v11825_v5  ;;  %9238 = vpow2.f32 %v2866_v55  ;;  %v16962_v3 = vsub.f32 %v16960_v14, %v16961_v10  ;;  %v16965_v30 = vld [vmem:[#allocation69_spill] sm:$0xff]  ;;  %v2254_v55 = vsel %vm1845_vm0, %v11821_v46, 0.0  ;;  %v2257_v14 = vsel %vm1845_vm0, %v11825_v5, 0.0 }
 0x364   : > { %v11827_v40 = vpop.xlane.xlu0 %1955  ;;  %3000 = vadd.xlane.f32.xlu1 %v2999_v13  ;;  %9240 = vpow2.f32 %v2868_v41  ;;  %v16967_v19 = vsub.f32 %v16965_v30, %v16966_v33  ;;  %v16974_v30 = vld [vmem:[#allocation113_spill] sm:$0xff] }
 0x365   : > { %v2126_v35 = vmul.f32 1.442695, %v16962_v3  ;;  %v11834_v45 = vpop.xlane.xlu1 %1958  ;;  %v11843_v13 = vpop.eup %9230 }
 0x366   : > { %16964 = vst [vmem:[#allocation60_spill] sm:$0xff] %v11834_v45  ;;  %v2128_v47 = vmul.f32 1.442695, %v16967_v19  ;;  %16969 = vst [vmem:[#allocation110_spill] sm:$0xff] %v11843_v13  ;;  %v11847_v10 = vpop.eup %9232  ;;  %v16972_v19 = vld [vmem:[#allocation174_spill] sm:$0xff] }
 0x367   : > { %2255 = vadd.xlane.f32.xlu0 %v2254_v55  ;;  %16970 = vst [vmem:[#allocation67_spill] sm:$0xff] %v11847_v10  ;;  %9242 = vpow2.f32 %v2126_v35  ;;  %v16973_v33 = vsub.f32 %v16803_v26, %v16972_v19  ;;  %v16976_v55 = vld [vmem:[#allocation65_spill] sm:$0xff]  ;;  %v2990_v35 = vsel %vm1845_vm0, %v11843_v13, 0.0  ;;  %v2993_v26 = vsel %vm1845_vm0, %v11847_v10, 0.0  ;;  %v16987_v13 = vld [vmem:[#allocation70_spill] sm:$0xff] }
 0x368   : > { %v11849_v3 = vpop.xlane.xlu0 %2691  ;;  %2258 = vadd.xlane.f32.xlu1 %v2257_v14  ;;  %9244 = vpow2.f32 %v2128_v47  ;;  %v16977_v46 = vsub.f32 %v16805_v0, %v16976_v55  ;;  %v11865_v14 = vpop.eup %9234  ;;  %v16982_v0 = vld [vmem:[#allocation68_spill] sm:$0xff]  ;;  %v16984_v55 = vld [vmem:[#allocation118_spill] sm:$0xff] }
 0x369   : > { %16971 = vst [vmem:[#allocation62_spill] sm:$0xff] %v11849_v3  ;;  %v2862_v41 = vmul.f32 1.442695, %v16973_v33  ;;  %v11856_v7 = vpop.xlane.xlu1 %2694  ;;  %16979 = vst [vmem:[#allocation171_spill] sm:$0xff] %v11865_v14  ;;  %v16983_v47 = vsub.f32 %v16809_v48, %v16982_v0 }
 0x36a   : > { %16975 = vst [vmem:[#allocation63_spill] sm:$0xff] %v11856_v7  ;;  %v2864_v5 = vmul.f32 1.442695, %v16977_v46  ;;  %v11869_v19 = vpop.eup %9236 }
 0x36b   : > { %2991 = vadd.xlane.f32.xlu0 %v2990_v35  ;;  %16980 = vst [vmem:[#allocation172_spill] sm:$0xff] %v11869_v19  ;;  %9246 = vpow2.f32 %v2862_v41  ;;  %v2138_v46 = vmul.f32 1.442695, %v16983_v47  ;;  %v16986_v35 = vld [vmem:[#allocation75_spill] sm:$0xff]  ;;  %v2272_v41 = vsel %vm1845_vm0, %v11865_v14, 0.0  ;;  %v2275_v48 = vsel %vm1845_vm0, %v11869_v19, 0.0 }
 0x36c   : > { %v11871_v33 = vpop.xlane.xlu0 %1973  ;;  %2994 = vadd.xlane.f32.xlu1 %v2993_v26  ;;  %9248 = vpow2.f32 %v2864_v5  ;;  %v16988_v7 = vsub.f32 %v16986_v35, %v16987_v13  ;;  %v16993_v5 = vld [vmem:[#allocation71_spill] sm:$0xff] }
 0x36d   : > { %16981 = vst [vmem:[#allocation64_spill] sm:$0xff] %v11871_v33  ;;  %v11878_v15 = vpop.xlane.xlu1 %1976  ;;  %v11887_v26 = vpop.eup %9238  ;;  %9250 = vpow2.f32 %v2138_v46  ;;  %v17006_v33 = vld [vmem:[#allocation120_spill] sm:$0xff] }
 0x36e   : > { %16985 = vst [vmem:[#allocation66_spill] sm:$0xff] %v11878_v15  ;;  %v2140_v10 = vmul.f32 1.442695, %v16988_v7  ;;  %16990 = vst [vmem:[#allocation112_spill] sm:$0xff] %v11887_v26  ;;  %v11891_v0 = vpop.eup %9240  ;;  %v16994_v7 = vld [vmem:[#allocation175_spill] sm:$0xff]  ;;  %v3008_v46 = vsel %vm1845_vm0, %v11887_v26, 0.0 }
 0x36f   : > { %2273 = vadd.xlane.f32.xlu0 %v2272_v41  ;;  %16991 = vst [vmem:[#allocation69_spill] sm:$0xff] %v11891_v0  ;;  %v16995_v13 = vsub.f32 %v16993_v5, %v16994_v7  ;;  %v16998_v41 = vld [vmem:[#allocation176_spill] sm:$0xff]  ;;  %v3011_v5 = vsel %vm1845_vm0, %v11891_v0, 0.0 }
 0x370   : > { %v11893_v47 = vpop.xlane.xlu0 %2709  ;;  %2276 = vadd.xlane.f32.xlu1 %v2275_v48  ;;  %9252 = vpow2.f32 %v2140_v10  ;;  %v16999_v15 = vsub.f32 %v16815_v2, %v16998_v41  ;;  %v17003_v2 = vld [vmem:[#allocation72_spill] sm:$0xff] }
 0x371   : > { %16992 = vst [vmem:[#allocation173_spill] sm:$0xff] %v11893_v47  ;;  %v2874_v35 = vmul.f32 1.442695, %v16995_v13  ;;  %v11900_v14 = vpop.xlane.xlu1 %2712  ;;  %v11909_v48 = vpop.eup %9242 }
 0x372   : > { %16997 = vst [vmem:[#allocation174_spill] sm:$0xff] %v11900_v14  ;;  %v2876_v19 = vmul.f32 1.442695, %v16999_v15  ;;  %17001 = vst [vmem:[#allocation113_spill] sm:$0xff] %v11909_v48  ;;  %v11913_v7 = vpop.eup %9244  ;;  %v17004_v15 = vld [vmem:[#allocation74_spill] sm:$0xff]  ;;  %v17009_v14 = vld [vmem:[#allocation177_spill] sm:$0xff] }
 0x373   : > { %3009 = vadd.xlane.f32.xlu0 %v3008_v46  ;;  %17002 = vst [vmem:[#allocation65_spill] sm:$0xff] %v11913_v7  ;;  %9254 = vpow2.f32 %v2874_v35  ;;  %v17005_v10 = vsub.f32 %v17003_v2, %v17004_v15  ;;  %v17008_v46 = vld [vmem:[#allocation77_spill] sm:$0xff]  ;;  %v2266_v35 = vsel %vm1845_vm0, %v11909_v48, 0.0  ;;  %v2269_v2 = vsel %vm1845_vm0, %v11913_v7, 0.0 }
 0x374   : > { %v11915_v13 = vpop.xlane.xlu0 %1967  ;;  %3012 = vadd.xlane.f32.xlu1 %v3011_v5  ;;  %9256 = vpow2.f32 %v2876_v19  ;;  %v17010_v45 = vsub.f32 %v17008_v46, %v17009_v14  ;;  %v17017_v46 = vld [vmem:[#allocation121_spill] sm:$0xff] }
 0x375   : > { %v2134_v41 = vmul.f32 1.442695, %v17005_v10  ;;  %v11922_v26 = vpop.xlane.xlu1 %1970  ;;  %v11931_v5 = vpop.eup %9246 }
 0x376   : > { %17007 = vst [vmem:[#allocation68_spill] sm:$0xff] %v11922_v26  ;;  %v2136_v0 = vmul.f32 1.442695, %v17010_v45  ;;  %17012 = vst [vmem:[#allocation118_spill] sm:$0xff] %v11931_v5  ;;  %v11935_v15 = vpop.eup %9248  ;;  %v17015_v45 = vld [vmem:[#allocation178_spill] sm:$0xff]  ;;  %v17063_v26 = vld [vmem:[#allocation132_spill] sm:$0xff] }
 0x377   : > { %2267 = vadd.xlane.f32.xlu0 %v2266_v35  ;;  %17013 = vst [vmem:[#allocation75_spill] sm:$0xff] %v11935_v15  ;;  %9258 = vpow2.f32 %v2134_v41  ;;  %v17016_v14 = vsub.f32 %v16823_v37, %v17015_v45  ;;  %v17019_v35 = vld [vmem:[#allocation73_spill] sm:$0xff]  ;;  %v3002_v41 = vsel %vm1845_vm0, %v11931_v5, 0.0  ;;  %v3005_v37 = vsel %vm1845_vm0, %v11935_v15, 0.0  ;;  %v17030_v5 = vld [vmem:[#allocation78_spill] sm:$0xff] }
 0x378   : > { %v11937_v10 = vpop.xlane.xlu0 %2703  ;;  %2270 = vadd.xlane.f32.xlu1 %v2269_v2  ;;  %9260 = vpow2.f32 %v2136_v0  ;;  %v17020_v48 = vsub.f32 %v16825_v44, %v17019_v35  ;;  %v11953_v2 = vpop.eup %9250  ;;  %v17025_v44 = vld [vmem:[#allocation76_spill] sm:$0xff]  ;;  %v17027_v35 = vld [vmem:[#allocation126_spill] sm:$0xff] }
 0x379   : > { %17014 = vst [vmem:[#allocation70_spill] sm:$0xff] %v11937_v10  ;;  %v2870_v19 = vmul.f32 1.442695, %v17016_v14  ;;  %v11944_v62 = vpop.xlane.xlu1 %2706  ;;  %17022 = vst [vmem:[#allocation175_spill] sm:$0xff] %v11953_v2  ;;  %v17026_v0 = vsub.f32 %v16829_v17, %v17025_v44  ;;  %v17039_v10 = vld [vmem:[#allocation127_spill] sm:$0xff] }
 0x37a   : > { %17018 = vst [vmem:[#allocation71_spill] sm:$0xff] %v11944_v62  ;;  %v2872_v7 = vmul.f32 1.442695, %v17020_v48  ;;  %v11957_v45 = vpop.eup %9252 }
 0x37b   : > { %3003 = vadd.xlane.f32.xlu0 %v3002_v41  ;;  %17023 = vst [vmem:[#allocation176_spill] sm:$0xff] %v11957_v45  ;;  %9262 = vpow2.f32 %v2870_v19  ;;  %v2146_v48 = vmul.f32 1.442695, %v17026_v0  ;;  %v17029_v41 = vld [vmem:[#allocation83_spill] sm:$0xff]  ;;  %v2284_v19 = vsel %vm1845_vm0, %v11953_v2, 0.0  ;;  %v2287_v17 = vsel %vm1845_vm0, %v11957_v45, 0.0 }
 0x37c   : > { %v11959_v14 = vpop.xlane.xlu0 %1985  ;;  %3006 = vadd.xlane.f32.xlu1 %v3005_v37  ;;  %9264 = vpow2.f32 %v2872_v7  ;;  %v17031_v62 = vsub.f32 %v17029_v41, %v17030_v5  ;;  %v17036_v7 = vld [vmem:[#allocation79_spill] sm:$0xff] }
 0x37d   : > { %17024 = vst [vmem:[#allocation72_spill] sm:$0xff] %v11959_v14  ;;  %v11966_v3 = vpop.xlane.xlu1 %1988  ;;  %v11975_v37 = vpop.eup %9254  ;;  %9266 = vpow2.f32 %v2146_v48  ;;  %v17050_v14 = vld [vmem:[#allocation128_spill] sm:$0xff] }
 0x37e   : > { %17028 = vst [vmem:[#allocation74_spill] sm:$0xff] %v11966_v3  ;;  %v2148_v15 = vmul.f32 1.442695, %v17031_v62  ;;  %17033 = vst [vmem:[#allocation120_spill] sm:$0xff] %v11975_v37  ;;  %v11979_v44 = vpop.eup %9256  ;;  %v17037_v62 = vld [vmem:[#allocation179_spill] sm:$0xff]  ;;  %v3020_v48 = vsel %vm1845_vm0, %v11975_v37, 0.0 }
 0x37f   : > { %2285 = vadd.xlane.f32.xlu0 %v2284_v19  ;;  %17034 = vst [vmem:[#allocation77_spill] sm:$0xff] %v11979_v44  ;;  %v17038_v5 = vsub.f32 %v17036_v7, %v17037_v62  ;;  %v17041_v19 = vld [vmem:[#allocation180_spill] sm:$0xff]  ;;  %v3023_v7 = vsel %vm1845_vm0, %v11979_v44, 0.0 }
 0x380   : > { %v11981_v0 = vpop.xlane.xlu0 %2721  ;;  %2288 = vadd.xlane.f32.xlu1 %v2287_v17  ;;  %9268 = vpow2.f32 %v2148_v15  ;;  %v17042_v3 = vsub.f32 %v16835_v27, %v17041_v19  ;;  %v17047_v27 = vld [vmem:[#allocation80_spill] sm:$0xff] }
 0x381   : > { %17035 = vst [vmem:[#allocation177_spill] sm:$0xff] %v11981_v0  ;;  %v2882_v41 = vmul.f32 1.442695, %v17038_v5  ;;  %v11988_v2 = vpop.xlane.xlu1 %2724  ;;  %v11997_v17 = vpop.eup %9258  ;;  %v17060_v0 = vld [vmem:[#allocation129_spill] sm:$0xff] }
 0x382   : > { %17040 = vst [vmem:[#allocation178_spill] sm:$0xff] %v11988_v2  ;;  %v2884_v45 = vmul.f32 1.442695, %v17042_v3  ;;  %17044 = vst [vmem:[#allocation121_spill] sm:$0xff] %v11997_v17  ;;  %v12001_v62 = vpop.eup %9260  ;;  %v17048_v3 = vld [vmem:[#allocation82_spill] sm:$0xff] }
 0x383   : > { %3021 = vadd.xlane.f32.xlu0 %v3020_v48  ;;  %17045 = vst [vmem:[#allocation73_spill] sm:$0xff] %v12001_v62  ;;  %9270 = vpow2.f32 %v2882_v41  ;;  %v17049_v15 = vsub.f32 %v17047_v27, %v17048_v3  ;;  %v17052_v48 = vld [vmem:[#allocation181_spill] sm:$0xff]  ;;  %v2278_v41 = vsel %vm1845_vm0, %v11997_v17, 0.0  ;;  %v2281_v27 = vsel %vm1845_vm0, %v12001_v62, 0.0 }
 0x384   : > { %v12003_v5 = vpop.xlane.xlu0 %1979  ;;  %3024 = vadd.xlane.f32.xlu1 %v3023_v7  ;;  %9272 = vpow2.f32 %v2884_v45  ;;  %v17053_v2 = vsub.f32 %v16840_v4, %v17052_v48  ;;  %v17057_v4 = vld [vmem:[#allocation81_spill] sm:$0xff] }
 0x385   : > { %17046 = vst [vmem:[#allocation76_spill] sm:$0xff] %v12003_v5  ;;  %v2142_v19 = vmul.f32 1.442695, %v17049_v15  ;;  %v12010_v37 = vpop.xlane.xlu1 %1982  ;;  %v12019_v7 = vpop.eup %9262 }
 0x386   : > { %17051 = vst [vmem:[#allocation126_spill] sm:$0xff] %v12010_v37  ;;  %v2144_v44 = vmul.f32 1.442695, %v17053_v2  ;;  %17055 = vst [vmem:[#allocation83_spill] sm:$0xff] %v12019_v7  ;;  %v12023_v3 = vpop.eup %9264  ;;  %v17058_v2 = vld [vmem:[#allocation85_spill] sm:$0xff] }
 0x387   : > { %2279 = vadd.xlane.f32.xlu0 %v2278_v41  ;;  %17056 = vst [vmem:[#allocation78_spill] sm:$0xff] %v12023_v3  ;;  %9274 = vpow2.f32 %v2142_v19  ;;  %v17059_v45 = vsub.f32 %v17057_v4, %v17058_v2  ;;  %v17061_v41 = vld [vmem:[#allocation182_spill] sm:$0xff]  ;;  %v3014_v19 = vsel %vm1845_vm0, %v12019_v7, 0.0  ;;  %v3017_v4 = vsel %vm1845_vm0, %v12023_v3, 0.0  ;;  %v17069_v3 = vld [vmem:[#allocation139_spill] sm:$0xff] }
 0x388   : > { %v12025_v15 = vpop.xlane.xlu0 %2715  ;;  %2282 = vadd.xlane.f32.xlu1 %v2281_v27  ;;  %9276 = vpow2.f32 %v2144_v44  ;;  %v17062_v37 = vsub.f32 %v16845_v6, %v17061_v41  ;;  %v12041_v27 = vpop.eup %9266  ;;  %v17066_v6 = vsub.f32 %v16849_v21, %v11531_v39  ;;  %v17067_v44 = vld [vmem:[#allocation134_spill] sm:$0xff] }
 0x389   : > { %v2878_v48 = vmul.f32 1.442695, %v17059_v45  ;;  %v12032_v17 = vpop.xlane.xlu1 %2718  ;;  %17064 = vst [vmem:[#allocation79_spill] sm:$0xff] %v12041_v27 }
 0x38a   : > { %v2880_v62 = vmul.f32 1.442695, %v17062_v37  ;;  %v12045_v2 = vpop.eup %9268  ;;  %v2154_v37 = vmul.f32 1.442695, %v17066_v6 }
 0x38b   : > { %3015 = vadd.xlane.f32.xlu0 %v3014_v19  ;;  %17065 = vst [vmem:[#allocation179_spill] sm:$0xff] %v12045_v2  ;;  %9278 = vpow2.f32 %v2878_v48  ;;  %v17068_v19 = vsub.f32 %v16851_v59, %v11538_v52  ;;  %v2296_v48 = vsel %vm1845_vm0, %v12041_v27, 0.0  ;;  %v2299_v39 = vsel %vm1845_vm0, %v12045_v2, 0.0  ;;  %v17075_v2 = vld [vmem:[#allocation138_spill] sm:$0xff] }
 0x38c   : > { %v12047_v45 = vpop.xlane.xlu0 %1997  ;;  %3018 = vadd.xlane.f32.xlu1 %v3017_v4  ;;  %9280 = vpow2.f32 %v2880_v62  ;;  %v17072_v52 = vsub.f32 %v16853_v60, %v11549_v16  ;;  %v17073_v62 = vld [vmem:[#allocation135_spill] sm:$0xff] }
 0x38d   : > { %v12054_v5 = vpop.xlane.xlu1 %2000  ;;  %v2156_v47 = vmul.f32 1.442695, %v17068_v19  ;;  %v12063_v4 = vpop.eup %9270  ;;  %9282 = vpow2.f32 %v2154_v37 }
 0x38e   : > { %17070 = vst [vmem:[#allocation127_spill] sm:$0xff] %v12063_v4  ;;  %v12067_v21 = vpop.eup %9272  ;;  %v2890_v59 = vmul.f32 1.442695, %v17072_v52  ;;  %v3032_v37 = vsel %vm1845_vm0, %v12063_v4, 0.0 }
 0x38f   : > { %2297 = vadd.xlane.f32.xlu0 %v2296_v48  ;;  %17071 = vst [vmem:[#allocation180_spill] sm:$0xff] %v12067_v21  ;;  %9284 = vpow2.f32 %v2156_v47  ;;  %v17074_v48 = vsub.f32 %v16855_v38, %v11556_v53  ;;  %v3035_v16 = vsel %vm1845_vm0, %v12067_v21, 0.0  ;;  %v17078_v38 = vsub.f32 %v16857_v58, %v11567_v57  ;;  %v17079_v47 = vld [vmem:[#allocation136_spill] sm:$0xff]  ;;  %v17081_v21 = vld [vmem:[#allocation141_spill] sm:$0xff] }
 0x390   : > { %v12069_v6 = vpop.xlane.xlu0 %2733  ;;  %2300 = vadd.xlane.f32.xlu1 %v2299_v39  ;;  %9286 = vpow2.f32 %v2890_v59 }
 0x391   : > { %v12076_v7 = vpop.xlane.xlu1 %2736  ;;  %v2892_v41 = vmul.f32 1.442695, %v17074_v48  ;;  %v12085_v39 = vpop.eup %9274  ;;  %v2150_v53 = vmul.f32 1.442695, %v17078_v38 }
 0x392   : > { %17076 = vst [vmem:[#allocation80_spill] sm:$0xff] %v12085_v39  ;;  %v12089_v60 = vpop.eup %9276  ;;  %v2290_v59 = vsel %vm1845_vm0, %v12085_v39, 0.0 }
 0x393   : > { %3033 = vadd.xlane.f32.xlu0 %v3032_v37  ;;  %17077 = vst [vmem:[#allocation82_spill] sm:$0xff] %v12089_v60  ;;  %9288 = vpow2.f32 %v2892_v41  ;;  %v17080_v37 = vsub.f32 %v16859_v20, %v11574_v61  ;;  %v2293_v57 = vsel %vm1845_vm0, %v12089_v60, 0.0  ;;  %v17084_v20 = vsub.f32 %v16862_v56, %v11585_v9  ;;  %v17085_v41 = vld [vmem:[#allocation137_spill] sm:$0xff]  ;;  %v17087_v60 = vld [vmem:[#allocation140_spill] sm:$0xff] }
 0x394   : > { %v12091_v52 = vpop.xlane.xlu0 %1991  ;;  %3036 = vadd.xlane.f32.xlu1 %v3035_v16  ;;  %9290 = vpow2.f32 %v2150_v53 }
 0x395   : > { %v12098_v27 = vpop.xlane.xlu1 %1994  ;;  %v2152_v19 = vmul.f32 1.442695, %v17080_v37  ;;  %v12107_v16 = vpop.eup %9278  ;;  %v2886_v61 = vmul.f32 1.442695, %v17084_v20 }
 0x396   : > { %17082 = vst [vmem:[#allocation128_spill] sm:$0xff] %v12107_v16  ;;  %v12111_v58 = vpop.eup %9280  ;;  %v3026_v53 = vsel %vm1845_vm0, %v12107_v16, 0.0 }
 0x397   : > { %2291 = vadd.xlane.f32.xlu0 %v2290_v59  ;;  %17083 = vst [vmem:[#allocation181_spill] sm:$0xff] %v12111_v58  ;;  %9292 = vpow2.f32 %v2152_v19  ;;  %v17086_v59 = vsub.f32 %v16864_v8, %v11592_v54  ;;  %v3029_v9 = vsel %vm1845_vm0, %v12111_v58, 0.0  ;;  %v17090_v8 = vsub.f32 %v16868_v34, %v11607_v29  ;;  %v17091_v19 = vld [vmem:[#allocation142_spill] sm:$0xff]  ;;  %v17093_v58 = vld [vmem:[#allocation147_spill] sm:$0xff] }
 0x398   : > { %v12113_v38 = vpop.xlane.xlu0 %2727  ;;  %2294 = vadd.xlane.f32.xlu1 %v2293_v57  ;;  %v12129_v57 = vpop.eup %9282  ;;  %9294 = vpow2.f32 %v2886_v61 }
 0x399   : > { %v12120_v4 = vpop.xlane.xlu1 %2730  ;;  %v2888_v48 = vmul.f32 1.442695, %v17086_v59  ;;  %17088 = vst [vmem:[#allocation81_spill] sm:$0xff] %v12129_v57  ;;  %v12133_v56 = vpop.eup %9284  ;;  %v2162_v54 = vmul.f32 1.442695, %v17090_v8  ;;  %v2308_v61 = vsel %vm1845_vm0, %v12129_v57, 0.0 }
 0x39a   : > { %17089 = vst [vmem:[#allocation85_spill] sm:$0xff] %v12133_v56  ;;  %v2311_v29 = vsel %vm1845_vm0, %v12133_v56, 0.0  ;;  %v17099_v56 = vld [vmem:[#allocation146_spill] sm:$0xff] }
 0x39b   : > { %3027 = vadd.xlane.f32.xlu0 %v3026_v53  ;;  %9296 = vpow2.f32 %v2888_v48  ;;  %v17092_v53 = vsub.f32 %v16870_v32, %v11614_v31  ;;  %v17096_v32 = vsub.f32 %v16874_v1, %v11629_v49  ;;  %v17097_v48 = vld [vmem:[#allocation143_spill] sm:$0xff] }
 0x39c   : > { %v12135_v20 = vpop.xlane.xlu0 %2009  ;;  %3030 = vadd.xlane.f32.xlu1 %v3029_v9  ;;  %v12151_v9 = vpop.eup %9286  ;;  %9298 = vpow2.f32 %v2162_v54 }
 0x39d   : > { %v12142_v39 = vpop.xlane.xlu1 %2012  ;;  %v2164_v37 = vmul.f32 1.442695, %v17092_v53  ;;  %17094 = vst [vmem:[#allocation129_spill] sm:$0xff] %v12151_v9  ;;  %v12155_v34 = vpop.eup %9288  ;;  %v2898_v31 = vmul.f32 1.442695, %v17096_v32  ;;  %v3044_v54 = vsel %vm1845_vm0, %v12151_v9, 0.0 }
 0x39e   : > { %17095 = vst [vmem:[#allocation182_spill] sm:$0xff] %v12155_v34  ;;  %v3047_v49 = vsel %vm1845_vm0, %v12155_v34, 0.0  ;;  %v17146_v34 = vld [vmem:[#allocation52_spill] sm:$0xff] }
 0x39f   : > { %2309 = vadd.xlane.f32.xlu0 %v2308_v61  ;;  %9300 = vpow2.f32 %v2164_v37  ;;  %v17098_v61 = vsub.f32 %v16876_v24, %v11636_v63  ;;  %v17102_v63 = vsub.f32 %v16880_v12, %v11651_v28  ;;  %v17103_v37 = vld [vmem:[#allocation144_spill] sm:$0xff] }
 0x3a0   : > { %v12157_v8 = vpop.xlane.xlu0 %2745  ;;  %2312 = vadd.xlane.f32.xlu1 %v2311_v29  ;;  %v12173_v29 = vpop.eup %9290  ;;  %9302 = vpow2.f32 %v2898_v31 }
 0x3a1   : > { %v12164_v16 = vpop.xlane.xlu1 %2748  ;;  %v2900_v59 = vmul.f32 1.442695, %v17098_v61  ;;  %17100 = vst [vmem:[#allocation132_spill] sm:$0xff] %v12173_v29  ;;  %v12177_v1 = vpop.eup %9292  ;;  %v2158_v24 = vmul.f32 1.442695, %v17102_v63  ;;  %v2302_v31 = vsel %vm1845_vm0, %v12173_v29, 0.0 }
 0x3a2   : > { %17101 = vst [vmem:[#allocation134_spill] sm:$0xff] %v12177_v1  ;;  %v2305_v28 = vsel %vm1845_vm0, %v12177_v1, 0.0  ;;  %v17114_v61 = vld [vmem:[#allocation92_spill] sm:$0xff] }
 0x3a3   : > { %3045 = vadd.xlane.f32.xlu0 %v3044_v54  ;;  %9304 = vpow2.f32 %v2900_v59  ;;  %v17105_v54 = vsub.f32 %v16883_v51, %v11658_v23  ;;  %v17110_v23 = vsub.f32 %v16888_v22, %v11673_v11  ;;  %v17111_v59 = vld [vmem:[#allocation145_spill] sm:$0xff] }
 0x3a4   : > { %v12179_v32 = vpop.xlane.xlu0 %2003  ;;  %3048 = vadd.xlane.f32.xlu1 %v3047_v49  ;;  %v12195_v49 = vpop.eup %9294  ;;  %9306 = vpow2.f32 %v2158_v24 }
 0x3a5   : > { %v12186_v57 = vpop.xlane.xlu1 %2006  ;;  %v2160_v53 = vmul.f32 1.442695, %v17105_v54  ;;  %17107 = vst [vmem:[#allocation135_spill] sm:$0xff] %v12195_v49  ;;  %v12199_v12 = vpop.eup %9296  ;;  %v2894_v51 = vmul.f32 1.442695, %v17110_v23  ;;  %v3038_v24 = vsel %vm1845_vm0, %v12195_v49, 0.0 }
 0x3a6   : > { %17104 = vst [vmem:[#allocation139_spill] sm:$0xff] %v12186_v57  ;;  %17108 = vst [vmem:[#allocation138_spill] sm:$0xff] %v12199_v12  ;;  %v3041_v11 = vsel %vm1845_vm0, %v12199_v12, 0.0  ;;  %v17125_v49 = vld [vmem:[#allocation98_spill] sm:$0xff] }
 0x3a7   : > { %2303 = vadd.xlane.f32.xlu0 %v2302_v31  ;;  %9308 = vpow2.f32 %v2160_v53  ;;  %v17113_v31 = vld [vmem:[#allocation100_spill] sm:$0xff]  ;;  %v17120_v53 = vld [vmem:[#allocation95_spill] sm:$0xff] }
 0x3a8   : > { %v12201_v63 = vpop.xlane.xlu0 %2739  ;;  %2306 = vadd.xlane.f32.xlu1 %v2305_v28  ;;  %v17115_v29 = vsub.f32 %v17113_v31, %v17114_v61  ;;  %v12217_v28 = vpop.eup %9298  ;;  %9310 = vpow2.f32 %v2894_v51 }
 0x3a9   : > { %17109 = vst [vmem:[#allocation136_spill] sm:$0xff] %v12201_v63  ;;  %v12208_v9 = vpop.xlane.xlu1 %2742  ;;  %17117 = vst [vmem:[#allocation137_spill] sm:$0xff] %v12217_v28  ;;  %v12221_v22 = vpop.eup %9300  ;;  %v2320_v51 = vsel %vm1845_vm0, %v12217_v28, 0.0  ;;  %v17133_v63 = vld [vmem:[#allocation151_spill] sm:$0xff] }
 0x3aa   : > { %17112 = vst [vmem:[#allocation141_spill] sm:$0xff] %v12208_v9  ;;  %v2896_v1 = vmul.f32 1.442695, %v17115_v29  ;;  %17118 = vst [vmem:[#allocation140_spill] sm:$0xff] %v12221_v22  ;;  %v17121_v29 = vsub.f32 %v16898_v43, %v17120_v53  ;;  %v2323_v43 = vsel %vm1845_vm0, %v12221_v22, 0.0 }
 0x3ab   : > { %3039 = vadd.xlane.f32.xlu0 %v3038_v24  ;;  %v17124_v24 = vld [vmem:[#allocation107_spill] sm:$0xff] }
 0x3ac   : > { %v12223_v23 = vpop.xlane.xlu0 %2021  ;;  %3042 = vadd.xlane.f32.xlu1 %v3041_v11  ;;  %v2170_v61 = vmul.f32 1.442695, %v17121_v29  ;;  %9312 = vpow2.f32 %v2896_v1  ;;  %v17126_v9 = vsub.f32 %v17124_v24, %v17125_v49  ;;  %v12239_v11 = vpop.eup %9302  ;;  %v17130_v1 = vld [vmem:[#allocation103_spill] sm:$0xff] }
 0x3ad   : > { %17119 = vst [vmem:[#allocation142_spill] sm:$0xff] %v12223_v23  ;;  %v12230_v54 = vpop.xlane.xlu1 %2024  ;;  %17128 = vst [vmem:[#allocation143_spill] sm:$0xff] %v12239_v11  ;;  %v12243_v53 = vpop.eup %9304 }
 0x3ae   : > { %17123 = vst [vmem:[#allocation147_spill] sm:$0xff] %v12230_v54  ;;  %v2172_v12 = vmul.f32 1.442695, %v17126_v9  ;;  %17129 = vst [vmem:[#allocation146_spill] sm:$0xff] %v12243_v53  ;;  %9314 = vpow2.f32 %v2170_v61  ;;  %v17131_v9 = vld [vmem:[#allocation101_spill] sm:$0xff]  ;;  %v3056_v61 = vsel %vm1845_vm0, %v12239_v11, 0.0 }
 0x3af   : > { %2321 = vadd.xlane.f32.xlu0 %v2320_v51  ;;  %v17132_v49 = vsub.f32 %v17130_v1, %v17131_v9  ;;  %v17135_v51 = vld [vmem:[#allocation106_spill] sm:$0xff]  ;;  %v17136_v54 = vld [vmem:[#allocation53_spill] sm:$0xff]  ;;  %v3059_v1 = vsel %vm1845_vm0, %v12243_v53, 0.0 }
 0x3b0   : > { %v12245_v29 = vpop.xlane.xlu0 %2757  ;;  %2324 = vadd.xlane.f32.xlu1 %v2323_v43  ;;  %9316 = vpow2.f32 %v2172_v12  ;;  %v17137_v57 = vsub.f32 %v17135_v51, %v17136_v54  ;;  %v12261_v43 = vpop.eup %9306  ;;  %v17143_v54 = vld [vmem:[#allocation152_spill] sm:$0xff] }
 0x3b1   : > { %v2906_v24 = vmul.f32 1.442695, %v17132_v49  ;;  %v12252_v28 = vpop.xlane.xlu1 %2760  ;;  %17139 = vst [vmem:[#allocation145_spill] sm:$0xff] %v12261_v43  ;;  %v12265_v9 = vpop.eup %9308 }
 0x3b2   : > { %17134 = vst [vmem:[#allocation144_spill] sm:$0xff] %v12252_v28  ;;  %v2908_v22 = vmul.f32 1.442695, %v17137_v57  ;;  %17140 = vst [vmem:[#allocation100_spill] sm:$0xff] %v12265_v9  ;;  %v17142_v57 = vsub.f32 %v16920_v50, %v11739_v36  ;;  %v2317_v50 = vsel %vm1845_vm0, %v12265_v9, 0.0 }
 0x3b3   : > { %3057 = vadd.xlane.f32.xlu0 %v3056_v61  ;;  %9318 = vpow2.f32 %v2906_v24  ;;  %v17145_v61 = vld [vmem:[#allocation109_spill] sm:$0xff]  ;;  %v2314_v24 = vsel %vm1845_vm0, %v12261_v43, 0.0  ;;  %v17157_v43 = vld [vmem:[#allocation55_spill] sm:$0xff] }
 0x3b4   : > { %v12267_v49 = vpop.xlane.xlu0 %2015  ;;  %3060 = vadd.xlane.f32.xlu1 %v3059_v1  ;;  %v2166_v12 = vmul.f32 1.442695, %v17142_v57  ;;  %9320 = vpow2.f32 %v2908_v22  ;;  %v17147_v11 = vsub.f32 %v17145_v61, %v17146_v34  ;;  %v12283_v1 = vpop.eup %9310  ;;  %v17152_v34 = vld [vmem:[#allocation54_spill] sm:$0xff]  ;;  %v17154_v61 = vld [vmem:[#allocation153_spill] sm:$0xff] }
 0x3b5   : > { %17141 = vst [vmem:[#allocation92_spill] sm:$0xff] %v12267_v49  ;;  %v12274_v31 = vpop.xlane.xlu1 %2018  ;;  %17149 = vst [vmem:[#allocation107_spill] sm:$0xff] %v12283_v1  ;;  %v17153_v22 = vsub.f32 %v16931_v18, %v17152_v34  ;;  %v17190_v49 = vld [vmem:[#allocation60_spill] sm:$0xff] }
 0x3b6   : > { %17144 = vst [vmem:[#allocation95_spill] sm:$0xff] %v12274_v31  ;;  %v2168_v53 = vmul.f32 1.442695, %v17147_v11  ;;  %v12287_v36 = vpop.eup %9312  ;;  %9322 = vpow2.f32 %v2166_v12  ;;  %v3050_v12 = vsel %vm1845_vm0, %v12283_v1, 0.0  ;;  %v17168_v1 = vld [vmem:[#allocation58_spill] sm:$0xff] }
 0x3b7   : > { %2315 = vadd.xlane.f32.xlu0 %v2314_v24  ;;  %17150 = vst [vmem:[#allocation98_spill] sm:$0xff] %v12287_v36  ;;  %v2902_v11 = vmul.f32 1.442695, %v17153_v22  ;;  %v17156_v24 = vld [vmem:[#allocation108_spill] sm:$0xff]  ;;  %v3053_v18 = vsel %vm1845_vm0, %v12287_v36, 0.0 }
 0x3b8   : > { %v12289_v57 = vpop.xlane.xlu0 %2751  ;;  %2318 = vadd.xlane.f32.xlu1 %v2317_v50  ;;  %9324 = vpow2.f32 %v2168_v53  ;;  %v17158_v31 = vsub.f32 %v17156_v24, %v17157_v43  ;;  %v12305_v50 = vpop.eup %9314 }
 0x3b9   : > { %17151 = vst [vmem:[#allocation103_spill] sm:$0xff] %v12289_v57  ;;  %v12296_v51 = vpop.xlane.xlu1 %2754  ;;  %17160 = vst [vmem:[#allocation151_spill] sm:$0xff] %v12305_v50  ;;  %9326 = vpow2.f32 %v2902_v11  ;;  %v2332_v11 = vsel %vm1845_vm0, %v12305_v50, 0.0 }
 0x3ba   : > { %17155 = vst [vmem:[#allocation101_spill] sm:$0xff] %v12296_v51  ;;  %v2904_v9 = vmul.f32 1.442695, %v17158_v31  ;;  %v12309_v34 = vpop.eup %9316  ;;  %v17163_v31 = vld [vmem:[#allocation56_spill] sm:$0xff] }
 0x3bb   : > { %3051 = vadd.xlane.f32.xlu0 %v3050_v12  ;;  %17161 = vst [vmem:[#allocation106_spill] sm:$0xff] %v12309_v34  ;;  %v17164_v53 = vsub.f32 %v16941_v42, %v17163_v31  ;;  %v17167_v12 = vld [vmem:[#allocation115_spill] sm:$0xff]  ;;  %v2335_v42 = vsel %vm1845_vm0, %v12309_v34, 0.0 }
 0x3bc   : > { %v12311_v22 = vpop.xlane.xlu0 %2033  ;;  %3054 = vadd.xlane.f32.xlu1 %v3053_v18  ;;  %9328 = vpow2.f32 %v2904_v9  ;;  %v17169_v51 = vsub.f32 %v17167_v12, %v17168_v1  ;;  %v17174_v9 = vld [vmem:[#allocation111_spill] sm:$0xff] }
 0x3bd   : > { %17162 = vst [vmem:[#allocation53_spill] sm:$0xff] %v12311_v22  ;;  %v2178_v43 = vmul.f32 1.442695, %v17164_v53  ;;  %v12318_v23 = vpop.xlane.xlu1 %2036  ;;  %v12327_v18 = vpop.eup %9318 }
 0x3be   : > { %17166 = vst [vmem:[#allocation152_spill] sm:$0xff] %v12318_v23  ;;  %v2180_v36 = vmul.f32 1.442695, %v17169_v51  ;;  %17171 = vst [vmem:[#allocation109_spill] sm:$0xff] %v12327_v18  ;;  %v12331_v31 = vpop.eup %9320  ;;  %v17175_v51 = vld [vmem:[#allocation169_spill] sm:$0xff]  ;;  %v17180_v23 = vld [vmem:[#allocation170_spill] sm:$0xff] }
 0x3bf   : > { %2333 = vadd.xlane.f32.xlu0 %v2332_v11  ;;  %17172 = vst [vmem:[#allocation52_spill] sm:$0xff] %v12331_v31  ;;  %9330 = vpow2.f32 %v2178_v43  ;;  %v17176_v1 = vsub.f32 %v17174_v9, %v17175_v51  ;;  %v17179_v11 = vld [vmem:[#allocation114_spill] sm:$0xff]  ;;  %v3068_v43 = vsel %vm1845_vm0, %v12327_v18, 0.0  ;;  %v3071_v9 = vsel %vm1845_vm0, %v12331_v31, 0.0 }
 0x3c0   : > { %v12333_v53 = vpop.xlane.xlu0 %2769  ;;  %2336 = vadd.xlane.f32.xlu1 %v2335_v42  ;;  %9332 = vpow2.f32 %v2180_v36  ;;  %v17181_v28 = vsub.f32 %v17179_v11, %v17180_v23  ;;  %v12349_v42 = vpop.eup %9322 }
 0x3c1   : > { %17173 = vst [vmem:[#allocation54_spill] sm:$0xff] %v12333_v53  ;;  %v2914_v12 = vmul.f32 1.442695, %v17176_v1  ;;  %v12340_v50 = vpop.xlane.xlu1 %2772  ;;  %17183 = vst [vmem:[#allocation108_spill] sm:$0xff] %v12349_v42 }
 0x3c2   : > { %17178 = vst [vmem:[#allocation153_spill] sm:$0xff] %v12340_v50  ;;  %v2916_v34 = vmul.f32 1.442695, %v17181_v28  ;;  %v12353_v51 = vpop.eup %9324  ;;  %v17186_v28 = vsub.f32 %v16963_v25, %v11827_v40  ;;  %v17194_v25 = vld [vmem:[#allocation62_spill] sm:$0xff] }
 0x3c3   : > { %3069 = vadd.xlane.f32.xlu0 %v3068_v43  ;;  %17184 = vst [vmem:[#allocation55_spill] sm:$0xff] %v12353_v51  ;;  %9334 = vpow2.f32 %v2914_v12  ;;  %v17189_v43 = vld [vmem:[#allocation117_spill] sm:$0xff]  ;;  %v2326_v12 = vsel %vm1845_vm0, %v12349_v42, 0.0  ;;  %v17195_v40 = vsub.f32 %v16974_v30, %v17194_v25  ;;  %v17201_v42 = vld [vmem:[#allocation64_spill] sm:$0xff] }
 0x3c4   : > { %v12355_v1 = vpop.xlane.xlu0 %2027  ;;  %3072 = vadd.xlane.f32.xlu1 %v3071_v9  ;;  %v2174_v23 = vmul.f32 1.442695, %v17186_v28  ;;  %9336 = vpow2.f32 %v2916_v34  ;;  %v17191_v18 = vsub.f32 %v17189_v43, %v17190_v49  ;;  %v12371_v9 = vpop.eup %9326  ;;  %v2329_v34 = vsel %vm1845_vm0, %v12353_v51, 0.0  ;;  %v17197_v49 = vld [vmem:[#allocation116_spill] sm:$0xff]  ;;  %v17206_v51 = vld [vmem:[#allocation66_spill] sm:$0xff] }
 0x3c5   : > { %17185 = vst [vmem:[#allocation56_spill] sm:$0xff] %v12355_v1  ;;  %v12362_v24 = vpop.xlane.xlu1 %2030  ;;  %17193 = vst [vmem:[#allocation58_spill] sm:$0xff] %v12371_v9  ;;  %v2910_v28 = vmul.f32 1.442695, %v17195_v40  ;;  %v17202_v57 = vsub.f32 %v16984_v55, %v17201_v42  ;;  %v17205_v40 = vld [vmem:[#allocation123_spill] sm:$0xff]  ;;  %v17251_v30 = vld [vmem:[#allocation88_spill] sm:$0xff] }
 0x3c6   : > { %17188 = vst [vmem:[#allocation115_spill] sm:$0xff] %v12362_v24  ;;  %v2176_v31 = vmul.f32 1.442695, %v17191_v18  ;;  %v12378_v11 = vpop.eup %9328  ;;  %v17198_v18 = vld [vmem:[#allocation63_spill] sm:$0xff]  ;;  %9338 = vpow2.f32 %v2174_v23  ;;  %v17207_v50 = vsub.f32 %v17205_v40, %v17206_v51  ;;  %v3062_v23 = vsel %vm1845_vm0, %v12371_v9, 0.0  ;;  %v17215_v51 = vld [vmem:[#allocation174_spill] sm:$0xff] }
 0x3c7   : > { %2327 = vadd.xlane.f32.xlu0 %v2326_v12  ;;  %17196 = vst [vmem:[#allocation111_spill] sm:$0xff] %v12378_v11  ;;  %v17199_v43 = vsub.f32 %v17197_v49, %v17198_v18  ;;  %v2186_v24 = vmul.f32 1.442695, %v17202_v57  ;;  %v17210_v55 = vld [vmem:[#allocation119_spill] sm:$0xff]  ;;  %v17211_v57 = vld [vmem:[#allocation173_spill] sm:$0xff]  ;;  %v17250_v49 = vld [vmem:[#allocation90_spill] sm:$0xff] }
 0x3c8   : > { %v12383_v22 = vpop.xlane.xlu0 %2763  ;;  %2330 = vadd.xlane.f32.xlu1 %v2329_v34  ;;  %9340 = vpow2.f32 %v2176_v31  ;;  %v2188_v1 = vmul.f32 1.442695, %v17207_v50  ;;  %v17212_v42 = vsub.f32 %v17210_v55, %v17211_v57  ;;  %v3065_v31 = vsel %vm1845_vm0, %v12378_v11, 0.0  ;;  %v17214_v50 = vld [vmem:[#allocation122_spill] sm:$0xff] }
 0x3c9   : > { %v2912_v53 = vmul.f32 1.442695, %v17199_v43  ;;  %17200 = vst [vmem:[#allocation169_spill] sm:$0xff] %v12383_v22  ;;  %v12390_v25 = vpop.xlane.xlu1 %2766  ;;  %v12399_v34 = vpop.eup %9330  ;;  %9342 = vpow2.f32 %v2910_v28  ;;  %v17216_v40 = vsub.f32 %v17214_v50, %v17215_v51  ;;  %v17217_v28 = vsub.f32 %v17006_v33, %v11915_v13  ;;  %v17222_v50 = vld [vmem:[#allocation125_spill] sm:$0xff]  ;;  %v17223_v51 = vld [vmem:[#allocation68_spill] sm:$0xff] }
 0x3ca   : > { %17204 = vst [vmem:[#allocation114_spill] sm:$0xff] %v12390_v25  ;;  %17209 = vst [vmem:[#allocation170_spill] sm:$0xff] %v12399_v34  ;;  %v2922_v43 = vmul.f32 1.442695, %v17212_v42  ;;  %v12406_v12 = vpop.eup %9332 }
 0x3cb   : > { %3063 = vadd.xlane.f32.xlu0 %v3062_v23  ;;  %17213 = vst [vmem:[#allocation117_spill] sm:$0xff] %v12406_v12  ;;  %9344 = vpow2.f32 %v2912_v53  ;;  %v2924_v18 = vmul.f32 1.442695, %v17216_v40  ;;  %v2182_v9 = vmul.f32 1.442695, %v17217_v28  ;;  %v2344_v23 = vsel %vm1845_vm0, %v12399_v34, 0.0 }
 0x3cc   : > { %v2238_v25 = vpop.xlane.xlu0 %2237  ;;  %3066 = vadd.xlane.f32.xlu1 %v3065_v31  ;;  %9346 = vpow2.f32 %v2186_v24  ;;  %v2347_v53 = vsel %vm1845_vm0, %v12406_v12, 0.0  ;;  %v17235_v12 = vld [vmem:[#allocation72_spill] sm:$0xff] }
 0x3cd   : > { %v2241_v55 = vpop.xlane.xlu1 %2240  ;;  %9348 = vpow2.f32 %v2188_v1  ;;  %v12416_v57 = vpop.eup %9334 }
 0x3ce   : > { %17218 = vst [vmem:[#allocation60_spill] sm:$0xff] %v12416_v57  ;;  %9350 = vpow2.f32 %v2922_v43  ;;  %v12420_v42 = vpop.eup %9336  ;;  %v3080_v13 = vsel %vm1845_vm0, %v12416_v57, 0.0 }
 0x3cf   : > { %2345 = vadd.xlane.f32.xlu0 %v2344_v23  ;;  %17219 = vst [vmem:[#allocation62_spill] sm:$0xff] %v12420_v42  ;;  %9352 = vpow2.f32 %v2924_v18  ;;  %v3083_v43 = vsel %vm1845_vm0, %v12420_v42, 0.0  ;;  %v17224_v18 = vsub.f32 %v17222_v50, %v17223_v51  ;;  %v17231_v51 = vld [vmem:[#allocation124_spill] sm:$0xff] }
 0x3d0   : > { %v2974_v24 = vpop.xlane.xlu0 %2973  ;;  %2348 = vadd.xlane.f32.xlu1 %v2347_v53  ;;  %9354 = vpow2.f32 %v2182_v9  ;;  %v12424_v1 = vpop.eup %9338 }
 0x3d1   : > { %v2977_v33 = vpop.xlane.xlu1 %2976  ;;  %9356 = vrcp.f32 %v2238_v25  ;;  %17220 = vst [vmem:[#allocation116_spill] sm:$0xff] %v12424_v1  ;;  %v2184_v40 = vmul.f32 1.442695, %v17224_v18  ;;  %v17232_v18 = vld [vmem:[#allocation71_spill] sm:$0xff] }
 0x3d2   : > { %9358 = vrcp.f32 %v2241_v55  ;;  %v12428_v31 = vpop.eup %9340  ;;  %v2338_v55 = vsel %vm1845_vm0, %v12424_v1, 0.0 }
 0x3d3   : > { %3081 = vadd.xlane.f32.xlu0 %v3080_v13  ;;  %17221 = vst [vmem:[#allocation63_spill] sm:$0xff] %v12428_v31  ;;  %9360 = vrcp.f32 %v2974_v24  ;;  %v12433_v25 = vpop.eup %9342  ;;  %v17228_v13 = vld [vmem:[#allocation70_spill] sm:$0xff]  ;;  %v2341_v24 = vsel %vm1845_vm0, %v12428_v31, 0.0 }
 0x3d4   : > { %v2232_v9 = vpop.xlane.xlu0 %2231  ;;  %3084 = vadd.xlane.f32.xlu1 %v3083_v43  ;;  %17225 = vst [vmem:[#allocation64_spill] sm:$0xff] %v12433_v25  ;;  %v17229_v42 = vsub.f32 %v17017_v46, %v17228_v13  ;;  %v17236_v46 = vsub.f32 %v17027_v35, %v17235_v12  ;;  %v17238_v13 = vld [vmem:[#allocation131_spill] sm:$0xff]  ;;  %v17239_v31 = vld [vmem:[#allocation74_spill] sm:$0xff] }
 0x3d5   : > { %9362 = vrcp.f32 %v2232_v9  ;;  %v2235_v28 = vpop.xlane.xlu1 %2234  ;;  %v12435_v23 = vpop.eup %9344  ;;  %v17233_v9 = vsub.f32 %v17231_v51, %v17232_v18  ;;  %v17240_v34 = vsub.f32 %v17238_v13, %v17239_v31  ;;  %v3074_v51 = vsel %vm1845_vm0, %v12433_v25, 0.0  ;;  %v17244_v31 = vld [vmem:[#allocation178_spill] sm:$0xff] }
 0x3d6   : > { %17226 = vst [vmem:[#allocation123_spill] sm:$0xff] %v12435_v23  ;;  %9364 = vrcp.f32 %v2235_v28  ;;  %v12439_v53 = vpop.eup %9346  ;;  %v2918_v50 = vmul.f32 1.442695, %v17229_v42  ;;  %v2194_v42 = vmul.f32 1.442695, %v17236_v46  ;;  %v3077_v12 = vsel %vm1845_vm0, %v12435_v23, 0.0 }
 0x3d7   : > { %17227 = vst [vmem:[#allocation66_spill] sm:$0xff] %v12439_v53  ;;  %9366 = vrcp.f32 %v2977_v33  ;;  %2339 = vadd.xlane.f32.xlu0 %v2338_v55  ;;  %v12446_v43 = vpop.eup %9348  ;;  %v2920_v28 = vmul.f32 1.442695, %v17233_v9  ;;  %v17243_v46 = vld [vmem:[#allocation130_spill] sm:$0xff] }
 0x3d8   : > { %17230 = vst [vmem:[#allocation119_spill] sm:$0xff] %v12446_v43  ;;  %9368 = vpow2.f32 %v2184_v40  ;;  %v2968_v57 = vpop.xlane.xlu0 %2967  ;;  %2342 = vadd.xlane.f32.xlu1 %v2341_v24  ;;  %v12451_v1 = vpop.eup %9350  ;;  %v2196_v40 = vmul.f32 1.442695, %v17240_v34  ;;  %v17241_v24 = vld [vmem:[#allocation177_spill] sm:$0xff]  ;;  %v17245_v34 = vsub.f32 %v17243_v46, %v17244_v31  ;;  %v2359_v46 = vsel %vm1845_vm0, %v12446_v43, 0.0 }
 0x3d9   : > { %17234 = vst [vmem:[#allocation173_spill] sm:$0xff] %v12451_v1  ;;  %9370 = vrcp.f32 %v2968_v57  ;;  %v2971_v33 = vpop.xlane.xlu1 %2970  ;;  %v12456_v55 = vpop.eup %9352  ;;  %v17242_v9 = vsub.f32 %v17039_v10, %v17241_v24  ;;  %v2356_v10 = vsel %vm1845_vm0, %v12439_v53, 0.0  ;;  %v17246_v24 = vld [vmem:[#allocation76_spill] sm:$0xff] }
 0x3da   : > { %17237 = vst [vmem:[#allocation122_spill] sm:$0xff] %v12456_v55  ;;  %9372 = vrcp.f32 %v2971_v33  ;;  %v12463_v18 = vpop.eup %9354  ;;  %v2932_v33 = vmul.f32 1.442695, %v17245_v34  ;;  %v17249_v34 = vld [vmem:[#allocation86_spill] sm:$0xff] }
 0x3db   : > { %9374 = vpow2.f32 %v2918_v50  ;;  %v2930_v35 = vmul.f32 1.442695, %v17242_v9  ;;  %3075 = vadd.xlane.f32.xlu0 %v3074_v51  ;;  %v9357_v57 = vpop.eup %9356  ;;  %v17247_v9 = vsub.f32 %v17050_v14, %v17246_v24 }
 0x3dc   : > { %9376 = vpow2.f32 %v2920_v28  ;;  %v2250_v13 = vpop.xlane.xlu0 %2249  ;;  %3078 = vadd.xlane.f32.xlu1 %v3077_v12  ;;  %v9359_v25 = vpop.eup %9358  ;;  %v17248_v12 = vld [vmem:[#allocation84_spill] sm:$0xff] }
 0x3dd   : > { %9378 = vpow2.f32 %v2194_v42  ;;  %v2253_v11 = vpop.xlane.xlu1 %2252  ;;  %v9361_v50 = vpop.eup %9360  ;;  %v2190_v28 = vmul.f32 1.442695, %v17247_v9  ;;  %v2488_v42 = vmul.f32 %v9357_v57, %v17248_v12  ;;  %v2489_v23 = vmul.f32 %v9359_v25, %v17249_v34  ;;  %v17252_v25 = vld [vmem:[#allocation133_spill] sm:$0xff]  ;;  %v17253_v9 = vld [vmem:[#allocation126_spill] sm:$0xff]  ;;  %v17256_v34 = vld [vmem:[#allocation87_spill] sm:$0xff] }
 0x3de   : > { %9380 = vpow2.f32 %v2196_v40  ;;  %v3095_v57 = vsel %vm1845_vm0, %v12456_v55, 0.0 }
 0x3df   : > { %v9363_v51 = vpop.eup %9362  ;;  %9382 = vpow2.f32 %v2930_v35  ;;  %2357 = vadd.xlane.f32.xlu0 %v2356_v10  ;;  %v3092_v10 = vsel %vm1845_vm0, %v12451_v1, 0.0  ;;  %v17257_v1 = vld [vmem:[#allocation93_spill] sm:$0xff] }
 0x3e0   : > { %v9365_v31 = vpop.eup %9364  ;;  %9384 = vpow2.f32 %v2932_v33  ;;  %v2986_v40 = vpop.xlane.xlu0 %2985  ;;  %2360 = vadd.xlane.f32.xlu1 %v2359_v46  ;;  %v2486_v53 = vmul.f32 %v9363_v51, %v17250_v49  ;;  %v17254_v46 = vsub.f32 %v17252_v25, %v17253_v9  ;;  %v17255_v51 = vld [vmem:[#allocation91_spill] sm:$0xff]  ;;  %v17258_v25 = vld [vmem:[#allocation89_spill] sm:$0xff] }
 0x3e1   : > { %v9367_v22 = vpop.eup %9366  ;;  %9386 = vrcp.f32 %v2250_v13  ;;  %v2989_v35 = vpop.xlane.xlu1 %2988  ;;  %v2487_v14 = vmul.f32 %v9365_v31, %v17251_v30  ;;  %v3224_v13 = vmul.f32 %v9361_v50, %v17255_v51  ;;  %v2551_v31 = vpack.c.bf16 %v2489_v23, %v2488_v42 }
 0x3e2   : > { %v12484_v24 = vpop.eup %9368  ;;  %9388 = vrcp.f32 %v2253_v11  ;;  %v2192_v49 = vmul.f32 1.442695, %v17254_v46  ;;  %v3225_v11 = vmul.f32 %v9367_v22, %v17256_v34  ;;  %v2350_v22 = vsel %vm1845_vm0, %v12463_v18, 0.0  ;;  %v17262_v46 = vld [vmem:[#allocation4_spill] sm:$0xff] }
 0x3e3   : > { %v9371_v33 = vpop.eup %9370  ;;  %9390 = vpow2.f32 %v2190_v28  ;;  %3093 = vadd.xlane.f32.xlu0 %v3092_v10  ;;  %v2550_v12 = vpack.c.bf16 %v2487_v14, %v2486_v53  ;;  %v2353_v42 = vsel %vm1845_vm0, %v12484_v24, 0.0  ;;  %v17261_v10 = vsub.f32 %v17063_v26, %v12032_v17 }
 0x3e4   : > { %v9373_v30 = vpop.eup %9372  ;;  %9392 = vrcp.f32 %v2986_v40  ;;  %v2244_v43 = vpop.xlane.xlu0 %2243  ;;  %3096 = vadd.xlane.f32.xlu1 %v3095_v57  ;;  %v3222_v36 = vmul.f32 %v9371_v33, %v17257_v1  ;;  %v17259_v1 = vsub.f32 %v17060_v0, %v12025_v15  ;;  %v3287_v33 = vpack.c.bf16 %v3225_v11, %v3224_v13  ;;  %v17268_v11 = vld [vmem:[#allocation13_spill] sm:$0xff] }
 0x3e5   : > { %v12496_v55 = vpop.eup %9374  ;;  %9394 = vrcp.f32 %v2244_v43  ;;  %8641 = vmatprep.mubr.msk.bf16.mxu0 %vm1845_vm0, %v2550_v12  ;;  %v2247_v28 = vpop.xlane.xlu1 %2246  ;;  %v3223_v9 = vmul.f32 %v9373_v30, %v17258_v25  ;;  %v17260_v43 = vld [vmem:[#allocation2_spill] sm:$0xff]  ;;  %v2928_v57 = vmul.f32 1.442695, %v17261_v10  ;;  %v17264_v26 = vsub.f32 %v17069_v3, %v12054_v5  ;;  %v17266_v30 = vld [vmem:[#allocation11_spill] sm:$0xff] }
 0x3e6   : > { %v12500_v50 = vpop.eup %9376  ;;  %9396 = vrcp.f32 %v2247_v28  ;;  %8642 = vmatmul.mubr.msk.bf16.vlgmr.msra.gmra.mrb[112].mxu0 %vm1845_vm0, %v2551_v31  ;;  %v2926_v53 = vmul.f32 1.442695, %v17259_v1  ;;  %v3086_v13 = vsel %vm1845_vm0, %v12496_v55, 0.0  ;;  %v17267_v3 = vsub.f32 %v17075_v2, %v12076_v7 }
 0x3e7   : > { %v12505_v23 = vpop.eup %9378  ;;  %9398 = vrcp.f32 %v2989_v35  ;;  %8778 = vmatpush3.bf16.xpose.msra.mxu0 %v17260_v43  ;;  %2351 = vadd.xlane.f32.xlu0 %v2350_v22  ;;  %v3286_v40 = vpack.c.bf16 %v3223_v9, %v3222_v36  ;;  %v17263_v35 = vsub.f32 %v17067_v44, %v12047_v45  ;;  %v2204_v17 = vmul.f32 1.442695, %v17264_v26 }
 0x3e8   : > { %v12513_v14 = vpop.eup %9380  ;;  %9400 = vpow2.f32 %v2192_v49  ;;  %8779 = vmatprep.subr.bf16.mxu0 %v17262_v46  ;;  %v2980_v0 = vpop.xlane.xlu0 %2979  ;;  %2354 = vadd.xlane.f32.xlu1 %v2353_v42  ;;  %v17265_v45 = vsub.f32 %v17073_v62, %v12069_v6  ;;  %v3089_v31 = vsel %vm1845_vm0, %v12500_v50, 0.0  ;;  %v2940_v34 = vmul.f32 1.442695, %v17267_v3  ;;  %v17271_v42 = vld [vmem:[#allocation99_spill] sm:$0xff] }
 0x3e9   : > { %v12519_v15 = vpop.eup %9382  ;;  %v2202_v51 = vmul.f32 1.442695, %v17263_v35  ;;  %9402 = vrcp.f32 %v2980_v0  ;;  %8713 = vmatprep.mubr.msk.bf16.mxu1 %vm1845_vm0, %v3286_v40  ;;  %v2983_v36 = vpop.xlane.xlu1 %2982  ;;  %v2368_v9 = vsel %vm1845_vm0, %v12505_v23, 0.0  ;;  %v2371_v22 = vsel %vm1845_vm0, %v12513_v14, 0.0  ;;  %v17273_v0 = vld [vmem:[#allocation97_spill] sm:$0xff] }
 0x3ea   : > { %v12525_v49 = vpop.eup %9384  ;;  %9404 = vrcp.f32 %v2983_v36  ;;  %8714 = vmatmul.mubr.msk.bf16.vlgmr.msra.gmra.mrb[112].mxu1 %vm1845_vm0, %v3287_v33  ;;  %v2938_v44 = vmul.f32 1.442695, %v17265_v45  ;;  %v17269_v7 = vsub.f32 %v17079_v47, %v12091_v52  ;;  %v17274_v52 = vld [vmem:[#allocation51_spill] sm:$0xff] }
 0x3eb   : > { %v9387_v12 = vpop.eup %9386  ;;  %9406 = vpow2.f32 %v2926_v53  ;;  %8850 = vmatpush3.bf16.xpose.msra.mxu1 %v17266_v30  ;;  %3087 = vadd.xlane.f32.xlu0 %v3086_v13  ;;  %v17270_v53 = vld [vmem:[#allocation94_spill] sm:$0xff] }
 0x3ec   : > { %v9389_v5 = vpop.eup %9388  ;;  %9408 = vpow2.f32 %v2928_v57  ;;  %8851 = vmatprep.subr.bf16.mxu1 %v17268_v11  ;;  %v2262_v28 = vpop.xlane.xlu0 %2261  ;;  %3090 = vadd.xlane.f32.xlu1 %v3089_v31  ;;  %v2198_v2 = vmul.f32 1.442695, %v17269_v7  ;;  %v2492_v43 = vmul.f32 %v9387_v12, %v17270_v53  ;;  %v17272_v57 = vld [vmem:[#allocation6_spill] sm:$0xff]  ;;  %v17275_v12 = vsub.f32 %v17081_v21, %v12098_v27  ;;  %v17280_v21 = vld [vmem:[#allocation59_spill] sm:$0xff] }
 0x3ed   : > { %v12543_v25 = vpop.eup %9390  ;;  %9410 = vpow2.f32 %v2202_v51  ;;  %v2265_v6 = vpop.xlane.xlu1 %2264  ;;  %v2493_v40 = vmul.f32 %v9389_v5, %v17271_v42  ;;  %v17276_v5 = vld [vmem:[#allocation15_spill] sm:$0xff] }
 0x3ee   : > { %v9393_v62 = vpop.eup %9392  ;;  %9412 = vpow2.f32 %v2204_v17  ;;  %v3107_v17 = vsel %vm1845_vm0, %v12525_v49, 0.0  ;;  %v2200_v45 = vmul.f32 1.442695, %v17275_v12  ;;  %v2362_v53 = vsel %vm1845_vm0, %v12543_v25, 0.0 }
 0x3ef   : > { %v9395_v1 = vpop.eup %9394  ;;  %9414 = vpow2.f32 %v2938_v44  ;;  %8780 = vmatpush3.bf16.xpose.msra.mxu0 %v17262_v46  ;;  %2369 = vadd.xlane.f32.xlu0 %v2368_v9  ;;  %v3104_v46 = vsel %vm1845_vm0, %v12519_v15, 0.0  ;;  %v2553_v30 = vpack.c.bf16 %v2493_v40, %v2492_v43 }
 0x3f0   : > { %v9397_v10 = vpop.eup %9396  ;;  %9416 = vpow2.f32 %v2940_v34  ;;  %8781 = vmatprep.subr.bf16.mxu0 %v17272_v57  ;;  %v2998_v33 = vpop.xlane.xlu0 %2997  ;;  %2372 = vadd.xlane.f32.xlu1 %v2371_v22  ;;  %v2490_v35 = vmul.f32 %v9395_v1, %v17273_v0  ;;  %v17277_v34 = vld [vmem:[#allocation102_spill] sm:$0xff]  ;;  %v17282_v0 = vsub.f32 %v17087_v60, %v12120_v4  ;;  %v17285_v4 = vsub.f32 %v17093_v58, %v12142_v39 }
 0x3f1   : > { %v9399_v51 = vpop.eup %9398  ;;  %9418 = vrcp.f32 %v2262_v28  ;;  %v3001_v36 = vpop.xlane.xlu1 %3000  ;;  %v2491_v47 = vmul.f32 %v9397_v10, %v17274_v52  ;;  %v17279_v22 = vld [vmem:[#allocation166_spill] sm:$0xff]  ;;  %v17287_v58 = vsub.f32 %v17099_v56, %v12164_v16  ;;  %v17289_v16 = vsub.f32 %v17103_v37, %v12179_v32  ;;  %v17294_v32 = vld [vmem:[#allocation57_spill] sm:$0xff] }
 0x3f2   : > { %v12558_v26 = vpop.eup %9400  ;;  %9420 = vrcp.f32 %v2265_v6  ;;  %v17278_v6 = vld [vmem:[#allocation96_spill] sm:$0xff]  ;;  %v3229_v1 = vmul.f32 %v9399_v51, %v17279_v22  ;;  %v2212_v60 = vmul.f32 1.442695, %v17285_v4 }
 0x3f3   : > { %v9403_v13 = vpop.eup %9402  ;;  %9422 = vpow2.f32 %v2198_v2  ;;  %8852 = vmatpush3.bf16.xpose.msra.mxu1 %v17268_v11  ;;  %3105 = vadd.xlane.f32.xlu0 %v3104_v46  ;;  %v2552_v44 = vpack.c.bf16 %v2491_v47, %v2490_v35  ;;  %v3228_v9 = vmul.f32 %v9393_v62, %v17278_v6  ;;  %v17281_v62 = vsub.f32 %v17085_v41, %v12113_v38  ;;  %v17283_v51 = vld [vmem:[#allocation8_spill] sm:$0xff] }
 0x3f4   : > { %v9405_v31 = vpop.eup %9404  ;;  %9424 = vrcp.f32 %v2998_v33  ;;  %8853 = vmatprep.subr.bf16.mxu1 %v17276_v5  ;;  %v2256_v3 = vpop.xlane.xlu0 %2255  ;;  %3108 = vadd.xlane.f32.xlu1 %v3107_v17  ;;  %v3226_v28 = vmul.f32 %v9403_v13, %v17277_v34  ;;  %v2365_v40 = vsel %vm1845_vm0, %v12558_v26, 0.0  ;;  %v2936_v35 = vmul.f32 1.442695, %v17282_v0 }
 0x3f5   : > { %v12572_v7 = vpop.eup %9406  ;;  %9426 = vrcp.f32 %v2256_v3  ;;  %8645 = vmatprep.mubr.msk.bf16.mxu0 %vm1845_vm0, %v2552_v44  ;;  %v2259_v27 = vpop.xlane.xlu1 %2258  ;;  %v3227_v11 = vmul.f32 %v9405_v31, %v17280_v21  ;;  %v2934_v42 = vmul.f32 1.442695, %v17281_v62  ;;  %v3289_v38 = vpack.c.bf16 %v3229_v1, %v3228_v9  ;;  %v17288_v44 = vld [vmem:[#allocation17_spill] sm:$0xff]  ;;  %v17291_v9 = vld [vmem:[#allocation168_spill] sm:$0xff] }
 0x3f6   : > { %v12576_v2 = vpop.eup %9408  ;;  %9428 = vrcp.f32 %v2259_v27  ;;  %8646 = vmatmul.mubr.msk.bf16.gmra.mrb[116].mxu0 %vm1845_vm0, %v2553_v30  ;;  %v3098_v17 = vsel %vm1845_vm0, %v12572_v7, 0.0  ;;  %v2206_v56 = vmul.f32 1.442695, %v17289_v16  ;;  %v17292_v27 = vld [vmem:[#allocation3_spill] sm:$0xff] }
 0x3f7   : > { %v12581_v43 = vpop.eup %9410  ;;  %9430 = vrcp.f32 %v3001_v36  ;;  %8782 = vmatpush3.bf16.xpose.msra.mxu0 %v17272_v57  ;;  %2363 = vadd.xlane.f32.xlu0 %v2362_v53  ;;  %v3288_v10 = vpack.c.bf16 %v3227_v11, %v3226_v28  ;;  %v17284_v57 = vsub.f32 %v17091_v19, %v12135_v20  ;;  %v17286_v20 = vsub.f32 %v17097_v48, %v12157_v8  ;;  %v17290_v28 = vld [vmem:[#allocation167_spill] sm:$0xff]  ;;  %v17293_v11 = vld [vmem:[#allocation105_spill] sm:$0xff] }
 0x3f8   : > { %v12589_v33 = vpop.eup %9412  ;;  %9432 = vpow2.f32 %v2200_v45  ;;  %8783 = vmatprep.subr.bf16.mxu0 %v17283_v51  ;;  %v2992_v52 = vpop.xlane.xlu0 %2991  ;;  %2366 = vadd.xlane.f32.xlu1 %v2365_v40  ;;  %v3101_v12 = vsel %vm1845_vm0, %v12576_v2, 0.0  ;;  %v2948_v45 = vmul.f32 1.442695, %v17287_v58 }
 0x3f9   : > { %v12595_v41 = vpop.eup %9414  ;;  %v2210_v36 = vmul.f32 1.442695, %v17284_v57  ;;  %9434 = vrcp.f32 %v2992_v52  ;;  %8717 = vmatprep.mubr.msk.bf16.mxu1 %vm1845_vm0, %v3288_v10  ;;  %v2995_v47 = vpop.xlane.xlu1 %2994  ;;  %v2946_v19 = vmul.f32 1.442695, %v17286_v20  ;;  %v2383_v3 = vsel %vm1845_vm0, %v12589_v33, 0.0  ;;  %v17296_v52 = vld [vmem:[#allocation139_spill] sm:$0xff] }
 0x3fa   : > { %v12601_v46 = vpop.eup %9416  ;;  %9436 = vrcp.f32 %v2995_v47  ;;  %8718 = vmatmul.mubr.msk.bf16.gmra.mrb[116].mxu1 %vm1845_vm0, %v3289_v38  ;;  %v3116_v10 = vsel %vm1845_vm0, %v12595_v41, 0.0 }
 0x3fb   : > { %v9419_v13 = vpop.eup %9418  ;;  %9438 = vpow2.f32 %v2934_v42  ;;  %8854 = vmatpush3.bf16.xpose.msra.mxu1 %v17276_v5  ;;  %3099 = vadd.xlane.f32.xlu0 %v3098_v17  ;;  %v2380_v5 = vsel %vm1845_vm0, %v12581_v43, 0.0  ;;  %v3119_v0 = vsel %vm1845_vm0, %v12601_v46, 0.0 }
 0x3fc   : > { %v9421_v39 = vpop.eup %9420  ;;  %9440 = vpow2.f32 %v2936_v35  ;;  %8855 = vmatprep.subr.bf16.mxu1 %v17288_v44  ;;  %v2274_v30 = vpop.xlane.xlu0 %2273  ;;  %3102 = vadd.xlane.f32.xlu1 %v3101_v12  ;;  %v2496_v6 = vmul.f32 %v9419_v13, %v17290_v28  ;;  %v17299_v13 = vld [vmem:[#allocation110_spill] sm:$0xff] }
 0x3fd   : > { %v12619_v31 = vpop.eup %9422  ;;  %9442 = vpow2.f32 %v2210_v36  ;;  %v2277_v8 = vpop.xlane.xlu1 %2276  ;;  %v2497_v22 = vmul.f32 %v9421_v39, %v17291_v9  ;;  %v17301_v39 = vld [vmem:[#allocation61_spill] sm:$0xff] }
 0x3fe   : > { %v9425_v48 = vpop.eup %9424  ;;  %9444 = vpow2.f32 %v2212_v60  ;;  %v17298_v60 = vld [vmem:[#allocation12_spill] sm:$0xff] }
 0x3ff   : > { %v9427_v34 = vpop.eup %9426  ;;  %9446 = vpow2.f32 %v2946_v19  ;;  %8784 = vmatpush3.bf16.xpose.msra.mxu0 %v17283_v51  ;;  %2381 = vadd.xlane.f32.xlu0 %v2380_v5  ;;  %v17295_v51 = vld [vmem:[#allocation149_spill] sm:$0xff]  ;;  %v2555_v47 = vpack.c.bf16 %v2497_v22, %v2496_v6  ;;  %v17300_v19 = vld [vmem:[#allocation104_spill] sm:$0xff] }
 0x400   : > { %v9429_v1 = vpop.eup %9428  ;;  %9448 = vpow2.f32 %v2948_v45  ;;  %8921 = vmatprep.subr.bf16.mxu0 %v17292_v27  ;;  %v3010_v21 = vpop.xlane.xlu0 %3009  ;;  %2384 = vadd.xlane.f32.xlu1 %v2383_v3  ;;  %v2494_v53 = vmul.f32 %v9427_v34, %v17293_v11  ;;  %v17297_v38 = vsub.f32 %v17295_v51, %v17296_v52  ;;  %v3232_v12 = vmul.f32 %v9425_v48, %v17300_v19  ;;  %v17303_v48 = vld [vmem:[#allocation136_spill] sm:$0xff]  ;;  %v17311_v51 = vld [vmem:[#allocation155_spill] sm:$0xff]  ;;  %v17315_v19 = vld [vmem:[#allocation154_spill] sm:$0xff] }
 0x401   : > { %v9431_v62 = vpop.eup %9430  ;;  %9450 = vrcp.f32 %v2274_v30  ;;  %v3013_v42 = vpop.xlane.xlu1 %3012  ;;  %v2495_v37 = vmul.f32 %v9429_v1, %v17294_v32  ;;  %v17302_v30 = vld [vmem:[#allocation67_spill] sm:$0xff]  ;;  %v2374_v3 = vsel %vm1845_vm0, %v12619_v31, 0.0  ;;  %v17304_v16 = vsub.f32 %v17111_v59, %v17303_v48  ;;  %v17305_v22 = vld [vmem:[#allocation148_spill] sm:$0xff]  ;;  %v17306_v1 = vld [vmem:[#allocation141_spill] sm:$0xff] }
 0x402   : > { %v12634_v40 = vpop.eup %9432  ;;  %9452 = vrcp.f32 %v2277_v8  ;;  %v2208_v57 = vmul.f32 1.442695, %v17297_v38  ;;  %v3233_v58 = vmul.f32 %v9431_v62, %v17301_v39  ;;  %v17308_v59 = vld [vmem:[#allocation150_spill] sm:$0xff]  ;;  %v17312_v52 = vld [vmem:[#allocation147_spill] sm:$0xff] }
 0x403   : > { %v9435_v35 = vpop.eup %9434  ;;  %9454 = vpow2.f32 %v2206_v56  ;;  %8856 = vmatpush3.bf16.xpose.msra.mxu1 %v17288_v44  ;;  %3117 = vadd.xlane.f32.xlu0 %v3116_v10  ;;  %v2554_v36 = vpack.c.bf16 %v2495_v37, %v2494_v53  ;;  %v2942_v56 = vmul.f32 1.442695, %v17304_v16  ;;  %v2377_v28 = vsel %vm1845_vm0, %v12634_v40, 0.0  ;;  %v17309_v37 = vld [vmem:[#allocation142_spill] sm:$0xff]  ;;  %v17318_v16 = vld [vmem:[#allocation92_spill] sm:$0xff] }
 0x404   : > { %v9437_v4 = vpop.eup %9436  ;;  %9456 = vrcp.f32 %v3010_v21  ;;  %8993 = vmatprep.subr.bf16.mxu1 %v17298_v60  ;;  %v2268_v17 = vpop.xlane.xlu0 %2267  ;;  %3120 = vadd.xlane.f32.xlu1 %v3119_v0  ;;  %v3230_v20 = vmul.f32 %v9435_v35, %v17299_v13  ;;  %v17307_v21 = vsub.f32 %v17305_v22, %v17306_v1  ;;  %v3291_v62 = vpack.c.bf16 %v3233_v58, %v3232_v12  ;;  %v17316_v12 = vld [vmem:[#allocation144_spill] sm:$0xff] }
 0x405   : > { %v12648_v45 = vpop.eup %9438  ;;  %9458 = vrcp.f32 %v2268_v17  ;;  %8649 = vmatprep.mubr.msk.bf16.mxu0 %vm1845_vm0, %v2554_v36  ;;  %v2271_v44 = vpop.xlane.xlu1 %2270  ;;  %v3231_v8 = vmul.f32 %v9437_v4, %v17302_v30  ;;  %v17313_v38 = vsub.f32 %v17311_v51, %v17312_v52  ;;  %v17314_v4 = vsub.f32 %v17133_v63, %v12245_v29  ;;  %v17321_v1 = vld [vmem:[#allocation172_spill] sm:$0xff] }
 0x406   : > { %v12652_v5 = vpop.eup %9440  ;;  %9460 = vrcp.f32 %v2271_v44  ;;  %8650 = vmatmul.mubr.msk.bf16.gmra.mrb[120].mxu0 %vm1845_vm0, %v2555_v47  ;;  %v2944_v11 = vmul.f32 1.442695, %v17307_v21  ;;  %v3110_v36 = vsel %vm1845_vm0, %v12648_v45, 0.0  ;;  %v17317_v39 = vsub.f32 %v17315_v19, %v17316_v12  ;;  %v17327_v12 = vld [vmem:[#allocation118_spill] sm:$0xff] }
 0x407   : > { %v12657_v34 = vpop.eup %9442  ;;  %9462 = vrcp.f32 %v3013_v42  ;;  %2375 = vadd.xlane.f32.xlu0 %v2374_v3  ;;  %v3290_v6 = vpack.c.bf16 %v3231_v8, %v3230_v20  ;;  %v17310_v42 = vsub.f32 %v17308_v59, %v17309_v37  ;;  %v2954_v17 = vmul.f32 1.442695, %v17314_v4 }
 0x408   : > { %v12664_v9 = vpop.eup %9444  ;;  %9464 = vpow2.f32 %v2208_v57  ;;  %v3004_v53 = vpop.xlane.xlu0 %3003  ;;  %2378 = vadd.xlane.f32.xlu1 %v2377_v28  ;;  %v2220_v57 = vmul.f32 1.442695, %v17313_v38  ;;  %v3113_v13 = vsel %vm1845_vm0, %v12652_v5, 0.0  ;;  %v2956_v58 = vmul.f32 1.442695, %v17317_v39 }
 0x409   : > { %v12669_v32 = vpop.eup %9446  ;;  %v2218_v10 = vmul.f32 1.442695, %v17310_v42  ;;  %9466 = vrcp.f32 %v3004_v53  ;;  %8721 = vmatprep.mubr.msk.bf16.mxu1 %vm1845_vm0, %v3290_v6  ;;  %v3007_v0 = vpop.xlane.xlu1 %3006  ;;  %v2392_v63 = vsel %vm1845_vm0, %v12657_v34, 0.0  ;;  %v2395_v29 = vsel %vm1845_vm0, %v12664_v9, 0.0  ;;  %v17320_v6 = vld [vmem:[#allocation171_spill] sm:$0xff] }
 0x40a   : > { %v12675_v35 = vpop.eup %9448  ;;  %9468 = vrcp.f32 %v3007_v0  ;;  %8722 = vmatmul.mubr.msk.bf16.gmra.mrb[120].mxu1 %vm1845_vm0, %v3291_v62  ;;  %v17322_v62 = vld [vmem:[#allocation113_spill] sm:$0xff] }
 0x40b   : > { %v9451_v47 = vpop.eup %9450  ;;  %9470 = vpow2.f32 %v2942_v56  ;;  %3111 = vadd.xlane.f32.xlu0 %v3110_v36  ;;  %v17319_v56 = vsub.f32 %v17143_v54, %v17318_v16  ;;  %v3128_v54 = vsel %vm1845_vm0, %v12669_v32, 0.0  ;;  %v3131_v52 = vsel %vm1845_vm0, %v12675_v35, 0.0  ;;  %v17325_v36 = vld [vmem:[#allocation95_spill] sm:$0xff] }
 0x40c   : > { %v9453_v20 = vpop.eup %9452  ;;  %9472 = vpow2.f32 %v2944_v11  ;;  %v2286_v44 = vpop.xlane.xlu0 %2285  ;;  %3114 = vadd.xlane.f32.xlu1 %v3113_v13  ;;  %v2500_v22 = vmul.f32 %v9451_v47, %v17320_v6  ;;  %v17330_v16 = vld [vmem:[#allocation75_spill] sm:$0xff] }
 0x40d   : > { %v12691_v30 = vpop.eup %9454  ;;  %9474 = vpow2.f32 %v2218_v10  ;;  %v2289_v8 = vpop.xlane.xlu1 %2288  ;;  %v2214_v28 = vmul.f32 1.442695, %v17319_v56  ;;  %v2501_v21 = vmul.f32 %v9453_v20, %v17321_v1  ;;  %v17323_v10 = vld [vmem:[#allocation65_spill] sm:$0xff] }
 0x40e   : > { %v9457_v3 = vpop.eup %9456  ;;  %9476 = vpow2.f32 %v2220_v57  ;;  %v17324_v57 = vld [vmem:[#allocation157_spill] sm:$0xff]  ;;  %v2386_v6 = vsel %vm1845_vm0, %v12691_v30, 0.0 }
 0x40f   : > { %v9459_v48 = vpop.eup %9458  ;;  %9478 = vpow2.f32 %v2954_v17  ;;  %2393 = vadd.xlane.f32.xlu0 %v2392_v63  ;;  %v17326_v47 = vsub.f32 %v17324_v57, %v17325_v36  ;;  %v2557_v13 = vpack.c.bf16 %v2501_v21, %v2500_v22  ;;  %v17337_v57 = vld [vmem:[#allocation53_spill] sm:$0xff] }
 0x410   : > { %v9461_v11 = vpop.eup %9460  ;;  %9480 = vpow2.f32 %v2956_v58  ;;  %v3022_v53 = vpop.xlane.xlu0 %3021  ;;  %2396 = vadd.xlane.f32.xlu1 %v2395_v29  ;;  %v2498_v59 = vmul.f32 %v9459_v48, %v17322_v62  ;;  %v17328_v58 = vld [vmem:[#allocation112_spill] sm:$0xff] }
 0x411   : > { %v9463_v37 = vpop.eup %9462  ;;  %9482 = vrcp.f32 %v2286_v44  ;;  %v3025_v42 = vpop.xlane.xlu1 %3024  ;;  %v2499_v0 = vmul.f32 %v9461_v11, %v17323_v10  ;;  %v2216_v4 = vmul.f32 1.442695, %v17326_v47  ;;  %v3236_v44 = vmul.f32 %v9457_v3, %v17328_v58  ;;  %v17331_v3 = vld [vmem:[#allocation103_spill] sm:$0xff]  ;;  %v17342_v58 = vld [vmem:[#allocation160_spill] sm:$0xff] }
 0x412   : > { %v12704_v51 = vpop.eup %9464  ;;  %9484 = vrcp.f32 %v2289_v8  ;;  %v17329_v8 = vld [vmem:[#allocation69_spill] sm:$0xff]  ;;  %v17332_v1 = vsub.f32 %v17154_v61, %v17331_v3  ;;  %v17336_v61 = vld [vmem:[#allocation158_spill] sm:$0xff] }
 0x413   : > { %v9467_v38 = vpop.eup %9466  ;;  %9486 = vpow2.f32 %v2214_v28  ;;  %3129 = vadd.xlane.f32.xlu0 %v3128_v54  ;;  %v2556_v17 = vpack.c.bf16 %v2499_v0, %v2498_v59  ;;  %v3237_v63 = vmul.f32 %v9463_v37, %v17329_v8  ;;  %v2389_v11 = vsel %vm1845_vm0, %v12704_v51, 0.0  ;;  %v17333_v59 = vld [vmem:[#allocation156_spill] sm:$0xff]  ;;  %v17334_v37 = vld [vmem:[#allocation101_spill] sm:$0xff] }
 0x414   : > { %v9469_v20 = vpop.eup %9468  ;;  %9488 = vrcp.f32 %v3022_v53  ;;  %v2280_v19 = vpop.xlane.xlu0 %2279  ;;  %3132 = vadd.xlane.f32.xlu1 %v3131_v52  ;;  %v3234_v39 = vmul.f32 %v9467_v38, %v17327_v12  ;;  %v2950_v21 = vmul.f32 1.442695, %v17332_v1  ;;  %v17335_v10 = vsub.f32 %v17333_v59, %v17334_v37 }
 0x415   : > { %v12716_v29 = vpop.eup %9470  ;;  %9490 = vrcp.f32 %v2280_v19  ;;  %8653 = vmatprep.mubr.msk.bf16.mxu0 %vm1845_vm0, %v2556_v17  ;;  %v2283_v48 = vpop.xlane.xlu1 %2282  ;;  %v3235_v56 = vmul.f32 %v9469_v20, %v17330_v16  ;;  %v3293_v52 = vpack.c.bf16 %v3237_v63, %v3236_v44  ;;  %v17343_v44 = vld [vmem:[#allocation56_spill] sm:$0xff] }
 0x416   : > { %v12720_v28 = vpop.eup %9472  ;;  %9492 = vrcp.f32 %v2283_v48  ;;  %8654 = vmatmul.mubr.msk.bf16.gmra.mrb[124].mxu0 %vm1845_vm0, %v2557_v13  ;;  %v2952_v0 = vmul.f32 1.442695, %v17335_v10  ;;  %v17340_v13 = vld [vmem:[#allocation152_spill] sm:$0xff]  ;;  %v3122_v12 = vsel %vm1845_vm0, %v12716_v29, 0.0  ;;  %v17344_v8 = vsub.f32 %v17342_v58, %v17343_v44 }
 0x417   : > { %v12725_v22 = vpop.eup %9474  ;;  %9494 = vrcp.f32 %v3025_v42  ;;  %2387 = vadd.xlane.f32.xlu0 %v2386_v6  ;;  %v3292_v53 = vpack.c.bf16 %v3235_v56, %v3234_v39  ;;  %v17338_v42 = vsub.f32 %v17336_v61, %v17337_v57  ;;  %v3125_v48 = vsel %vm1845_vm0, %v12720_v28, 0.0  ;;  %v17345_v56 = vld [vmem:[#allocation165_spill] sm:$0xff]  ;;  %v17346_v6 = vld [vmem:[#allocation115_spill] sm:$0xff] }
 0x418   : > { %v12732_v62 = vpop.eup %9476  ;;  %9496 = vpow2.f32 %v2216_v4  ;;  %v3016_v54 = vpop.xlane.xlu0 %3015  ;;  %2390 = vadd.xlane.f32.xlu1 %v2389_v11  ;;  %v17339_v4 = vld [vmem:[#allocation163_spill] sm:$0xff]  ;;  %v2222_v63 = vmul.f32 1.442695, %v17344_v8  ;;  %v17347_v3 = vsub.f32 %v17345_v56, %v17346_v6  ;;  %v2404_v37 = vsel %vm1845_vm0, %v12725_v22, 0.0  ;;  %v17354_v8 = vld [vmem:[#allocation73_spill] sm:$0xff]  ;;  %v17355_v6 = vld [vmem:[#allocation164_spill] sm:$0xff] }
 0x419   : > { %v12737_v38 = vpop.eup %9478  ;;  %v2226_v36 = vmul.f32 1.442695, %v17338_v42  ;;  %9498 = vrcp.f32 %v3016_v54  ;;  %8725 = vmatprep.mubr.msk.bf16.mxu1 %vm1845_vm0, %v3292_v53  ;;  %v3019_v47 = vpop.xlane.xlu1 %3018  ;;  %v17341_v20 = vsub.f32 %v17339_v4, %v17340_v13  ;;  %v2407_v10 = vsel %vm1845_vm0, %v12732_v62, 0.0  ;;  %v17351_v42 = vld [vmem:[#allocation175_spill] sm:$0xff]  ;;  %v17352_v4 = vld [vmem:[#allocation176_spill] sm:$0xff] }
 0x41a   : > { %v12743_v17 = vpop.eup %9480  ;;  %9500 = vrcp.f32 %v3019_v47  ;;  %8726 = vmatmul.mubr.msk.bf16.gmra.mrb[124].mxu1 %vm1845_vm0, %v3293_v52  ;;  %v2224_v1 = vmul.f32 1.442695, %v17347_v3  ;;  %v17349_v52 = vld [vmem:[#allocation169_spill] sm:$0xff]  ;;  %v3140_v56 = vsel %vm1845_vm0, %v12737_v38, 0.0  ;;  %v17356_v3 = vld [vmem:[#allocation114_spill] sm:$0xff] }
 0x41b   : > { %v2228_v19 = vmul.f32 1.442695, %v17341_v20  ;;  %v9483_v39 = vpop.eup %9482  ;;  %9502 = vpow2.f32 %v2950_v21  ;;  %3123 = vadd.xlane.f32.xlu0 %v3122_v12 }
 0x41c   : > { %v9485_v16 = vpop.eup %9484  ;;  %9504 = vpow2.f32 %v2952_v0  ;;  %v2298_v11 = vpop.xlane.xlu0 %2297  ;;  %3126 = vadd.xlane.f32.xlu1 %v3125_v48  ;;  %v17348_v0 = vld [vmem:[#allocation161_spill] sm:$0xff]  ;;  %v2504_v47 = vmul.f32 %v9483_v39, %v17351_v42  ;;  %v3143_v39 = vsel %vm1845_vm0, %v12743_v17, 0.0 }
 0x41d   : > { %v12759_v53 = vpop.eup %9486  ;;  %9506 = vpow2.f32 %v2226_v36  ;;  %v2301_v21 = vpop.xlane.xlu1 %2300  ;;  %v17350_v61 = vsub.f32 %v17348_v0, %v17349_v52  ;;  %v2505_v36 = vmul.f32 %v9485_v16, %v17352_v4  ;;  %v17360_v4 = vld [vmem:[#allocation77_spill] sm:$0xff] }
 0x41e   : > { %v9489_v59 = vpop.eup %9488  ;;  %9508 = vpow2.f32 %v2228_v19  ;;  %v17353_v19 = vld [vmem:[#allocation121_spill] sm:$0xff] }
 0x41f   : > { %v9491_v54 = vpop.eup %9490  ;;  %9510 = vpow2.f32 %v2222_v63  ;;  %v2958_v57 = vmul.f32 1.442695, %v17350_v61  ;;  %2405 = vadd.xlane.f32.xlu0 %v2404_v37  ;;  %v17359_v61 = vld [vmem:[#allocation120_spill] sm:$0xff] }
 0x420   : > { %v9493_v13 = vpop.eup %9492  ;;  %9512 = vpow2.f32 %v2224_v1  ;;  %v3034_v20 = vpop.xlane.xlu0 %3033  ;;  %2408 = vadd.xlane.f32.xlu1 %v2407_v10  ;;  %v2502_v12 = vmul.f32 %v9491_v54, %v17353_v19  ;;  %v17357_v1 = vsub.f32 %v17355_v6, %v17356_v3  ;;  %v2559_v10 = vpack.c.bf16 %v2505_v36, %v2504_v47  ;;  %v17363_v6 = vld [vmem:[#allocation159_spill] sm:$0xff]  ;;  %v17364_v3 = vld [vmem:[#allocation54_spill] sm:$0xff] }
 0x421   : > { %v9495_v58 = vpop.eup %9494  ;;  %9514 = vrcp.f32 %v2298_v11  ;;  %v3037_v44 = vpop.xlane.xlu1 %3036  ;;  %v2503_v63 = vmul.f32 %v9493_v13, %v17354_v8  ;;  %v3240_v42 = vmul.f32 %v9489_v59, %v17359_v61  ;;  %v17361_v8 = vld [vmem:[#allocation78_spill] sm:$0xff]  ;;  %v2398_v47 = vsel %vm1845_vm0, %v12759_v53, 0.0 }
 0x422   : > { %v12772_v48 = vpop.eup %9496  ;;  %9516 = vrcp.f32 %v2301_v21  ;;  %v2960_v37 = vmul.f32 1.442695, %v17357_v1  ;;  %v17358_v21 = vld [vmem:[#allocation83_spill] sm:$0xff]  ;;  %v3241_v13 = vmul.f32 %v9495_v58, %v17360_v4  ;;  %v17365_v1 = vsub.f32 %v17363_v6, %v17364_v3 }
 0x423   : > { %v9499_v16 = vpop.eup %9498  ;;  %9518 = vpow2.f32 %v2958_v57  ;;  %3141 = vadd.xlane.f32.xlu0 %v3140_v56  ;;  %v2558_v11 = vpack.c.bf16 %v2503_v63, %v2502_v12  ;;  %v2401_v59 = vsel %vm1845_vm0, %v12772_v48, 0.0  ;;  %v17371_v6 = vld [vmem:[#allocation179_spill] sm:$0xff] }
 0x424   : > { %v9501_v54 = vpop.eup %9500  ;;  %9520 = vrcp.f32 %v3034_v20  ;;  %v2292_v0 = vpop.xlane.xlu0 %2291  ;;  %3144 = vadd.xlane.f32.xlu1 %v3143_v39  ;;  %v3238_v52 = vmul.f32 %v9499_v16, %v17358_v21  ;;  %v3295_v39 = vpack.c.bf16 %v3241_v13, %v3240_v42 }
 0x425   : > { %v12784_v19 = vpop.eup %9502  ;;  %9522 = vrcp.f32 %v2292_v0  ;;  %8657 = vmatprep.mubr.msk.bf16.mxu0 %vm1845_vm0, %v2558_v11  ;;  %v2295_v57 = vpop.xlane.xlu1 %2294  ;;  %v3239_v56 = vmul.f32 %v9501_v54, %v17361_v8  ;;  %v2962_v11 = vmul.f32 1.442695, %v17365_v1  ;;  %v17366_v54 = vld [vmem:[#allocation162_spill] sm:$0xff]  ;;  %v17367_v0 = vld [vmem:[#allocation153_spill] sm:$0xff] }
 0x426   : > { %v12788_v12 = vpop.eup %9504  ;;  %9524 = vrcp.f32 %v2295_v57  ;;  %8658 = vmatmul.mubr.msk.bf16.gmra.mrb[128].mxu0 %vm1845_vm0, %v2559_v10  ;;  %v17368_v21 = vsub.f32 %v17366_v54, %v17367_v0  ;;  %v17372_v54 = vld [vmem:[#allocation80_spill] sm:$0xff] }
 0x427   : > { %v12793_v36 = vpop.eup %9506  ;;  %9526 = vrcp.f32 %v3037_v44  ;;  %2399 = vadd.xlane.f32.xlu0 %v2398_v47  ;;  %v3294_v20 = vpack.c.bf16 %v3239_v56, %v3238_v52  ;;  %v3137_v42 = vsel %vm1845_vm0, %v12788_v12, 0.0 }
 0x428   : > { %v12797_v58 = vpop.eup %9508  ;;  %9528 = vpow2.f32 %v2960_v37  ;;  %v3028_v63 = vpop.xlane.xlu0 %3027  ;;  %2402 = vadd.xlane.f32.xlu1 %v2401_v59  ;;  %v2964_v52 = vmul.f32 1.442695, %v17368_v21  ;;  %v3134_v37 = vsel %vm1845_vm0, %v12784_v19, 0.0  ;;  %v2416_v47 = vsel %vm1845_vm0, %v12793_v36, 0.0 }
 0x429   : > { %17362 = vst [vmem:[#allocation174_spill] sm:$0xff] %v12797_v58  ;;  %v12799_v16 = vpop.eup %9510  ;;  %9530 = vrcp.f32 %v3028_v63  ;;  %8729 = vmatprep.mubr.msk.bf16.mxu1 %vm1845_vm0, %v3294_v20  ;;  %v3031_v44 = vpop.xlane.xlu1 %3030  ;;  %v2419_v20 = vsel %vm1845_vm0, %v12797_v58, 0.0  ;;  %v17370_v63 = vld [vmem:[#allocation79_spill] sm:$0xff] }
 0x42a   : > { %v12805_v10 = vpop.eup %9512  ;;  %9532 = vrcp.f32 %v3031_v44  ;;  %8730 = vmatmul.mubr.msk.bf16.gmra.mrb[128].mxu1 %vm1845_vm0, %v3295_v39 }
 0x42b   : > { %v9515_v61 = vpop.eup %9514  ;;  %3135 = vadd.xlane.f32.xlu0 %v3134_v37  ;;  %9534 = vpow2.f32 %v2962_v11 }
 0x42c   : > { %v9517_v4 = vpop.eup %9516  ;;  %v2310_v13 = vpop.xlane.xlu0 %2309  ;;  %3138 = vadd.xlane.f32.xlu1 %v3137_v42  ;;  %9536 = vpow2.f32 %v2964_v52  ;;  %v2508_v39 = vmul.f32 %v9515_v61, %v17370_v63  ;;  %v17373_v52 = vld [vmem:[#allocation82_spill] sm:$0xff]  ;;  %v2413_v61 = vsel %vm1845_vm0, %v12805_v10, 0.0 }
 0x42d   : > { %v12815_v57 = vpop.eup %9518  ;;  %v2313_v8 = vpop.xlane.xlu1 %2312  ;;  %v2509_v3 = vmul.f32 %v9517_v4, %v17371_v6  ;;  %9538 = vrcp.f32 %v2310_v13  ;;  %v17375_v13 = vld [vmem:[#allocation128_spill] sm:$0xff] }
 0x42e   : > { %17369 = vst [vmem:[#allocation125_spill] sm:$0xff] %v12815_v57  ;;  %v9521_v56 = vpop.eup %9520  ;;  %9540 = vrcp.f32 %v2313_v8 }
 0x42f   : > { %v9523_v59 = vpop.eup %9522  ;;  %2417 = vadd.xlane.f32.xlu0 %v2416_v47  ;;  %v2410_v47 = vsel %vm1845_vm0, %v12799_v16, 0.0 }
 0x430   : > { %v9525_v1 = vpop.eup %9524  ;;  %v3046_v44 = vpop.xlane.xlu0 %3045  ;;  %2420 = vadd.xlane.f32.xlu1 %v2419_v20  ;;  %v2506_v11 = vmul.f32 %v9523_v59, %v17372_v54  ;;  %v2561_v20 = vpack.c.bf16 %v2509_v3, %v2508_v39  ;;  %v3146_v39 = vsel %vm1845_vm0, %v12815_v57, 0.0 }
 0x431   : > { %v9527_v0 = vpop.eup %9526  ;;  %v3049_v21 = vpop.xlane.xlu1 %3048  ;;  %v2507_v37 = vmul.f32 %v9525_v1, %v17373_v52  ;;  %9542 = vrcp.f32 %v3046_v44  ;;  %v17376_v1 = vld [vmem:[#allocation127_spill] sm:$0xff]  ;;  %v17377_v52 = vld [vmem:[#allocation180_spill] sm:$0xff] }
 0x432   : > { %v12825_v42 = vpop.eup %9528  ;;  %v3244_v54 = vmul.f32 %v9521_v56, %v17376_v1  ;;  %v3245_v8 = vmul.f32 %v9527_v0, %v17377_v52  ;;  %v17382_v1 = vld [vmem:[#allocation85_spill] sm:$0xff] }
 0x433   : > { %17374 = vst [vmem:[#allocation68_spill] sm:$0xff] %v12825_v42  ;;  %v9531_v60 = vpop.eup %9530  ;;  %2411 = vadd.xlane.f32.xlu0 %v2410_v47  ;;  %v2560_v4 = vpack.c.bf16 %v2507_v37, %v2506_v11  ;;  %v17378_v47 = vld [vmem:[#allocation181_spill] sm:$0xff] }
 0x434   : > { %v9533_v63 = vpop.eup %9532  ;;  %v2304_v59 = vpop.xlane.xlu0 %2303  ;;  %2414 = vadd.xlane.f32.xlu1 %v2413_v61  ;;  %v3242_v6 = vmul.f32 %v9531_v60, %v17375_v13  ;;  %v3149_v60 = vsel %vm1845_vm0, %v12825_v42, 0.0  ;;  %v3297_v0 = vpack.c.bf16 %v3245_v8, %v3244_v54  ;;  %v17381_v13 = vld [vmem:[#allocation81_spill] sm:$0xff]  ;;  %v17385_v42 = vld [vmem:[#allocation135_spill] sm:$0xff] }
 0x435   : > { %9544 = vrcp.f32 %v2304_v59  ;;  %8661 = vmatprep.mubr.msk.bf16.mxu0 %vm1845_vm0, %v2560_v4  ;;  %v2307_v27 = vpop.xlane.xlu1 %2306  ;;  %v3243_v58 = vmul.f32 %v9533_v63, %v17378_v47  ;;  %v12839_v3 = vpop.eup %9534  ;;  %v17383_v47 = vld [vmem:[#allocation132_spill] sm:$0xff] }
 0x436   : > { %9546 = vrcp.f32 %v2307_v27  ;;  %8662 = vmatmul.mubr.msk.bf16.gmra.mrb[132].mxu0 %vm1845_vm0, %v2561_v20  ;;  %17379 = vst [vmem:[#allocation70_spill] sm:$0xff] %v12839_v3  ;;  %v12843_v44 = vpop.eup %9536 }
 0x437   : > { %9548 = vrcp.f32 %v3049_v21  ;;  %3147 = vadd.xlane.f32.xlu0 %v3146_v39  ;;  %v3296_v56 = vpack.c.bf16 %v3243_v58, %v3242_v6  ;;  %17380 = vst [vmem:[#allocation124_spill] sm:$0xff] %v12843_v44  ;;  %v3152_v21 = vsel %vm1845_vm0, %v12839_v3, 0.0  ;;  %v9539_v37 = vpop.eup %9538  ;;  %v3155_v58 = vsel %vm1845_vm0, %v12843_v44, 0.0 }
 0x438   : > { %v3040_v11 = vpop.xlane.xlu0 %3039  ;;  %3150 = vadd.xlane.f32.xlu1 %v3149_v60  ;;  %v9541_v61 = vpop.eup %9540  ;;  %v2512_v6 = vmul.f32 %v9539_v37, %v17381_v13  ;;  %v17386_v13 = vld [vmem:[#allocation129_spill] sm:$0xff] }
 0x439   : > { %9550 = vrcp.f32 %v3040_v11  ;;  %8733 = vmatprep.mubr.msk.bf16.mxu1 %vm1845_vm0, %v3296_v56  ;;  %v3043_v27 = vpop.xlane.xlu1 %3042  ;;  %v2513_v54 = vmul.f32 %v9541_v61, %v17382_v1  ;;  %v17384_v11 = vld [vmem:[#allocation134_spill] sm:$0xff] }
 0x43a   : > { %9552 = vrcp.f32 %v3043_v27  ;;  %8734 = vmatmul.mubr.msk.bf16.gmra.mrb[132].mxu1 %vm1845_vm0, %v3297_v0  ;;  %v17387_v1 = vld [vmem:[#allocation182_spill] sm:$0xff] }
 0x43b   : > { %3153 = vadd.xlane.f32.xlu0 %v3152_v21  ;;  %v9543_v63 = vpop.eup %9542 }
 0x43c   : > { %v2322_v4 = vpop.xlane.xlu0 %2321  ;;  %3156 = vadd.xlane.f32.xlu1 %v3155_v58  ;;  %v2563_v58 = vpack.c.bf16 %v2513_v54, %v2512_v6  ;;  %v3248_v61 = vmul.f32 %v9543_v63, %v17386_v13 }
 0x43d   : > { %v2325_v20 = vpop.xlane.xlu1 %2324  ;;  %9554 = vrcp.f32 %v2322_v4 }
 0x43e   : > { %9556 = vrcp.f32 %v2325_v20 }
 0x43f   : > { %v9545_v59 = vpop.eup %9544 }
 0x440   : > { %v9547_v52 = vpop.eup %9546  ;;  %v3058_v8 = vpop.xlane.xlu0 %3057  ;;  %v2510_v39 = vmul.f32 %v9545_v59, %v17383_v47  ;;  %v17388_v59 = vld [vmem:[#allocation138_spill] sm:$0xff] }
 0x441   : > { %v9549_v60 = vpop.eup %9548  ;;  %v3061_v56 = vpop.xlane.xlu1 %3060  ;;  %v2511_v0 = vmul.f32 %v9547_v52, %v17384_v11  ;;  %9558 = vrcp.f32 %v3058_v8 }
 0x442   : > { %v3249_v57 = vmul.f32 %v9549_v60, %v17387_v1  ;;  %v17389_v60 = vld [vmem:[#allocation137_spill] sm:$0xff] }
 0x443   : > { %v9551_v27 = vpop.eup %9550  ;;  %v2562_v21 = vpack.c.bf16 %v2511_v0, %v2510_v39  ;;  %v17390_v0 = vld [vmem:[#allocation140_spill] sm:$0xff] }
 0x444   : > { %v9553_v44 = vpop.eup %9552  ;;  %v2316_v3 = vpop.xlane.xlu0 %2315  ;;  %v3246_v37 = vmul.f32 %v9551_v27, %v17385_v42  ;;  %v3299_v54 = vpack.c.bf16 %v3249_v57, %v3248_v61  ;;  %v17391_v57 = vld [vmem:[#allocation145_spill] sm:$0xff]  ;;  %v17392_v61 = vld [vmem:[#allocation100_spill] sm:$0xff] }
 0x445   : > { %9560 = vrcp.f32 %v2316_v3  ;;  %8665 = vmatprep.mubr.msk.bf16.mxu0 %vm1845_vm0, %v2562_v21  ;;  %v2319_v4 = vpop.xlane.xlu1 %2318  ;;  %v3247_v47 = vmul.f32 %v9553_v44, %v17388_v59 }
 0x446   : > { %9562 = vrcp.f32 %v2319_v4  ;;  %8666 = vmatmul.mubr.msk.bf16.gmra.mrb[136].mxu0 %vm1845_vm0, %v2563_v58 }
 0x447   : > { %9564 = vrcp.f32 %v3061_v56  ;;  %v3298_v20 = vpack.c.bf16 %v3247_v47, %v3246_v37  ;;  %v9555_v3 = vpop.eup %9554 }
 0x448   : > { %v3052_v6 = vpop.xlane.xlu0 %3051  ;;  %v9557_v63 = vpop.eup %9556  ;;  %v2516_v11 = vmul.f32 %v9555_v3, %v17389_v60  ;;  %v17394_v3 = vld [vmem:[#allocation143_spill] sm:$0xff]  ;;  %v17395_v60 = vld [vmem:[#allocation146_spill] sm:$0xff] }
 0x449   : > { %9566 = vrcp.f32 %v3052_v6  ;;  %8737 = vmatprep.mubr.msk.bf16.mxu1 %vm1845_vm0, %v3298_v20  ;;  %v3055_v42 = vpop.xlane.xlu1 %3054  ;;  %v2517_v56 = vmul.f32 %v9557_v63, %v17390_v0 }
 0x44a   : > { %9568 = vrcp.f32 %v3055_v42  ;;  %8738 = vmatmul.mubr.msk.bf16.gmra.mrb[136].mxu1 %vm1845_vm0, %v3299_v54  ;;  %v17393_v54 = vld [vmem:[#allocation107_spill] sm:$0xff] }
 0x44b   : > { %v9559_v39 = vpop.eup %9558  ;;  %v2565_v47 = vpack.c.bf16 %v2517_v56, %v2516_v11 }
 0x44c   : > { %v2334_v52 = vpop.xlane.xlu0 %2333  ;;  %v3252_v63 = vmul.f32 %v9559_v39, %v17394_v3 }
 0x44d   : > { %v2337_v8 = vpop.xlane.xlu1 %2336  ;;  %9570 = vrcp.f32 %v2334_v52 }
 0x44e   : > { %9572 = vrcp.f32 %v2337_v8 }
 0x44f   : > { %v9561_v44 = vpop.eup %9560 }
 0x450   : > { %v9563_v27 = vpop.eup %9562  ;;  %v3070_v21 = vpop.xlane.xlu0 %3069  ;;  %v2514_v58 = vmul.f32 %v9561_v44, %v17391_v57  ;;  %v17396_v44 = vld [vmem:[#allocation98_spill] sm:$0xff] }
 0x451   : > { %v9565_v37 = vpop.eup %9564  ;;  %v3073_v13 = vpop.xlane.xlu1 %3072  ;;  %v2515_v1 = vmul.f32 %v9563_v27, %v17392_v61  ;;  %9574 = vrcp.f32 %v3070_v21 }
 0x452   : > { %v3253_v0 = vmul.f32 %v9565_v37, %v17395_v60  ;;  %v17400_v60 = vld [vmem:[#allocation55_spill] sm:$0xff] }
 0x453   : > { %v9567_v4 = vpop.eup %9566  ;;  %v2564_v59 = vpack.c.bf16 %v2515_v1, %v2514_v58 }
 0x454   : > { %v9569_v20 = vpop.eup %9568  ;;  %v2328_v6 = vpop.xlane.xlu0 %2327  ;;  %v3250_v42 = vmul.f32 %v9567_v4, %v17393_v54  ;;  %v3301_v56 = vpack.c.bf16 %v3253_v0, %v3252_v63  ;;  %v17397_v4 = vld [vmem:[#allocation151_spill] sm:$0xff]  ;;  %v17399_v54 = vld [vmem:[#allocation108_spill] sm:$0xff] }
 0x455   : > { %9576 = vrcp.f32 %v2328_v6  ;;  %8669 = vmatprep.mubr.msk.bf16.mxu0 %vm1845_vm0, %v2564_v59  ;;  %v2331_v52 = vpop.xlane.xlu1 %2330  ;;  %v3251_v57 = vmul.f32 %v9569_v20, %v17396_v44 }
 0x456   : > { %9578 = vrcp.f32 %v2331_v52  ;;  %8670 = vmatmul.mubr.msk.bf16.gmra.mrb[140].mxu0 %vm1845_vm0, %v2565_v47  ;;  %v17398_v47 = vld [vmem:[#allocation106_spill] sm:$0xff] }
 0x457   : > { %9580 = vrcp.f32 %v3073_v13  ;;  %v3300_v8 = vpack.c.bf16 %v3251_v57, %v3250_v42  ;;  %v9571_v39 = vpop.eup %9570 }
 0x458   : > { %v3064_v11 = vpop.xlane.xlu0 %3063  ;;  %v9573_v21 = vpop.eup %9572  ;;  %v2520_v59 = vmul.f32 %v9571_v39, %v17397_v4  ;;  %v17402_v39 = vld [vmem:[#allocation109_spill] sm:$0xff]  ;;  %v17403_v4 = vld [vmem:[#allocation52_spill] sm:$0xff] }
 0x459   : > { %9582 = vrcp.f32 %v3064_v11  ;;  %8741 = vmatprep.mubr.msk.bf16.mxu1 %vm1845_vm0, %v3300_v8  ;;  %v3067_v27 = vpop.xlane.xlu1 %3066  ;;  %v2521_v13 = vmul.f32 %v9573_v21, %v17398_v47 }
 0x45a   : > { %9584 = vrcp.f32 %v3067_v27  ;;  %8742 = vmatmul.mubr.msk.bf16.gmra.mrb[140].mxu1 %vm1845_vm0, %v3301_v56  ;;  %v17401_v56 = vld [vmem:[#allocation58_spill] sm:$0xff] }
 0x45b   : > { %v9575_v61 = vpop.eup %9574  ;;  %v2567_v57 = vpack.c.bf16 %v2521_v13, %v2520_v59 }
 0x45c   : > { %v2346_v58 = vpop.xlane.xlu0 %2345  ;;  %v3256_v21 = vmul.f32 %v9575_v61, %v17402_v39 }
 0x45d   : > { %v2349_v37 = vpop.xlane.xlu1 %2348  ;;  %9586 = vrcp.f32 %v2346_v58 }
 0x45e   : > { %9588 = vrcp.f32 %v2349_v37 }
 0x45f   : > { %v9577_v1 = vpop.eup %9576 }
 0x460   : > { %v9579_v20 = vpop.eup %9578  ;;  %v3082_v6 = vpop.xlane.xlu0 %3081  ;;  %v2518_v42 = vmul.f32 %v9577_v1, %v17399_v54  ;;  %v17404_v1 = vld [vmem:[#allocation111_spill] sm:$0xff] }
 0x461   : > { %v9581_v3 = vpop.eup %9580  ;;  %v3085_v63 = vpop.xlane.xlu1 %3084  ;;  %v2519_v0 = vmul.f32 %v9579_v20, %v17400_v60  ;;  %9590 = vrcp.f32 %v3082_v6 }
 0x462   : > { %v3257_v47 = vmul.f32 %v9581_v3, %v17403_v4  ;;  %v17408_v4 = vld [vmem:[#allocation63_spill] sm:$0xff] }
 0x463   : > { %v9583_v52 = vpop.eup %9582  ;;  %v2566_v44 = vpack.c.bf16 %v2519_v0, %v2518_v42 }
 0x464   : > { %v9585_v8 = vpop.eup %9584  ;;  %v2340_v11 = vpop.xlane.xlu0 %2339  ;;  %v3254_v27 = vmul.f32 %v9583_v52, %v17401_v56  ;;  %v3303_v13 = vpack.c.bf16 %v3257_v47, %v3256_v21  ;;  %v17405_v52 = vld [vmem:[#allocation170_spill] sm:$0xff]  ;;  %v17407_v56 = vld [vmem:[#allocation116_spill] sm:$0xff] }
 0x465   : > { %9592 = vrcp.f32 %v2340_v11  ;;  %8673 = vmatprep.mubr.msk.bf16.mxu0 %vm1845_vm0, %v2566_v44  ;;  %v2343_v58 = vpop.xlane.xlu1 %2342  ;;  %v3255_v54 = vmul.f32 %v9585_v8, %v17404_v1 }
 0x466   : > { %9594 = vrcp.f32 %v2343_v58  ;;  %8674 = vmatmul.mubr.msk.bf16.gmra.mrb[144].mxu0 %vm1845_vm0, %v2567_v57  ;;  %v17406_v57 = vld [vmem:[#allocation117_spill] sm:$0xff] }
 0x467   : > { %9596 = vrcp.f32 %v3085_v63  ;;  %v3302_v37 = vpack.c.bf16 %v3255_v54, %v3254_v27  ;;  %v9587_v61 = vpop.eup %9586 }
 0x468   : > { %v3076_v59 = vpop.xlane.xlu0 %3075  ;;  %v9589_v6 = vpop.eup %9588  ;;  %v2524_v44 = vmul.f32 %v9587_v61, %v17405_v52  ;;  %v17410_v61 = vld [vmem:[#allocation60_spill] sm:$0xff]  ;;  %v17411_v52 = vld [vmem:[#allocation62_spill] sm:$0xff] }
 0x469   : > { %9598 = vrcp.f32 %v3076_v59  ;;  %8745 = vmatprep.mubr.msk.bf16.mxu1 %vm1845_vm0, %v3302_v37  ;;  %v3079_v20 = vpop.xlane.xlu1 %3078  ;;  %v2525_v63 = vmul.f32 %v9589_v6, %v17406_v57 }
 0x46a   : > { %9600 = vrcp.f32 %v3079_v20  ;;  %8746 = vmatmul.mubr.msk.bf16.gmra.mrb[144].mxu1 %vm1845_vm0, %v3303_v13  ;;  %v17409_v13 = vld [vmem:[#allocation64_spill] sm:$0xff] }
 0x46b   : > { %v9591_v60 = vpop.eup %9590  ;;  %v2569_v54 = vpack.c.bf16 %v2525_v63, %v2524_v44 }
 0x46c   : > { %v2358_v42 = vpop.xlane.xlu0 %2357  ;;  %v3260_v6 = vmul.f32 %v9591_v60, %v17410_v61 }
 0x46d   : > { %v2361_v3 = vpop.xlane.xlu1 %2360  ;;  %9602 = vrcp.f32 %v2358_v42 }
 0x46e   : > { %9604 = vrcp.f32 %v2361_v3 }
 0x46f   : > { %v9593_v0 = vpop.eup %9592 }
 0x470   : > { %v9595_v8 = vpop.eup %9594  ;;  %v3094_v11 = vpop.xlane.xlu0 %3093  ;;  %v2522_v27 = vmul.f32 %v9593_v0, %v17407_v56  ;;  %v17412_v0 = vld [vmem:[#allocation123_spill] sm:$0xff] }
 0x471   : > { %v9597_v39 = vpop.eup %9596  ;;  %v3097_v21 = vpop.xlane.xlu1 %3096  ;;  %v2523_v47 = vmul.f32 %v9595_v8, %v17408_v4  ;;  %9606 = vrcp.f32 %v3094_v11 }
 0x472   : > { %v3261_v57 = vmul.f32 %v9597_v39, %v17411_v52 }
 0x473   : > { %v9599_v58 = vpop.eup %9598  ;;  %v2568_v1 = vpack.c.bf16 %v2523_v47, %v2522_v27 }
 0x474   : > { %v9601_v37 = vpop.eup %9600  ;;  %v2352_v59 = vpop.xlane.xlu0 %2351  ;;  %v3258_v20 = vmul.f32 %v9599_v58, %v17409_v13  ;;  %v3305_v63 = vpack.c.bf16 %v3261_v57, %v3260_v6  ;;  %v17413_v58 = vld [vmem:[#allocation66_spill] sm:$0xff] }
 0x475   : > { %9608 = vrcp.f32 %v2352_v59  ;;  %8677 = vmatprep.mubr.msk.bf16.mxu0 %vm1845_vm0, %v2568_v1  ;;  %v2355_v42 = vpop.xlane.xlu1 %2354  ;;  %v3259_v56 = vmul.f32 %v9601_v37, %v17412_v0 }
 0x476   : > { %9610 = vrcp.f32 %v2355_v42  ;;  %8678 = vmatmul.mubr.msk.bf16.gmra.mrb[148].mxu0 %vm1845_vm0, %v2569_v54  ;;  %v17414_v54 = vld [vmem:[#allocation119_spill] sm:$0xff] }
 0x477   : > { %9612 = vrcp.f32 %v3097_v21  ;;  %v3304_v3 = vpack.c.bf16 %v3259_v56, %v3258_v20  ;;  %v9603_v60 = vpop.eup %9602 }
 0x478   : > { %v3088_v44 = vpop.xlane.xlu0 %3087  ;;  %v9605_v11 = vpop.eup %9604  ;;  %v2528_v1 = vmul.f32 %v9603_v60, %v17413_v58 }
 0x479   : > { %9614 = vrcp.f32 %v3088_v44  ;;  %8749 = vmatprep.mubr.msk.bf16.mxu1 %vm1845_vm0, %v3304_v3  ;;  %v3091_v8 = vpop.xlane.xlu1 %3090  ;;  %v2529_v21 = vmul.f32 %v9605_v11, %v17414_v54  ;;  %v17415_v44 = vld [vmem:[#allocation173_spill] sm:$0xff] }
 0x47a   : > { %9616 = vrcp.f32 %v3091_v8  ;;  %8750 = vmatmul.mubr.msk.bf16.gmra.mrb[148].mxu1 %vm1845_vm0, %v3305_v63  ;;  %v17416_v8 = vld [vmem:[#allocation122_spill] sm:$0xff] }
 0x47b   : > { %v9607_v4 = vpop.eup %9606  ;;  %v2571_v42 = vpack.c.bf16 %v2529_v21, %v2528_v1 }
 0x47c   : > { %v2370_v27 = vpop.xlane.xlu0 %2369  ;;  %v3264_v63 = vmul.f32 %v9607_v4, %v17415_v44 }
 0x47d   : > { %v2373_v39 = vpop.xlane.xlu1 %2372  ;;  %9618 = vrcp.f32 %v2370_v27 }
 0x47e   : > { %9620 = vrcp.f32 %v2373_v39 }
 0x47f   : > { %v9609_v47 = vpop.eup %9608 }
 0x480   : > { %v9611_v37 = vpop.eup %9610  ;;  %v3106_v59 = vpop.xlane.xlu0 %3105  ;;  %v2526_v13 = vmul.f32 %v9609_v47, %v12463_v18 }
 0x481   : > { %v9613_v20 = vpop.eup %9612  ;;  %v3109_v61 = vpop.xlane.xlu1 %3108  ;;  %v2527_v6 = vmul.f32 %v9611_v37, %v12484_v24  ;;  %9622 = vrcp.f32 %v3106_v59 }
 0x482   : > { %v3265_v60 = vmul.f32 %v9613_v20, %v17416_v8 }
 0x483   : > { %v9615_v52 = vpop.eup %9614  ;;  %v2570_v57 = vpack.c.bf16 %v2527_v6, %v2526_v13 }
 0x484   : > { %v9617_v0 = vpop.eup %9616  ;;  %v2364_v56 = vpop.xlane.xlu0 %2363  ;;  %v3262_v3 = vmul.f32 %v9615_v52, %v12496_v55  ;;  %v3307_v39 = vpack.c.bf16 %v3265_v60, %v3264_v63 }
 0x485   : > { %9624 = vrcp.f32 %v2364_v56  ;;  %8681 = vmatprep.mubr.msk.bf16.mxu0 %vm1845_vm0, %v2570_v57  ;;  %v2367_v18 = vpop.xlane.xlu1 %2366  ;;  %v3263_v11 = vmul.f32 %v9617_v0, %v12500_v50 }
 0x486   : > { %9626 = vrcp.f32 %v2367_v18  ;;  %8682 = vmatmul.mubr.msk.bf16.gmra.mrb[152].mxu0 %vm1845_vm0, %v2571_v42 }
 0x487   : > { %9628 = vrcp.f32 %v3109_v61  ;;  %v3306_v24 = vpack.c.bf16 %v3263_v11, %v3262_v3  ;;  %v9619_v4 = vpop.eup %9618 }
 0x488   : > { %v3100_v27 = vpop.xlane.xlu0 %3099  ;;  %v9621_v47 = vpop.eup %9620  ;;  %v2532_v21 = vmul.f32 %v9619_v4, %v12505_v23 }
 0x489   : > { %9630 = vrcp.f32 %v3100_v27  ;;  %8753 = vmatprep.mubr.msk.bf16.mxu1 %vm1845_vm0, %v3306_v24  ;;  %v3103_v55 = vpop.xlane.xlu1 %3102  ;;  %v2533_v37 = vmul.f32 %v9621_v47, %v12513_v14 }
 0x48a   : > { %9632 = vrcp.f32 %v3103_v55  ;;  %8754 = vmatmul.mubr.msk.bf16.gmra.mrb[152].mxu1 %vm1845_vm0, %v3307_v39 }
 0x48b   : > { %v9623_v54 = vpop.eup %9622  ;;  %v2573_v0 = vpack.c.bf16 %v2533_v37, %v2532_v21 }
 0x48c   : > { %v2382_v58 = vpop.xlane.xlu0 %2381  ;;  %v3268_v14 = vmul.f32 %v9623_v54, %v12519_v15 }
 0x48d   : > { %v2385_v1 = vpop.xlane.xlu1 %2384  ;;  %9634 = vrcp.f32 %v2382_v58 }
 0x48e   : > { %9636 = vrcp.f32 %v2385_v1 }
 0x48f   : > { %v9625_v50 = vpop.eup %9624 }
 0x490   : > { %v9627_v59 = vpop.eup %9626  ;;  %v3118_v13 = vpop.xlane.xlu0 %3117  ;;  %v2530_v20 = vmul.f32 %v9625_v50, %v12543_v25 }
 0x491   : > { %v9629_v61 = vpop.eup %9628  ;;  %v3121_v6 = vpop.xlane.xlu1 %3120  ;;  %v2531_v52 = vmul.f32 %v9627_v59, %v12558_v26  ;;  %9638 = vrcp.f32 %v3118_v13 }
 0x492   : > { %v3269_v44 = vmul.f32 %v9629_v61, %v12525_v49 }
 0x493   : > { %v9631_v57 = vpop.eup %9630  ;;  %v2572_v42 = vpack.c.bf16 %v2531_v52, %v2530_v20 }
 0x494   : > { %v9633_v56 = vpop.eup %9632  ;;  %v2376_v3 = vpop.xlane.xlu0 %2375  ;;  %v3266_v23 = vmul.f32 %v9631_v57, %v12572_v7  ;;  %v3309_v60 = vpack.c.bf16 %v3269_v44, %v3268_v14 }
 0x495   : > { %9640 = vrcp.f32 %v2376_v3  ;;  %8685 = vmatprep.mubr.msk.bf16.mxu0 %vm1845_vm0, %v2572_v42  ;;  %v2379_v25 = vpop.xlane.xlu1 %2378  ;;  %v3267_v63 = vmul.f32 %v9633_v56, %v12576_v2 }
 0x496   : > { %9642 = vrcp.f32 %v2379_v25  ;;  %8686 = vmatmul.mubr.msk.bf16.gmra.mrb[156].mxu0 %vm1845_vm0, %v2573_v0 }
 0x497   : > { %9644 = vrcp.f32 %v3121_v6  ;;  %v3308_v26 = vpack.c.bf16 %v3267_v63, %v3266_v23  ;;  %v9635_v15 = vpop.eup %9634 }
 0x498   : > { %v3112_v8 = vpop.xlane.xlu0 %3111  ;;  %v9637_v49 = vpop.eup %9636  ;;  %v2536_v27 = vmul.f32 %v9635_v15, %v12581_v43 }
 0x499   : > { %9646 = vrcp.f32 %v3112_v8  ;;  %8757 = vmatprep.mubr.msk.bf16.mxu1 %vm1845_vm0, %v3308_v26  ;;  %v3115_v7 = vpop.xlane.xlu1 %3114  ;;  %v2537_v39 = vmul.f32 %v9637_v49, %v12589_v33 }
 0x49a   : > { %9648 = vrcp.f32 %v3115_v7  ;;  %8758 = vmatmul.mubr.msk.bf16.gmra.mrb[156].mxu1 %vm1845_vm0, %v3309_v60 }
 0x49b   : > { %v9639_v24 = vpop.eup %9638  ;;  %v2575_v37 = vpack.c.bf16 %v2537_v39, %v2536_v27 }
 0x49c   : > { %v2394_v18 = vpop.xlane.xlu0 %2393  ;;  %v3272_v33 = vmul.f32 %v9639_v24, %v12595_v41 }
 0x49d   : > { %v2397_v11 = vpop.xlane.xlu1 %2396  ;;  %9650 = vrcp.f32 %v2394_v18 }
 0x49e   : > { %9652 = vrcp.f32 %v2397_v11 }
 0x49f   : > { %v9641_v2 = vpop.eup %9640 }
 0x4a0   : > { %v9643_v55 = vpop.eup %9642  ;;  %v3130_v4 = vpop.xlane.xlu0 %3129  ;;  %v2534_v47 = vmul.f32 %v9641_v2, %v12619_v31 }
 0x4a1   : > { %v9645_v58 = vpop.eup %9644  ;;  %v3133_v1 = vpop.xlane.xlu1 %3132  ;;  %v2535_v54 = vmul.f32 %v9643_v55, %v12634_v40  ;;  %9654 = vrcp.f32 %v3130_v4 }
 0x4a2   : > { %v3273_v20 = vmul.f32 %v9645_v58, %v12601_v46 }
 0x4a3   : > { %v9647_v50 = vpop.eup %9646  ;;  %v2574_v21 = vpack.c.bf16 %v2535_v54, %v2534_v47 }
 0x4a4   : > { %v9649_v59 = vpop.eup %9648  ;;  %v2388_v13 = vpop.xlane.xlu0 %2387  ;;  %v3270_v43 = vmul.f32 %v9647_v50, %v12648_v45  ;;  %v3311_v52 = vpack.c.bf16 %v3273_v20, %v3272_v33 }
 0x4a5   : > { %9656 = vrcp.f32 %v2388_v13  ;;  %8689 = vmatprep.mubr.msk.bf16.mxu0 %vm1845_vm0, %v2574_v21  ;;  %v2391_v31 = vpop.xlane.xlu1 %2390  ;;  %v3271_v61 = vmul.f32 %v9649_v59, %v12652_v5 }
 0x4a6   : > { %9658 = vrcp.f32 %v2391_v31  ;;  %8690 = vmatmul.mubr.msk.bf16.gmra.mrb[160].mxu0 %vm1845_vm0, %v2575_v37 }
 0x4a7   : > { %9660 = vrcp.f32 %v3133_v1  ;;  %v3310_v40 = vpack.c.bf16 %v3271_v61, %v3270_v43  ;;  %v9651_v41 = vpop.eup %9650 }
 0x4a8   : > { %v3124_v6 = vpop.xlane.xlu0 %3123  ;;  %v9653_v46 = vpop.eup %9652  ;;  %v2540_v56 = vmul.f32 %v9651_v41, %v12657_v34 }
 0x4a9   : > { %9662 = vrcp.f32 %v3124_v6  ;;  %8761 = vmatprep.mubr.msk.bf16.mxu1 %vm1845_vm0, %v3310_v40  ;;  %v3127_v45 = vpop.xlane.xlu1 %3126  ;;  %v2541_v3 = vmul.f32 %v9653_v46, %v12664_v9 }
 0x4aa   : > { %9664 = vrcp.f32 %v3127_v45  ;;  %8762 = vmatmul.mubr.msk.bf16.gmra.mrb[160].mxu1 %vm1845_vm0, %v3311_v52 }
 0x4ab   : > { %v9655_v0 = vpop.eup %9654  ;;  %v2577_v7 = vpack.c.bf16 %v2541_v3, %v2540_v56 }
 0x4ac   : > { %v2406_v57 = vpop.xlane.xlu0 %2405  ;;  %v3276_v9 = vmul.f32 %v9655_v0, %v12669_v32 }
 0x4ad   : > { %v2409_v42 = vpop.xlane.xlu1 %2408  ;;  %9666 = vrcp.f32 %v2406_v57 }
 0x4ae   : > { %9668 = vrcp.f32 %v2409_v42 }
 0x4af   : > { %v9657_v5 = vpop.eup %9656 }
 0x4b0   : > { %v9659_v23 = vpop.eup %9658  ;;  %v3142_v14 = vpop.xlane.xlu0 %3141  ;;  %v2538_v44 = vmul.f32 %v9657_v5, %v12691_v30 }
 0x4b1   : > { %v9661_v25 = vpop.eup %9660  ;;  %v3145_v63 = vpop.xlane.xlu1 %3144  ;;  %v2539_v26 = vmul.f32 %v9659_v23, %v12704_v51  ;;  %9670 = vrcp.f32 %v3142_v14 }
 0x4b2   : > { %v3277_v18 = vmul.f32 %v9661_v25, %v12675_v35 }
 0x4b3   : > { %v9663_v8 = vpop.eup %9662  ;;  %v2576_v60 = vpack.c.bf16 %v2539_v26, %v2538_v44  ;;  %v17417_v26 = vld [vmem:[#allocation174_spill] sm:$0xff] }
 0x4b4   : > { %v9665_v15 = vpop.eup %9664  ;;  %v2400_v49 = vpop.xlane.xlu0 %2399  ;;  %v3274_v34 = vmul.f32 %v9663_v8, %v12716_v29  ;;  %v3313_v2 = vpack.c.bf16 %v3277_v18, %v3276_v9 }
 0x4b5   : > { %9672 = vrcp.f32 %v2400_v49  ;;  %8693 = vmatprep.mubr.msk.bf16.mxu0 %vm1845_vm0, %v2576_v60  ;;  %v2403_v30 = vpop.xlane.xlu1 %2402  ;;  %v3275_v51 = vmul.f32 %v9665_v15, %v12720_v28 }
 0x4b6   : > { %9674 = vrcp.f32 %v2403_v30  ;;  %8694 = vmatmul.mubr.msk.bf16.gmra.mrb[164].mxu0 %vm1845_vm0, %v2577_v7 }
 0x4b7   : > { %9676 = vrcp.f32 %v3145_v63  ;;  %v3312_v11 = vpack.c.bf16 %v3275_v51, %v3274_v34  ;;  %v9667_v28 = vpop.eup %9666 }
 0x4b8   : > { %v3136_v24 = vpop.xlane.xlu0 %3135  ;;  %v9669_v4 = vpop.eup %9668  ;;  %v2544_v33 = vmul.f32 %v9667_v28, %v12725_v22 }
 0x4b9   : > { %9678 = vrcp.f32 %v3136_v24  ;;  %v12945_v27 = vpop.f32.mrb[112].mxu0  ;;  %8765 = vmatprep.mubr.msk.bf16.mxu1 %vm1845_vm0, %v3312_v11  ;;  %v3139_v32 = vpop.xlane.xlu1 %3138  ;;  %v2545_v20 = vmul.f32 %v9669_v4, %v12732_v62  ;;  %v17418_v11 = vld [vmem:[#allocation125_spill] sm:$0xff]  ;;  %v17420_v4 = vld [vmem:[#allocation20_spill] sm:$0xff] }
 0x4ba   : > { %9680 = vrcp.f32 %v3139_v32  ;;  %v12948_v35 = vpop.f32.mrb[113].mxu0  ;;  %8766 = vmatmul.mubr.msk.bf16.gmra.mrb[164].mxu1 %vm1845_vm0, %v3313_v2  ;;  %v10211_v32 = vld [vmem:[%s15766_s0 + $0x1] sm:$0x1] }
 0x4bb   : > { %v12951_v29 = vpop.f32.mrb[114].mxu0  ;;  %v9671_v1 = vpop.eup %9670  ;;  %v2579_v46 = vpack.c.bf16 %v2545_v20, %v2544_v33  ;;  %v284_v28 = vunpack.c.l.bf16 %v10211_v32  ;;  %v17423_v33 = vld [vmem:[#allocation10_spill] sm:$0xff]  ;;  %v17436_v32 = vld [vmem:[#allocation16_spill] sm:$0xff] }
 0x4bc   : > { %v2418_v39 = vpop.xlane.xlu0 %2417  ;;  %v12953_v55 = vpop.f32.mrb[115].mxu0  ;;  %v3280_v42 = vmul.f32 %v9671_v1, %v12737_v38 }
 0x4bd   : > { %v12955_v47 = vpop.f32.mrb[112].mxu1  ;;  %v2421_v58 = vpop.xlane.xlu1 %2420  ;;  %9682 = vrcp.f32 %v2418_v39 }
 0x4be   : > { %v12957_v54 = vpop.f32.mrb[113].mxu1  ;;  %9684 = vrcp.f32 %v2421_v58 }
 0x4bf   : > { %v9673_v50 = vpop.eup %9672  ;;  %v12959_v21 = vpop.f32.mrb[114].mxu1 }
 0x4c0   : > { %v9675_v37 = vpop.eup %9674  ;;  %v2412_v59 = vpop.xlane.xlu0 %2411  ;;  %v2542_v43 = vmul.f32 %v9673_v50, %v12759_v53  ;;  %v17421_v50 = vld [vmem:[#allocation70_spill] sm:$0xff] }
 0x4c1   : > { %v12961_v13 = vpop.f32.mrb[115].mxu1  ;;  %v9677_v31 = vpop.eup %9676  ;;  %9686 = vrcp.f32 %v2412_v59  ;;  %v2543_v40 = vmul.f32 %v9675_v37, %v12772_v48  ;;  %v17422_v59 = vld [vmem:[#allocation124_spill] sm:$0xff] }
 0x4c2   : > { %v2415_v61 = vpop.xlane.xlu1 %2414  ;;  %v3281_v53 = vmul.f32 %v9677_v31, %v12743_v17  ;;  %v13013_v31 = vrot.slane %v284_v28, %v17423_v33 }
 0x4c3   : > { %9688 = vrcp.f32 %v2415_v61  ;;  %v9679_v6 = vpop.eup %9678  ;;  %v2578_v52 = vpack.c.bf16 %v2543_v40, %v2542_v43 }
 0x4c4   : > { %v9681_v45 = vpop.eup %9680  ;;  %v3148_v41 = vpop.xlane.xlu0 %3147  ;;  %v3278_v57 = vmul.f32 %v9679_v6, %v12784_v19  ;;  %v3315_v56 = vpack.c.bf16 %v3281_v53, %v3280_v42  ;;  %17425 = vst [vmem:[#allocation72_spill] sm:$0xff] %v13013_v31  ;;  %v17427_v42 = vld [vmem:[#allocation3_spill] sm:$0xff] }
 0x4c5   : > { %9690 = vrcp.f32 %v3148_v41  ;;  %8697 = vmatprep.mubr.msk.bf16.mxu0 %vm1845_vm0, %v2578_v52  ;;  %v3279_v62 = vmul.f32 %v9681_v45, %v12788_v12  ;;  %v17426_v41 = vld [vmem:[#allocation19_spill] sm:$0xff] }
 0x4c6   : > { %v3151_v22 = vpop.xlane.xlu1 %3150  ;;  %8698 = vmatmul.mubr.msk.bf16.gmra.mrb[168].mxu0 %vm1845_vm0, %v2579_v46 }
 0x4c7   : > { %9692 = vrcp.f32 %v3151_v22  ;;  %v3314_v48 = vpack.c.bf16 %v3279_v62, %v3278_v57  ;;  %v9683_v0 = vpop.eup %9682  ;;  %v17428_v22 = vld [vmem:[#allocation39_spill] sm:$0xff] }
 0x4c8   : > { %v3154_v5 = vpop.xlane.xlu0 %3153  ;;  %v9685_v3 = vpop.eup %9684  ;;  %v2548_v63 = vmul.f32 %v9683_v0, %v12793_v36  ;;  %v17419_v36 = vld [vmem:[#allocation68_spill] sm:$0xff]  ;;  %v17429_v0 = vld [vmem:[#allocation5_spill] sm:$0xff] }
 0x4c9   : > { %9694 = vrcp.f32 %v3154_v5  ;;  %v12973_v19 = vpop.f32.mrb[116].mxu0  ;;  %8769 = vmatprep.mubr.msk.bf16.mxu1 %vm1845_vm0, %v3314_v48  ;;  %v2549_v8 = vmul.f32 %v9685_v3, %v17417_v26 }
 0x4ca   : > { %v3157_v38 = vpop.xlane.xlu1 %3156  ;;  %v12976_v17 = vpop.f32.mrb[117].mxu0  ;;  %8770 = vmatmul.mubr.msk.bf16.gmra.mrb[168].mxu1 %vm1845_vm0, %v3315_v56 }
 0x4cb   : > { %9696 = vrcp.f32 %v3157_v38  ;;  %v9687_v12 = vpop.eup %9686  ;;  %v12979_v23 = vpop.f32.mrb[118].mxu0  ;;  %v2581_v51 = vpack.c.bf16 %v2549_v8, %v2548_v63 }
 0x4cc   : > { %v12981_v44 = vpop.f32.mrb[119].mxu0  ;;  %v2546_v25 = vmul.f32 %v9687_v12, %v12799_v16 }
 0x4cd   : > { %v9689_v14 = vpop.eup %9688  ;;  %v12986_v60 = vpop.f32.mrb[116].mxu1 }
 0x4ce   : > { %v2547_v7 = vmul.f32 %v9689_v14, %v12805_v10  ;;  %v12989_v15 = vpop.f32.mrb[117].mxu1  ;;  %v10210_v10 = vld [vmem:[%s15766_s0] sm:$0x1] }
 0x4cf   : > { %v9691_v49 = vpop.eup %9690  ;;  %v12991_v34 = vpop.f32.mrb[118].mxu1  ;;  %v283_v2 = vunpack.c.l.bf16 %v10210_v10  ;;  %v17433_v10 = vld [vmem:[#allocation14_spill] sm:$0xff] }
 0x4d0   : > { %v2580_v9 = vpack.c.bf16 %v2547_v7, %v2546_v25  ;;  %v12993_v30 = vpop.f32.mrb[119].mxu1  ;;  %v3282_v16 = vmul.f32 %v9691_v49, %v17418_v11 }
 0x4d1   : > { %v9693_v18 = vpop.eup %9692  ;;  %v13010_v20 = vrot.slane %v283_v2, %v17423_v33  ;;  %v17435_v2 = vld [vmem:[#allocation9_spill] sm:$0xff] }
 0x4d2   : > { %8701 = vmatprep.mubr.msk.bf16.mxu0 %vm1845_vm0, %v2580_v9  ;;  %v3283_v24 = vmul.f32 %v9693_v18, %v17419_v36  ;;  %v17430_v9 = vld [vmem:[#allocation7_spill] sm:$0xff]  ;;  %v17431_v36 = vld [vmem:[#allocation12_spill] sm:$0xff] }
 0x4d3   : > { %8702 = vmatmul.mubr.msk.bf16.gmra.mrb[172].mxu0 %vm1845_vm0, %v2581_v51  ;;  %v9695_v39 = vpop.eup %9694  ;;  %17424 = vst [vmem:[#allocation71_spill] sm:$0xff] %v13010_v20  ;;  %v4122_v6 = vmul.f32 %v12945_v27, %v13010_v20  ;;  %v4120_v46 = vmul.f32 %v13010_v20, %v12948_v35  ;;  %v4123_v27 = vmul.f32 %v12951_v29, %v13010_v20 }
 0x4d4   : > { %8785 = vmatprep.mubr.bf16.mxu0 %v17420_v4  ;;  %v3316_v58 = vpack.c.bf16 %v3283_v24, %v3282_v16  ;;  %v3284_v37 = vmul.f32 %v9695_v39, %v17421_v50  ;;  %v4121_v35 = vmul.f32 %v13010_v20, %v12953_v55  ;;  %v4282_v12 = vmul.f32 %v12955_v47, %v13010_v20 }
 0x4d5   : > { %v9697_v1 = vpop.eup %9696  ;;  %v4280_v63 = vmul.f32 %v13010_v20, %v12957_v54  ;;  %v4283_v7 = vmul.f32 %v12959_v21, %v13010_v20  ;;  %v4281_v54 = vmul.f32 %v13010_v20, %v12961_v13  ;;  %v17432_v21 = vld [vmem:[#allocation35_spill] sm:$0xff]  ;;  %v17434_v13 = vld [vmem:[#allocation21_spill] sm:$0xff]  ;;  %v4126_v39 = vmul.f32 %v12973_v19, %v13010_v20 }
 0x4d6   : > { %8773 = vmatprep.mubr.msk.bf16.mxu1 %vm1845_vm0, %v3316_v58  ;;  %v3285_v43 = vmul.f32 %v9697_v1, %v17422_v59  ;;  %v17437_v1 = vld [vmem:[#allocation22_spill] sm:$0xff]  ;;  %v4124_v50 = vmul.f32 %v13010_v20, %v12976_v17  ;;  %v4127_v19 = vmul.f32 %v12979_v23, %v13010_v20  ;;  %v4125_v17 = vmul.f32 %v13010_v20, %v12981_v44 }
 0x4d7   : > { %v17438_v59 = vld [vmem:[#allocation18_spill] sm:$0xff] }
 0x4d8   : > { %v3317_v61 = vpack.c.bf16 %v3285_v43, %v3284_v37 }
 0x4d9   : > { %v8651_v40 = vpop.f32.mrb[120].mxu0 }
 0x4da   : > { %8774 = vmatmul.mubr.msk.bf16.gmra.mrb[172].mxu1 %vm1845_vm0, %v3317_v61  ;;  %v4130_v52 = vmul.f32 %v8651_v40, %v13013_v31  ;;  %v3480_v45 = vpop.f32.mrb[121].mxu0 }
 0x4db   : > { %8786 = vmatmul.mubr.bf16.vlgmr.msra.gmra.mrb[176].mxu0 %v17426_v41  ;;  %8857 = vmatprep.mubr.bf16.mxu1 %v17420_v4  ;;  %v4128_v57 = vmul.f32 %v13013_v31, %v3480_v45  ;;  %v8652_v53 = vpop.f32.mrb[122].mxu0 }
 0x4dc   : > { %8922 = vmatpush3.bf16.msra.mxu0 %v17427_v42  ;;  %8789 = vmatprep.mubr.bf16.mxu0 %v17428_v22  ;;  %v13028_v62 = vadd.f32 %v4130_v52, %v4122_v6  ;;  %v4131_v48 = vmul.f32 %v8652_v53, %v13013_v31  ;;  %v3483_v5 = vpop.f32.mrb[123].mxu0  ;;  %v17439_v6 = vld [vmem:[#allocation40_spill] sm:$0xff] }
 0x4dd   : > { %8923 = vmatprep.subr.bf16.mxu0 %v17429_v0  ;;  %v13034_v56 = vadd.f32 %v4128_v57, %v4120_v46  ;;  %v4129_v3 = vmul.f32 %v13013_v31, %v3483_v5  ;;  %v8723_v38 = vpop.f32.mrb[120].mxu1  ;;  %v4286_v57 = vmul.f32 %v12986_v60, %v13010_v20 }
 0x4de   : > { %v13039_v14 = vadd.f32 %v4131_v48, %v4123_v27  ;;  %v4290_v29 = vmul.f32 %v8723_v38, %v13013_v31  ;;  %v3865_v25 = vpop.f32.mrb[121].mxu1 }
 0x4df   : > { %v13044_v26 = vadd.f32 %v4129_v3, %v4121_v35  ;;  %v4288_v55 = vmul.f32 %v13013_v31, %v3865_v25  ;;  %v8724_v8 = vpop.f32.mrb[122].mxu1  ;;  %v4285_v3 = vmul.f32 %v13010_v20, %v12993_v30  ;;  %v17440_v25 = vld [vmem:[#allocation36_spill] sm:$0xff]  ;;  %v17441_v30 = vld [vmem:[#allocation23_spill] sm:$0xff] }
 0x4e0   : > { %8924 = vmatpush3.bf16.msra.mxu0 %v17429_v0  ;;  %v13050_v49 = vadd.f32 %v4290_v29, %v4282_v12  ;;  %v4291_v47 = vmul.f32 %v8724_v8, %v13013_v31  ;;  %v3868_v18 = vpop.f32.mrb[123].mxu1  ;;  %v4287_v0 = vmul.f32 %v12991_v34, %v13010_v20  ;;  %v10212_v12 = vld [vmem:[%s15766_s0 + $0x2] sm:$0x1] }
 0x4e1   : > { %8925 = vmatprep.subr.bf16.mxu0 %v17430_v9  ;;  %v13056_v51 = vadd.f32 %v4288_v55, %v4280_v63  ;;  %v4289_v11 = vmul.f32 %v13013_v31, %v3868_v18  ;;  %v285_v29 = vunpack.c.l.bf16 %v10212_v12 }
 0x4e2   : > { %8858 = vmatmul.mubr.bf16.vlgmr.msra.gmra.mrb[176].mxu1 %v17426_v41  ;;  %v13060_v16 = vadd.f32 %v4291_v47, %v4283_v7 }
 0x4e3   : > { %8994 = vmatpush3.bf16.msra.mxu1 %v17431_v36  ;;  %8790 = vmatmul.mubr.bf16.gmra.mrb[180].mxu0 %v17432_v21  ;;  %v13064_v24 = vadd.f32 %v4289_v11, %v4281_v54  ;;  %v13129_v55 = vrot.slane %v285_v29, %v17423_v33  ;;  %v17444_v11 = vld [vmem:[#allocation41_spill] sm:$0xff] }
 0x4e4   : > { %8861 = vmatprep.mubr.bf16.mxu1 %v17428_v22  ;;  %8926 = vmatpush3.bf16.msra.mxu0 %v17430_v9  ;;  %v4284_v22 = vmul.f32 %v13010_v20, %v12989_v15  ;;  %v17443_v9 = vld [vmem:[#allocation24_spill] sm:$0xff] }
 0x4e5   : > { %8995 = vmatprep.subr.bf16.mxu1 %v17433_v10  ;;  %8793 = vmatprep.mubr.bf16.mxu0 %v17434_v13  ;;  %17442 = vst [vmem:[#allocation131_spill] sm:$0xff] %v13129_v55 }
 0x4e6   : > { %8927 = vmatprep.subr.bf16.mxu0 %v17435_v2 }
 0x4e7   : > { %8996 = vmatpush3.bf16.msra.mxu1 %v17433_v10 }
 0x4e8   : > { %8928 = vmatpush3.bf16.msra.mxu0 %v17435_v2  ;;  %8997 = vmatprep.subr.bf16.mxu1 %v17436_v32 }
 0x4e9   : > { %v8655_v28 = vpop.f32.mrb[124].mxu0 }
 0x4ea   : > { %8862 = vmatmul.mubr.bf16.gmra.mrb[180].mxu1 %v17432_v21  ;;  %v4134_v4 = vmul.f32 %v8655_v28, %v13013_v31  ;;  %v3496_v58 = vpop.f32.mrb[125].mxu0 }
 0x4eb   : > { %8998 = vmatpush3.bf16.msra.mxu1 %v17436_v32  ;;  %8794 = vmatmul.mubr.bf16.gmra.mrb[184].mxu0 %v17437_v1  ;;  %v4132_v37 = vmul.f32 %v13013_v31, %v3496_v58  ;;  %v8656_v43 = vpop.f32.mrb[126].mxu0 }
 0x4ec   : > { %8865 = vmatprep.mubr.bf16.mxu1 %v17434_v13  ;;  %8999 = vmatprep.subr.bf16.mxu1 %v17438_v59  ;;  %v13087_v61 = vadd.f32 %v4134_v4, %v4126_v39  ;;  %v4135_v40 = vmul.f32 %v8656_v43, %v13013_v31  ;;  %v3499_v52 = vpop.f32.mrb[127].mxu0 }
 0x4ed   : > { %8797 = vmatprep.mubr.bf16.mxu0 %v17439_v6  ;;  %v13093_v45 = vadd.f32 %v4132_v37, %v4124_v50  ;;  %v4133_v41 = vmul.f32 %v13013_v31, %v3499_v52  ;;  %v8727_v46 = vpop.f32.mrb[124].mxu1  ;;  %v17447_v52 = vld [vmem:[#allocation26_spill] sm:$0xff] }
 0x4ee   : > { %v13098_v42 = vadd.f32 %v4135_v40, %v4127_v19  ;;  %v4294_v23 = vmul.f32 %v8727_v46, %v13013_v31  ;;  %v3881_v53 = vpop.f32.mrb[125].mxu1  ;;  %v17446_v19 = vld [vmem:[#allocation25_spill] sm:$0xff] }
 0x4ef   : > { %9000 = vmatpush3.bf16.msra.mxu1 %v17438_v59  ;;  %v13104_v27 = vadd.f32 %v4133_v41, %v4125_v17  ;;  %v4292_v44 = vmul.f32 %v13013_v31, %v3881_v53  ;;  %v8728_v48 = vpop.f32.mrb[126].mxu1  ;;  %v17448_v41 = vld [vmem:[#allocation42_spill] sm:$0xff] }
 0x4f0   : > { %v13109_v5 = vadd.f32 %v4294_v23, %v4286_v57  ;;  %v4295_v60 = vmul.f32 %v8728_v48, %v13013_v31  ;;  %v3884_v35 = vpop.f32.mrb[127].mxu1 }
 0x4f1   : > { %v13114_v38 = vadd.f32 %v4292_v44, %v4284_v22  ;;  %v4293_v15 = vmul.f32 %v13013_v31, %v3884_v35 }
 0x4f2   : > { %8866 = vmatmul.mubr.bf16.gmra.mrb[184].mxu1 %v17437_v1  ;;  %v13121_v34 = vadd.f32 %v4295_v60, %v4287_v0 }
 0x4f3   : > { %8798 = vmatmul.mubr.bf16.gmra.mrb[188].mxu0 %v17440_v25  ;;  %8869 = vmatprep.mubr.bf16.mxu1 %v17439_v6  ;;  %v13125_v63 = vadd.f32 %v4293_v15, %v4285_v3 }
 0x4f4   : > { %8801 = vmatprep.mubr.bf16.mxu0 %v17441_v30 }
 0x4f9   : > { %v8659_v8 = vpop.f32.mrb[128].mxu0 }
 0x4fa   : > { %8870 = vmatmul.mubr.bf16.gmra.mrb[188].mxu1 %v17440_v25  ;;  %v4138_v7 = vmul.f32 %v8659_v8, %v13129_v55  ;;  %v3512_v47 = vpop.f32.mrb[129].mxu0 }
 0x4fb   : > { %8802 = vmatmul.mubr.bf16.gmra.mrb[192].mxu0 %v17443_v9  ;;  %8873 = vmatprep.mubr.bf16.mxu1 %v17441_v30  ;;  %v4136_v18 = vmul.f32 %v13129_v55, %v3512_v47  ;;  %v8660_v54 = vpop.f32.mrb[130].mxu0 }
 0x4fc   : > { %8805 = vmatprep.mubr.bf16.mxu0 %v17444_v11  ;;  %v13138_v36 = vadd.f32 %v13028_v62, %v4138_v7  ;;  %v4139_v21 = vmul.f32 %v8660_v54, %v13129_v55  ;;  %v3515_v10 = vpop.f32.mrb[131].mxu0 }
 0x4fd   : > { %v13142_v13 = vadd.f32 %v13034_v56, %v4136_v18  ;;  %v4137_v2 = vmul.f32 %v13129_v55, %v3515_v10  ;;  %v8731_v32 = vpop.f32.mrb[128].mxu1 }
 0x4fe   : > { %v13146_v28 = vadd.f32 %v13039_v14, %v4139_v21  ;;  %v4298_v39 = vmul.f32 %v8731_v32, %v13129_v55  ;;  %v3897_v4 = vpop.f32.mrb[129].mxu1 }
 0x4ff   : > { %v13150_v58 = vadd.f32 %v13044_v26, %v4137_v2  ;;  %v4296_v62 = vmul.f32 %v13129_v55, %v3897_v4  ;;  %v8732_v1 = vpop.f32.mrb[130].mxu1  ;;  %v17445_v26 = vld [vmem:[#allocation37_spill] sm:$0xff] }
 0x500   : > { %v13154_v50 = vadd.f32 %v13050_v49, %v4298_v39  ;;  %v4299_v56 = vmul.f32 %v8732_v1, %v13129_v55  ;;  %v3900_v37 = vpop.f32.mrb[131].mxu1 }
 0x501   : > { %v13158_v59 = vadd.f32 %v13056_v51, %v4296_v62  ;;  %v4297_v14 = vmul.f32 %v13129_v55, %v3900_v37 }
 0x502   : > { %8874 = vmatmul.mubr.bf16.gmra.mrb[192].mxu1 %v17443_v9  ;;  %v13163_v43 = vadd.f32 %v13060_v16, %v4299_v56 }
 0x503   : > { %8806 = vmatmul.mubr.bf16.gmra.mrb[196].mxu0 %v17445_v26  ;;  %8877 = vmatprep.mubr.bf16.mxu1 %v17444_v11  ;;  %v13168_v49 = vadd.f32 %v13064_v24, %v4297_v14 }
 0x504   : > { %8809 = vmatprep.mubr.bf16.mxu0 %v17446_v19 }
 0x509   : > { %v8663_v40 = vpop.f32.mrb[132].mxu0 }
 0x50a   : > { %8878 = vmatmul.mubr.bf16.gmra.mrb[196].mxu1 %v17445_v26  ;;  %v4142_v51 = vmul.f32 %v8663_v40, %v13129_v55  ;;  %v3528_v6 = vpop.f32.mrb[133].mxu0 }
 0x50b   : > { %8810 = vmatmul.mubr.bf16.gmra.mrb[200].mxu0 %v17447_v52  ;;  %8881 = vmatprep.mubr.bf16.mxu1 %v17446_v19  ;;  %v4140_v16 = vmul.f32 %v13129_v55, %v3528_v6  ;;  %v8664_v17 = vpop.f32.mrb[134].mxu0 }
 0x50c   : > { %8813 = vmatprep.mubr.bf16.mxu0 %v17448_v41  ;;  %v13178_v24 = vadd.f32 %v13087_v61, %v4142_v51  ;;  %v4143_v46 = vmul.f32 %v8664_v17, %v13129_v55  ;;  %v3531_v57 = vpop.f32.mrb[135].mxu0  ;;  %v17455_v51 = vld [vmem:[#allocation29_spill] sm:$0xff] }
 0x50d   : > { %v13182_v23 = vadd.f32 %v13093_v45, %v4140_v16  ;;  %v4141_v53 = vmul.f32 %v13129_v55, %v3531_v57  ;;  %v8735_v22 = vpop.f32.mrb[132].mxu1  ;;  %v17456_v16 = vld [vmem:[#allocation30_spill] sm:$0xff] }
 0x50e   : > { %v13186_v44 = vadd.f32 %v13098_v42, %v4143_v46  ;;  %v4302_v48 = vmul.f32 %v8735_v22, %v13129_v55  ;;  %v3913_v0 = vpop.f32.mrb[133].mxu1 }
 0x50f   : > { %v13190_v60 = vadd.f32 %v13104_v27, %v4141_v53  ;;  %v4300_v61 = vmul.f32 %v13129_v55, %v3913_v0  ;;  %v8736_v35 = vpop.f32.mrb[134].mxu1  ;;  %v10213_v27 = vld [vmem:[%s15766_s0 + $0x3] sm:$0x1] }
 0x510   : > { %v13194_v3 = vadd.f32 %v13109_v5, %v4302_v48  ;;  %v4303_v45 = vmul.f32 %v8736_v35, %v13129_v55  ;;  %v3916_v15 = vpop.f32.mrb[135].mxu1  ;;  %v286_v29 = vunpack.c.l.bf16 %v10213_v27  ;;  %v17449_v5 = vld [vmem:[#allocation38_spill] sm:$0xff] }
 0x511   : > { %v13198_v12 = vadd.f32 %v13114_v38, %v4300_v61  ;;  %v4301_v42 = vmul.f32 %v13129_v55, %v3916_v15  ;;  %v17450_v38 = vld [vmem:[#allocation27_spill] sm:$0xff] }
 0x512   : > { %8882 = vmatmul.mubr.bf16.gmra.mrb[200].mxu1 %v17447_v52  ;;  %v13206_v25 = vadd.f32 %v13121_v34, %v4303_v45  ;;  %v13215_v8 = vrot.slane %v286_v29, %v17423_v33  ;;  %v17452_v34 = vld [vmem:[#allocation28_spill] sm:$0xff] }
 0x513   : > { %8814 = vmatmul.mubr.bf16.gmra.mrb[204].mxu0 %v17449_v5  ;;  %8885 = vmatprep.mubr.bf16.mxu1 %v17448_v41  ;;  %v13211_v30 = vadd.f32 %v13125_v63, %v4301_v42  ;;  %v17453_v63 = vld [vmem:[#allocation43_spill] sm:$0xff]  ;;  %v17457_v41 = vld [vmem:[#allocation45_spill] sm:$0xff] }
 0x514   : > { %8817 = vmatprep.mubr.bf16.mxu0 %v17450_v38  ;;  %17451 = vst [vmem:[#allocation74_spill] sm:$0xff] %v13215_v8 }
 0x519   : > { %v8667_v7 = vpop.f32.mrb[136].mxu0 }
 0x51a   : > { %8886 = vmatmul.mubr.bf16.gmra.mrb[204].mxu1 %v17449_v5  ;;  %v4146_v47 = vmul.f32 %v8667_v7, %v13215_v8  ;;  %v3544_v9 = vpop.f32.mrb[137].mxu0 }
 0x51b   : > { %8818 = vmatmul.mubr.bf16.gmra.mrb[208].mxu0 %v17452_v34  ;;  %8889 = vmatprep.mubr.bf16.mxu1 %v17450_v38  ;;  %v4144_v18 = vmul.f32 %v13215_v8, %v3544_v9  ;;  %v8668_v54 = vpop.f32.mrb[138].mxu0 }
 0x51c   : > { %8821 = vmatprep.mubr.bf16.mxu0 %v17453_v63  ;;  %v13224_v11 = vadd.f32 %v13138_v36, %v4146_v47  ;;  %v4147_v21 = vmul.f32 %v8668_v54, %v13215_v8  ;;  %v3547_v10 = vpop.f32.mrb[139].mxu0 }
 0x51d   : > { %v13228_v2 = vadd.f32 %v13142_v13, %v4144_v18  ;;  %v4145_v32 = vmul.f32 %v13215_v8, %v3547_v10  ;;  %v8739_v39 = vpop.f32.mrb[136].mxu1 }
 0x51e   : > { %v13232_v4 = vadd.f32 %v13146_v28, %v4147_v21  ;;  %v4306_v62 = vmul.f32 %v8739_v39, %v13215_v8  ;;  %v3929_v1 = vpop.f32.mrb[137].mxu1 }
 0x51f   : > { %v13236_v56 = vadd.f32 %v13150_v58, %v4145_v32  ;;  %v4304_v36 = vmul.f32 %v13215_v8, %v3929_v1  ;;  %v8740_v37 = vpop.f32.mrb[138].mxu1  ;;  %v17454_v58 = vld [vmem:[#allocation44_spill] sm:$0xff] }
 0x520   : > { %v13240_v14 = vadd.f32 %v13154_v50, %v4306_v62  ;;  %v4307_v13 = vmul.f32 %v8740_v37, %v13215_v8  ;;  %v3932_v26 = vpop.f32.mrb[139].mxu1 }
 0x521   : > { %v13244_v19 = vadd.f32 %v13158_v59, %v4304_v36  ;;  %v4305_v28 = vmul.f32 %v13215_v8, %v3932_v26 }
 0x522   : > { %8890 = vmatmul.mubr.bf16.gmra.mrb[208].mxu1 %v17452_v34  ;;  %v13249_v40 = vadd.f32 %v13163_v43, %v4307_v13 }
 0x523   : > { %8822 = vmatmul.mubr.bf16.gmra.mrb[212].mxu0 %v17454_v58  ;;  %8893 = vmatprep.mubr.bf16.mxu1 %v17453_v63  ;;  %v13254_v50 = vadd.f32 %v13168_v49, %v4305_v28 }
 0x524   : > { %8825 = vmatprep.mubr.bf16.mxu0 %v17455_v51 }
 0x529   : > { %v8671_v6 = vpop.f32.mrb[140].mxu0 }
 0x52a   : > { %8894 = vmatmul.mubr.bf16.gmra.mrb[212].mxu1 %v17454_v58  ;;  %v4150_v59 = vmul.f32 %v8671_v6, %v13215_v8  ;;  %v3560_v52 = vpop.f32.mrb[141].mxu0 }
 0x52b   : > { %8826 = vmatmul.mubr.bf16.gmra.mrb[216].mxu0 %v17456_v16  ;;  %8897 = vmatprep.mubr.bf16.mxu1 %v17455_v51  ;;  %v4148_v43 = vmul.f32 %v13215_v8, %v3560_v52  ;;  %v8672_v17 = vpop.f32.mrb[142].mxu0 }
 0x52c   : > { %8829 = vmatprep.mubr.bf16.mxu0 %v17457_v41  ;;  %v13264_v49 = vadd.f32 %v13178_v24, %v4150_v59  ;;  %v4151_v46 = vmul.f32 %v8672_v17, %v13215_v8  ;;  %v3563_v57 = vpop.f32.mrb[143].mxu0  ;;  %v17465_v17 = vld [vmem:[#allocation34_spill] sm:$0xff] }
 0x52d   : > { %v13268_v53 = vadd.f32 %v13182_v23, %v4148_v43  ;;  %v4149_v22 = vmul.f32 %v13215_v8, %v3563_v57  ;;  %v8743_v48 = vpop.f32.mrb[140].mxu1 }
 0x52e   : > { %v13272_v0 = vadd.f32 %v13186_v44, %v4151_v46  ;;  %v4310_v61 = vmul.f32 %v8743_v48, %v13215_v8  ;;  %v3945_v35 = vpop.f32.mrb[141].mxu1  ;;  %v17466_v46 = vld [vmem:[#allocation49_spill] sm:$0xff] }
 0x52f   : > { %v13276_v45 = vadd.f32 %v13190_v60, %v4149_v22  ;;  %v4308_v24 = vmul.f32 %v13215_v8, %v3945_v35  ;;  %v8744_v15 = vpop.f32.mrb[142].mxu1  ;;  %v10214_v60 = vld [vmem:[%s15766_s0 + $0x4] sm:$0x1] }
 0x530   : > { %v13280_v42 = vadd.f32 %v13194_v3, %v4310_v61  ;;  %v4311_v23 = vmul.f32 %v8744_v15, %v13215_v8  ;;  %v3948_v27 = vpop.f32.mrb[143].mxu1  ;;  %v287_v5 = vunpack.c.l.bf16 %v10214_v60  ;;  %v17458_v3 = vld [vmem:[#allocation46_spill] sm:$0xff] }
 0x531   : > { %v13284_v29 = vadd.f32 %v13198_v12, %v4308_v24  ;;  %v4309_v44 = vmul.f32 %v13215_v8, %v3948_v27  ;;  %v17459_v12 = vld [vmem:[#allocation31_spill] sm:$0xff] }
 0x532   : > { %8898 = vmatmul.mubr.bf16.gmra.mrb[216].mxu1 %v17456_v16  ;;  %v13292_v38 = vadd.f32 %v13206_v25, %v4311_v23  ;;  %v13301_v47 = vrot.slane %v287_v5, %v17423_v33  ;;  %v17461_v25 = vld [vmem:[#allocation32_spill] sm:$0xff] }
 0x533   : > { %8830 = vmatmul.mubr.bf16.gmra.mrb[220].mxu0 %v17458_v3  ;;  %8901 = vmatprep.mubr.bf16.mxu1 %v17457_v41  ;;  %v13297_v7 = vadd.f32 %v13211_v30, %v4309_v44  ;;  %v17462_v30 = vld [vmem:[#allocation47_spill] sm:$0xff] }
 0x534   : > { %8833 = vmatprep.mubr.bf16.mxu0 %v17459_v12  ;;  %17460 = vst [vmem:[#allocation177_spill] sm:$0xff] %v13301_v47 }
 0x539   : > { %v8675_v9 = vpop.f32.mrb[144].mxu0 }
 0x53a   : > { %8902 = vmatmul.mubr.bf16.gmra.mrb[220].mxu1 %v17458_v3  ;;  %v4154_v34 = vmul.f32 %v8675_v9, %v13301_v47  ;;  %v3576_v18 = vpop.f32.mrb[145].mxu0 }
 0x53b   : > { %8834 = vmatmul.mubr.bf16.gmra.mrb[224].mxu0 %v17461_v25  ;;  %8905 = vmatprep.mubr.bf16.mxu1 %v17459_v12  ;;  %v4152_v54 = vmul.f32 %v13301_v47, %v3576_v18  ;;  %v8676_v63 = vpop.f32.mrb[146].mxu0 }
 0x53c   : > { %8837 = vmatprep.mubr.bf16.mxu0 %v17462_v30  ;;  %v13310_v21 = vadd.f32 %v13224_v11, %v4154_v34  ;;  %v4155_v10 = vmul.f32 %v8676_v63, %v13301_v47  ;;  %v3579_v32 = vpop.f32.mrb[147].mxu0  ;;  %v17467_v34 = vld [vmem:[#allocation50_spill] sm:$0xff] }
 0x53d   : > { %v13314_v39 = vadd.f32 %v13228_v2, %v4152_v54  ;;  %v4153_v62 = vmul.f32 %v13301_v47, %v3579_v32  ;;  %v8747_v1 = vpop.f32.mrb[144].mxu1 }
 0x53e   : > { %v13318_v36 = vadd.f32 %v13232_v4, %v4155_v10  ;;  %v4314_v37 = vmul.f32 %v8747_v1, %v13301_v47  ;;  %v3961_v13 = vpop.f32.mrb[145].mxu1 }
 0x53f   : > { %v13322_v26 = vadd.f32 %v13236_v56, %v4153_v62  ;;  %v4312_v11 = vmul.f32 %v13301_v47, %v3961_v13  ;;  %v8748_v28 = vpop.f32.mrb[146].mxu1  ;;  %v17463_v56 = vld [vmem:[#allocation48_spill] sm:$0xff] }
 0x540   : > { %v13326_v58 = vadd.f32 %v13240_v14, %v4314_v37  ;;  %v4315_v2 = vmul.f32 %v8748_v28, %v13301_v47  ;;  %v3964_v51 = vpop.f32.mrb[147].mxu1  ;;  %v17464_v14 = vld [vmem:[#allocation33_spill] sm:$0xff] }
 0x541   : > { %v13330_v6 = vadd.f32 %v13244_v19, %v4312_v11  ;;  %v4313_v4 = vmul.f32 %v13301_v47, %v3964_v51 }
 0x542   : > { %8906 = vmatmul.mubr.bf16.gmra.mrb[224].mxu1 %v17461_v25  ;;  %v4368_v59 = vadd.f32 %v13249_v40, %v4315_v2 }
 0x543   : > { %8838 = vmatmul.mubr.bf16.gmra.mrb[228].mxu0 %v17463_v56  ;;  %8909 = vmatprep.mubr.bf16.mxu1 %v17462_v30  ;;  %v4354_v52 = vadd.f32 %v13254_v50, %v4313_v4 }
 0x544   : > { %8841 = vmatprep.mubr.bf16.mxu0 %v17464_v14 }
 0x549   : > { %v8679_v16 = vpop.f32.mrb[148].mxu0 }
 0x54a   : > { %8910 = vmatmul.mubr.bf16.gmra.mrb[228].mxu1 %v17463_v56  ;;  %v4158_v19 = vmul.f32 %v8679_v16, %v13301_v47  ;;  %v3592_v43 = vpop.f32.mrb[149].mxu0 }
 0x54b   : > { %8842 = vmatmul.mubr.bf16.gmra.mrb[232].mxu0 %v17465_v17  ;;  %8913 = vmatprep.mubr.bf16.mxu1 %v17464_v14  ;;  %v4156_v40 = vmul.f32 %v13301_v47, %v3592_v43  ;;  %v8680_v41 = vpop.f32.mrb[150].mxu0 }
 0x54c   : > { %8845 = vmatprep.mubr.bf16.mxu0 %v17466_v46  ;;  %v4229_v57 = vadd.f32 %v13264_v49, %v4158_v19  ;;  %v4159_v50 = vmul.f32 %v8680_v41, %v13301_v47  ;;  %v3595_v22 = vpop.f32.mrb[151].mxu0 }
 0x54d   : > { %v4215_v48 = vadd.f32 %v13268_v53, %v4156_v40  ;;  %v4157_v61 = vmul.f32 %v13301_v47, %v3595_v22  ;;  %v8751_v35 = vpop.f32.mrb[148].mxu1 }
 0x54e   : > { %v4236_v24 = vadd.f32 %v13272_v0, %v4159_v50  ;;  %v4318_v15 = vmul.f32 %v8751_v35, %v13301_v47  ;;  %v3977_v23 = vpop.f32.mrb[149].mxu1  ;;  %v10215_v0 = vld [vmem:[%s15766_s0 + $0x5] sm:$0x1] }
 0x54f   : > { %v4222_v27 = vadd.f32 %v13276_v45, %v4157_v61  ;;  %v4316_v44 = vmul.f32 %v13301_v47, %v3977_v23  ;;  %v8752_v60 = vpop.f32.mrb[150].mxu1  ;;  %v288_v9 = vunpack.c.l.bf16 %v10215_v0 }
 0x550   : > { %v4389_v49 = vadd.f32 %v13280_v42, %v4318_v15  ;;  %v4319_v5 = vmul.f32 %v8752_v60, %v13301_v47  ;;  %v3980_v3 = vpop.f32.mrb[151].mxu1 }
 0x551   : > { %v4375_v53 = vadd.f32 %v13284_v29, %v4316_v44  ;;  %v4317_v12 = vmul.f32 %v13301_v47, %v3980_v3  ;;  %v13366_v18 = vrot.slane %v288_v9, %v17423_v33 }
 0x552   : > { %8914 = vmatmul.mubr.bf16.gmra.mrb[232].mxu1 %v17465_v17  ;;  %v4396_v45 = vadd.f32 %v13292_v38, %v4319_v5 }
 0x553   : > { %8846 = vmatmul.mubr.bf16.gmra.mrb[236].mxu0 %v17467_v34  ;;  %8917 = vmatprep.mubr.bf16.mxu1 %v17466_v46  ;;  %v4382_v42 = vadd.f32 %v13297_v7, %v4317_v12  ;;  %17468 = vst [vmem:[#allocation130_spill] sm:$0xff] %v13366_v18 }
 0x559   : > { %v8683_v29 = vpop.f32.mrb[152].mxu0 }
 0x55a   : > { %8918 = vmatmul.mubr.bf16.gmra.mrb[236].mxu1 %v17467_v34  ;;  %v4162_v25 = vmul.f32 %v8683_v29, %v13366_v18  ;;  %v3608_v54 = vpop.f32.mrb[153].mxu0 }
 0x55b   : > { %v4160_v63 = vmul.f32 %v13366_v18, %v3608_v54  ;;  %v8684_v30 = vpop.f32.mrb[154].mxu0 }
 0x55c   : > { %v4202_v38 = vadd.f32 %v13310_v21, %v4162_v25  ;;  %v4163_v10 = vmul.f32 %v8684_v30, %v13366_v18  ;;  %v3611_v32 = vpop.f32.mrb[155].mxu0 }
 0x55d   : > { %v4188_v62 = vadd.f32 %v13314_v39, %v4160_v63  ;;  %v4161_v7 = vmul.f32 %v13366_v18, %v3611_v32  ;;  %v8755_v1 = vpop.f32.mrb[152].mxu1 }
 0x55e   : > { %v4209_v37 = vadd.f32 %v13318_v36, %v4163_v10  ;;  %v4322_v13 = vmul.f32 %v8755_v1, %v13366_v18  ;;  %v3993_v11 = vpop.f32.mrb[153].mxu1 }
 0x55f   : > { %v4195_v28 = vadd.f32 %v13322_v26, %v4161_v7  ;;  %v4320_v2 = vmul.f32 %v13366_v18, %v3993_v11  ;;  %v8756_v51 = vpop.f32.mrb[154].mxu1 }
 0x560   : > { %v4362_v21 = vadd.f32 %v13326_v58, %v4322_v13  ;;  %v4323_v4 = vmul.f32 %v8756_v51, %v13366_v18  ;;  %v3996_v56 = vpop.f32.mrb[155].mxu1 }
 0x561   : > { %v4348_v39 = vadd.f32 %v13330_v6, %v4320_v2  ;;  %v4321_v14 = vmul.f32 %v13366_v18, %v3996_v56 }
 0x562   : > { %v4369_v16 = vadd.f32 %v4368_v59, %v4323_v4 }
 0x563   : > { %v4355_v19 = vadd.f32 %v4354_v52, %v4321_v14 }
 0x569   : > { %v8687_v36 = vpop.f32.mrb[156].mxu0 }
 0x56a   : > { %v4166_v43 = vmul.f32 %v8687_v36, %v13366_v18  ;;  %v3624_v17 = vpop.f32.mrb[157].mxu0 }
 0x56b   : > { %v4164_v26 = vmul.f32 %v13366_v18, %v3624_v17  ;;  %v8688_v40 = vpop.f32.mrb[158].mxu0 }
 0x56c   : > { %v4230_v41 = vadd.f32 %v4229_v57, %v4166_v43  ;;  %v4167_v46 = vmul.f32 %v8688_v40, %v13366_v18  ;;  %v3627_v58 = vpop.f32.mrb[159].mxu0 }
 0x56d   : > { %v4216_v50 = vadd.f32 %v4215_v48, %v4164_v26  ;;  %v4165_v22 = vmul.f32 %v13366_v18, %v3627_v58  ;;  %v8759_v61 = vpop.f32.mrb[156].mxu1  ;;  %v10216_v48 = vld [vmem:[%s15766_s0 + $0x6] sm:$0x1] }
 0x56e   : > { %v4237_v6 = vadd.f32 %v4236_v24, %v4167_v46  ;;  %v4326_v35 = vmul.f32 %v8759_v61, %v13366_v18  ;;  %v4009_v59 = vpop.f32.mrb[157].mxu1  ;;  %v289_v12 = vunpack.c.l.bf16 %v10216_v48 }
 0x56f   : > { %v4223_v52 = vadd.f32 %v4222_v27, %v4165_v22  ;;  %v4324_v15 = vmul.f32 %v13366_v18, %v4009_v59  ;;  %v8760_v23 = vpop.f32.mrb[158].mxu1 }
 0x570   : > { %v4390_v44 = vadd.f32 %v4389_v49, %v4326_v35  ;;  %v4327_v60 = vmul.f32 %v8760_v23, %v13366_v18  ;;  %v4012_v5 = vpop.f32.mrb[159].mxu1  ;;  %v13395_v9 = vrot.slane %v289_v12, %v17423_v33 }
 0x571   : > { %v4376_v57 = vadd.f32 %v4375_v53, %v4324_v15  ;;  %v4325_v3 = vmul.f32 %v13366_v18, %v4012_v5 }
 0x572   : > { %v4397_v24 = vadd.f32 %v4396_v45, %v4327_v60  ;;  %17469 = vst [vmem:[#allocation178_spill] sm:$0xff] %v13395_v9 }
 0x573   : > { %v4383_v0 = vadd.f32 %v4382_v42, %v4325_v3 }
 0x579   : > { %v8691_v27 = vpop.f32.mrb[160].mxu0 }
 0x57a   : > { %v4170_v34 = vmul.f32 %v8691_v27, %v13395_v9  ;;  %v3640_v49 = vpop.f32.mrb[161].mxu0 }
 0x57b   : > { %v4168_v29 = vmul.f32 %v13395_v9, %v3640_v49  ;;  %v8692_v25 = vpop.f32.mrb[162].mxu0 }
 0x57c   : > { %v4203_v53 = vadd.f32 %v4202_v38, %v4170_v34  ;;  %v4171_v54 = vmul.f32 %v8692_v25, %v13395_v9  ;;  %v3643_v63 = vpop.f32.mrb[163].mxu0 }
 0x57d   : > { %v4189_v30 = vadd.f32 %v4188_v62, %v4168_v29  ;;  %v4169_v10 = vmul.f32 %v13395_v9, %v3643_v63  ;;  %v8763_v32 = vpop.f32.mrb[160].mxu1 }
 0x57e   : > { %v4210_v45 = vadd.f32 %v4209_v37, %v4171_v54  ;;  %v4330_v42 = vmul.f32 %v8763_v32, %v13395_v9  ;;  %v4025_v7 = vpop.f32.mrb[161].mxu1 }
 0x57f   : > { %v4196_v1 = vadd.f32 %v4195_v28, %v4169_v10  ;;  %v4328_v13 = vmul.f32 %v13395_v9, %v4025_v7  ;;  %v8764_v11 = vpop.f32.mrb[162].mxu1 }
 0x580   : > { %v4363_v2 = vadd.f32 %v4362_v21, %v4330_v42  ;;  %v4331_v51 = vmul.f32 %v8764_v11, %v13395_v9  ;;  %v4028_v4 = vpop.f32.mrb[163].mxu1 }
 0x581   : > { %v4349_v38 = vadd.f32 %v4348_v39, %v4328_v13  ;;  %v4329_v56 = vmul.f32 %v13395_v9, %v4028_v4 }
 0x582   : > { %v4370_v14 = vadd.f32 %v4369_v16, %v4331_v51 }
 0x583   : > { %v4356_v62 = vadd.f32 %v4355_v19, %v4329_v56 }
 0x589   : > { %v8695_v36 = vpop.f32.mrb[164].mxu0 }
 0x58a   : > { %v4174_v43 = vmul.f32 %v8695_v36, %v13395_v9  ;;  %v3656_v37 = vpop.f32.mrb[165].mxu0 }
 0x58b   : > { %v4172_v17 = vmul.f32 %v13395_v9, %v3656_v37  ;;  %v8696_v26 = vpop.f32.mrb[166].mxu0 }
 0x58c   : > { %v4231_v28 = vadd.f32 %v4230_v41, %v4174_v43  ;;  %v4175_v40 = vmul.f32 %v8696_v26, %v13395_v9  ;;  %v3659_v46 = vpop.f32.mrb[167].mxu0 }
 0x58d   : > { %v4217_v21 = vadd.f32 %v4216_v50, %v4172_v17  ;;  %v4173_v58 = vmul.f32 %v13395_v9, %v3659_v46  ;;  %v8767_v22 = vpop.f32.mrb[164].mxu1 }
 0x58e   : > { %v4238_v39 = vadd.f32 %v4237_v6, %v4175_v40  ;;  %v4334_v61 = vmul.f32 %v8767_v22, %v13395_v9  ;;  %v4041_v16 = vpop.f32.mrb[165].mxu1  ;;  %v10217_v6 = vld [vmem:[%s15766_s0 + $0x7] sm:$0x1] }
 0x58f   : > { %v4224_v19 = vadd.f32 %v4223_v52, %v4173_v58  ;;  %v4332_v35 = vmul.f32 %v13395_v9, %v4041_v16  ;;  %v8768_v59 = vpop.f32.mrb[166].mxu1  ;;  %v290_v5 = vunpack.c.l.bf16 %v10217_v6 }
 0x590   : > { %v13411_v15 = vadd.f32 %v4390_v44, %v4334_v61  ;;  %v4335_v23 = vmul.f32 %v8768_v59, %v13395_v9  ;;  %v4044_v41 = vpop.f32.mrb[167].mxu1 }
 0x591   : > { %v13414_v60 = vadd.f32 %v4376_v57, %v4332_v35  ;;  %v4333_v50 = vmul.f32 %v13395_v9, %v4044_v41  ;;  %v13425_v44 = vrot.slane %v290_v5, %v17423_v33 }
 0x592   : > { %v13420_v3 = vadd.f32 %v4397_v24, %v4335_v23 }
 0x593   : > { %v13422_v52 = vadd.f32 %v4383_v0, %v4333_v50  ;;  %17470 = vst [vmem:[#allocation76_spill] sm:$0xff] %v13425_v44 }
 0x599   : > { %v8699_v48 = vpop.f32.mrb[168].mxu0 }
 0x59a   : > { %v4178_v12 = vmul.f32 %v8699_v48, %v13425_v44  ;;  %v3672_v57 = vpop.f32.mrb[169].mxu0 }
 0x59b   : > { %v4176_v27 = vmul.f32 %v13425_v44, %v3672_v57  ;;  %v8700_v34 = vpop.f32.mrb[170].mxu0 }
 0x59c   : > { %v4204_v49 = vadd.f32 %v4203_v53, %v4178_v12  ;;  %v4179_v29 = vmul.f32 %v8700_v34, %v13425_v44  ;;  %v3675_v25 = vpop.f32.mrb[171].mxu0 }
 0x59d   : > { %v4190_v54 = vadd.f32 %v4189_v30, %v4176_v27  ;;  %v4177_v24 = vmul.f32 %v13425_v44, %v3675_v25  ;;  %v8771_v0 = vpop.f32.mrb[168].mxu1 }
 0x59e   : > { %v4211_v63 = vadd.f32 %v4210_v45, %v4179_v29  ;;  %v4338_v10 = vmul.f32 %v8771_v0, %v13425_v44  ;;  %v4057_v33 = vpop.f32.mrb[169].mxu1 }
 0x59f   : > { %v4197_v53 = vadd.f32 %v4196_v1, %v4177_v24  ;;  %v4336_v32 = vmul.f32 %v13425_v44, %v4057_v33  ;;  %v8772_v42 = vpop.f32.mrb[170].mxu1 }
 0x5a0   : > { %v8019_v30 = vpack.c.bf16 %v4211_v63, %v4204_v49  ;;  %v4364_v7 = vadd.f32 %v4363_v2, %v4338_v10  ;;  %v4339_v13 = vmul.f32 %v8772_v42, %v13425_v44  ;;  %v4060_v45 = vpop.f32.mrb[171].mxu1 }
 0x5a1   : > { %v8014_v11 = vpack.c.bf16 %v4197_v53, %v4190_v54  ;;  %v4350_v51 = vadd.f32 %v4349_v38, %v4336_v32  ;;  %v4337_v4 = vmul.f32 %v13425_v44, %v4060_v45 }
 0x5a2   : > { %8091 = vst [vmem:[%s13436_s15 + $0x8] sm:$0xff] %v8019_v30   ;;  %v4371_v56 = vadd.f32 %v4370_v14, %v4339_v13 }
 0x5a3   : > { %8015 = vst [vmem:[%s13436_s15] sm:$0xff] %v8014_v11   ;;  %v4357_v1 = vadd.f32 %v4356_v62, %v4337_v4 }
 0x5a4   : > { %v8039_v36 = vpack.c.bf16 %v4371_v56, %v4364_v7 }
 0x5a5   : > { %v8034_v2 = vpack.c.bf16 %v4357_v1, %v4350_v51 }
 0x5a6   : > { %v8703_v43 = vpop.f32.mrb[172].mxu0  ;;  %8094 = vst [vmem:[%s13447_s19 + $0x8] sm:$0xff] %v8039_v36  }
 0x5a7   : > { %v4182_v37 = vmul.f32 %v8703_v43, %v13425_v44  ;;  %v3688_v38 = vpop.f32.mrb[173].mxu0  ;;  %8035 = vst [vmem:[%s13447_s19] sm:$0xff] %v8034_v2  }
 0x5a8   : > { %v4180_v14 = vmul.f32 %v13425_v44, %v3688_v38  ;;  %v8704_v17 = vpop.f32.mrb[174].mxu0 }
 0x5a9   : > { %v4232_v26 = vadd.f32 %v4231_v28, %v4182_v37  ;;  %v4183_v40 = vmul.f32 %v8704_v17, %v13425_v44  ;;  %v3691_v46 = vpop.f32.mrb[175].mxu0 }
 0x5aa   : > { %v4218_v58 = vadd.f32 %v4217_v21, %v4180_v14  ;;  %v4181_v62 = vmul.f32 %v13425_v44, %v3691_v46 }
 0x5ab   : > { %v4239_v22 = vadd.f32 %v4238_v39, %v4183_v40 }
 0x5ac   : > { %v4225_v61 = vadd.f32 %v4224_v19, %v4181_v62 }
 0x5ad   : > { %v8029_v16 = vpack.c.bf16 %v4239_v22, %v4232_v26  ;;  %v8775_v35 = vpop.f32.mrb[172].mxu1 }
 0x5ae   : > { %v8024_v59 = vpack.c.bf16 %v4225_v61, %v4218_v58  ;;  %v4342_v23 = vmul.f32 %v8775_v35, %v13425_v44  ;;  %v4073_v41 = vpop.f32.mrb[173].mxu1  ;;  %v13456_v50 = vpop.f32.mrb[176].mxu0 }
 0x5af   : > { %8093 = vst [vmem:[%s13436_s15 + $0x18] sm:$0xff] %v8029_v16   ;;  %v4340_v28 = vmul.f32 %v13425_v44, %v4073_v41  ;;  %v8776_v6 = vpop.f32.mrb[174].mxu1  ;;  %v13460_v5 = vpop.f32.mrb[177].mxu0  ;;  %v5060_v21 = vsel %vm1845_vm0, %v13456_v50, -inf }
 0x5b0   : > { %8092 = vst [vmem:[%s13436_s15 + $0x10] sm:$0xff] %v8024_v59   ;;  %v4392_v39 = vadd.f32 %v13411_v15, %v4342_v23  ;;  %v4343_v19 = vmul.f32 %v8776_v6, %v13425_v44  ;;  %5061 = vmax.xlane.f32.xlu0 %v5060_v21  ;;  %v4076_v48 = vpop.f32.mrb[175].mxu1  ;;  %v13467_v12 = vpop.f32.mrb[178].mxu0  ;;  %v5054_v42 = vsel %vm1845_vm0, %v13460_v5, -inf }
 0x5b1   : > { %v4378_v57 = vadd.f32 %v13414_v60, %v4340_v28  ;;  %v4341_v27 = vmul.f32 %v13425_v44, %v4076_v48  ;;  %v13471_v34 = vpop.f32.mrb[179].mxu0  ;;  %v5063_v49 = vsel %vm1845_vm0, %v13467_v12, -inf }
 0x5b2   : > { %v4399_v29 = vadd.f32 %v13420_v3, %v4343_v19  ;;  %5064 = vmax.xlane.f32.xlu1 %v5063_v49  ;;  %v5057_v30 = vsel %vm1845_vm0, %v13471_v34, -inf }
 0x5b3   : > { %v4385_v15 = vadd.f32 %v13422_v52, %v4341_v27 }
 0x5b4   : > { %v8049_v25 = vpack.c.bf16 %v4399_v29, %v4392_v39 }
 0x5b5   : > { %v8044_v54 = vpack.c.bf16 %v4385_v15, %v4378_v57  ;;  %v13477_v24 = vpop.f32.mrb[176].mxu1 }
 0x5b6   : > { %8096 = vst [vmem:[%s13447_s19 + $0x18] sm:$0xff] %v8049_v25   ;;  %v13480_v0 = vpop.f32.mrb[180].mxu0  ;;  %v13482_v60 = vpop.f32.mrb[177].mxu1  ;;  %v5796_v63 = vsel %vm1845_vm0, %v13477_v24, -inf }
 0x5b7   : > { %8095 = vst [vmem:[%s13447_s19 + $0x10] sm:$0xff] %v8044_v54   ;;  %5797 = vmax.xlane.f32.xlu0 %v5796_v63  ;;  %v13487_v10 = vpop.f32.mrb[181].mxu0  ;;  %v13489_v3 = vpop.f32.mrb[178].mxu1  ;;  %v5790_v11 = vsel %vm1845_vm0, %v13482_v60, -inf  ;;  %v5072_v43 = vsel %vm1845_vm0, %v13480_v0, -inf }
 0x5b8   : > { %v13491_v33 = vpop.f32.mrb[182].mxu0  ;;  %v13493_v52 = vpop.f32.mrb[179].mxu1  ;;  %v5799_v53 = vsel %vm1845_vm0, %v13489_v3, -inf  ;;  %v5066_v16 = vsel %vm1845_vm0, %v13487_v10, -inf }
 0x5b9   : > { %5800 = vmax.xlane.f32.xlu1 %v5799_v53  ;;  %v13497_v32 = vpop.f32.mrb[183].mxu0  ;;  %v5793_v36 = vsel %vm1845_vm0, %v13493_v52, -inf  ;;  %v5075_v37 = vsel %vm1845_vm0, %v13491_v33, -inf }
 0x5ba   : > { %17471 = vst [vmem:[#allocation84_spill] sm:$0xff] %v13497_v32  ;;  %v5069_v35 = vsel %vm1845_vm0, %v13497_v32, -inf }
 0x5bb   : > { %5055 = vmax.xlane.f32.xlu0 %v5054_v42 }
 0x5bd   : > { %5058 = vmax.xlane.f32.xlu1 %v5057_v30  ;;  %v13503_v7 = vpop.f32.mrb[180].mxu1 }
 0x5be   : > { %v13505_v13 = vpop.f32.mrb[184].mxu0  ;;  %v13507_v45 = vpop.f32.mrb[181].mxu1  ;;  %v5808_v26 = vsel %vm1845_vm0, %v13503_v7, -inf }
 0x5bf   : > { %17472 = vst [vmem:[#allocation86_spill] sm:$0xff] %v13505_v13  ;;  %17473 = vst [vmem:[#allocation90_spill] sm:$0xff] %v13507_v45  ;;  %5791 = vmax.xlane.f32.xlu0 %v5790_v11  ;;  %v13511_v51 = vpop.f32.mrb[185].mxu0  ;;  %v13513_v4 = vpop.f32.mrb[182].mxu1  ;;  %v5802_v28 = vsel %vm1845_vm0, %v13507_v45, -inf  ;;  %v5084_v27 = vsel %vm1845_vm0, %v13505_v13, -inf }
 0x5c0   : > { %17474 = vst [vmem:[#allocation88_spill] sm:$0xff] %v13511_v51  ;;  %v13515_v56 = vpop.f32.mrb[186].mxu0  ;;  %v13517_v1 = vpop.f32.mrb[183].mxu1  ;;  %v5811_v22 = vsel %vm1845_vm0, %v13513_v4, -inf }
 0x5c1   : > { %17475 = vst [vmem:[#allocation133_spill] sm:$0xff] %v13515_v56  ;;  %17476 = vst [vmem:[#allocation126_spill] sm:$0xff] %v13517_v1  ;;  %5794 = vmax.xlane.f32.xlu1 %v5793_v36  ;;  %v13521_v2 = vpop.f32.mrb[187].mxu0  ;;  %v5805_v48 = vsel %vm1845_vm0, %v13517_v1, -inf  ;;  %v5087_v49 = vsel %vm1845_vm0, %v13515_v56, -inf }
 0x5c2   : > { %17477 = vst [vmem:[#allocation91_spill] sm:$0xff] %v13521_v2 }
 0x5c3   : > { %5073 = vmax.xlane.f32.xlu0 %v5072_v43  ;;  %v5078_v43 = vsel %vm1845_vm0, %v13511_v51, -inf }
 0x5c5   : > { %v13527_v38 = vpop.f32.mrb[184].mxu1  ;;  %5076 = vmax.xlane.f32.xlu1 %v5075_v37  ;;  %v5081_v37 = vsel %vm1845_vm0, %v13521_v2, -inf }
 0x5c6   : > { %17478 = vst [vmem:[#allocation87_spill] sm:$0xff] %v13527_v38  ;;  %v13529_v14 = vpop.f32.mrb[188].mxu0  ;;  %v13531_v17 = vpop.f32.mrb[185].mxu1  ;;  %v5820_v54 = vsel %vm1845_vm0, %v13527_v38, -inf }
 0x5c7   : > { %17479 = vst [vmem:[#allocation93_spill] sm:$0xff] %v13529_v14  ;;  %17480 = vst [vmem:[#allocation89_spill] sm:$0xff] %v13531_v17  ;;  %v13535_v40 = vpop.f32.mrb[186].mxu1  ;;  %5809 = vmax.xlane.f32.xlu0 %v5808_v26  ;;  %v13537_v46 = vpop.f32.mrb[189].mxu0 }
 0x5c8   : > { %17481 = vst [vmem:[#allocation2_spill] sm:$0xff] %v13535_v40  ;;  %17482 = vst [vmem:[#allocation4_spill] sm:$0xff] %v13537_v46  ;;  %v13539_v58 = vpop.f32.mrb[190].mxu0  ;;  %v13541_v62 = vpop.f32.mrb[187].mxu1  ;;  %v5823_v11 = vsel %vm1845_vm0, %v13535_v40, -inf  ;;  %v5090_v31 = vsel %vm1845_vm0, %v13537_v46, -inf }
 0x5c9   : > { %17483 = vst [vmem:[#allocation11_spill] sm:$0xff] %v13539_v58  ;;  %17484 = vst [vmem:[#allocation13_spill] sm:$0xff] %v13541_v62  ;;  %5812 = vmax.xlane.f32.xlu1 %v5811_v22  ;;  %v13545_v61 = vpop.f32.mrb[191].mxu0 }
 0x5ca   : > { %17485 = vst [vmem:[#allocation94_spill] sm:$0xff] %v13545_v61  ;;  %v5093_v20 = vsel %vm1845_vm0, %v13545_v61, -inf }
 0x5cb   : > { %5067 = vmax.xlane.f32.xlu0 %v5066_v16 }
 0x5cd   : > { %v13551_v59 = vpop.f32.mrb[188].mxu1  ;;  %5070 = vmax.xlane.f32.xlu1 %v5069_v35  ;;  %v5814_v35 = vsel %vm1845_vm0, %v13531_v17, -inf }
 0x5ce   : > { %17486 = vst [vmem:[#allocation99_spill] sm:$0xff] %v13551_v59  ;;  %v13553_v23 = vpop.f32.mrb[192].mxu0  ;;  %v13555_v41 = vpop.f32.mrb[189].mxu1  ;;  %v5832_v18 = vsel %vm1845_vm0, %v13551_v59, -inf }
 0x5cf   : > { %17487 = vst [vmem:[#allocation6_spill] sm:$0xff] %v13553_v23  ;;  %17488 = vst [vmem:[#allocation97_spill] sm:$0xff] %v13555_v41  ;;  %v13559_v6 = vpop.f32.mrb[190].mxu1  ;;  %5803 = vmax.xlane.f32.xlu0 %v5802_v28  ;;  %v13561_v21 = vpop.f32.mrb[193].mxu0 }
 0x5d0   : > { %17489 = vst [vmem:[#allocation51_spill] sm:$0xff] %v13559_v6  ;;  %17490 = vst [vmem:[#allocation15_spill] sm:$0xff] %v13561_v21  ;;  %v13563_v39 = vpop.f32.mrb[194].mxu0  ;;  %v13565_v19 = vpop.f32.mrb[191].mxu1  ;;  %v5835_v55 = vsel %vm1845_vm0, %v13559_v6, -inf  ;;  %v5826_v6 = vsel %vm1845_vm0, %v13555_v41, -inf }
 0x5d1   : > { %17491 = vst [vmem:[#allocation102_spill] sm:$0xff] %v13563_v39  ;;  %17492 = vst [vmem:[#allocation96_spill] sm:$0xff] %v13565_v19  ;;  %5806 = vmax.xlane.f32.xlu1 %v5805_v48  ;;  %v13569_v57 = vpop.f32.mrb[195].mxu0  ;;  %v5829_v61 = vsel %vm1845_vm0, %v13565_v19, -inf  ;;  %v5111_v41 = vsel %vm1845_vm0, %v13563_v39, -inf  ;;  %v5102_v40 = vsel %vm1845_vm0, %v13561_v21, -inf }
 0x5d2   : > { %17493 = vst [vmem:[#allocation166_spill] sm:$0xff] %v13569_v57 }
 0x5d3   : > { %5085 = vmax.xlane.f32.xlu0 %v5084_v27 }
 0x5d5   : > { %v13575_v29 = vpop.f32.mrb[192].mxu1  ;;  %5088 = vmax.xlane.f32.xlu1 %v5087_v49 }
 0x5d6   : > { %17494 = vst [vmem:[#allocation59_spill] sm:$0xff] %v13575_v29  ;;  %v13577_v15 = vpop.f32.mrb[196].mxu0  ;;  %v13579_v25 = vpop.f32.mrb[193].mxu1  ;;  %v5844_v19 = vsel %vm1845_vm0, %v13575_v29, -inf  ;;  %v5105_v29 = vsel %vm1845_vm0, %v13569_v57, -inf }
 0x5d7   : > { %17495 = vst [vmem:[#allocation8_spill] sm:$0xff] %v13577_v15  ;;  %17496 = vst [vmem:[#allocation17_spill] sm:$0xff] %v13579_v25  ;;  %v13583_v63 = vpop.f32.mrb[194].mxu1  ;;  %5821 = vmax.xlane.f32.xlu0 %v5820_v54  ;;  %v13585_v53 = vpop.f32.mrb[197].mxu0  ;;  %v5817_v54 = vsel %vm1845_vm0, %v13541_v62, -inf  ;;  %v5108_v62 = vsel %vm1845_vm0, %v13553_v23, -inf }
 0x5d8   : > { %17497 = vst [vmem:[#allocation167_spill] sm:$0xff] %v13583_v63  ;;  %17498 = vst [vmem:[#allocation168_spill] sm:$0xff] %v13585_v53  ;;  %v13587_v42 = vpop.f32.mrb[198].mxu0  ;;  %v13589_v30 = vpop.f32.mrb[195].mxu1  ;;  %v5847_v39 = vsel %vm1845_vm0, %v13583_v63, -inf  ;;  %v5838_v63 = vsel %vm1845_vm0, %v13579_v25, -inf }
 0x5d9   : > { %17499 = vst [vmem:[#allocation105_spill] sm:$0xff] %v13587_v42  ;;  %17500 = vst [vmem:[#allocation57_spill] sm:$0xff] %v13589_v30  ;;  %5824 = vmax.xlane.f32.xlu1 %v5823_v11  ;;  %v13593_v36 = vpop.f32.mrb[199].mxu0  ;;  %v5841_v57 = vsel %vm1845_vm0, %v13589_v30, -inf  ;;  %v5120_v1 = vsel %vm1845_vm0, %v13577_v15, -inf  ;;  %v5123_v25 = vsel %vm1845_vm0, %v13587_v42, -inf }
 0x5da   : > { %17501 = vst [vmem:[#allocation149_spill] sm:$0xff] %v13593_v36 }
 0x5db   : > { %5079 = vmax.xlane.f32.xlu0 %v5078_v43  ;;  %v5096_v43 = vsel %vm1845_vm0, %v13529_v14, -inf }
 0x5dd   : > { %v13599_v26 = vpop.f32.mrb[196].mxu1  ;;  %5082 = vmax.xlane.f32.xlu1 %v5081_v37  ;;  %v5099_v37 = vsel %vm1845_vm0, %v13539_v58, -inf }
 0x5de   : > { %17502 = vst [vmem:[#allocation139_spill] sm:$0xff] %v13599_v26  ;;  %v13601_v22 = vpop.f32.mrb[200].mxu0  ;;  %v13603_v16 = vpop.f32.mrb[197].mxu1  ;;  %v5856_v30 = vsel %vm1845_vm0, %v13599_v26, -inf  ;;  %v5117_v26 = vsel %vm1845_vm0, %v13593_v36, -inf }
 0x5df   : > { %17503 = vst [vmem:[#allocation110_spill] sm:$0xff] %v13601_v22  ;;  %17504 = vst [vmem:[#allocation104_spill] sm:$0xff] %v13603_v16  ;;  %v13607_v28 = vpop.f32.mrb[198].mxu1  ;;  %5815 = vmax.xlane.f32.xlu0 %v5814_v35  ;;  %v13609_v48 = vpop.f32.mrb[201].mxu0 }
 0x5e0   : > { %17505 = vst [vmem:[#allocation61_spill] sm:$0xff] %v13607_v28  ;;  %17506 = vst [vmem:[#allocation67_spill] sm:$0xff] %v13609_v48  ;;  %v13611_v27 = vpop.f32.mrb[202].mxu0  ;;  %v13613_v49 = vpop.f32.mrb[199].mxu1  ;;  %v5859_v42 = vsel %vm1845_vm0, %v13607_v28, -inf  ;;  %v5850_v28 = vsel %vm1845_vm0, %v13603_v16, -inf }
 0x5e1   : > { %17507 = vst [vmem:[#allocation136_spill] sm:$0xff] %v13611_v27  ;;  %17508 = vst [vmem:[#allocation148_spill] sm:$0xff] %v13613_v49  ;;  %5818 = vmax.xlane.f32.xlu1 %v5817_v54  ;;  %v13617_v11 = vpop.f32.mrb[203].mxu0  ;;  %v5853_v36 = vsel %vm1845_vm0, %v13613_v49, -inf  ;;  %v5135_v16 = vsel %vm1845_vm0, %v13611_v27, -inf }
 0x5e2   : > { %17509 = vst [vmem:[#allocation141_spill] sm:$0xff] %v13617_v11 }
 0x5e3   : > { %5097 = vmax.xlane.f32.xlu0 %v5096_v43 }
 0x5e5   : > { %v13623_v35 = vpop.f32.mrb[200].mxu1  ;;  %5100 = vmax.xlane.f32.xlu1 %v5099_v37 }
 0x5e6   : > { %17510 = vst [vmem:[#allocation150_spill] sm:$0xff] %v13623_v35  ;;  %v13625_v44 = vpop.f32.mrb[204].mxu0  ;;  %v13627_v9 = vpop.f32.mrb[201].mxu1  ;;  %v5868_v49 = vsel %vm1845_vm0, %v13623_v35, -inf  ;;  %v5129_v35 = vsel %vm1845_vm0, %v13617_v11, -inf }
 0x5e7   : > { %17511 = vst [vmem:[#allocation142_spill] sm:$0xff] %v13625_v44  ;;  %17512 = vst [vmem:[#allocation155_spill] sm:$0xff] %v13627_v9  ;;  %v13631_v54 = vpop.f32.mrb[202].mxu1  ;;  %5833 = vmax.xlane.f32.xlu0 %v5832_v18  ;;  %v13633_v47 = vpop.f32.mrb[205].mxu0 }
 0x5e8   : > { %17513 = vst [vmem:[#allocation147_spill] sm:$0xff] %v13631_v54  ;;  %17514 = vst [vmem:[#allocation154_spill] sm:$0xff] %v13633_v47  ;;  %v13635_v8 = vpop.f32.mrb[206].mxu0  ;;  %v13637_v43 = vpop.f32.mrb[203].mxu1  ;;  %v5871_v27 = vsel %vm1845_vm0, %v13631_v54, -inf  ;;  %v5862_v54 = vsel %vm1845_vm0, %v13627_v9, -inf }
 0x5e9   : > { %17515 = vst [vmem:[#allocation144_spill] sm:$0xff] %v13635_v8  ;;  %17516 = vst [vmem:[#allocation92_spill] sm:$0xff] %v13637_v43  ;;  %5836 = vmax.xlane.f32.xlu1 %v5835_v55  ;;  %v13641_v37 = vpop.f32.mrb[207].mxu0  ;;  %v5865_v11 = vsel %vm1845_vm0, %v13637_v43, -inf  ;;  %v5147_v9 = vsel %vm1845_vm0, %v13635_v8, -inf }
 0x5eb   : > { %5091 = vmax.xlane.f32.xlu0 %v5090_v31 }
 0x5ed   : > { %v13647_v18 = vpop.f32.mrb[204].mxu1  ;;  %5094 = vmax.xlane.f32.xlu1 %v5093_v20 }
 0x5ee   : > { %17517 = vst [vmem:[#allocation171_spill] sm:$0xff] %v13647_v18  ;;  %v13649_v59 = vpop.f32.mrb[208].mxu0  ;;  %v13651_v58 = vpop.f32.mrb[205].mxu1  ;;  %v5880_v43 = vsel %vm1845_vm0, %v13647_v18, -inf  ;;  %v5141_v18 = vsel %vm1845_vm0, %v13641_v37, -inf }
 0x5ef   : > { %17518 = vst [vmem:[#allocation172_spill] sm:$0xff] %v13649_v59  ;;  %17519 = vst [vmem:[#allocation113_spill] sm:$0xff] %v13651_v58  ;;  %v13655_v55 = vpop.f32.mrb[206].mxu1  ;;  %5827 = vmax.xlane.f32.xlu0 %v5826_v6  ;;  %v13657_v14 = vpop.f32.mrb[209].mxu0 }
 0x5f0   : > { %17520 = vst [vmem:[#allocation65_spill] sm:$0xff] %v13657_v14  ;;  %v13659_v46 = vpop.f32.mrb[210].mxu0  ;;  %v13661_v31 = vpop.f32.mrb[207].mxu1  ;;  %v5883_v8 = vsel %vm1845_vm0, %v13655_v55, -inf }
 0x5f1   : > { %17521 = vst [vmem:[#allocation157_spill] sm:$0xff] %v13659_v46  ;;  %17522 = vst [vmem:[#allocation95_spill] sm:$0xff] %v13661_v31  ;;  %5830 = vmax.xlane.f32.xlu1 %v5829_v61  ;;  %v13665_v20 = vpop.f32.mrb[211].mxu0 }
 0x5f2   : > { %17523 = vst [vmem:[#allocation118_spill] sm:$0xff] %v13665_v20 }
 0x5f3   : > { %5109 = vmax.xlane.f32.xlu0 %v5108_v62 }
 0x5f5   : > { %v13671_v6 = vpop.f32.mrb[208].mxu1  ;;  %5112 = vmax.xlane.f32.xlu1 %v5111_v41 }
 0x5f6   : > { %17524 = vst [vmem:[#allocation112_spill] sm:$0xff] %v13671_v6  ;;  %v13673_v17 = vpop.f32.mrb[212].mxu0  ;;  %v13675_v2 = vpop.f32.mrb[209].mxu1 }
 0x5f7   : > { %17525 = vst [vmem:[#allocation69_spill] sm:$0xff] %v13673_v17  ;;  %17526 = vst [vmem:[#allocation75_spill] sm:$0xff] %v13675_v2  ;;  %v13679_v61 = vpop.f32.mrb[210].mxu1  ;;  %5845 = vmax.xlane.f32.xlu0 %v5844_v19  ;;  %v13681_v51 = vpop.f32.mrb[213].mxu0 }
 0x5f8   : > { %17527 = vst [vmem:[#allocation103_spill] sm:$0xff] %v13679_v61  ;;  %17528 = vst [vmem:[#allocation156_spill] sm:$0xff] %v13681_v51  ;;  %v13683_v23 = vpop.f32.mrb[214].mxu0  ;;  %v13685_v62 = vpop.f32.mrb[211].mxu1 }
 0x5f9   : > { %17529 = vst [vmem:[#allocation101_spill] sm:$0xff] %v13683_v23  ;;  %17530 = vst [vmem:[#allocation158_spill] sm:$0xff] %v13685_v62  ;;  %5848 = vmax.xlane.f32.xlu1 %v5847_v39  ;;  %v13689_v41 = vpop.f32.mrb[215].mxu0 }
 0x5fa   : > { %17531 = vst [vmem:[#allocation53_spill] sm:$0xff] %v13689_v41 }
 0x5fb   : > { %5103 = vmax.xlane.f32.xlu0 %v5102_v40 }
 0x5fd   : > { %v13695_v19 = vpop.f32.mrb[212].mxu1  ;;  %5106 = vmax.xlane.f32.xlu1 %v5105_v29 }
 0x5fe   : > { %17532 = vst [vmem:[#allocation163_spill] sm:$0xff] %v13695_v19  ;;  %v13697_v38 = vpop.f32.mrb[216].mxu0  ;;  %v13699_v56 = vpop.f32.mrb[213].mxu1 }
 0x5ff   : > { %17533 = vst [vmem:[#allocation152_spill] sm:$0xff] %v13697_v38  ;;  %17534 = vst [vmem:[#allocation160_spill] sm:$0xff] %v13699_v56  ;;  %v13703_v39 = vpop.f32.mrb[214].mxu1  ;;  %5839 = vmax.xlane.f32.xlu0 %v5838_v63  ;;  %v13705_v13 = vpop.f32.mrb[217].mxu0 }
 0x600   : > { %17535 = vst [vmem:[#allocation56_spill] sm:$0xff] %v13703_v39  ;;  %17536 = vst [vmem:[#allocation165_spill] sm:$0xff] %v13705_v13  ;;  %v13707_v21 = vpop.f32.mrb[218].mxu0  ;;  %v13709_v40 = vpop.f32.mrb[215].mxu1 }
 0x601   : > { %17537 = vst [vmem:[#allocation115_spill] sm:$0xff] %v13707_v21  ;;  %17538 = vst [vmem:[#allocation161_spill] sm:$0xff] %v13709_v40  ;;  %5842 = vmax.xlane.f32.xlu1 %v5841_v57  ;;  %v13713_v29 = vpop.f32.mrb[219].mxu0 }
 0x602   : > { %17539 = vst [vmem:[#allocation169_spill] sm:$0xff] %v13713_v29 }
 0x603   : > { %5121 = vmax.xlane.f32.xlu0 %v5120_v1 }
 0x605   : > { %v13719_v63 = vpop.f32.mrb[216].mxu1  ;;  %5124 = vmax.xlane.f32.xlu1 %v5123_v25 }
 0x606   : > { %17540 = vst [vmem:[#allocation175_spill] sm:$0xff] %v13719_v63  ;;  %v13721_v45 = vpop.f32.mrb[220].mxu0  ;;  %v13723_v32 = vpop.f32.mrb[217].mxu1 }
 0x607   : > { %17541 = vst [vmem:[#allocation176_spill] sm:$0xff] %v13721_v45  ;;  %17542 = vst [vmem:[#allocation121_spill] sm:$0xff] %v13723_v32  ;;  %v13727_v57 = vpop.f32.mrb[218].mxu1  ;;  %5857 = vmax.xlane.f32.xlu0 %v5856_v30  ;;  %v13729_v29 = vpop.f32.mrb[221].mxu0  ;;  %v5114_v45 = vsel %vm1845_vm0, %v13585_v53, -inf }
 0x608   : > { %17543 = vst [vmem:[#allocation73_spill] sm:$0xff] %v13727_v57  ;;  %17544 = vst [vmem:[#allocation164_spill] sm:$0xff] %v13729_v29  ;;  %v13731_v15 = vpop.f32.mrb[222].mxu0  ;;  %v13733_v1 = vpop.f32.mrb[219].mxu1 }
 0x609   : > { %17545 = vst [vmem:[#allocation114_spill] sm:$0xff] %v13731_v15  ;;  %17546 = vst [vmem:[#allocation83_spill] sm:$0xff] %v13733_v1  ;;  %5860 = vmax.xlane.f32.xlu1 %v5859_v42  ;;  %v13737_v25 = vpop.f32.mrb[223].mxu0 }
 0x60a   : > { %17547 = vst [vmem:[#allocation120_spill] sm:$0xff] %v13737_v25 }
 0x60b   : > { %5115 = vmax.xlane.f32.xlu0 %v5114_v45 }
 0x60d   : > { %v13743_v30 = vpop.f32.mrb[220].mxu1  ;;  %5118 = vmax.xlane.f32.xlu1 %v5117_v26 }
 0x60e   : > { %17548 = vst [vmem:[#allocation77_spill] sm:$0xff] %v13743_v30  ;;  %v13745_v29 = vpop.f32.mrb[224].mxu0  ;;  %v13747_v15 = vpop.f32.mrb[221].mxu1 }
 0x60f   : > { %17549 = vst [vmem:[#allocation78_spill] sm:$0xff] %v13745_v29  ;;  %17550 = vst [vmem:[#allocation159_spill] sm:$0xff] %v13747_v15  ;;  %v13751_v42 = vpop.f32.mrb[222].mxu1  ;;  %5851 = vmax.xlane.f32.xlu0 %v5850_v28  ;;  %v13753_v25 = vpop.f32.mrb[225].mxu0  ;;  %v5132_v29 = vsel %vm1845_vm0, %v13601_v22, -inf }
 0x610   : > { %17551 = vst [vmem:[#allocation54_spill] sm:$0xff] %v13751_v42  ;;  %17552 = vst [vmem:[#allocation162_spill] sm:$0xff] %v13753_v25  ;;  %v13755_v53 = vpop.f32.mrb[226].mxu0  ;;  %v13757_v45 = vpop.f32.mrb[223].mxu1 }
 0x611   : > { %17553 = vst [vmem:[#allocation153_spill] sm:$0xff] %v13755_v53  ;;  %17554 = vst [vmem:[#allocation79_spill] sm:$0xff] %v13757_v45  ;;  %5854 = vmax.xlane.f32.xlu1 %v5853_v36  ;;  %v13761_v26 = vpop.f32.mrb[227].mxu0 }
 0x612   : > { %17555 = vst [vmem:[#allocation179_spill] sm:$0xff] %v13761_v26 }
 0x613   : > { %5133 = vmax.xlane.f32.xlu0 %v5132_v29 }
 0x615   : > { %v13767_v28 = vpop.f32.mrb[224].mxu1  ;;  %5136 = vmax.xlane.f32.xlu1 %v5135_v16 }
 0x616   : > { %17556 = vst [vmem:[#allocation80_spill] sm:$0xff] %v13767_v28  ;;  %v13769_v25 = vpop.f32.mrb[228].mxu0  ;;  %v13771_v53 = vpop.f32.mrb[225].mxu1 }
 0x617   : > { %17557 = vst [vmem:[#allocation82_spill] sm:$0xff] %v13769_v25  ;;  %17558 = vst [vmem:[#allocation128_spill] sm:$0xff] %v13771_v53  ;;  %v13775_v36 = vpop.f32.mrb[226].mxu1  ;;  %5869 = vmax.xlane.f32.xlu0 %v5868_v49  ;;  %v13777_v26 = vpop.f32.mrb[229].mxu0  ;;  %v5126_v25 = vsel %vm1845_vm0, %v13609_v48, -inf }
 0x618   : > { %17559 = vst [vmem:[#allocation127_spill] sm:$0xff] %v13775_v36  ;;  %17560 = vst [vmem:[#allocation180_spill] sm:$0xff] %v13777_v26  ;;  %v13779_v22 = vpop.f32.mrb[230].mxu0  ;;  %v13781_v29 = vpop.f32.mrb[227].mxu1 }
 0x619   : > { %17561 = vst [vmem:[#allocation181_spill] sm:$0xff] %v13779_v22  ;;  %17562 = vst [vmem:[#allocation81_spill] sm:$0xff] %v13781_v29  ;;  %5872 = vmax.xlane.f32.xlu1 %v5871_v27  ;;  %v13785_v16 = vpop.f32.mrb[231].mxu0 }
 0x61a   : > { %17563 = vst [vmem:[#allocation85_spill] sm:$0xff] %v13785_v16 }
 0x61b   : > { %5127 = vmax.xlane.f32.xlu0 %v5126_v25 }
 0x61d   : > { %v13791_v49 = vpop.f32.mrb[228].mxu1  ;;  %5130 = vmax.xlane.f32.xlu1 %v5129_v35 }
 0x61e   : > { %17564 = vst [vmem:[#allocation132_spill] sm:$0xff] %v13791_v49  ;;  %v13793_v26 = vpop.f32.mrb[232].mxu0  ;;  %v13795_v22 = vpop.f32.mrb[229].mxu1 }
 0x61f   : > { %17565 = vst [vmem:[#allocation134_spill] sm:$0xff] %v13793_v26  ;;  %17566 = vst [vmem:[#allocation135_spill] sm:$0xff] %v13795_v22  ;;  %v13799_v27 = vpop.f32.mrb[230].mxu1  ;;  %5863 = vmax.xlane.f32.xlu0 %v5862_v54  ;;  %v13801_v16 = vpop.f32.mrb[233].mxu0  ;;  %v5144_v26 = vsel %vm1845_vm0, %v13625_v44, -inf }
 0x620   : > { %17567 = vst [vmem:[#allocation129_spill] sm:$0xff] %v13799_v27  ;;  %17568 = vst [vmem:[#allocation182_spill] sm:$0xff] %v13801_v16  ;;  %v13803_v48 = vpop.f32.mrb[234].mxu0  ;;  %v13805_v25 = vpop.f32.mrb[231].mxu1 }
 0x621   : > { %17569 = vst [vmem:[#allocation138_spill] sm:$0xff] %v13803_v48  ;;  %17570 = vst [vmem:[#allocation137_spill] sm:$0xff] %v13805_v25  ;;  %5866 = vmax.xlane.f32.xlu1 %v5865_v11  ;;  %v13809_v35 = vpop.f32.mrb[235].mxu0 }
 0x622   : > { %17571 = vst [vmem:[#allocation140_spill] sm:$0xff] %v13809_v35 }
 0x623   : > { %5145 = vmax.xlane.f32.xlu0 %v5144_v26 }
 0x625   : > { %v13815_v54 = vpop.f32.mrb[232].mxu1  ;;  %5148 = vmax.xlane.f32.xlu1 %v5147_v9 }
 0x626   : > { %17572 = vst [vmem:[#allocation145_spill] sm:$0xff] %v13815_v54  ;;  %v13817_v16 = vpop.f32.mrb[236].mxu0  ;;  %v13819_v48 = vpop.f32.mrb[233].mxu1 }
 0x627   : > { %17573 = vst [vmem:[#allocation100_spill] sm:$0xff] %v13817_v16  ;;  %17574 = vst [vmem:[#allocation107_spill] sm:$0xff] %v13819_v48  ;;  %v13823_v11 = vpop.f32.mrb[234].mxu1  ;;  %5881 = vmax.xlane.f32.xlu0 %v5880_v43  ;;  %v13825_v35 = vpop.f32.mrb[237].mxu0  ;;  %v5138_v16 = vsel %vm1845_vm0, %v13633_v47, -inf  ;;  %v5877_v47 = vsel %vm1845_vm0, %v13661_v31, -inf }
 0x628   : > { %17575 = vst [vmem:[#allocation143_spill] sm:$0xff] %v13823_v11  ;;  %17576 = vst [vmem:[#allocation146_spill] sm:$0xff] %v13825_v35  ;;  %v13827_v44 = vpop.f32.mrb[238].mxu0  ;;  %v13829_v26 = vpop.f32.mrb[235].mxu1  ;;  %v5150_v31 = vsel %vm1845_vm0, %v13657_v14, -inf }
 0x629   : > { %17577 = vst [vmem:[#allocation98_spill] sm:$0xff] %v13827_v44  ;;  %17578 = vst [vmem:[#allocation151_spill] sm:$0xff] %v13829_v26  ;;  %5884 = vmax.xlane.f32.xlu1 %v5883_v8  ;;  %v13833_v9 = vpop.f32.mrb[239].mxu0  ;;  %v5874_v44 = vsel %vm1845_vm0, %v13651_v58, -inf  ;;  %v5892_v58 = vsel %vm1845_vm0, %v13671_v6, -inf }
 0x62a   : > { %17579 = vst [vmem:[#allocation106_spill] sm:$0xff] %v13833_v9 }
 0x62b   : > { %5139 = vmax.xlane.f32.xlu0 %v5138_v16  ;;  %v5156_v16 = vsel %vm1845_vm0, %v13649_v59, -inf }
 0x62d   : > { %v13839_v43 = vpop.f32.mrb[236].mxu1  ;;  %5142 = vmax.xlane.f32.xlu1 %v5141_v18  ;;  %v5159_v18 = vsel %vm1845_vm0, %v13659_v46, -inf }
 0x62e   : > { %17580 = vst [vmem:[#allocation108_spill] sm:$0xff] %v13839_v43  ;;  %v13841_v35 = vpop.f32.mrb[237].mxu1 }
 0x62f   : > { %17581 = vst [vmem:[#allocation55_spill] sm:$0xff] %v13841_v35  ;;  %v13845_v26 = vpop.f32.mrb[238].mxu1  ;;  %5875 = vmax.xlane.f32.xlu0 %v5874_v44  ;;  %v5895_v44 = vsel %vm1845_vm0, %v13679_v61, -inf }
 0x630   : > { %17582 = vst [vmem:[#allocation58_spill] sm:$0xff] %v13845_v26  ;;  %v13847_v8 = vpop.f32.mrb[239].mxu1 }
 0x631   : > { %17583 = vst [vmem:[#allocation109_spill] sm:$0xff] %v13847_v8  ;;  %5878 = vmax.xlane.f32.xlu1 %v5877_v47  ;;  %v5153_v47 = vsel %vm1845_vm0, %v13665_v20, -inf  ;;  %v5168_v20 = vsel %vm1845_vm0, %v13673_v17, -inf }
 0x633   : > { %5157 = vmax.xlane.f32.xlu0 %v5156_v16 }
 0x635   : > { %5160 = vmax.xlane.f32.xlu1 %v5159_v18  ;;  %v5171_v18 = vsel %vm1845_vm0, %v13683_v23, -inf }
 0x637   : > { %5893 = vmax.xlane.f32.xlu0 %v5892_v58  ;;  %v5886_v58 = vsel %vm1845_vm0, %v13675_v2, -inf }
 0x639   : > { %5896 = vmax.xlane.f32.xlu1 %v5895_v44  ;;  %v5904_v44 = vsel %vm1845_vm0, %v13695_v19, -inf }
 0x63b   : > { %5151 = vmax.xlane.f32.xlu0 %v5150_v31  ;;  %v5889_v31 = vsel %vm1845_vm0, %v13685_v62, -inf }
 0x63d   : > { %v13863_v16 = vpop.xlane.xlu0 %5061  ;;  %5154 = vmax.xlane.f32.xlu1 %v5153_v47 }
 0x63f   : > { %v13869_v6 = vpop.xlane.xlu1 %5064  ;;  %5887 = vmax.xlane.f32.xlu0 %v5886_v58 }
 0x641   : > { %5890 = vmax.xlane.f32.xlu1 %v5889_v31 }
 0x643   : > { %5169 = vmax.xlane.f32.xlu0 %v5168_v20  ;;  %v5907_v20 = vsel %vm1845_vm0, %v13703_v39, -inf }
 0x644   : > { %v13877_v47 = vpop.xlane.xlu0 %5797 }
 0x645   : > { %5172 = vmax.xlane.f32.xlu1 %v5171_v18  ;;  %v5162_v18 = vsel %vm1845_vm0, %v13681_v51, -inf }
 0x646   : > { %v13883_v58 = vpop.xlane.xlu1 %5800 }
 0x647   : > { %5905 = vmax.xlane.f32.xlu0 %v5904_v44  ;;  %v5165_v44 = vsel %vm1845_vm0, %v13689_v41, -inf }
 0x648   : > { %v13889_v17 = vpop.xlane.xlu0 %5055 }
 0x649   : > { %5908 = vmax.xlane.f32.xlu1 %v5907_v20  ;;  %v5898_v20 = vsel %vm1845_vm0, %v13699_v56, -inf }
 0x64a   : > { %v13895_v2 = vpop.xlane.xlu1 %5058 }
 0x64b   : > { %5163 = vmax.xlane.f32.xlu0 %v5162_v18  ;;  %v5901_v18 = vsel %vm1845_vm0, %v13709_v40, -inf }
 0x64c   : > { %v13901_v31 = vpop.xlane.xlu0 %5791 }
 0x64d   : > { %5166 = vmax.xlane.f32.xlu1 %v5165_v44  ;;  %v5180_v44 = vsel %vm1845_vm0, %v13697_v38, -inf }
 0x64e   : > { %v13907_v23 = vpop.xlane.xlu1 %5794 }
 0x64f   : > { %5899 = vmax.xlane.f32.xlu0 %v5898_v20  ;;  %v5183_v20 = vsel %vm1845_vm0, %v13707_v21, -inf }
 0x650   : > { %v13913_v19 = vpop.xlane.xlu0 %5073 }
 0x651   : > { %5902 = vmax.xlane.f32.xlu1 %v5901_v18  ;;  %v5916_v18 = vsel %vm1845_vm0, %v13719_v63, -inf  ;;  %v17584_v63 = vld [vmem:[#allocation84_spill] sm:$0xff] }
 0x652   : > { %v13919_v39 = vpop.xlane.xlu1 %5076 }
 0x653   : > { %5181 = vmax.xlane.f32.xlu0 %v5180_v44  ;;  %v5919_v44 = vsel %vm1845_vm0, %v13727_v57, -inf }
 0x654   : > { %v13925_v51 = vpop.xlane.xlu0 %5809 }
 0x655   : > { %5184 = vmax.xlane.f32.xlu1 %v5183_v20  ;;  %v5174_v20 = vsel %vm1845_vm0, %v13705_v13, -inf }
 0x656   : > { %v13931_v41 = vpop.xlane.xlu1 %5812 }
 0x657   : > { %5917 = vmax.xlane.f32.xlu0 %v5916_v18  ;;  %v17586_v18 = vld [vmem:[#allocation169_spill] sm:$0xff] }
 0x658   : > { %v13937_v56 = vpop.xlane.xlu0 %5067  ;;  %v5177_v14 = vsel %vm1845_vm0, %v17586_v18, -inf  ;;  %v17591_v18 = vld [vmem:[#allocation86_spill] sm:$0xff] }
 0x659   : > { %5920 = vmax.xlane.f32.xlu1 %v5919_v44  ;;  %v5910_v44 = vsel %vm1845_vm0, %v13723_v32, -inf  ;;  %v17594_v32 = vld [vmem:[#allocation133_spill] sm:$0xff] }
 0x65a   : > { %v13943_v40 = vpop.xlane.xlu1 %5070 }
 0x65b   : > { %5175 = vmax.xlane.f32.xlu0 %v5174_v20  ;;  %v5913_v20 = vsel %vm1845_vm0, %v13733_v1, -inf }
 0x65c   : > { %v13949_v38 = vpop.xlane.xlu0 %5803 }
 0x65d   : > { %17585 = vst [vmem:[#allocation52_spill] sm:$0xff] %v13949_v38  ;;  %5178 = vmax.xlane.f32.xlu1 %v5177_v14  ;;  %v17593_v14 = vld [vmem:[#allocation176_spill] sm:$0xff] }
 0x65e   : > { %v13955_v21 = vpop.xlane.xlu1 %5806  ;;  %v5192_v38 = vsel %vm1845_vm0, %v17593_v14, -inf }
 0x65f   : > { %17588 = vst [vmem:[#allocation111_spill] sm:$0xff] %v13955_v21  ;;  %5911 = vmax.xlane.f32.xlu0 %v5910_v44  ;;  %v17596_v44 = vld [vmem:[#allocation114_spill] sm:$0xff] }
 0x660   : > { %v13961_v62 = vpop.xlane.xlu0 %5085  ;;  %v5195_v21 = vsel %vm1845_vm0, %v17596_v44, -inf  ;;  %v17601_v44 = vld [vmem:[#allocation88_spill] sm:$0xff] }
 0x661   : > { %17590 = vst [vmem:[#allocation170_spill] sm:$0xff] %v13961_v62  ;;  %5914 = vmax.xlane.f32.xlu1 %v5913_v20  ;;  %v5928_v20 = vsel %vm1845_vm0, %v13743_v30, -inf  ;;  %v17604_v30 = vld [vmem:[#allocation91_spill] sm:$0xff] }
 0x662   : > { %v13967_v61 = vpop.xlane.xlu1 %5088 }
 0x663   : > { %17592 = vst [vmem:[#allocation117_spill] sm:$0xff] %v13967_v61  ;;  %5193 = vmax.xlane.f32.xlu0 %v5192_v38  ;;  %v5931_v38 = vsel %vm1845_vm0, %v13751_v42, -inf }
 0x664   : > { %v13973_v46 = vpop.xlane.xlu0 %5821 }
 0x665   : > { %17595 = vst [vmem:[#allocation116_spill] sm:$0xff] %v13973_v46  ;;  %5196 = vmax.xlane.f32.xlu1 %v5195_v21  ;;  %v17603_v21 = vld [vmem:[#allocation164_spill] sm:$0xff] }
 0x666   : > { %v13979_v59 = vpop.xlane.xlu1 %5824  ;;  %v5186_v46 = vsel %vm1845_vm0, %v17603_v21, -inf }
 0x667   : > { %17598 = vst [vmem:[#allocation63_spill] sm:$0xff] %v13979_v59  ;;  %5929 = vmax.xlane.f32.xlu0 %v5928_v20  ;;  %v17606_v20 = vld [vmem:[#allocation120_spill] sm:$0xff] }
 0x668   : > { %v13985_v57 = vpop.xlane.xlu0 %5079  ;;  %v5189_v59 = vsel %vm1845_vm0, %v17606_v20, -inf  ;;  %v17611_v20 = vld [vmem:[#allocation93_spill] sm:$0xff] }
 0x669   : > { %17600 = vst [vmem:[#allocation64_spill] sm:$0xff] %v13985_v57  ;;  %5932 = vmax.xlane.f32.xlu1 %v5931_v38  ;;  %v5922_v38 = vsel %vm1845_vm0, %v13747_v15, -inf  ;;  %v17614_v15 = vld [vmem:[#allocation11_spill] sm:$0xff] }
 0x66a   : > { %v13991_v13 = vpop.xlane.xlu1 %5082 }
 0x66b   : > { %17602 = vst [vmem:[#allocation60_spill] sm:$0xff] %v13991_v13  ;;  %5187 = vmax.xlane.f32.xlu0 %v5186_v46  ;;  %v5925_v46 = vsel %vm1845_vm0, %v13757_v45, -inf }
 0x66c   : > { %v13997_v62 = vpop.xlane.xlu0 %5815 }
 0x66d   : > { %17605 = vst [vmem:[#allocation62_spill] sm:$0xff] %v13997_v62  ;;  %5190 = vmax.xlane.f32.xlu1 %v5189_v59  ;;  %v17613_v59 = vld [vmem:[#allocation78_spill] sm:$0xff] }
 0x66e   : > { %v14003_v61 = vpop.xlane.xlu1 %5818  ;;  %v5204_v62 = vsel %vm1845_vm0, %v17613_v59, -inf }
 0x66f   : > { %17608 = vst [vmem:[#allocation123_spill] sm:$0xff] %v14003_v61  ;;  %5923 = vmax.xlane.f32.xlu0 %v5922_v38  ;;  %v17616_v38 = vld [vmem:[#allocation153_spill] sm:$0xff] }
 0x670   : > { %v14009_v1 = vpop.xlane.xlu0 %5097  ;;  %v5207_v61 = vsel %vm1845_vm0, %v17616_v38, -inf  ;;  %v17621_v38 = vld [vmem:[#allocation4_spill] sm:$0xff] }
 0x671   : > { %17610 = vst [vmem:[#allocation66_spill] sm:$0xff] %v14009_v1  ;;  %5926 = vmax.xlane.f32.xlu1 %v5925_v46  ;;  %v5940_v46 = vsel %vm1845_vm0, %v13767_v28, -inf  ;;  %v17624_v28 = vld [vmem:[#allocation94_spill] sm:$0xff] }
 0x672   : > { %v14015_v14 = vpop.xlane.xlu1 %5100 }
 0x673   : > { %17612 = vst [vmem:[#allocation119_spill] sm:$0xff] %v14015_v14  ;;  %5205 = vmax.xlane.f32.xlu0 %v5204_v62  ;;  %v5943_v62 = vsel %vm1845_vm0, %v13775_v36, -inf }
 0x674   : > { %v14021_v57 = vpop.xlane.xlu0 %5833 }
 0x675   : > { %17615 = vst [vmem:[#allocation173_spill] sm:$0xff] %v14021_v57  ;;  %5208 = vmax.xlane.f32.xlu1 %v5207_v61  ;;  %v17623_v61 = vld [vmem:[#allocation162_spill] sm:$0xff] }
 0x676   : > { %v14027_v13 = vpop.xlane.xlu1 %5836  ;;  %v5198_v57 = vsel %vm1845_vm0, %v17623_v61, -inf }
 0x677   : > { %17618 = vst [vmem:[#allocation122_spill] sm:$0xff] %v14027_v13  ;;  %5941 = vmax.xlane.f32.xlu0 %v5940_v46  ;;  %v17626_v46 = vld [vmem:[#allocation179_spill] sm:$0xff] }
 0x678   : > { %v14033_v42 = vpop.xlane.xlu0 %5091  ;;  %v5201_v13 = vsel %vm1845_vm0, %v17626_v46, -inf  ;;  %v17631_v46 = vld [vmem:[#allocation6_spill] sm:$0xff] }
 0x679   : > { %17620 = vst [vmem:[#allocation174_spill] sm:$0xff] %v14033_v42  ;;  %5944 = vmax.xlane.f32.xlu1 %v5943_v62  ;;  %v5934_v62 = vsel %vm1845_vm0, %v13771_v53, -inf  ;;  %v17634_v53 = vld [vmem:[#allocation102_spill] sm:$0xff] }
 0x67a   : > { %v14039_v21 = vpop.xlane.xlu1 %5094 }
 0x67b   : > { %17622 = vst [vmem:[#allocation125_spill] sm:$0xff] %v14039_v21  ;;  %5199 = vmax.xlane.f32.xlu0 %v5198_v57  ;;  %v5937_v57 = vsel %vm1845_vm0, %v13781_v29, -inf }
 0x67c   : > { %v14045_v1 = vpop.xlane.xlu0 %5827 }
 0x67d   : > { %17625 = vst [vmem:[#allocation68_spill] sm:$0xff] %v14045_v1  ;;  %5202 = vmax.xlane.f32.xlu1 %v5201_v13  ;;  %v17633_v13 = vld [vmem:[#allocation82_spill] sm:$0xff] }
 0x67e   : > { %v14051_v14 = vpop.xlane.xlu1 %5830  ;;  %v5216_v1 = vsel %vm1845_vm0, %v17633_v13, -inf }
 0x67f   : > { %17628 = vst [vmem:[#allocation20_spill] sm:$0xff] %v14051_v14  ;;  %5935 = vmax.xlane.f32.xlu0 %v5934_v62  ;;  %v17636_v62 = vld [vmem:[#allocation181_spill] sm:$0xff] }
 0x680   : > { %v14057_v45 = vpop.xlane.xlu0 %5109  ;;  %v5219_v14 = vsel %vm1845_vm0, %v17636_v62, -inf  ;;  %v17641_v62 = vld [vmem:[#allocation15_spill] sm:$0xff] }
 0x681   : > { %17630 = vst [vmem:[#allocation70_spill] sm:$0xff] %v14057_v45  ;;  %5938 = vmax.xlane.f32.xlu1 %v5937_v57  ;;  %v5952_v57 = vsel %vm1845_vm0, %v13791_v49, -inf  ;;  %v17644_v49 = vld [vmem:[#allocation166_spill] sm:$0xff] }
 0x682   : > { %v14063_v59 = vpop.xlane.xlu1 %5112 }
 0x683   : > { %17632 = vst [vmem:[#allocation124_spill] sm:$0xff] %v14063_v59  ;;  %5217 = vmax.xlane.f32.xlu0 %v5216_v1  ;;  %v5955_v1 = vsel %vm1845_vm0, %v13799_v27, -inf }
 0x684   : > { %v14069_v42 = vpop.xlane.xlu0 %5845 }
 0x685   : > { %17635 = vst [vmem:[#allocation10_spill] sm:$0xff] %v14069_v42  ;;  %5220 = vmax.xlane.f32.xlu1 %v5219_v14  ;;  %v17643_v14 = vld [vmem:[#allocation180_spill] sm:$0xff] }
 0x686   : > { %v14075_v21 = vpop.xlane.xlu1 %5848  ;;  %v5210_v42 = vsel %vm1845_vm0, %v17643_v14, -inf }
 0x687   : > { %17638 = vst [vmem:[#allocation19_spill] sm:$0xff] %v14075_v21  ;;  %5953 = vmax.xlane.f32.xlu0 %v5952_v57  ;;  %v17646_v57 = vld [vmem:[#allocation85_spill] sm:$0xff] }
 0x688   : > { %v14081_v36 = vpop.xlane.xlu0 %5103  ;;  %v5213_v21 = vsel %vm1845_vm0, %v17646_v57, -inf  ;;  %v17651_v57 = vld [vmem:[#allocation8_spill] sm:$0xff] }
 0x689   : > { %17640 = vst [vmem:[#allocation3_spill] sm:$0xff] %v14081_v36  ;;  %5956 = vmax.xlane.f32.xlu1 %v5955_v1  ;;  %v5946_v1 = vsel %vm1845_vm0, %v13795_v22, -inf  ;;  %v17654_v22 = vld [vmem:[#allocation105_spill] sm:$0xff] }
 0x68a   : > { %v14087_v61 = vpop.xlane.xlu1 %5106 }
 0x68b   : > { %17642 = vst [vmem:[#allocation39_spill] sm:$0xff] %v14087_v61  ;;  %5211 = vmax.xlane.f32.xlu0 %v5210_v42  ;;  %v5949_v42 = vsel %vm1845_vm0, %v13805_v25, -inf }
 0x68c   : > { %v14093_v45 = vpop.xlane.xlu0 %5839 }
 0x68d   : > { %17645 = vst [vmem:[#allocation5_spill] sm:$0xff] %v14093_v45  ;;  %5214 = vmax.xlane.f32.xlu1 %v5213_v21  ;;  %v17653_v21 = vld [vmem:[#allocation134_spill] sm:$0xff] }
 0x68e   : > { %v14099_v59 = vpop.xlane.xlu1 %5842  ;;  %v5228_v45 = vsel %vm1845_vm0, %v17653_v21, -inf  ;;  %v17678_v21 = vld [vmem:[#allocation150_spill] sm:$0xff] }
 0x68f   : > { %17648 = vst [vmem:[#allocation7_spill] sm:$0xff] %v14099_v59  ;;  %5947 = vmax.xlane.f32.xlu0 %v5946_v1  ;;  %v17656_v1 = vld [vmem:[#allocation138_spill] sm:$0xff] }
 0x690   : > { %v14105_v29 = vpop.xlane.xlu0 %5121  ;;  %v5231_v59 = vsel %vm1845_vm0, %v17656_v1, -inf  ;;  %v17661_v1 = vld [vmem:[#allocation168_spill] sm:$0xff] }
 0x691   : > { %17650 = vst [vmem:[#allocation12_spill] sm:$0xff] %v14105_v29  ;;  %5950 = vmax.xlane.f32.xlu1 %v5949_v42  ;;  %v5964_v42 = vsel %vm1845_vm0, %v13815_v54, -inf }
 0x692   : > { %v14111_v13 = vpop.xlane.xlu1 %5124 }
 0x693   : > { %17652 = vst [vmem:[#allocation35_spill] sm:$0xff] %v14111_v13  ;;  %5229 = vmax.xlane.f32.xlu0 %v5228_v45  ;;  %v5967_v45 = vsel %vm1845_vm0, %v13823_v11, -inf }
 0x694   : > { %v14117_v36 = vpop.xlane.xlu0 %5857 }
 0x695   : > { %17655 = vst [vmem:[#allocation14_spill] sm:$0xff] %v14117_v36  ;;  %5232 = vmax.xlane.f32.xlu1 %v5231_v59  ;;  %v17663_v59 = vld [vmem:[#allocation182_spill] sm:$0xff] }
 0x696   : > { %v14123_v61 = vpop.xlane.xlu1 %5860  ;;  %v5222_v36 = vsel %vm1845_vm0, %v17663_v59, -inf }
 0x697   : > { %17658 = vst [vmem:[#allocation21_spill] sm:$0xff] %v14123_v61  ;;  %5965 = vmax.xlane.f32.xlu0 %v5964_v42  ;;  %v17666_v42 = vld [vmem:[#allocation140_spill] sm:$0xff] }
 0x698   : > { %v14129_v27 = vpop.xlane.xlu0 %5115  ;;  %v5225_v61 = vsel %vm1845_vm0, %v17666_v42, -inf  ;;  %v17671_v42 = vsub.f32 %v13456_v50, %v13863_v16  ;;  %v17676_v50 = vld [vmem:[#allocation98_spill] sm:$0xff] }
 0x699   : > { %17660 = vst [vmem:[#allocation9_spill] sm:$0xff] %v14129_v27  ;;  %5968 = vmax.xlane.f32.xlu1 %v5967_v45  ;;  %v5958_v45 = vsel %vm1845_vm0, %v13819_v48, -inf  ;;  %v17673_v48 = vld [vmem:[#allocation100_spill] sm:$0xff]  ;;  %v5243_v16 = vsel %vm1845_vm0, %v17676_v50, -inf  ;;  %v17738_v50 = vld [vmem:[#allocation103_spill] sm:$0xff] }
 0x69a   : > { %v14135_v14 = vpop.xlane.xlu1 %5118  ;;  %v5314_v54 = vmul.f32 1.442695, %v17671_v42  ;;  %v5240_v11 = vsel %vm1845_vm0, %v17673_v48, -inf  ;;  %v17692_v48 = vsub.f32 %v13480_v0, %v13913_v19  ;;  %v17701_v0 = vsub.f32 %v13513_v4, %v13931_v41  ;;  %v17708_v4 = vld [vmem:[#allocation90_spill] sm:$0xff] }
 0x69b   : > { %17662 = vst [vmem:[#allocation16_spill] sm:$0xff] %v14135_v14  ;;  %5223 = vmax.xlane.f32.xlu0 %v5222_v36  ;;  %v17670_v36 = vld [vmem:[#allocation151_spill] sm:$0xff] }
 0x69c   : > { %v14141_v29 = vpop.xlane.xlu0 %5851  ;;  %v5961_v14 = vsel %vm1845_vm0, %v17670_v36, -inf  ;;  %9698 = vpow2.f32 %v5314_v54  ;;  %v17680_v54 = vld [vmem:[#allocation147_spill] sm:$0xff] }
 0x69d   : > { %17665 = vst [vmem:[#allocation22_spill] sm:$0xff] %v14141_v29  ;;  %5226 = vmax.xlane.f32.xlu1 %v5225_v61  ;;  %v17672_v61 = vld [vmem:[#allocation110_spill] sm:$0xff] }
 0x69e   : > { %v14147_v13 = vpop.xlane.xlu1 %5854 }
 0x69f   : > { %17668 = vst [vmem:[#allocation18_spill] sm:$0xff] %v14147_v13  ;;  %5959 = vmax.xlane.f32.xlu0 %v5958_v45  ;;  %v17674_v45 = vsub.f32 %v13467_v12, %v13869_v6  ;;  %v17675_v13 = vld [vmem:[#allocation136_spill] sm:$0xff]  ;;  %v5976_v6 = vsel %vm1845_vm0, %v13839_v43, -inf }
 0x6a0   : > { %v14153_v25 = vpop.xlane.xlu0 %5133  ;;  %v17732_v43 = vld [vmem:[#allocation112_spill] sm:$0xff] }
 0x6a1   : > { %5962 = vmax.xlane.f32.xlu1 %v5961_v14  ;;  %v5316_v27 = vmul.f32 1.442695, %v17674_v45  ;;  %v17677_v14 = vsub.f32 %v13477_v24, %v13877_v47  ;;  %v5979_v47 = vsel %vm1845_vm0, %v13845_v26, -inf  ;;  %v17690_v26 = vld [vmem:[#allocation92_spill] sm:$0xff] }
 0x6a2   : > { %v14162_v29 = vpop.xlane.xlu1 %5136 }
 0x6a3   : > { %5241 = vmax.xlane.f32.xlu0 %v5240_v11  ;;  %v6050_v42 = vmul.f32 1.442695, %v17677_v14  ;;  %9700 = vpow2.f32 %v5316_v27  ;;  %v17679_v11 = vsub.f32 %v13489_v3, %v13883_v58  ;;  %v17682_v27 = vld [vmem:[#allocation67_spill] sm:$0xff]  ;;  %v17683_v58 = vld [vmem:[#allocation146_spill] sm:$0xff] }
 0x6a4   : > { %v14171_v59 = vpop.xlane.xlu0 %5869 }
 0x6a5   : > { %5244 = vmax.xlane.f32.xlu1 %v5243_v16  ;;  %v6052_v45 = vmul.f32 1.442695, %v17679_v11  ;;  %9702 = vpow2.f32 %v6050_v42  ;;  %v17681_v16 = vsub.f32 %v13460_v5, %v13889_v17  ;;  %v5234_v11 = vsel %vm1845_vm0, %v17683_v58, -inf  ;;  %v17685_v42 = vld [vmem:[#allocation141_spill] sm:$0xff]  ;;  %v17716_v58 = vld [vmem:[#allocation95_spill] sm:$0xff] }
 0x6a6   : > { %v14180_v12 = vpop.xlane.xlu1 %5872  ;;  %v5237_v17 = vsel %vm1845_vm0, %v13833_v9, -inf }
 0x6a7   : > { %5977 = vmax.xlane.f32.xlu0 %v5976_v6  ;;  %v5310_v14 = vmul.f32 1.442695, %v17681_v16  ;;  %9704 = vpow2.f32 %v6052_v45  ;;  %v17684_v6 = vsub.f32 %v13471_v34, %v13895_v2  ;;  %v17687_v45 = vld [vmem:[#allocation155_spill] sm:$0xff]  ;;  %v5970_v2 = vsel %vm1845_vm0, %v13841_v35, -inf  ;;  %v17693_v35 = vld [vmem:[#allocation142_spill] sm:$0xff] }
 0x6a8   : > { %v14189_v24 = vpop.xlane.xlu0 %5127 }
 0x6a9   : > { %5980 = vmax.xlane.f32.xlu1 %v5979_v47  ;;  %v5312_v36 = vmul.f32 1.442695, %v17684_v6  ;;  %9706 = vpow2.f32 %v5310_v14  ;;  %v17686_v47 = vsub.f32 %v13482_v60, %v13901_v31  ;;  %v17689_v6 = vsub.f32 %v13493_v52, %v13907_v23 }
 0x6aa   : > { %v14198_v3 = vpop.xlane.xlu1 %5130  ;;  %v17695_v60 = vsub.f32 %v13491_v33, %v13919_v39  ;;  %v17698_v52 = vsub.f32 %v13503_v7, %v13925_v51  ;;  %v17703_v33 = vsub.f32 %v13487_v10, %v13937_v56  ;;  %v17706_v7 = vsub.f32 %v17584_v63, %v13943_v40  ;;  %v17713_v10 = vld [vmem:[#allocation126_spill] sm:$0xff] }
 0x6ab   : > { %5235 = vmax.xlane.f32.xlu0 %v5234_v11  ;;  %v6046_v16 = vmul.f32 1.442695, %v17686_v47  ;;  %v14220_v11 = vpop.eup %9698  ;;  %9708 = vpow2.f32 %v5312_v36  ;;  %v6048_v14 = vmul.f32 1.442695, %v17689_v6  ;;  %v5322_v36 = vmul.f32 1.442695, %v17692_v48 }
 0x6ac   : > { %v14207_v5 = vpop.xlane.xlu0 %5863  ;;  %17688 = vst [vmem:[#allocation40_spill] sm:$0xff] %v14220_v11  ;;  %v17719_v40 = vld [vmem:[#allocation170_spill] sm:$0xff] }
 0x6ad   : > { %5238 = vmax.xlane.f32.xlu1 %v5237_v17  ;;  %v5973_v17 = vsel %vm1845_vm0, %v13847_v8, -inf  ;;  %v14231_v47 = vpop.eup %9700  ;;  %9710 = vpow2.f32 %v6046_v16  ;;  %v5324_v16 = vmul.f32 1.442695, %v17695_v60  ;;  %v17696_v8 = vld [vmem:[#allocation144_spill] sm:$0xff] }
 0x6ae   : > { %v14216_v34 = vpop.xlane.xlu1 %5866  ;;  %17691 = vst [vmem:[#allocation36_spill] sm:$0xff] %v14231_v47  ;;  %9712 = vpow2.f32 %v6048_v14  ;;  %v5447_v19 = vsel %vm1845_vm0, %v14231_v47, 0.0  ;;  %v6058_v14 = vmul.f32 1.442695, %v17698_v52  ;;  %v17711_v47 = vld [vmem:[#allocation113_spill] sm:$0xff] }
 0x6af   : > { %5971 = vmax.xlane.f32.xlu0 %v5970_v2  ;;  %v5444_v2 = vsel %vm1845_vm0, %v14220_v11, 0.0  ;;  %v14242_v6 = vpop.eup %9702  ;;  %9714 = vpow2.f32 %v5322_v36  ;;  %v17699_v11 = vld [vmem:[#allocation171_spill] sm:$0xff]  ;;  %v6060_v36 = vmul.f32 1.442695, %v17701_v0 }
 0x6b0   : > { %v14227_v31 = vpop.xlane.xlu0 %5145  ;;  %17694 = vst [vmem:[#allocation23_spill] sm:$0xff] %v14242_v6  ;;  %v6180_v60 = vsel %vm1845_vm0, %v14242_v6, 0.0  ;;  %9716 = vpow2.f32 %v5324_v16  ;;  %v5318_v16 = vmul.f32 1.442695, %v17703_v33  ;;  %v17704_v6 = vld [vmem:[#allocation154_spill] sm:$0xff] }
 0x6b1   : > { %5974 = vmax.xlane.f32.xlu1 %v5973_v17  ;;  %v14253_v17 = vpop.eup %9704  ;;  %9718 = vpow2.f32 %v6058_v14  ;;  %v5320_v14 = vmul.f32 1.442695, %v17706_v7 }
 0x6b2   : > { %v14238_v23 = vpop.xlane.xlu1 %5148  ;;  %17697 = vst [vmem:[#allocation24_spill] sm:$0xff] %v14253_v17  ;;  %v6183_v52 = vsel %vm1845_vm0, %v14253_v17, 0.0  ;;  %9720 = vpow2.f32 %v6060_v36  ;;  %v17709_v17 = vld [vmem:[#allocation52_spill] sm:$0xff] }
 0x6b3   : > { %5445 = vadd.xlane.f32.xlu0 %v5444_v2  ;;  %v14264_v2 = vpop.eup %9706  ;;  %9722 = vpow2.f32 %v5318_v16 }
 0x6b4   : > { %v14249_v48 = vpop.xlane.xlu0 %5881  ;;  %17700 = vst [vmem:[#allocation41_spill] sm:$0xff] %v14264_v2  ;;  %v5438_v0 = vsel %vm1845_vm0, %v14264_v2, 0.0  ;;  %v17710_v2 = vsub.f32 %v17708_v4, %v17709_v17  ;;  %9724 = vpow2.f32 %v5320_v14  ;;  %v17724_v17 = vld [vmem:[#allocation117_spill] sm:$0xff] }
 0x6b5   : > { %5448 = vadd.xlane.f32.xlu1 %v5447_v19  ;;  %v14275_v19 = vpop.eup %9708 }
 0x6b6   : > { %v14260_v39 = vpop.xlane.xlu1 %5884  ;;  %17702 = vst [vmem:[#allocation37_spill] sm:$0xff] %v14275_v19  ;;  %v5441_v33 = vsel %vm1845_vm0, %v14275_v19, 0.0  ;;  %v6054_v36 = vmul.f32 1.442695, %v17710_v2  ;;  %v17714_v19 = vld [vmem:[#allocation111_spill] sm:$0xff] }
 0x6b7   : > { %6181 = vadd.xlane.f32.xlu0 %v6180_v60  ;;  %v14286_v60 = vpop.eup %9710  ;;  %v17715_v9 = vsub.f32 %v17713_v10, %v17714_v19  ;;  %v17729_v19 = vld [vmem:[#allocation87_spill] sm:$0xff] }
 0x6b8   : > { %v14271_v51 = vpop.xlane.xlu0 %5139  ;;  %17705 = vst [vmem:[#allocation25_spill] sm:$0xff] %v14286_v60  ;;  %v6174_v7 = vsel %vm1845_vm0, %v14286_v60, 0.0  ;;  %9726 = vpow2.f32 %v6054_v36  ;;  %v17720_v60 = vsub.f32 %v17591_v18, %v17719_v40  ;;  %v17735_v18 = vld [vmem:[#allocation2_spill] sm:$0xff] }
 0x6b9   : > { %6184 = vadd.xlane.f32.xlu1 %v6183_v52  ;;  %v14297_v52 = vpop.eup %9712  ;;  %v6056_v16 = vmul.f32 1.442695, %v17715_v9 }
 0x6ba   : > { %v14282_v41 = vpop.xlane.xlu1 %5142  ;;  %17707 = vst [vmem:[#allocation26_spill] sm:$0xff] %v14297_v52  ;;  %v6177_v4 = vsel %vm1845_vm0, %v14297_v52, 0.0  ;;  %v5330_v14 = vmul.f32 1.442695, %v17720_v60  ;;  %v17725_v52 = vsub.f32 %v17594_v32, %v17724_v17  ;;  %v17741_v32 = vld [vmem:[#allocation64_spill] sm:$0xff] }
 0x6bb   : > { %5439 = vadd.xlane.f32.xlu0 %v5438_v0  ;;  %v14308_v0 = vpop.eup %9714  ;;  %9728 = vpow2.f32 %v6056_v16 }
 0x6bc   : > { %v14293_v56 = vpop.xlane.xlu0 %5875  ;;  %17712 = vst [vmem:[#allocation42_spill] sm:$0xff] %v14308_v0  ;;  %v5456_v10 = vsel %vm1845_vm0, %v14308_v0, 0.0  ;;  %v5332_v36 = vmul.f32 1.442695, %v17725_v52  ;;  %9730 = vpow2.f32 %v5330_v14  ;;  %v17730_v0 = vld [vmem:[#allocation116_spill] sm:$0xff] }
 0x6bd   : > { %5442 = vadd.xlane.f32.xlu1 %v5441_v33  ;;  %v14319_v33 = vpop.eup %9716 }
 0x6be   : > { %v14304_v63 = vpop.xlane.xlu1 %5878  ;;  %17718 = vst [vmem:[#allocation27_spill] sm:$0xff] %v14319_v33  ;;  %v5459_v40 = vsel %vm1845_vm0, %v14319_v33, 0.0  ;;  %9732 = vpow2.f32 %v5332_v36  ;;  %v17736_v33 = vld [vmem:[#allocation63_spill] sm:$0xff] }
 0x6bf   : > { %6175 = vadd.xlane.f32.xlu0 %v6174_v7  ;;  %v14330_v7 = vpop.eup %9718 }
 0x6c0   : > { %v14315_v2 = vpop.xlane.xlu0 %5157  ;;  %17723 = vst [vmem:[#allocation43_spill] sm:$0xff] %v14330_v7  ;;  %v6192_v17 = vsel %vm1845_vm0, %v14330_v7, 0.0  ;;  %v17742_v7 = vsub.f32 %v17601_v44, %v17741_v32  ;;  %v17757_v44 = vld [vmem:[#allocation13_spill] sm:$0xff] }
 0x6c1   : > { %17717 = vst [vmem:[#allocation38_spill] sm:$0xff] %v14315_v2  ;;  %6178 = vadd.xlane.f32.xlu1 %v6177_v4  ;;  %v14341_v4 = vpop.eup %9720  ;;  %v17731_v2 = vsub.f32 %v17729_v19, %v17730_v0  ;;  %v17746_v0 = vld [vmem:[#allocation60_spill] sm:$0xff] }
 0x6c2   : > { %v14326_v9 = vpop.xlane.xlu1 %5160  ;;  %17728 = vst [vmem:[#allocation29_spill] sm:$0xff] %v14341_v4  ;;  %v6195_v19 = vsel %vm1845_vm0, %v14341_v4, 0.0  ;;  %v5326_v36 = vmul.f32 1.442695, %v17742_v7  ;;  %v17747_v4 = vsub.f32 %v17604_v30, %v17746_v0  ;;  %v17763_v30 = vld [vmem:[#allocation66_spill] sm:$0xff] }
 0x6c3   : > { %17722 = vst [vmem:[#allocation28_spill] sm:$0xff] %v14326_v9  ;;  %5457 = vadd.xlane.f32.xlu0 %v5456_v10  ;;  %v6066_v16 = vmul.f32 1.442695, %v17731_v2  ;;  %v14352_v10 = vpop.eup %9722  ;;  %v17737_v9 = vsub.f32 %v17735_v18, %v17736_v33  ;;  %v17751_v33 = vld [vmem:[#allocation89_spill] sm:$0xff] }
 0x6c4   : > { %v14337_v60 = vpop.xlane.xlu0 %5893  ;;  %17734 = vst [vmem:[#allocation45_spill] sm:$0xff] %v14352_v10  ;;  %v5450_v18 = vsel %vm1845_vm0, %v14352_v10, 0.0  ;;  %v17752_v10 = vld [vmem:[#allocation62_spill] sm:$0xff] }
 0x6c5   : > { %17727 = vst [vmem:[#allocation44_spill] sm:$0xff] %v14337_v60  ;;  %5460 = vadd.xlane.f32.xlu1 %v5459_v40  ;;  %v6068_v14 = vmul.f32 1.442695, %v17737_v9  ;;  %v14363_v40 = vpop.eup %9724  ;;  %9734 = vpow2.f32 %v6066_v16  ;;  %v5328_v16 = vmul.f32 1.442695, %v17747_v4  ;;  %v17754_v60 = vld [vmem:[#allocation75_spill] sm:$0xff] }
 0x6c6   : > { %v14348_v52 = vpop.xlane.xlu1 %5896  ;;  %17740 = vst [vmem:[#allocation31_spill] sm:$0xff] %v14363_v40  ;;  %v5453_v32 = vsel %vm1845_vm0, %v14363_v40, 0.0  ;;  %v17758_v40 = vld [vmem:[#allocation123_spill] sm:$0xff] }
 0x6c7   : > { %17733 = vst [vmem:[#allocation30_spill] sm:$0xff] %v14348_v52  ;;  %6193 = vadd.xlane.f32.xlu0 %v6192_v17  ;;  %v14374_v17 = vpop.eup %9726  ;;  %9736 = vpow2.f32 %v6068_v14  ;;  %v17760_v52 = vld [vmem:[#allocation158_spill] sm:$0xff] }
 0x6c8   : > { %v14359_v2 = vpop.xlane.xlu0 %5151  ;;  %17745 = vst [vmem:[#allocation47_spill] sm:$0xff] %v14374_v17  ;;  %9738 = vpow2.f32 %v5326_v36  ;;  %v6186_v0 = vsel %vm1845_vm0, %v14374_v17, 0.0  ;;  %v17764_v17 = vsub.f32 %v17611_v20, %v17763_v30  ;;  %v17779_v20 = vld [vmem:[#allocation51_spill] sm:$0xff] }
 0x6c9   : > { %17739 = vst [vmem:[#allocation46_spill] sm:$0xff] %v14359_v2  ;;  %6196 = vadd.xlane.f32.xlu1 %v6195_v19  ;;  %v14385_v19 = vpop.eup %9728  ;;  %v17753_v2 = vsub.f32 %v17751_v33, %v17752_v10  ;;  %9740 = vpow2.f32 %v5328_v16  ;;  %v17768_v10 = vld [vmem:[#allocation119_spill] sm:$0xff] }
 0x6ca   : > { %v14370_v9 = vpop.xlane.xlu1 %5154  ;;  %17750 = vst [vmem:[#allocation33_spill] sm:$0xff] %v14385_v19  ;;  %v6189_v33 = vsel %vm1845_vm0, %v14385_v19, 0.0  ;;  %v5338_v16 = vmul.f32 1.442695, %v17764_v17  ;;  %v17769_v19 = vsub.f32 %v17614_v15, %v17768_v10  ;;  %v17785_v15 = vld [vmem:[#allocation174_spill] sm:$0xff] }
 0x6cb   : > { %17744 = vst [vmem:[#allocation32_spill] sm:$0xff] %v14370_v9  ;;  %5451 = vadd.xlane.f32.xlu0 %v5450_v18  ;;  %v6062_v14 = vmul.f32 1.442695, %v17753_v2  ;;  %v14396_v18 = vpop.eup %9730  ;;  %v17759_v9 = vsub.f32 %v17757_v44, %v17758_v40  ;;  %v17773_v40 = vld [vmem:[#allocation99_spill] sm:$0xff] }
 0x6cc   : > { %v14381_v7 = vpop.xlane.xlu0 %5887  ;;  %17756 = vst [vmem:[#allocation49_spill] sm:$0xff] %v14396_v18  ;;  %v5468_v44 = vsel %vm1845_vm0, %v14396_v18, 0.0  ;;  %v17774_v18 = vld [vmem:[#allocation173_spill] sm:$0xff] }
 0x6cd   : > { %17749 = vst [vmem:[#allocation48_spill] sm:$0xff] %v14381_v7  ;;  %5454 = vadd.xlane.f32.xlu1 %v5453_v32  ;;  %v6064_v36 = vmul.f32 1.442695, %v17759_v9  ;;  %v14407_v32 = vpop.eup %9732  ;;  %9742 = vpow2.f32 %v6062_v14  ;;  %v5340_v14 = vmul.f32 1.442695, %v17769_v19  ;;  %v17776_v7 = vld [vmem:[#allocation163_spill] sm:$0xff] }
 0x6ce   : > { %v14392_v4 = vpop.xlane.xlu1 %5890  ;;  %17762 = vst [vmem:[#allocation84_spill] sm:$0xff] %v14407_v32  ;;  %v5471_v30 = vsel %vm1845_vm0, %v14407_v32, 0.0  ;;  %v17780_v32 = vld [vmem:[#allocation122_spill] sm:$0xff] }
 0x6cf   : > { %17755 = vst [vmem:[#allocation34_spill] sm:$0xff] %v14392_v4  ;;  %6187 = vadd.xlane.f32.xlu0 %v6186_v0  ;;  %v14418_v0 = vpop.eup %9734  ;;  %9744 = vpow2.f32 %v6064_v36  ;;  %v17782_v4 = vld [vmem:[#allocation56_spill] sm:$0xff] }
 0x6d0   : > { %v14403_v2 = vpop.xlane.xlu0 %5169  ;;  %17767 = vst [vmem:[#allocation133_spill] sm:$0xff] %v14418_v0  ;;  %9746 = vpow2.f32 %v5338_v16  ;;  %v6204_v10 = vsel %vm1845_vm0, %v14418_v0, 0.0  ;;  %v17786_v0 = vsub.f32 %v17621_v38, %v17785_v15  ;;  %v17801_v38 = vld [vmem:[#allocation96_spill] sm:$0xff] }
 0x6d1   : > { %17761 = vst [vmem:[#allocation50_spill] sm:$0xff] %v14403_v2  ;;  %6190 = vadd.xlane.f32.xlu1 %v6189_v33  ;;  %v14429_v33 = vpop.eup %9736  ;;  %v17775_v2 = vsub.f32 %v17773_v40, %v17774_v18  ;;  %9748 = vpow2.f32 %v5340_v14  ;;  %v17790_v18 = vld [vmem:[#allocation125_spill] sm:$0xff] }
 0x6d2   : > { %v14414_v9 = vpop.xlane.xlu1 %5172  ;;  %17772 = vst [vmem:[#allocation91_spill] sm:$0xff] %v14429_v33  ;;  %v6207_v40 = vsel %vm1845_vm0, %v14429_v33, 0.0  ;;  %v5334_v14 = vmul.f32 1.442695, %v17786_v0  ;;  %v17791_v33 = vsub.f32 %v17624_v28, %v17790_v18  ;;  %v17807_v28 = vld [vmem:[#allocation70_spill] sm:$0xff] }
 0x6d3   : > { %17766 = vst [vmem:[#allocation86_spill] sm:$0xff] %v14414_v9  ;;  %5469 = vadd.xlane.f32.xlu0 %v5468_v44  ;;  %v6074_v36 = vmul.f32 1.442695, %v17775_v2  ;;  %v14440_v44 = vpop.eup %9738  ;;  %v17781_v9 = vsub.f32 %v17779_v20, %v17780_v32  ;;  %v17795_v32 = vld [vmem:[#allocation97_spill] sm:$0xff] }
 0x6d4   : > { %v14425_v17 = vpop.xlane.xlu0 %5905  ;;  %17778 = vst [vmem:[#allocation11_spill] sm:$0xff] %v14440_v44  ;;  %v5462_v20 = vsel %vm1845_vm0, %v14440_v44, 0.0  ;;  %v17796_v44 = vld [vmem:[#allocation68_spill] sm:$0xff] }
 0x6d5   : > { %17771 = vst [vmem:[#allocation88_spill] sm:$0xff] %v14425_v17  ;;  %5472 = vadd.xlane.f32.xlu1 %v5471_v30  ;;  %v6076_v16 = vmul.f32 1.442695, %v17781_v9  ;;  %v14451_v30 = vpop.eup %9740  ;;  %9750 = vpow2.f32 %v6074_v36  ;;  %v5336_v36 = vmul.f32 1.442695, %v17791_v33  ;;  %v17798_v17 = vld [vmem:[#allocation160_spill] sm:$0xff] }
 0x6d6   : > { %v14436_v19 = vpop.xlane.xlu1 %5908  ;;  %17784 = vst [vmem:[#allocation94_spill] sm:$0xff] %v14451_v30  ;;  %v5465_v15 = vsel %vm1845_vm0, %v14451_v30, 0.0  ;;  %v17802_v30 = vld [vmem:[#allocation20_spill] sm:$0xff] }
 0x6d7   : > { %17777 = vst [vmem:[#allocation93_spill] sm:$0xff] %v14436_v19  ;;  %6205 = vadd.xlane.f32.xlu0 %v6204_v10  ;;  %v14462_v10 = vpop.eup %9742  ;;  %9752 = vpow2.f32 %v6076_v16  ;;  %v17804_v19 = vld [vmem:[#allocation161_spill] sm:$0xff] }
 0x6d8   : > { %v14447_v2 = vpop.xlane.xlu0 %5163  ;;  %17789 = vst [vmem:[#allocation102_spill] sm:$0xff] %v14462_v10  ;;  %9754 = vpow2.f32 %v5334_v14  ;;  %v6198_v18 = vsel %vm1845_vm0, %v14462_v10, 0.0  ;;  %v17808_v10 = vsub.f32 %v17631_v46, %v17807_v28  ;;  %v17823_v46 = vld [vmem:[#allocation167_spill] sm:$0xff] }
 0x6d9   : > { %17783 = vst [vmem:[#allocation4_spill] sm:$0xff] %v14447_v2  ;;  %6208 = vadd.xlane.f32.xlu1 %v6207_v40  ;;  %v14473_v40 = vpop.eup %9744  ;;  %v17797_v2 = vsub.f32 %v17795_v32, %v17796_v44  ;;  %9756 = vpow2.f32 %v5336_v36  ;;  %v17812_v44 = vld [vmem:[#allocation124_spill] sm:$0xff] }
 0x6da   : > { %v14458_v9 = vpop.xlane.xlu1 %5166  ;;  %17794 = vst [vmem:[#allocation166_spill] sm:$0xff] %v14473_v40  ;;  %v6201_v32 = vsel %vm1845_vm0, %v14473_v40, 0.0  ;;  %v5346_v36 = vmul.f32 1.442695, %v17808_v10  ;;  %v17813_v40 = vsub.f32 %v17634_v53, %v17812_v44  ;;  %v17829_v53 = vld [vmem:[#allocation3_spill] sm:$0xff] }
 0x6db   : > { %17788 = vst [vmem:[#allocation6_spill] sm:$0xff] %v14458_v9  ;;  %5463 = vadd.xlane.f32.xlu0 %v5462_v20  ;;  %v6070_v16 = vmul.f32 1.442695, %v17797_v2  ;;  %v14484_v20 = vpop.eup %9746  ;;  %v17803_v9 = vsub.f32 %v17801_v38, %v17802_v30  ;;  %v17817_v30 = vld [vmem:[#allocation59_spill] sm:$0xff] }
 0x6dc   : > { %v14469_v0 = vpop.xlane.xlu0 %5899  ;;  %17800 = vst [vmem:[#allocation105_spill] sm:$0xff] %v14484_v20  ;;  %v5480_v38 = vsel %vm1845_vm0, %v14484_v20, 0.0  ;;  %v17818_v20 = vld [vmem:[#allocation10_spill] sm:$0xff] }
 0x6dd   : > { %17793 = vst [vmem:[#allocation15_spill] sm:$0xff] %v14469_v0  ;;  %5466 = vadd.xlane.f32.xlu1 %v5465_v15  ;;  %v6072_v14 = vmul.f32 1.442695, %v17803_v9  ;;  %v14495_v15 = vpop.eup %9748  ;;  %9758 = vpow2.f32 %v6070_v16  ;;  %v5348_v16 = vmul.f32 1.442695, %v17813_v40  ;;  %v17820_v0 = vld [vmem:[#allocation175_spill] sm:$0xff] }
 0x6de   : > { %v14480_v33 = vpop.xlane.xlu1 %5902  ;;  %17806 = vst [vmem:[#allocation110_spill] sm:$0xff] %v14495_v15  ;;  %v5483_v28 = vsel %vm1845_vm0, %v14495_v15, 0.0  ;;  %v17824_v15 = vld [vmem:[#allocation19_spill] sm:$0xff] }
 0x6df   : > { %17799 = vst [vmem:[#allocation8_spill] sm:$0xff] %v14480_v33  ;;  %6199 = vadd.xlane.f32.xlu0 %v6198_v18  ;;  %v14506_v18 = vpop.eup %9750  ;;  %9760 = vpow2.f32 %v6072_v14  ;;  %v17826_v33 = vld [vmem:[#allocation73_spill] sm:$0xff] }
 0x6e0   : > { %v14491_v2 = vpop.xlane.xlu0 %5181  ;;  %17811 = vst [vmem:[#allocation150_spill] sm:$0xff] %v14506_v18  ;;  %9762 = vpow2.f32 %v5346_v36  ;;  %v6216_v44 = vsel %vm1845_vm0, %v14506_v18, 0.0  ;;  %v17830_v18 = vsub.f32 %v17641_v62, %v17829_v53  ;;  %v17845_v62 = vld [vmem:[#allocation57_spill] sm:$0xff] }
 0x6e1   : > { %17805 = vst [vmem:[#allocation168_spill] sm:$0xff] %v14491_v2  ;;  %6202 = vadd.xlane.f32.xlu1 %v6201_v32  ;;  %v14517_v32 = vpop.eup %9752  ;;  %v17819_v2 = vsub.f32 %v17817_v30, %v17818_v20  ;;  %9764 = vpow2.f32 %v5348_v16  ;;  %v17834_v20 = vld [vmem:[#allocation39_spill] sm:$0xff] }
 0x6e2   : > { %v14502_v9 = vpop.xlane.xlu1 %5184  ;;  %17816 = vst [vmem:[#allocation67_spill] sm:$0xff] %v14517_v32  ;;  %v6219_v30 = vsel %vm1845_vm0, %v14517_v32, 0.0  ;;  %v5342_v16 = vmul.f32 1.442695, %v17830_v18  ;;  %v17835_v32 = vsub.f32 %v17644_v49, %v17834_v20  ;;  %v17851_v49 = vld [vmem:[#allocation12_spill] sm:$0xff] }
 0x6e3   : > { %17810 = vst [vmem:[#allocation136_spill] sm:$0xff] %v14502_v9  ;;  %5481 = vadd.xlane.f32.xlu0 %v5480_v38  ;;  %v6082_v14 = vmul.f32 1.442695, %v17819_v2  ;;  %v14528_v38 = vpop.eup %9754  ;;  %v17825_v9 = vsub.f32 %v17823_v46, %v17824_v15  ;;  %v17839_v15 = vld [vmem:[#allocation17_spill] sm:$0xff] }
 0x6e4   : > { %v14513_v10 = vpop.xlane.xlu0 %5917  ;;  %17822 = vst [vmem:[#allocation155_spill] sm:$0xff] %v14528_v38  ;;  %v5474_v46 = vsel %vm1845_vm0, %v14528_v38, 0.0  ;;  %v17840_v38 = vld [vmem:[#allocation5_spill] sm:$0xff] }
 0x6e5   : > { %17815 = vst [vmem:[#allocation147_spill] sm:$0xff] %v14513_v10  ;;  %5484 = vadd.xlane.f32.xlu1 %v5483_v28  ;;  %v6084_v36 = vmul.f32 1.442695, %v17825_v9  ;;  %v14539_v28 = vpop.eup %9756  ;;  %9766 = vpow2.f32 %v6082_v14  ;;  %v5344_v14 = vmul.f32 1.442695, %v17835_v32  ;;  %v17842_v10 = vld [vmem:[#allocation121_spill] sm:$0xff] }
 0x6e6   : > { %v14524_v40 = vpop.xlane.xlu1 %5920  ;;  %17828 = vst [vmem:[#allocation142_spill] sm:$0xff] %v14539_v28  ;;  %v5477_v53 = vsel %vm1845_vm0, %v14539_v28, 0.0  ;;  %v17846_v28 = vld [vmem:[#allocation7_spill] sm:$0xff] }
 0x6e7   : > { %17821 = vst [vmem:[#allocation141_spill] sm:$0xff] %v14524_v40  ;;  %6217 = vadd.xlane.f32.xlu0 %v6216_v44  ;;  %v14550_v44 = vpop.eup %9758  ;;  %9768 = vpow2.f32 %v6084_v36  ;;  %v17848_v40 = vld [vmem:[#allocation83_spill] sm:$0xff] }
 0x6e8   : > { %v14535_v2 = vpop.xlane.xlu0 %5175  ;;  %17833 = vst [vmem:[#allocation171_spill] sm:$0xff] %v14550_v44  ;;  %9770 = vpow2.f32 %v5342_v16  ;;  %v6210_v20 = vsel %vm1845_vm0, %v14550_v44, 0.0  ;;  %v17852_v44 = vsub.f32 %v17651_v57, %v17851_v49  ;;  %v17867_v57 = vld [vmem:[#allocation61_spill] sm:$0xff] }
 0x6e9   : > { %17827 = vst [vmem:[#allocation92_spill] sm:$0xff] %v14535_v2  ;;  %6220 = vadd.xlane.f32.xlu1 %v6219_v30  ;;  %v14561_v30 = vpop.eup %9760  ;;  %v17841_v2 = vsub.f32 %v17839_v15, %v17840_v38  ;;  %9772 = vpow2.f32 %v5344_v14  ;;  %v17856_v38 = vld [vmem:[#allocation35_spill] sm:$0xff] }
 0x6ea   : > { %v14546_v9 = vpop.xlane.xlu1 %5178  ;;  %17838 = vst [vmem:[#allocation90_spill] sm:$0xff] %v14561_v30  ;;  %v6213_v15 = vsel %vm1845_vm0, %v14561_v30, 0.0  ;;  %v5354_v14 = vmul.f32 1.442695, %v17852_v44  ;;  %v17857_v30 = vsub.f32 %v17654_v22, %v17856_v38  ;;  %v17873_v22 = vld [vmem:[#allocation9_spill] sm:$0xff] }
 0x6eb   : > { %17832 = vst [vmem:[#allocation144_spill] sm:$0xff] %v14546_v9  ;;  %5475 = vadd.xlane.f32.xlu0 %v5474_v46  ;;  %v6078_v36 = vmul.f32 1.442695, %v17841_v2  ;;  %v14572_v46 = vpop.eup %9762  ;;  %v17847_v9 = vsub.f32 %v17845_v62, %v17846_v28  ;;  %v17861_v28 = vld [vmem:[#allocation139_spill] sm:$0xff] }
 0x6ec   : > { %v14557_v18 = vpop.xlane.xlu0 %5911  ;;  %17844 = vst [vmem:[#allocation113_spill] sm:$0xff] %v14572_v46  ;;  %v5492_v62 = vsel %vm1845_vm0, %v14572_v46, 0.0  ;;  %v17862_v46 = vld [vmem:[#allocation14_spill] sm:$0xff] }
 0x6ed   : > { %17837 = vst [vmem:[#allocation154_spill] sm:$0xff] %v14557_v18  ;;  %5478 = vadd.xlane.f32.xlu1 %v5477_v53  ;;  %v6080_v16 = vmul.f32 1.442695, %v17847_v9  ;;  %v14583_v53 = vpop.eup %9764  ;;  %9774 = vpow2.f32 %v6078_v36  ;;  %v5356_v36 = vmul.f32 1.442695, %v17857_v30  ;;  %v17864_v18 = vld [vmem:[#allocation77_spill] sm:$0xff] }
 0x6ee   : > { %v14568_v32 = vpop.xlane.xlu1 %5914  ;;  %17850 = vst [vmem:[#allocation111_spill] sm:$0xff] %v14583_v53  ;;  %v5495_v49 = vsel %vm1845_vm0, %v14583_v53, 0.0  ;;  %v17868_v53 = vld [vmem:[#allocation21_spill] sm:$0xff] }
 0x6ef   : > { %17843 = vst [vmem:[#allocation52_spill] sm:$0xff] %v14568_v32  ;;  %6211 = vadd.xlane.f32.xlu0 %v6210_v20  ;;  %v14594_v20 = vpop.eup %9766  ;;  %9776 = vpow2.f32 %v6080_v16  ;;  %v17891_v32 = vld [vmem:[#allocation79_spill] sm:$0xff] }
 0x6f0   : > { %v14579_v2 = vpop.xlane.xlu0 %5193  ;;  %17855 = vst [vmem:[#allocation170_spill] sm:$0xff] %v14594_v20  ;;  %9778 = vpow2.f32 %v5354_v14  ;;  %v6228_v38 = vsel %vm1845_vm0, %v14594_v20, 0.0  ;;  %v17874_v20 = vsub.f32 %v17661_v1, %v17873_v22  ;;  %v17888_v1 = vld [vmem:[#allocation148_spill] sm:$0xff] }
 0x6f1   : > { %17849 = vst [vmem:[#allocation126_spill] sm:$0xff] %v14579_v2  ;;  %6214 = vadd.xlane.f32.xlu1 %v6213_v15  ;;  %v14605_v15 = vpop.eup %9768  ;;  %v17863_v2 = vsub.f32 %v17861_v28, %v17862_v46  ;;  %9780 = vpow2.f32 %v5356_v36  ;;  %v17878_v46 = vld [vmem:[#allocation149_spill] sm:$0xff] }
 0x6f2   : > { %v14590_v9 = vpop.xlane.xlu1 %5196  ;;  %17860 = vst [vmem:[#allocation87_spill] sm:$0xff] %v14605_v15  ;;  %v6231_v28 = vsel %vm1845_vm0, %v14605_v15, 0.0  ;;  %v5350_v36 = vmul.f32 1.442695, %v17874_v20  ;;  %v17879_v15 = vld [vmem:[#allocation16_spill] sm:$0xff] }
 0x6f3   : > { %17854 = vst [vmem:[#allocation95_spill] sm:$0xff] %v14590_v9  ;;  %5493 = vadd.xlane.f32.xlu0 %v5492_v62  ;;  %v6090_v16 = vmul.f32 1.442695, %v17863_v2  ;;  %v14616_v62 = vpop.eup %9770  ;;  %v17869_v9 = vsub.f32 %v17867_v57, %v17868_v53  ;;  %v17883_v53 = vld [vmem:[#allocation104_spill] sm:$0xff] }
 0x6f4   : > { %v14601_v44 = vpop.xlane.xlu0 %5929  ;;  %17866 = vst [vmem:[#allocation112_spill] sm:$0xff] %v14616_v62  ;;  %v5486_v57 = vsel %vm1845_vm0, %v14616_v62, 0.0  ;;  %v17884_v62 = vld [vmem:[#allocation22_spill] sm:$0xff] }
 0x6f5   : > { %17859 = vst [vmem:[#allocation117_spill] sm:$0xff] %v14601_v44  ;;  %5496 = vadd.xlane.f32.xlu1 %v5495_v49  ;;  %v6092_v14 = vmul.f32 1.442695, %v17869_v9  ;;  %v14627_v49 = vpop.eup %9772  ;;  %9782 = vpow2.f32 %v6090_v16  ;;  %v17886_v44 = vld [vmem:[#allocation159_spill] sm:$0xff] }
 0x6f6   : > { %v14612_v30 = vpop.xlane.xlu1 %5932  ;;  %17872 = vst [vmem:[#allocation63_spill] sm:$0xff] %v14627_v49  ;;  %v5489_v22 = vsel %vm1845_vm0, %v14627_v49, 0.0  ;;  %v17889_v49 = vld [vmem:[#allocation18_spill] sm:$0xff] }
 0x6f7   : > { %17865 = vst [vmem:[#allocation116_spill] sm:$0xff] %v14612_v30  ;;  %6229 = vadd.xlane.f32.xlu0 %v6228_v38  ;;  %v14638_v38 = vpop.eup %9774  ;;  %9784 = vpow2.f32 %v6092_v14  ;;  %v17880_v30 = vsub.f32 %v17878_v46, %v17879_v15  ;;  %v17893_v15 = vsub.f32 %v17672_v61, %v14153_v25  ;;  %v17902_v25 = vsub.f32 %v17680_v54, %v14180_v12 }
 0x6f8   : > { %v14623_v2 = vpop.xlane.xlu0 %5187  ;;  %17877 = vst [vmem:[#allocation64_spill] sm:$0xff] %v14638_v38  ;;  %9786 = vpow2.f32 %v5350_v36  ;;  %v6222_v46 = vsel %vm1845_vm0, %v14638_v38, 0.0  ;;  %v17894_v38 = vld [vmem:[#allocation78_spill] sm:$0xff]  ;;  %v17911_v12 = vsub.f32 %v17687_v45, %v14207_v5  ;;  %v17920_v5 = vsub.f32 %v17696_v8, %v14238_v23 }
 0x6f9   : > { %17871 = vst [vmem:[#allocation2_spill] sm:$0xff] %v14623_v2  ;;  %6232 = vadd.xlane.f32.xlu1 %v6231_v28  ;;  %v5352_v16 = vmul.f32 1.442695, %v17880_v30  ;;  %v14649_v28 = vpop.eup %9776  ;;  %v17885_v2 = vsub.f32 %v17883_v53, %v17884_v62  ;;  %v17896_v62 = vsub.f32 %v17675_v13, %v14162_v29  ;;  %v17905_v29 = vsub.f32 %v17682_v27, %v14189_v24 }
 0x6fa   : > { %v14634_v9 = vpop.xlane.xlu1 %5190  ;;  %17882 = vst [vmem:[#allocation60_spill] sm:$0xff] %v14649_v28  ;;  %v6225_v53 = vsel %vm1845_vm0, %v14649_v28, 0.0  ;;  %v17897_v28 = vld [vmem:[#allocation153_spill] sm:$0xff]  ;;  %v17914_v24 = vsub.f32 %v17690_v26, %v14216_v34  ;;  %v17923_v26 = vsub.f32 %v17699_v11, %v14249_v48  ;;  %v17929_v8 = vsub.f32 %v17704_v6, %v14271_v51 }
 0x6fb   : > { %17876 = vst [vmem:[#allocation103_spill] sm:$0xff] %v14634_v9  ;;  %5487 = vadd.xlane.f32.xlu0 %v5486_v57  ;;  %v6086_v14 = vmul.f32 1.442695, %v17885_v2  ;;  %v14660_v57 = vpop.eup %9778  ;;  %9788 = vpow2.f32 %v5352_v16  ;;  %v17890_v9 = vsub.f32 %v17888_v1, %v17889_v49  ;;  %v5362_v16 = vmul.f32 1.442695, %v17893_v15 }
 0x6fc   : > { %v14645_v20 = vpop.xlane.xlu0 %5923  ;;  %17887 = vst [vmem:[#allocation89_spill] sm:$0xff] %v14660_v57  ;;  %v5504_v1 = vsel %vm1845_vm0, %v14660_v57, 0.0  ;;  %v17899_v49 = vsub.f32 %v17678_v21, %v14171_v59  ;;  %v17900_v57 = vld [vmem:[#allocation80_spill] sm:$0xff]  ;;  %v17908_v21 = vsub.f32 %v17685_v42, %v14198_v3  ;;  %v17917_v3 = vsub.f32 %v17693_v35, %v14227_v31 }
 0x6fd   : > { %5490 = vadd.xlane.f32.xlu1 %v5489_v22  ;;  %v6088_v36 = vmul.f32 1.442695, %v17890_v9  ;;  %v14671_v22 = vpop.eup %9780  ;;  %9790 = vpow2.f32 %v6086_v14  ;;  %v5364_v14 = vmul.f32 1.442695, %v17896_v62  ;;  %v17926_v35 = vsub.f32 %v13655_v55, %v14260_v39 }
 0x6fe   : > { %v14656_v30 = vpop.xlane.xlu1 %5926  ;;  %17892 = vst [vmem:[#allocation62_spill] sm:$0xff] %v14671_v22  ;;  %v5507_v15 = vsel %vm1845_vm0, %v14671_v22, 0.0  ;;  %v17903_v22 = vld [vmem:[#allocation127_spill] sm:$0xff]  ;;  %v17932_v11 = vsub.f32 %v13641_v37, %v14282_v41  ;;  %v17936_v55 = vsub.f32 %v17711_v47, %v14293_v56  ;;  %v17940_v6 = vsub.f32 %v17716_v58, %v14304_v63  ;;  %v17944_v37 = vld [vmem:[#allocation172_spill] sm:$0xff]  ;;  %v17950_v47 = vld [vmem:[#allocation157_spill] sm:$0xff] }
 0x6ff   : > { %6223 = vadd.xlane.f32.xlu0 %v6222_v46  ;;  %v14682_v46 = vpop.eup %9782  ;;  %9792 = vpow2.f32 %v6088_v36  ;;  %v6098_v36 = vmul.f32 1.442695, %v17899_v49  ;;  %v17956_v58 = vld [vmem:[#allocation44_spill] sm:$0xff] }
 0x700   : > { %v14667_v2 = vpop.xlane.xlu0 %5205  ;;  %17895 = vst [vmem:[#allocation75_spill] sm:$0xff] %v14682_v46  ;;  %9794 = vpow2.f32 %v5362_v16  ;;  %v6240_v62 = vsel %vm1845_vm0, %v14682_v46, 0.0  ;;  %v6100_v16 = vmul.f32 1.442695, %v17902_v25  ;;  %v17906_v46 = vld [vmem:[#allocation162_spill] sm:$0xff] }
 0x701   : > { %6226 = vadd.xlane.f32.xlu1 %v6225_v53  ;;  %v14693_v53 = vpop.eup %9784  ;;  %9796 = vpow2.f32 %v5364_v14  ;;  %v5358_v14 = vmul.f32 1.442695, %v17905_v29 }
 0x702   : > { %v14678_v9 = vpop.xlane.xlu1 %5208  ;;  %17898 = vst [vmem:[#allocation13_spill] sm:$0xff] %v14693_v53  ;;  %v6243_v49 = vsel %vm1845_vm0, %v14693_v53, 0.0  ;;  %9798 = vpow2.f32 %v6098_v36  ;;  %v5360_v36 = vmul.f32 1.442695, %v17908_v21  ;;  %v17909_v53 = vld [vmem:[#allocation179_spill] sm:$0xff] }
 0x703   : > { %5505 = vadd.xlane.f32.xlu0 %v5504_v1  ;;  %v14704_v1 = vpop.eup %9786  ;;  %9800 = vpow2.f32 %v6100_v16  ;;  %v6094_v16 = vmul.f32 1.442695, %v17911_v12 }
 0x704   : > { %v14689_v61 = vpop.xlane.xlu0 %5941  ;;  %17901 = vst [vmem:[#allocation123_spill] sm:$0xff] %v14704_v1  ;;  %v5498_v25 = vsel %vm1845_vm0, %v14704_v1, 0.0  ;;  %9802 = vpow2.f32 %v5358_v14  ;;  %v17912_v1 = vld [vmem:[#allocation128_spill] sm:$0xff]  ;;  %v6096_v14 = vmul.f32 1.442695, %v17914_v24 }
 0x705   : > { %5508 = vadd.xlane.f32.xlu1 %v5507_v15  ;;  %v14715_v15 = vpop.eup %9788  ;;  %9804 = vpow2.f32 %v5360_v36  ;;  %v5370_v36 = vmul.f32 1.442695, %v17917_v3 }
 0x706   : > { %v14700_v13 = vpop.xlane.xlu1 %5944  ;;  %17904 = vst [vmem:[#allocation158_spill] sm:$0xff] %v14715_v15  ;;  %v5501_v29 = vsel %vm1845_vm0, %v14715_v15, 0.0  ;;  %v17915_v15 = vld [vmem:[#allocation81_spill] sm:$0xff]  ;;  %9806 = vpow2.f32 %v6094_v16  ;;  %v5372_v16 = vmul.f32 1.442695, %v17920_v5 }
 0x707   : > { %6241 = vadd.xlane.f32.xlu0 %v6240_v62  ;;  %v14726_v62 = vpop.eup %9790  ;;  %9808 = vpow2.f32 %v6096_v14  ;;  %v6106_v14 = vmul.f32 1.442695, %v17923_v26 }
 0x708   : > { %v14711_v59 = vpop.xlane.xlu0 %5199  ;;  %17907 = vst [vmem:[#allocation66_spill] sm:$0xff] %v14726_v62  ;;  %v6234_v21 = vsel %vm1845_vm0, %v14726_v62, 0.0  ;;  %v17918_v62 = vld [vmem:[#allocation82_spill] sm:$0xff]  ;;  %9810 = vpow2.f32 %v5370_v36  ;;  %v6108_v36 = vmul.f32 1.442695, %v17926_v35 }
 0x709   : > { %6244 = vadd.xlane.f32.xlu1 %v6243_v49  ;;  %v14737_v49 = vpop.eup %9792  ;;  %9812 = vpow2.f32 %v5372_v16  ;;  %v5366_v16 = vmul.f32 1.442695, %v17929_v8 }
 0x70a   : > { %v14722_v54 = vpop.xlane.xlu1 %5202  ;;  %17910 = vst [vmem:[#allocation119_spill] sm:$0xff] %v14737_v49  ;;  %v6237_v12 = vsel %vm1845_vm0, %v14737_v49, 0.0  ;;  %v17921_v49 = vld [vmem:[#allocation181_spill] sm:$0xff]  ;;  %9814 = vpow2.f32 %v6106_v14  ;;  %v5368_v14 = vmul.f32 1.442695, %v17932_v11 }
 0x70b   : > { %5499 = vadd.xlane.f32.xlu0 %v5498_v25  ;;  %v14748_v25 = vpop.eup %9794  ;;  %9816 = vpow2.f32 %v6108_v36  ;;  %v6102_v36 = vmul.f32 1.442695, %v17936_v55 }
 0x70c   : > { %v14733_v27 = vpop.xlane.xlu0 %5935  ;;  %17913 = vst [vmem:[#allocation99_spill] sm:$0xff] %v14748_v25  ;;  %v5516_v24 = vsel %vm1845_vm0, %v14748_v25, 0.0  ;;  %v17924_v25 = vld [vmem:[#allocation132_spill] sm:$0xff]  ;;  %9818 = vpow2.f32 %v5366_v16  ;;  %v6104_v16 = vmul.f32 1.442695, %v17940_v6 }
 0x70d   : > { %5502 = vadd.xlane.f32.xlu1 %v5501_v29  ;;  %v14759_v29 = vpop.eup %9796  ;;  %9820 = vpow2.f32 %v5368_v14 }
 0x70e   : > { %v14744_v42 = vpop.xlane.xlu1 %5938  ;;  %17916 = vst [vmem:[#allocation173_spill] sm:$0xff] %v14759_v29  ;;  %v5519_v3 = vsel %vm1845_vm0, %v14759_v29, 0.0  ;;  %v17927_v29 = vld [vmem:[#allocation129_spill] sm:$0xff]  ;;  %9822 = vpow2.f32 %v6102_v36 }
 0x70f   : > { %6235 = vadd.xlane.f32.xlu0 %v6234_v21  ;;  %v14770_v21 = vpop.eup %9798  ;;  %9824 = vpow2.f32 %v6104_v16 }
 0x710   : > { %v14755_v45 = vpop.xlane.xlu0 %5217  ;;  %17919 = vst [vmem:[#allocation163_spill] sm:$0xff] %v14770_v21  ;;  %v6252_v5 = vsel %vm1845_vm0, %v14770_v21, 0.0  ;;  %v17930_v21 = vld [vmem:[#allocation180_spill] sm:$0xff] }
 0x711   : > { %6238 = vadd.xlane.f32.xlu1 %v6237_v12  ;;  %v14781_v12 = vpop.eup %9800 }
 0x712   : > { %v14766_v34 = vpop.xlane.xlu1 %5220  ;;  %17922 = vst [vmem:[#allocation51_spill] sm:$0xff] %v14781_v12  ;;  %v6255_v26 = vsel %vm1845_vm0, %v14781_v12, 0.0  ;;  %v17933_v12 = vld [vmem:[#allocation85_spill] sm:$0xff] }
 0x713   : > { %5517 = vadd.xlane.f32.xlu0 %v5516_v24  ;;  %v14792_v24 = vpop.eup %9802 }
 0x714   : > { %v14777_v31 = vpop.xlane.xlu0 %5953  ;;  %17925 = vst [vmem:[#allocation122_spill] sm:$0xff] %v14792_v24  ;;  %v5510_v35 = vsel %vm1845_vm0, %v14792_v24, 0.0  ;;  %v17947_v24 = vld [vmem:[#allocation134_spill] sm:$0xff] }
 0x715   : > { %5520 = vadd.xlane.f32.xlu1 %v5519_v3  ;;  %v14803_v3 = vpop.eup %9804 }
 0x716   : > { %v14788_v23 = vpop.xlane.xlu1 %5956  ;;  %17928 = vst [vmem:[#allocation56_spill] sm:$0xff] %v14803_v3  ;;  %v5513_v8 = vsel %vm1845_vm0, %v14803_v3, 0.0  ;;  %v17953_v3 = vld [vmem:[#allocation138_spill] sm:$0xff] }
 0x717   : > { %6253 = vadd.xlane.f32.xlu0 %v6252_v5  ;;  %v14814_v5 = vpop.eup %9806 }
 0x718   : > { %v14799_v48 = vpop.xlane.xlu0 %5211  ;;  %17931 = vst [vmem:[#allocation174_spill] sm:$0xff] %v14814_v5  ;;  %v6246_v11 = vsel %vm1845_vm0, %v14814_v5, 0.0  ;;  %v17945_v5 = vld [vmem:[#allocation38_spill] sm:$0xff] }
 0x719   : > { %6256 = vadd.xlane.f32.xlu1 %v6255_v26  ;;  %v14825_v26 = vpop.eup %9808 }
 0x71a   : > { %v14810_v39 = vpop.xlane.xlu1 %5214  ;;  %17935 = vst [vmem:[#allocation97_spill] sm:$0xff] %v14825_v26  ;;  %v6249_v55 = vsel %vm1845_vm0, %v14825_v26, 0.0  ;;  %v17951_v26 = vld [vmem:[#allocation28_spill] sm:$0xff] }
 0x71b   : > { %5511 = vadd.xlane.f32.xlu0 %v5510_v35  ;;  %v14836_v35 = vpop.eup %9810 }
 0x71c   : > { %v14821_v51 = vpop.xlane.xlu0 %5947  ;;  %17939 = vst [vmem:[#allocation160_spill] sm:$0xff] %v14836_v35  ;;  %v5528_v6 = vsel %vm1845_vm0, %v14836_v35, 0.0  ;;  %v17957_v35 = vsub.f32 %v17732_v43, %v17956_v58  ;;  %v17972_v43 = vld [vmem:[#allocation118_spill] sm:$0xff] }
 0x71d   : > { %17934 = vst [vmem:[#allocation125_spill] sm:$0xff] %v14821_v51  ;;  %5514 = vadd.xlane.f32.xlu1 %v5513_v8  ;;  %v14847_v8 = vpop.eup %9812  ;;  %v17946_v51 = vsub.f32 %v17944_v37, %v17945_v5  ;;  %v17961_v5 = vld [vmem:[#allocation30_spill] sm:$0xff] }
 0x71e   : > { %v14832_v41 = vpop.xlane.xlu1 %5950  ;;  %17943 = vst [vmem:[#allocation20_spill] sm:$0xff] %v14847_v8  ;;  %v5531_v37 = vsel %vm1845_vm0, %v14847_v8, 0.0  ;;  %v6114_v16 = vmul.f32 1.442695, %v17957_v35  ;;  %v17962_v8 = vsub.f32 %v17738_v50, %v17961_v5  ;;  %v17978_v50 = vld [vmem:[#allocation48_spill] sm:$0xff] }
 0x71f   : > { %17938 = vst [vmem:[#allocation68_spill] sm:$0xff] %v14832_v41  ;;  %6247 = vadd.xlane.f32.xlu0 %v6246_v11  ;;  %v5378_v14 = vmul.f32 1.442695, %v17946_v51  ;;  %v14858_v11 = vpop.eup %9814  ;;  %v17952_v41 = vsub.f32 %v17950_v47, %v17951_v26  ;;  %v17966_v26 = vld [vmem:[#allocation65_spill] sm:$0xff] }
 0x720   : > { %v14843_v56 = vpop.xlane.xlu0 %5229  ;;  %17949 = vst [vmem:[#allocation70_spill] sm:$0xff] %v14858_v11  ;;  %v6264_v47 = vsel %vm1845_vm0, %v14858_v11, 0.0  ;;  %v17967_v11 = vld [vmem:[#allocation46_spill] sm:$0xff] }
 0x721   : > { %17942 = vst [vmem:[#allocation96_spill] sm:$0xff] %v14843_v56  ;;  %6250 = vadd.xlane.f32.xlu1 %v6249_v55  ;;  %v5380_v36 = vmul.f32 1.442695, %v17952_v41  ;;  %v14869_v55 = vpop.eup %9816  ;;  %9826 = vpow2.f32 %v5378_v14  ;;  %v6116_v14 = vmul.f32 1.442695, %v17962_v8  ;;  %v17969_v56 = vld [vmem:[#allocation182_spill] sm:$0xff] }
 0x722   : > { %v14854_v63 = vpop.xlane.xlu1 %5232  ;;  %17955 = vst [vmem:[#allocation59_spill] sm:$0xff] %v14869_v55  ;;  %v6267_v58 = vsel %vm1845_vm0, %v14869_v55, 0.0  ;;  %v17973_v55 = vld [vmem:[#allocation32_spill] sm:$0xff] }
 0x723   : > { %17948 = vst [vmem:[#allocation161_spill] sm:$0xff] %v14854_v63  ;;  %5529 = vadd.xlane.f32.xlu0 %v5528_v6  ;;  %v14880_v6 = vpop.eup %9818  ;;  %9828 = vpow2.f32 %v5380_v36  ;;  %v18081_v63 = vld [vmem:[#allocation24_spill] sm:$0xff] }
 0x724   : > { %v14865_v51 = vpop.xlane.xlu0 %5965  ;;  %17960 = vst [vmem:[#allocation175_spill] sm:$0xff] %v14880_v6  ;;  %9830 = vpow2.f32 %v6114_v16  ;;  %v5522_v5 = vsel %vm1845_vm0, %v14880_v6, 0.0  ;;  %v17979_v6 = vsub.f32 %v17754_v60, %v17978_v50  ;;  %v17994_v60 = vld [vmem:[#allocation101_spill] sm:$0xff] }
 0x725   : > { %17954 = vst [vmem:[#allocation124_spill] sm:$0xff] %v14865_v51  ;;  %5532 = vadd.xlane.f32.xlu1 %v5531_v37  ;;  %v14891_v37 = vpop.eup %9820  ;;  %v17968_v51 = vsub.f32 %v17966_v26, %v17967_v11  ;;  %9832 = vpow2.f32 %v6116_v14  ;;  %v17983_v11 = vld [vmem:[#allocation34_spill] sm:$0xff] }
 0x726   : > { %v14876_v41 = vpop.xlane.xlu1 %5968  ;;  %17965 = vst [vmem:[#allocation19_spill] sm:$0xff] %v14891_v37  ;;  %v5525_v26 = vsel %vm1845_vm0, %v14891_v37, 0.0  ;;  %v6110_v14 = vmul.f32 1.442695, %v17979_v6  ;;  %v17984_v37 = vsub.f32 %v17760_v52, %v17983_v11  ;;  %v18000_v52 = vld [vmem:[#allocation88_spill] sm:$0xff] }
 0x727   : > { %17959 = vst [vmem:[#allocation10_spill] sm:$0xff] %v14876_v41  ;;  %6265 = vadd.xlane.f32.xlu0 %v6264_v47  ;;  %v5374_v36 = vmul.f32 1.442695, %v17968_v51  ;;  %v14902_v47 = vpop.eup %9822  ;;  %v17974_v41 = vsub.f32 %v17972_v43, %v17973_v55  ;;  %v17988_v55 = vld [vmem:[#allocation69_spill] sm:$0xff] }
 0x728   : > { %v14887_v35 = vpop.xlane.xlu0 %5223  ;;  %17971 = vst [vmem:[#allocation3_spill] sm:$0xff] %v14902_v47  ;;  %v6258_v43 = vsel %vm1845_vm0, %v14902_v47, 0.0  ;;  %v17989_v47 = vld [vmem:[#allocation50_spill] sm:$0xff] }
 0x729   : > { %17964 = vst [vmem:[#allocation167_spill] sm:$0xff] %v14887_v35  ;;  %6268 = vadd.xlane.f32.xlu1 %v6267_v58  ;;  %v5376_v16 = vmul.f32 1.442695, %v17974_v41  ;;  %v14913_v58 = vpop.eup %9824  ;;  %9834 = vpow2.f32 %v5374_v36  ;;  %v6112_v36 = vmul.f32 1.442695, %v17984_v37 }
 0x72a   : > { %v14898_v8 = vpop.xlane.xlu1 %5226  ;;  %17977 = vst [vmem:[#allocation17_spill] sm:$0xff] %v14913_v58  ;;  %v6261_v50 = vsel %vm1845_vm0, %v14913_v58, 0.0  ;;  %v17995_v58 = vld [vmem:[#allocation86_spill] sm:$0xff] }
 0x72b   : > { %17970 = vst [vmem:[#allocation73_spill] sm:$0xff] %v14898_v8  ;;  %5523 = vadd.xlane.f32.xlu0 %v5522_v5  ;;  %v14924_v5 = vpop.eup %9826  ;;  %9836 = vpow2.f32 %v5376_v16 }
 0x72c   : > { %v14909_v51 = vpop.xlane.xlu0 %5959  ;;  %17982 = vst [vmem:[#allocation121_spill] sm:$0xff] %v14924_v5  ;;  %9838 = vpow2.f32 %v6110_v14  ;;  %v5540_v11 = vsel %vm1845_vm0, %v14924_v5, 0.0  ;;  %v18001_v5 = vsub.f32 %v17776_v7, %v18000_v52  ;;  %v18016_v7 = vld [vmem:[#allocation53_spill] sm:$0xff] }
 0x72d   : > { %17976 = vst [vmem:[#allocation39_spill] sm:$0xff] %v14909_v51  ;;  %5526 = vadd.xlane.f32.xlu1 %v5525_v26  ;;  %v14935_v26 = vpop.eup %9828  ;;  %v17990_v51 = vsub.f32 %v17988_v55, %v17989_v47  ;;  %9840 = vpow2.f32 %v6112_v36  ;;  %v18005_v47 = vld [vmem:[#allocation93_spill] sm:$0xff] }
 0x72e   : > { %v14920_v41 = vpop.xlane.xlu1 %5962  ;;  %17987 = vst [vmem:[#allocation7_spill] sm:$0xff] %v14935_v26  ;;  %v5543_v55 = vsel %vm1845_vm0, %v14935_v26, 0.0  ;;  %v6122_v36 = vmul.f32 1.442695, %v18001_v5  ;;  %v18006_v26 = vsub.f32 %v17782_v4, %v18005_v47 }
 0x72f   : > { %17981 = vst [vmem:[#allocation5_spill] sm:$0xff] %v14920_v41  ;;  %6259 = vadd.xlane.f32.xlu0 %v6258_v43  ;;  %v5386_v16 = vmul.f32 1.442695, %v17990_v51  ;;  %v14946_v43 = vpop.eup %9830  ;;  %v17996_v41 = vsub.f32 %v17994_v60, %v17995_v58  ;;  %v18010_v58 = vld [vmem:[#allocation156_spill] sm:$0xff] }
 0x730   : > { %v14931_v6 = vpop.xlane.xlu0 %5241  ;;  %17993 = vst [vmem:[#allocation12_spill] sm:$0xff] %v14946_v43  ;;  %v6276_v60 = vsel %vm1845_vm0, %v14946_v43, 0.0  ;;  %v18011_v43 = vld [vmem:[#allocation4_spill] sm:$0xff] }
 0x731   : > { %17986 = vst [vmem:[#allocation57_spill] sm:$0xff] %v14931_v6  ;;  %6262 = vadd.xlane.f32.xlu1 %v6261_v50  ;;  %v5388_v14 = vmul.f32 1.442695, %v17996_v41  ;;  %v14957_v50 = vpop.eup %9832  ;;  %9842 = vpow2.f32 %v5386_v16  ;;  %v6124_v16 = vmul.f32 1.442695, %v18006_v26  ;;  %v18033_v6 = vld [vmem:[#allocation136_spill] sm:$0xff] }
 0x732   : > { %v14942_v37 = vpop.xlane.xlu1 %5244  ;;  %17999 = vst [vmem:[#allocation139_spill] sm:$0xff] %v14957_v50  ;;  %v6279_v52 = vsel %vm1845_vm0, %v14957_v50, 0.0  ;;  %v18017_v50 = vld [vmem:[#allocation6_spill] sm:$0xff] }
 0x733   : > { %17992 = vst [vmem:[#allocation83_spill] sm:$0xff] %v14942_v37  ;;  %5541 = vadd.xlane.f32.xlu0 %v5540_v11  ;;  %v14968_v11 = vpop.eup %9834  ;;  %9844 = vpow2.f32 %v5388_v14 }
 0x734   : > { %v14953_v51 = vpop.xlane.xlu0 %5977  ;;  %18004 = vst [vmem:[#allocation77_spill] sm:$0xff] %v14968_v11  ;;  %9846 = vpow2.f32 %v6122_v36  ;;  %v5534_v47 = vsel %vm1845_vm0, %v14968_v11, 0.0 }
 0x735   : > { %17998 = vst [vmem:[#allocation35_spill] sm:$0xff] %v14953_v51  ;;  %5544 = vadd.xlane.f32.xlu1 %v5543_v55  ;;  %v14979_v55 = vpop.eup %9836  ;;  %v18012_v51 = vsub.f32 %v18010_v58, %v18011_v43  ;;  %9848 = vpow2.f32 %v6124_v16  ;;  %v18024_v16 = vld [vmem:[#allocation8_spill] sm:$0xff] }
 0x736   : > { %v14964_v41 = vpop.xlane.xlu1 %5980  ;;  %18009 = vst [vmem:[#allocation21_spill] sm:$0xff] %v14979_v55  ;;  %v5537_v11 = vsel %vm1845_vm0, %v14979_v55, 0.0 }
 0x737   : > { %18003 = vst [vmem:[#allocation14_spill] sm:$0xff] %v14964_v41  ;;  %6277 = vadd.xlane.f32.xlu0 %v6276_v60  ;;  %v5382_v14 = vmul.f32 1.442695, %v18012_v51  ;;  %v14990_v60 = vpop.eup %9838  ;;  %v18018_v41 = vsub.f32 %v18016_v7, %v18017_v50  ;;  %v18020_v51 = vld [vmem:[#allocation15_spill] sm:$0xff]  ;;  %v18025_v50 = vsub.f32 %v17804_v19, %v18024_v16 }
 0x738   : > { %v14975_v5 = vpop.xlane.xlu0 %5235  ;;  %18015 = vst [vmem:[#allocation149_spill] sm:$0xff] %v14990_v60  ;;  %v18021_v58 = vsub.f32 %v17798_v17, %v18020_v51  ;;  %v6270_v55 = vsel %vm1845_vm0, %v14990_v60, 0.0  ;;  %v18075_v7 = vld [vmem:[#allocation103_spill] sm:$0xff] }
 0x739   : > { %18008 = vst [vmem:[#allocation61_spill] sm:$0xff] %v14975_v5  ;;  %6280 = vadd.xlane.f32.xlu1 %v6279_v52  ;;  %v5384_v36 = vmul.f32 1.442695, %v18018_v41  ;;  %v15004_v5 = vpop.eup %9840  ;;  %9850 = vpow2.f32 %v5382_v14  ;;  %v6120_v41 = vmul.f32 1.442695, %v18025_v50  ;;  %v18032_v14 = vld [vmem:[#allocation115_spill] sm:$0xff] }
 0x73a   : > { %v14986_v26 = vpop.xlane.xlu1 %5238  ;;  %v6118_v52 = vmul.f32 1.442695, %v18021_v58  ;;  %18023 = vst [vmem:[#allocation104_spill] sm:$0xff] %v15004_v5  ;;  %v18034_v19 = vsub.f32 %v18032_v14, %v18033_v6  ;;  %v6273_v60 = vsel %vm1845_vm0, %v15004_v5, 0.0  ;;  %v18046_v5 = vld [vmem:[#allocation144_spill] sm:$0xff] }
 0x73b   : > { %18014 = vst [vmem:[#allocation9_spill] sm:$0xff] %v14986_v26  ;;  %5535 = vadd.xlane.f32.xlu0 %v5534_v47  ;;  %v18027_v47 = vld [vmem:[#allocation152_spill] sm:$0xff]  ;;  %v15018_v37 = vpop.eup %9842  ;;  %9852 = vpow2.f32 %v5384_v36  ;;  %v18039_v36 = vld [vmem:[#allocation141_spill] sm:$0xff] }
 0x73c   : > { %v15000_v4 = vpop.xlane.xlu0 %5971  ;;  %v18028_v26 = vld [vmem:[#allocation168_spill] sm:$0xff]  ;;  %18031 = vst [vmem:[#allocation159_spill] sm:$0xff] %v15018_v37  ;;  %v5396_v16 = vmul.f32 1.442695, %v18034_v19  ;;  %9854 = vpow2.f32 %v6118_v52  ;;  %v18040_v6 = vsub.f32 %v17826_v33, %v18039_v36  ;;  %v18041_v19 = vld [vmem:[#allocation165_spill] sm:$0xff] }
 0x73d   : > { %18022 = vst [vmem:[#allocation16_spill] sm:$0xff] %v15000_v4  ;;  %5538 = vadd.xlane.f32.xlu1 %v5537_v11  ;;  %v18029_v17 = vsub.f32 %v18027_v47, %v18028_v26  ;;  %v18036_v11 = vld [vmem:[#allocation147_spill] sm:$0xff]  ;;  %v15030_v4 = vpop.eup %9844  ;;  %9856 = vpow2.f32 %v6120_v41 }
 0x73e   : > { %v15014_v58 = vpop.xlane.xlu1 %5974  ;;  %v18037_v26 = vsub.f32 %v17820_v0, %v18036_v11  ;;  %18038 = vst [vmem:[#allocation148_spill] sm:$0xff] %v15030_v4  ;;  %v6132_v14 = vmul.f32 1.442695, %v18040_v6  ;;  %v5552_v0 = vsel %vm1845_vm0, %v15018_v37, 0.0  ;;  %v15040_v11 = vpop.eup %9846  ;;  %v18063_v37 = vld [vmem:[#allocation114_spill] sm:$0xff] }
 0x73f   : > { %v5394_v51 = vmul.f32 1.442695, %v18029_v17  ;;  %18030 = vst [vmem:[#allocation22_spill] sm:$0xff] %v15014_v58  ;;  %6271 = vadd.xlane.f32.xlu0 %v6270_v55  ;;  %v18042_v55 = vld [vmem:[#allocation92_spill] sm:$0xff]  ;;  %18044 = vst [vmem:[#allocation18_spill] sm:$0xff] %v15040_v11  ;;  %v6288_v6 = vsel %vm1845_vm0, %v15040_v11, 0.0 }
 0x740   : > { %v6130_v47 = vmul.f32 1.442695, %v18037_v26  ;;  %v5446_v17 = vpop.xlane.xlu0 %5445  ;;  %v18043_v52 = vsub.f32 %v18041_v19, %v18042_v55  ;;  %v18045_v26 = vld [vmem:[#allocation169_spill] sm:$0xff]  ;;  %v18061_v11 = vld [vmem:[#allocation126_spill] sm:$0xff] }
 0x741   : > { %6274 = vadd.xlane.f32.xlu1 %v6273_v60  ;;  %9858 = vpow2.f32 %v5394_v51  ;;  %v18047_v41 = vsub.f32 %v18045_v26, %v18046_v5  ;;  %v5555_v60 = vsel %vm1845_vm0, %v15030_v4, 0.0  ;;  %v15047_v51 = vpop.eup %9848 }
 0x742   : > { %v5390_v43 = vmul.f32 1.442695, %v18043_v52  ;;  %v5449_v58 = vpop.xlane.xlu1 %5448  ;;  %9860 = vpow2.f32 %v5396_v16  ;;  %18048 = vst [vmem:[#allocation79_spill] sm:$0xff] %v15047_v51 }
 0x743   : > { %v5392_v50 = vmul.f32 1.442695, %v18047_v41  ;;  %5553 = vadd.xlane.f32.xlu0 %v5552_v0  ;;  %9862 = vpow2.f32 %v6130_v47  ;;  %v15051_v16 = vpop.eup %9850  ;;  %v6291_v47 = vsel %vm1845_vm0, %v15047_v51, 0.0 }
 0x744   : > { %v6182_v33 = vpop.xlane.xlu0 %6181  ;;  %9864 = vpow2.f32 %v6132_v14  ;;  %18049 = vst [vmem:[#allocation78_spill] sm:$0xff] %v15051_v16  ;;  %v5546_v55 = vsel %vm1845_vm0, %v15051_v16, 0.0 }
 0x745   : > { %5556 = vadd.xlane.f32.xlu1 %v5555_v60  ;;  %9866 = vpow2.f32 %v5390_v43  ;;  %v15055_v19 = vpop.eup %9852 }
 0x746   : > { %v6185_v36 = vpop.xlane.xlu1 %6184  ;;  %9868 = vpow2.f32 %v5392_v50  ;;  %18050 = vst [vmem:[#allocation153_spill] sm:$0xff] %v15055_v19  ;;  %v15057_v14 = vpop.eup %9854  ;;  %v18054_v50 = vld [vmem:[#allocation154_spill] sm:$0xff]  ;;  %v5549_v60 = vsel %vm1845_vm0, %v15055_v19, 0.0  ;;  %v18064_v19 = vld [vmem:[#allocation95_spill] sm:$0xff] }
 0x747   : > { %6289 = vadd.xlane.f32.xlu0 %v6288_v6  ;;  %9870 = vrcp.f32 %v5449_v58  ;;  %18051 = vst [vmem:[#allocation80_spill] sm:$0xff] %v15057_v14  ;;  %v15061_v52 = vpop.eup %9856  ;;  %v18055_v0 = vsub.f32 %v17842_v10, %v18054_v50  ;;  %v18057_v6 = vld [vmem:[#allocation52_spill] sm:$0xff]  ;;  %v6282_v50 = vsel %vm1845_vm0, %v15057_v14, 0.0  ;;  %v18065_v16 = vsub.f32 %v18063_v37, %v18064_v19 }
 0x748   : > { %v5440_v5 = vpop.xlane.xlu0 %5439  ;;  %18052 = vst [vmem:[#allocation127_spill] sm:$0xff] %v15061_v52  ;;  %v18069_v14 = vld [vmem:[#allocation116_spill] sm:$0xff] }
 0x749   : > { %9872 = vrcp.f32 %v5440_v5  ;;  %6292 = vadd.xlane.f32.xlu1 %v6291_v47  ;;  %v6126_v26 = vmul.f32 1.442695, %v18055_v0  ;;  %v18058_v5 = vsub.f32 %v17848_v40, %v18057_v6  ;;  %v5404_v40 = vmul.f32 1.442695, %v18065_v16 }
 0x74a   : > { %9874 = vrcp.f32 %v5446_v17  ;;  %v5443_v43 = vpop.xlane.xlu1 %5442  ;;  %v6285_v6 = vsel %vm1845_vm0, %v15061_v52, 0.0  ;;  %v18074_v52 = vld [vmem:[#allocation120_spill] sm:$0xff] }
 0x74b   : > { %9876 = vrcp.f32 %v5443_v43  ;;  %5547 = vadd.xlane.f32.xlu0 %v5546_v55  ;;  %v15063_v58 = vpop.eup %9858  ;;  %v6128_v47 = vmul.f32 1.442695, %v18058_v5  ;;  %v18060_v55 = vld [vmem:[#allocation176_spill] sm:$0xff] }
 0x74c   : > { %18053 = vst [vmem:[#allocation162_spill] sm:$0xff] %v15063_v58  ;;  %9878 = vrcp.f32 %v6185_v36  ;;  %v6176_v41 = vpop.xlane.xlu0 %6175  ;;  %v15070_v17 = vpop.eup %9860  ;;  %v18062_v51 = vsub.f32 %v18060_v55, %v18061_v11  ;;  %v18068_v55 = vld [vmem:[#allocation54_spill] sm:$0xff] }
 0x74d   : > { %18056 = vst [vmem:[#allocation179_spill] sm:$0xff] %v15070_v17  ;;  %9880 = vrcp.f32 %v6176_v41  ;;  %5550 = vadd.xlane.f32.xlu1 %v5549_v60  ;;  %v15075_v43 = vpop.eup %9862  ;;  %v18066_v60 = vld [vmem:[#allocation117_spill] sm:$0xff]  ;;  %v18070_v37 = vsub.f32 %v18068_v55, %v18069_v14 }
 0x74e   : > { %18059 = vst [vmem:[#allocation128_spill] sm:$0xff] %v15075_v43  ;;  %v5402_v10 = vmul.f32 1.442695, %v18062_v51  ;;  %9882 = vrcp.f32 %v6182_v33  ;;  %v6179_v36 = vpop.xlane.xlu1 %6178  ;;  %v15082_v0 = vpop.eup %9864  ;;  %v18067_v11 = vsub.f32 %v17864_v18, %v18066_v60  ;;  %v5564_v60 = vsel %vm1845_vm0, %v15063_v58, 0.0  ;;  %v18080_v58 = vld [vmem:[#allocation40_spill] sm:$0xff] }
 0x74f   : > { %9884 = vrcp.f32 %v6179_v36  ;;  %6283 = vadd.xlane.f32.xlu0 %v6282_v50  ;;  %v15087_v41 = vpop.eup %9866  ;;  %v6140_v16 = vmul.f32 1.442695, %v18070_v37  ;;  %v18071_v36 = vld [vmem:[#allocation164_spill] sm:$0xff] }
 0x750   : > { %9886 = vpow2.f32 %v6126_v26  ;;  %v6138_v51 = vmul.f32 1.442695, %v18067_v11  ;;  %v5458_v33 = vpop.xlane.xlu0 %5457  ;;  %v15094_v5 = vpop.eup %9868  ;;  %v18072_v26 = vld [vmem:[#allocation2_spill] sm:$0xff]  ;;  %v18077_v37 = vld [vmem:[#allocation36_spill] sm:$0xff] }
 0x751   : > { %9888 = vpow2.f32 %v6128_v47  ;;  %6286 = vadd.xlane.f32.xlu1 %v6285_v6  ;;  %v9871_v19 = vpop.eup %9870  ;;  %v18073_v50 = vsub.f32 %v18071_v36, %v18072_v26  ;;  %v18076_v47 = vsub.f32 %v18074_v52, %v18075_v7  ;;  %v18078_v7 = vld [vmem:[#allocation41_spill] sm:$0xff] }
 0x752   : > { %9890 = vpow2.f32 %v5402_v10  ;;  %v5461_v18 = vpop.xlane.xlu1 %5460  ;;  %v5567_v10 = vsel %vm1845_vm0, %v15070_v17, 0.0  ;;  %v5697_v36 = vmul.f32 %v9871_v19, %v18077_v37  ;;  %v6303_v19 = vsel %vm1845_vm0, %v15082_v0, 0.0 }
 0x753   : > { %v5398_v4 = vmul.f32 1.442695, %v18073_v50  ;;  %v9873_v11 = vpop.eup %9872  ;;  %9892 = vpow2.f32 %v5404_v40  ;;  %v5400_v8 = vmul.f32 1.442695, %v18076_v47  ;;  %5565 = vadd.xlane.f32.xlu0 %v5564_v60  ;;  %v6300_v40 = vsel %vm1845_vm0, %v15075_v43, 0.0  ;;  %v18079_v60 = vld [vmem:[#allocation37_spill] sm:$0xff] }
 0x754   : > { %v9875_v14 = vpop.eup %9874  ;;  %9894 = vpow2.f32 %v6138_v51  ;;  %v6194_v6 = vpop.xlane.xlu0 %6193  ;;  %v5694_v52 = vmul.f32 %v9873_v11, %v18078_v7 }
 0x755   : > { %v9877_v55 = vpop.eup %9876  ;;  %9896 = vpow2.f32 %v6140_v16  ;;  %5568 = vadd.xlane.f32.xlu1 %v5567_v10  ;;  %v5696_v35 = vmul.f32 %v9875_v14, %v18080_v58  ;;  %v5558_v58 = vsel %vm1845_vm0, %v15087_v41, 0.0 }
 0x756   : > { %v9879_v26 = vpop.eup %9878  ;;  %9898 = vpow2.f32 %v5398_v4  ;;  %v6197_v50 = vpop.xlane.xlu1 %6196  ;;  %v5695_v47 = vmul.f32 %v9877_v55, %v18079_v60  ;;  %v18083_v55 = vld [vmem:[#allocation26_spill] sm:$0xff]  ;;  %v5561_v60 = vsel %vm1845_vm0, %v15094_v5, 0.0 }
 0x757   : > { %v9881_v51 = vpop.eup %9880  ;;  %9900 = vpow2.f32 %v5400_v8  ;;  %6301 = vadd.xlane.f32.xlu0 %v6300_v40  ;;  %v5759_v37 = vpack.c.bf16 %v5697_v36, %v5696_v35  ;;  %v6433_v43 = vmul.f32 %v9879_v26, %v18081_v63  ;;  %v18084_v35 = vld [vmem:[#allocation23_spill] sm:$0xff] }
 0x758   : > { %v9883_v17 = vpop.eup %9882  ;;  %9902 = vrcp.f32 %v5461_v18  ;;  %v5452_v16 = vpop.xlane.xlu0 %5451  ;;  %v5758_v4 = vpack.c.bf16 %v5695_v47, %v5694_v52  ;;  %v18082_v18 = vld [vmem:[#allocation25_spill] sm:$0xff] }
 0x759   : > { %v9885_v10 = vpop.eup %9884  ;;  %9904 = vrcp.f32 %v5452_v16  ;;  %6304 = vadd.xlane.f32.xlu1 %v6303_v19  ;;  %v6430_v14 = vmul.f32 %v9881_v51, %v18082_v18  ;;  %v6432_v36 = vmul.f32 %v9883_v17, %v18084_v35  ;;  %v18086_v17 = vsub.f32 %v17891_v32, %v14656_v30 }
 0x75a   : > { %v15118_v11 = vpop.eup %9886  ;;  %9906 = vrcp.f32 %v5458_v33  ;;  %8929 = vmatprep.mubr.msk.bf16.mxu0 %vm1845_vm0, %v5758_v4  ;;  %v5455_v8 = vpop.xlane.xlu1 %5454  ;;  %v6431_v40 = vmul.f32 %v9885_v10, %v18083_v55  ;;  %v18085_v33 = vsub.f32 %v17886_v44, %v14645_v20  ;;  %v18087_v44 = vsub.f32 %v17894_v38, %v14667_v2 }
 0x75b   : > { %v15125_v7 = vpop.eup %9888  ;;  %9908 = vrcp.f32 %v5455_v8  ;;  %5559 = vadd.xlane.f32.xlu0 %v5558_v58  ;;  %8930 = vmatmul.mubr.msk.bf16.vlgmr.msra.gmra.mrb[240].mxu0 %vm1845_vm0, %v5759_v37  ;;  %v6136_v16 = vmul.f32 1.442695, %v18086_v17  ;;  %v6495_v19 = vpack.c.bf16 %v6433_v43, %v6432_v36  ;;  %v6294_v10 = vsel %vm1845_vm0, %v15118_v11, 0.0  ;;  %v18095_v17 = vld [vmem:[#allocation31_spill] sm:$0xff] }
 0x75c   : > { %v15129_v63 = vpop.eup %9890  ;;  %v6134_v26 = vmul.f32 1.442695, %v18085_v33  ;;  %9910 = vrcp.f32 %v6197_v50  ;;  %v6188_v52 = vpop.xlane.xlu0 %6187  ;;  %v6494_v47 = vpack.c.bf16 %v6431_v40, %v6430_v14  ;;  %v5410_v20 = vmul.f32 1.442695, %v18087_v44  ;;  %v18096_v44 = vld [vmem:[#allocation42_spill] sm:$0xff] }
 0x75d   : > { %v15136_v51 = vpop.eup %9892  ;;  %9912 = vrcp.f32 %v6188_v52  ;;  %5562 = vadd.xlane.f32.xlu1 %v5561_v60  ;;  %v18088_v32 = vsub.f32 %v17897_v28, %v14678_v9  ;;  %v18089_v38 = vsub.f32 %v17900_v57, %v14689_v61  ;;  %v6297_v8 = vsel %vm1845_vm0, %v15125_v7, 0.0 }
 0x75e   : > { %v15141_v4 = vpop.eup %9894  ;;  %9914 = vrcp.f32 %v6194_v6  ;;  %9001 = vmatprep.mubr.msk.bf16.mxu1 %vm1845_vm0, %v6494_v47  ;;  %v6191_v50 = vpop.xlane.xlu1 %6190  ;;  %v18090_v28 = vsub.f32 %v17903_v22, %v14700_v13  ;;  %v18091_v14 = vsub.f32 %v17906_v46, %v14711_v59  ;;  %v5576_v61 = vsel %vm1845_vm0, %v15129_v63, 0.0  ;;  %v18093_v46 = vld [vmem:[#allocation27_spill] sm:$0xff] }
 0x75f   : > { %v15149_v37 = vpop.eup %9896  ;;  %v5412_v30 = vmul.f32 1.442695, %v18088_v32  ;;  %9916 = vrcp.f32 %v6191_v50  ;;  %6295 = vadd.xlane.f32.xlu0 %v6294_v10  ;;  %9002 = vmatmul.mubr.msk.bf16.vlgmr.msra.gmra.mrb[240].mxu1 %vm1845_vm0, %v6495_v19  ;;  %v6146_v2 = vmul.f32 1.442695, %v18089_v38  ;;  %v18092_v35 = vsub.f32 %v17909_v53, %v14722_v54  ;;  %v18094_v53 = vld [vmem:[#allocation45_spill] sm:$0xff] }
 0x760   : > { %v15155_v43 = vpop.eup %9898  ;;  %9918 = vpow2.f32 %v6134_v26  ;;  %v5470_v6 = vpop.xlane.xlu0 %5469  ;;  %v6148_v9 = vmul.f32 1.442695, %v18090_v28  ;;  %v5406_v55 = vmul.f32 1.442695, %v18091_v14  ;;  %v5579_v33 = vsel %vm1845_vm0, %v15136_v51, 0.0 }
 0x761   : > { %v15162_v58 = vpop.eup %9900  ;;  %9920 = vpow2.f32 %v6136_v16  ;;  %6298 = vadd.xlane.f32.xlu1 %v6297_v8  ;;  %v5408_v36 = vmul.f32 1.442695, %v18092_v35  ;;  %v6312_v47 = vsel %vm1845_vm0, %v15141_v4, 0.0  ;;  %v6315_v32 = vsel %vm1845_vm0, %v15149_v37, 0.0  ;;  %v18097_v8 = vld [vmem:[#allocation29_spill] sm:$0xff] }
 0x762   : > { %v9903_v18 = vpop.eup %9902  ;;  %9922 = vpow2.f32 %v5410_v20  ;;  %v5473_v57 = vpop.xlane.xlu1 %5472  ;;  %v5570_v14 = vsel %vm1845_vm0, %v15155_v43, 0.0 }
 0x763   : > { %v9905_v40 = vpop.eup %9904  ;;  %9924 = vpow2.f32 %v5412_v30  ;;  %5577 = vadd.xlane.f32.xlu0 %v5576_v61  ;;  %v5701_v59 = vmul.f32 %v9903_v18, %v18093_v46  ;;  %v18099_v61 = vld [vmem:[#allocation33_spill] sm:$0xff] }
 0x764   : > { %v9907_v22 = vpop.eup %9906  ;;  %9926 = vpow2.f32 %v6146_v2  ;;  %v6206_v13 = vpop.xlane.xlu0 %6205  ;;  %v5698_v54 = vmul.f32 %v9905_v40, %v18094_v53  ;;  %v18102_v53 = vsub.f32 %v17915_v15, %v14744_v42  ;;  %v18104_v15 = vsub.f32 %v17921_v49, %v14766_v34 }
 0x765   : > { %v9909_v26 = vpop.eup %9908  ;;  %9928 = vpow2.f32 %v6148_v9  ;;  %5580 = vadd.xlane.f32.xlu1 %v5579_v33  ;;  %v5700_v20 = vmul.f32 %v9907_v22, %v18096_v44  ;;  %v18106_v49 = vsub.f32 %v17927_v29, %v14788_v23 }
 0x766   : > { %v9911_v52 = vpop.eup %9910  ;;  %9930 = vpow2.f32 %v5406_v55  ;;  %v6209_v60 = vpop.xlane.xlu1 %6208  ;;  %v5699_v16 = vmul.f32 %v9909_v26, %v18095_v17  ;;  %v18098_v55 = vld [vmem:[#allocation47_spill] sm:$0xff]  ;;  %v5420_v42 = vmul.f32 1.442695, %v18104_v15 }
 0x767   : > { %v9913_v19 = vpop.eup %9912  ;;  %9932 = vpow2.f32 %v5408_v36  ;;  %6313 = vadd.xlane.f32.xlu0 %v6312_v47  ;;  %v5761_v2 = vpack.c.bf16 %v5701_v59, %v5700_v20  ;;  %v6437_v28 = vmul.f32 %v9911_v52, %v18097_v8  ;;  %v18100_v36 = vld [vmem:[#allocation43_spill] sm:$0xff]  ;;  %v5573_v59 = vsel %vm1845_vm0, %v15162_v58, 0.0 }
 0x768   : > { %v9915_v50 = vpop.eup %9914  ;;  %9934 = vrcp.f32 %v5473_v57  ;;  %v5464_v10 = vpop.xlane.xlu0 %5463  ;;  %v5760_v30 = vpack.c.bf16 %v5699_v16, %v5698_v54  ;;  %v6434_v57 = vmul.f32 %v9913_v19, %v18098_v55  ;;  %v6144_v54 = vmul.f32 1.442695, %v18102_v53 }
 0x769   : > { %v9917_v38 = vpop.eup %9916  ;;  %9936 = vrcp.f32 %v5464_v10  ;;  %6316 = vadd.xlane.f32.xlu1 %v6315_v32  ;;  %v6436_v22 = vmul.f32 %v9915_v50, %v18100_v36  ;;  %v6156_v34 = vmul.f32 1.442695, %v18106_v49  ;;  %v18108_v8 = vsub.f32 %v17933_v12, %v14810_v39  ;;  %v18110_v12 = vld [vmem:[#allocation11_spill] sm:$0xff] }
 0x76a   : > { %v15186_v9 = vpop.eup %9918  ;;  %9938 = vrcp.f32 %v5470_v6  ;;  %8933 = vmatprep.mubr.msk.bf16.mxu0 %vm1845_vm0, %v5760_v30  ;;  %v5467_v18 = vpop.xlane.xlu1 %5466  ;;  %v6435_v40 = vmul.f32 %v9917_v38, %v18099_v61  ;;  %v18101_v6 = vsub.f32 %v17912_v1, %v14733_v27  ;;  %v18103_v1 = vsub.f32 %v17918_v62, %v14755_v45 }
 0x76b   : > { %v15193_v35 = vpop.eup %9920  ;;  %9940 = vrcp.f32 %v5467_v18  ;;  %5571 = vadd.xlane.f32.xlu0 %v5570_v14  ;;  %8934 = vmatmul.mubr.msk.bf16.gmra.mrb[244].mxu0 %vm1845_vm0, %v5761_v2  ;;  %v6497_v17 = vpack.c.bf16 %v6437_v28, %v6436_v22  ;;  %v6306_v19 = vsel %vm1845_vm0, %v15186_v9, 0.0  ;;  %v18105_v62 = vsub.f32 %v17924_v25, %v14777_v31 }
 0x76c   : > { %v15197_v33 = vpop.eup %9922  ;;  %v6142_v26 = vmul.f32 1.442695, %v18101_v6  ;;  %9942 = vrcp.f32 %v6209_v60  ;;  %v6200_v46 = vpop.xlane.xlu0 %6199  ;;  %v6496_v52 = vpack.c.bf16 %v6435_v40, %v6434_v57  ;;  %v5418_v27 = vmul.f32 1.442695, %v18103_v1  ;;  %v18111_v40 = vld [vmem:[#allocation94_spill] sm:$0xff]  ;;  %v18112_v6 = vld [vmem:[#allocation49_spill] sm:$0xff] }
 0x76d   : > { %v15204_v47 = vpop.eup %9924  ;;  %9944 = vrcp.f32 %v6200_v46  ;;  %5574 = vadd.xlane.f32.xlu1 %v5573_v59  ;;  %v6154_v45 = vmul.f32 1.442695, %v18105_v62  ;;  %v6309_v50 = vsel %vm1845_vm0, %v15193_v35, 0.0  ;;  %v18107_v30 = vsub.f32 %v17930_v21, %v14799_v48  ;;  %v18109_v21 = vld [vmem:[#allocation84_spill] sm:$0xff]  ;;  %v18113_v1 = vld [vmem:[#allocation91_spill] sm:$0xff] }
 0x76e   : > { %v15209_v16 = vpop.eup %9926  ;;  %9946 = vrcp.f32 %v6206_v13  ;;  %9005 = vmatprep.mubr.msk.bf16.mxu1 %vm1845_vm0, %v6496_v52  ;;  %v6203_v60 = vpop.xlane.xlu1 %6202  ;;  %v5588_v31 = vsel %vm1845_vm0, %v15197_v33, 0.0  ;;  %v5416_v28 = vmul.f32 1.442695, %v18108_v8  ;;  %v5591_v18 = vsel %vm1845_vm0, %v15204_v47, 0.0 }
 0x76f   : > { %v15217_v44 = vpop.eup %9928  ;;  %9948 = vrcp.f32 %v6203_v60  ;;  %6307 = vadd.xlane.f32.xlu0 %v6306_v19  ;;  %9006 = vmatmul.mubr.msk.bf16.gmra.mrb[244].mxu1 %vm1845_vm0, %v6497_v17  ;;  %v5414_v38 = vmul.f32 1.442695, %v18107_v30  ;;  %v6324_v61 = vsel %vm1845_vm0, %v15209_v16, 0.0 }
 0x770   : > { %v15223_v20 = vpop.eup %9930  ;;  %9950 = vpow2.f32 %v6142_v26  ;;  %v5482_v13 = vpop.xlane.xlu0 %5481  ;;  %v6327_v52 = vsel %vm1845_vm0, %v15217_v44, 0.0 }
 0x771   : > { %v15230_v10 = vpop.eup %9932  ;;  %9952 = vpow2.f32 %v6144_v54  ;;  %6310 = vadd.xlane.f32.xlu1 %v6309_v50  ;;  %v5582_v15 = vsel %vm1845_vm0, %v15223_v20, 0.0 }
 0x772   : > { %v9935_v32 = vpop.eup %9934  ;;  %9954 = vpow2.f32 %v5418_v27  ;;  %v5485_v25 = vpop.xlane.xlu1 %5484  ;;  %v5585_v8 = vsel %vm1845_vm0, %v15230_v10, 0.0 }
 0x773   : > { %v9937_v2 = vpop.eup %9936  ;;  %9956 = vpow2.f32 %v5420_v42  ;;  %5589 = vadd.xlane.f32.xlu0 %v5588_v31  ;;  %v5705_v48 = vmul.f32 %v9935_v32, %v18109_v21  ;;  %v18114_v42 = vld [vmem:[#allocation102_spill] sm:$0xff] }
 0x774   : > { %v9939_v29 = vpop.eup %9938  ;;  %9958 = vpow2.f32 %v6154_v45  ;;  %v6218_v23 = vpop.xlane.xlu0 %6217  ;;  %v5702_v39 = vmul.f32 %v9937_v2, %v18110_v12  ;;  %v18115_v45 = vld [vmem:[#allocation166_spill] sm:$0xff]  ;;  %v18123_v12 = vld [vmem:[#allocation96_spill] sm:$0xff] }
 0x775   : > { %v9941_v14 = vpop.eup %9940  ;;  %9960 = vpow2.f32 %v6156_v34  ;;  %5592 = vadd.xlane.f32.xlu1 %v5591_v18  ;;  %v5704_v26 = vmul.f32 %v9939_v29, %v18112_v6  ;;  %v18116_v34 = vld [vmem:[#allocation133_spill] sm:$0xff] }
 0x776   : > { %v9943_v55 = vpop.eup %9942  ;;  %9962 = vpow2.f32 %v5414_v38  ;;  %v6221_v57 = vpop.xlane.xlu1 %6220  ;;  %v5703_v36 = vmul.f32 %v9941_v14, %v18111_v40  ;;  %v18118_v38 = vld [vmem:[#allocation125_spill] sm:$0xff]  ;;  %v18121_v14 = vld [vmem:[#allocation68_spill] sm:$0xff] }
 0x777   : > { %v9945_v22 = vpop.eup %9944  ;;  %9964 = vpow2.f32 %v5416_v28  ;;  %6325 = vadd.xlane.f32.xlu0 %v6324_v61  ;;  %v5763_v17 = vpack.c.bf16 %v5705_v48, %v5704_v26  ;;  %v6441_v27 = vmul.f32 %v9943_v55, %v18113_v1  ;;  %v18120_v18 = vld [vmem:[#allocation137_spill] sm:$0xff] }
 0x778   : > { %v9947_v46 = vpop.eup %9946  ;;  %9966 = vrcp.f32 %v5485_v25  ;;  %v5476_v59 = vpop.xlane.xlu0 %5475  ;;  %v5762_v53 = vpack.c.bf16 %v5703_v36, %v5702_v39  ;;  %v6438_v62 = vmul.f32 %v9945_v22, %v18114_v42  ;;  %v18122_v21 = vsub.f32 %v18120_v18, %v18121_v14  ;;  %v18125_v6 = vld [vmem:[#allocation161_spill] sm:$0xff] }
 0x779   : > { %v9949_v54 = vpop.eup %9948  ;;  %9968 = vrcp.f32 %v5476_v59  ;;  %6328 = vadd.xlane.f32.xlu1 %v6327_v52  ;;  %v6440_v32 = vmul.f32 %v9947_v46, %v18116_v34  ;;  %v18124_v39 = vsub.f32 %v17947_v24, %v18123_v12  ;;  %v18126_v26 = vsub.f32 %v17953_v3, %v18125_v6  ;;  %v18127_v24 = vld [vmem:[#allocation145_spill] sm:$0xff]  ;;  %v18130_v3 = vld [vmem:[#allocation143_spill] sm:$0xff] }
 0x77a   : > { %v15254_v60 = vpop.eup %9950  ;;  %9970 = vrcp.f32 %v5482_v13  ;;  %8937 = vmatprep.mubr.msk.bf16.mxu0 %vm1845_vm0, %v5762_v53  ;;  %v5479_v19 = vpop.xlane.xlu1 %5478  ;;  %v6439_v50 = vmul.f32 %v9949_v54, %v18115_v45  ;;  %v18117_v13 = vld [vmem:[#allocation135_spill] sm:$0xff]  ;;  %v6152_v48 = vmul.f32 1.442695, %v18122_v21 }
 0x77b   : > { %v15261_v49 = vpop.eup %9952  ;;  %9972 = vrcp.f32 %v5479_v19  ;;  %5583 = vadd.xlane.f32.xlu0 %v5582_v15  ;;  %8938 = vmatmul.mubr.msk.bf16.gmra.mrb[248].mxu0 %vm1845_vm0, %v5763_v17  ;;  %v18119_v25 = vsub.f32 %v18117_v13, %v18118_v38  ;;  %v6499_v55 = vpack.c.bf16 %v6441_v27, %v6440_v32  ;;  %v6318_v36 = vsel %vm1845_vm0, %v15254_v60, 0.0  ;;  %v18131_v27 = vld [vmem:[#allocation10_spill] sm:$0xff]  ;;  %v18135_v38 = vld [vmem:[#allocation140_spill] sm:$0xff] }
 0x77c   : > { %v15265_v30 = vpop.eup %9954  ;;  %9974 = vrcp.f32 %v6221_v57  ;;  %v6212_v2 = vpop.xlane.xlu0 %6211  ;;  %v6498_v28 = vpack.c.bf16 %v6439_v50, %v6438_v62  ;;  %v5426_v57 = vmul.f32 1.442695, %v18124_v39  ;;  %v5428_v46 = vmul.f32 1.442695, %v18126_v26  ;;  %v18133_v62 = vld [vmem:[#allocation167_spill] sm:$0xff]  ;;  %v18141_v26 = vld [vmem:[#allocation105_spill] sm:$0xff] }
 0x77d   : > { %v6150_v31 = vmul.f32 1.442695, %v18119_v25  ;;  %v15272_v29 = vpop.eup %9956  ;;  %9976 = vrcp.f32 %v6212_v2  ;;  %5586 = vadd.xlane.f32.xlu1 %v5585_v8  ;;  %v6321_v17 = vsel %vm1845_vm0, %v15261_v49, 0.0  ;;  %v18132_v19 = vsub.f32 %v18130_v3, %v18131_v27  ;;  %v18136_v25 = vld [vmem:[#allocation73_spill] sm:$0xff]  ;;  %v18139_v39 = vld [vmem:[#allocation155_spill] sm:$0xff] }
 0x77e   : > { %v15277_v61 = vpop.eup %9958  ;;  %9978 = vrcp.f32 %v6218_v23  ;;  %9009 = vmatprep.mubr.msk.bf16.mxu1 %vm1845_vm0, %v6498_v28  ;;  %v6215_v40 = vpop.xlane.xlu1 %6214  ;;  %v18128_v23 = vld [vmem:[#allocation124_spill] sm:$0xff]  ;;  %v18134_v45 = vsub.f32 %v17969_v56, %v18133_v62  ;;  %v5600_v32 = vsel %vm1845_vm0, %v15265_v30, 0.0  ;;  %v5603_v18 = vsel %vm1845_vm0, %v15272_v29, 0.0  ;;  %v18138_v56 = vld [vmem:[#allocation110_spill] sm:$0xff]  ;;  %v18142_v27 = vld [vmem:[#allocation67_spill] sm:$0xff] }
 0x77f   : > { %v15285_v22 = vpop.eup %9960  ;;  %9980 = vrcp.f32 %v6215_v40  ;;  %6319 = vadd.xlane.f32.xlu0 %v6318_v36  ;;  %9010 = vmatmul.mubr.msk.bf16.gmra.mrb[248].mxu1 %vm1845_vm0, %v6499_v55  ;;  %v18129_v52 = vsub.f32 %v18127_v24, %v18128_v23  ;;  %v6164_v15 = vmul.f32 1.442695, %v18132_v19  ;;  %v6336_v12 = vsel %vm1845_vm0, %v15277_v61, 0.0  ;;  %v18140_v40 = vld [vmem:[#allocation142_spill] sm:$0xff] }
 0x780   : > { %v15291_v59 = vpop.eup %9962  ;;  %9982 = vpow2.f32 %v6150_v31  ;;  %v5494_v54 = vpop.xlane.xlu0 %5493  ;;  %v5422_v50 = vmul.f32 1.442695, %v18134_v45  ;;  %v18137_v31 = vsub.f32 %v18135_v38, %v18136_v25  ;;  %v18143_v45 = vld [vmem:[#allocation171_spill] sm:$0xff]  ;;  %v18145_v38 = vld [vmem:[#allocation150_spill] sm:$0xff] }
 0x781   : > { %v6162_v53 = vmul.f32 1.442695, %v18129_v52  ;;  %v15298_v1 = vpop.eup %9964  ;;  %9984 = vpow2.f32 %v6152_v48  ;;  %6322 = vadd.xlane.f32.xlu1 %v6321_v17  ;;  %v6339_v52 = vsel %vm1845_vm0, %v15285_v22, 0.0  ;;  %v5594_v62 = vsel %vm1845_vm0, %v15291_v59, 0.0 }
 0x782   : > { %v9967_v42 = vpop.eup %9966  ;;  %9986 = vpow2.f32 %v5426_v57  ;;  %v5497_v34 = vpop.xlane.xlu1 %5496  ;;  %v5424_v2 = vmul.f32 1.442695, %v18137_v31 }
 0x783   : > { %v9969_v13 = vpop.eup %9968  ;;  %9988 = vpow2.f32 %v5428_v46  ;;  %5601 = vadd.xlane.f32.xlu0 %v5600_v32  ;;  %v5709_v21 = vmul.f32 %v9967_v42, %v18138_v56  ;;  %v5597_v56 = vsel %vm1845_vm0, %v15298_v1, 0.0 }
 0x784   : > { %v9971_v8 = vpop.eup %9970  ;;  %9990 = vpow2.f32 %v6162_v53  ;;  %v6230_v28 = vpop.xlane.xlu0 %6229  ;;  %v5706_v57 = vmul.f32 %v9969_v13, %v18139_v39  ;;  %v18150_v39 = vld [vmem:[#allocation5_spill] sm:$0xff] }
 0x785   : > { %v9973_v14 = vpop.eup %9972  ;;  %9992 = vpow2.f32 %v6164_v15  ;;  %5604 = vadd.xlane.f32.xlu1 %v5603_v18  ;;  %v5708_v46 = vmul.f32 %v9971_v8, %v18141_v26  ;;  %v18153_v26 = vld [vmem:[#allocation100_spill] sm:$0xff] }
 0x786   : > { %v9975_v48 = vpop.eup %9974  ;;  %9994 = vpow2.f32 %v5422_v50  ;;  %v6233_v55 = vpop.xlane.xlu1 %6232  ;;  %v5707_v36 = vmul.f32 %v9973_v14, %v18140_v40 }
 0x787   : > { %v9977_v6 = vpop.eup %9976  ;;  %9996 = vpow2.f32 %v5424_v2  ;;  %6337 = vadd.xlane.f32.xlu0 %v6336_v12  ;;  %v5765_v3 = vpack.c.bf16 %v5709_v21, %v5708_v46  ;;  %v6445_v19 = vmul.f32 %v9975_v48, %v18142_v27  ;;  %v18147_v2 = vld [vmem:[#allocation39_spill] sm:$0xff]  ;;  %v18154_v46 = vld [vmem:[#allocation57_spill] sm:$0xff] }
 0x788   : > { %v9979_v24 = vpop.eup %9978  ;;  %9998 = vrcp.f32 %v5497_v34  ;;  %v5488_v23 = vpop.xlane.xlu0 %5487  ;;  %v5764_v53 = vpack.c.bf16 %v5707_v36, %v5706_v57  ;;  %v6442_v50 = vmul.f32 %v9977_v6, %v18143_v45  ;;  %v18144_v34 = vld [vmem:[#allocation90_spill] sm:$0xff]  ;;  %v18149_v12 = vld [vmem:[#allocation151_spill] sm:$0xff] }
 0x789   : > { %v9981_v17 = vpop.eup %9980  ;;  %10000 = vrcp.f32 %v5488_v23  ;;  %6340 = vadd.xlane.f32.xlu1 %v6339_v52  ;;  %v6444_v25 = vmul.f32 %v9979_v24, %v18145_v38  ;;  %v18151_v57 = vsub.f32 %v18149_v12, %v18150_v39  ;;  %v18155_v24 = vsub.f32 %v18153_v26, %v18154_v46  ;;  %v18168_v26 = vld [vmem:[#allocation109_spill] sm:$0xff]  ;;  %v18169_v46 = vld [vmem:[#allocation22_spill] sm:$0xff] }
 0x78a   : > { %v15322_v15 = vpop.eup %9982  ;;  %10002 = vrcp.f32 %v5494_v54  ;;  %8941 = vmatprep.mubr.msk.bf16.mxu0 %vm1845_vm0, %v5764_v53  ;;  %v5491_v42 = vpop.xlane.xlu1 %5490  ;;  %v6443_v32 = vmul.f32 %v9981_v17, %v18144_v34  ;;  %v18146_v54 = vld [vmem:[#allocation107_spill] sm:$0xff]  ;;  %v18156_v17 = vld [vmem:[#allocation98_spill] sm:$0xff] }
 0x78b   : > { %v15329_v13 = vpop.eup %9984  ;;  %10004 = vrcp.f32 %v5491_v42  ;;  %5595 = vadd.xlane.f32.xlu0 %v5594_v62  ;;  %8942 = vmatmul.mubr.msk.bf16.gmra.mrb[252].mxu0 %vm1845_vm0, %v5765_v3  ;;  %v18148_v8 = vsub.f32 %v18146_v54, %v18147_v2  ;;  %v6160_v40 = vmul.f32 1.442695, %v18151_v57  ;;  %v6501_v36 = vpack.c.bf16 %v6445_v19, %v6444_v25  ;;  %v18157_v3 = vld [vmem:[#allocation83_spill] sm:$0xff]  ;;  %v18160_v62 = vld [vmem:[#allocation61_spill] sm:$0xff]  ;;  %v18162_v25 = vld [vmem:[#allocation106_spill] sm:$0xff] }
 0x78c   : > { %v15333_v31 = vpop.eup %9986  ;;  %10006 = vrcp.f32 %v6233_v55  ;;  %v6224_v14 = vpop.xlane.xlu0 %6223  ;;  %v6500_v21 = vpack.c.bf16 %v6443_v32, %v6442_v50  ;;  %v5434_v55 = vmul.f32 1.442695, %v18155_v24  ;;  %v6330_v52 = vsel %vm1845_vm0, %v15322_v15, 0.0  ;;  %v18163_v54 = vld [vmem:[#allocation9_spill] sm:$0xff] }
 0x78d   : > { %v6158_v18 = vmul.f32 1.442695, %v18148_v8  ;;  %v15340_v48 = vpop.eup %9988  ;;  %10008 = vrcp.f32 %v6224_v14  ;;  %5598 = vadd.xlane.f32.xlu1 %v5597_v56  ;;  %v18158_v27 = vsub.f32 %v18156_v17, %v18157_v3  ;;  %v6333_v32 = vsel %vm1845_vm0, %v15329_v13, 0.0  ;;  %v18165_v56 = vld [vmem:[#allocation55_spill] sm:$0xff] }
 0x78e   : > { %v15345_v6 = vpop.eup %9990  ;;  %10010 = vrcp.f32 %v6230_v28  ;;  %9013 = vmatprep.mubr.msk.bf16.mxu1 %vm1845_vm0, %v6500_v21  ;;  %v6227_v23 = vpop.xlane.xlu1 %6226  ;;  %v18159_v28 = vld [vmem:[#allocation146_spill] sm:$0xff]  ;;  %v18164_v2 = vsub.f32 %v18162_v25, %v18163_v54  ;;  %v5612_v57 = vsel %vm1845_vm0, %v15333_v31, 0.0  ;;  %v18171_v3 = vld [vmem:[#allocation111_spill] sm:$0xff] }
 0x78f   : > { %18152 = vst [vmem:[#allocation81_spill] sm:$0xff] %v15345_v6  ;;  %v15353_v53 = vpop.eup %9992  ;;  %v5436_v42 = vmul.f32 1.442695, %v18158_v27  ;;  %10012 = vrcp.f32 %v6227_v23  ;;  %6331 = vadd.xlane.f32.xlu0 %v6330_v52  ;;  %9014 = vmatmul.mubr.msk.bf16.gmra.mrb[252].mxu1 %vm1845_vm0, %v6501_v36  ;;  %v18161_v45 = vsub.f32 %v18159_v28, %v18160_v62  ;;  %v18173_v25 = vld [vmem:[#allocation63_spill] sm:$0xff] }
 0x790   : > { %v15359_v19 = vpop.eup %9994  ;;  %10014 = vpow2.f32 %v6158_v18  ;;  %v5506_v34 = vpop.xlane.xlu0 %5505  ;;  %v5432_v8 = vmul.f32 1.442695, %v18164_v2  ;;  %v18166_v18 = vld [vmem:[#allocation16_spill] sm:$0xff]  ;;  %v18174_v2 = vld [vmem:[#allocation113_spill] sm:$0xff] }
 0x791   : > { %v5430_v50 = vmul.f32 1.442695, %v18161_v45  ;;  %v15366_v38 = vpop.eup %9996  ;;  %10016 = vpow2.f32 %v6160_v40  ;;  %6334 = vadd.xlane.f32.xlu1 %v6333_v32  ;;  %v18167_v21 = vsub.f32 %v18165_v56, %v18166_v18  ;;  %v18170_v40 = vsub.f32 %v18168_v26, %v18169_v46  ;;  %v18172_v45 = vld [vmem:[#allocation112_spill] sm:$0xff]  ;;  %v18175_v26 = vld [vmem:[#allocation87_spill] sm:$0xff] }
 0x792   : > { %v9999_v14 = vpop.eup %9998  ;;  %10018 = vpow2.f32 %v5434_v55  ;;  %v5509_v39 = vpop.xlane.xlu1 %5508  ;;  %v5615_v55 = vsel %vm1845_vm0, %v15340_v48, 0.0 }
 0x793   : > { %v6166_v12 = vmul.f32 1.442695, %v18167_v21  ;;  %v10001_v36 = vpop.eup %10000  ;;  %10020 = vpow2.f32 %v5436_v42  ;;  %v6168_v24 = vmul.f32 1.442695, %v18170_v40  ;;  %5613 = vadd.xlane.f32.xlu0 %v5612_v57  ;;  %v5713_v27 = vmul.f32 %v9999_v14, %v18171_v3 }
 0x794   : > { %v10003_v23 = vpop.eup %10002  ;;  %10022 = vpow2.f32 %v5430_v50  ;;  %v6242_v52 = vpop.xlane.xlu0 %6241  ;;  %v6348_v42 = vsel %vm1845_vm0, %v15345_v6, 0.0  ;;  %v5710_v32 = vmul.f32 %v10001_v36, %v18172_v45  ;;  %v6351_v14 = vsel %vm1845_vm0, %v15353_v53, 0.0  ;;  %v18193_v6 = vld [vmem:[#allocation13_spill] sm:$0xff] }
 0x795   : > { %v10005_v17 = vpop.eup %10004  ;;  %10024 = vpow2.f32 %v5432_v8  ;;  %5616 = vadd.xlane.f32.xlu1 %v5615_v55  ;;  %v5712_v56 = vmul.f32 %v10003_v23, %v18174_v2  ;;  %v18177_v55 = vld [vmem:[#allocation60_spill] sm:$0xff]  ;;  %v5609_v45 = vsel %vm1845_vm0, %v15366_v38, 0.0 }
 0x796   : > { %v10007_v28 = vpop.eup %10006  ;;  %10026 = vpow2.f32 %v6166_v12  ;;  %v6245_v62 = vpop.xlane.xlu1 %6244  ;;  %v5711_v54 = vmul.f32 %v10005_v17, %v18173_v25 }
 0x797   : > { %v10009_v50 = vpop.eup %10008  ;;  %10028 = vpow2.f32 %v6168_v24  ;;  %6349 = vadd.xlane.f32.xlu0 %v6348_v42  ;;  %v5767_v57 = vpack.c.bf16 %v5713_v27, %v5712_v56  ;;  %v6449_v46 = vmul.f32 %v10007_v28, %v18175_v26  ;;  %v18176_v24 = vld [vmem:[#allocation64_spill] sm:$0xff]  ;;  %v18179_v27 = vld [vmem:[#allocation170_spill] sm:$0xff] }
 0x798   : > { %v10011_v18 = vpop.eup %10010  ;;  %10030 = vrcp.f32 %v5509_v39  ;;  %v5500_v8 = vpop.xlane.xlu0 %5499  ;;  %v5766_v21 = vpack.c.bf16 %v5711_v54, %v5710_v32  ;;  %v5606_v39 = vsel %vm1845_vm0, %v15359_v19, 0.0  ;;  %v6446_v23 = vmul.f32 %v10009_v50, %v18176_v24  ;;  %v18182_v54 = vld [vmem:[#allocation108_spill] sm:$0xff]  ;;  %v18183_v50 = vld [vmem:[#allocation35_spill] sm:$0xff] }
 0x799   : > { %v10013_v12 = vpop.eup %10012  ;;  %10032 = vrcp.f32 %v5500_v8  ;;  %6352 = vadd.xlane.f32.xlu1 %v6351_v14  ;;  %v6448_v42 = vmul.f32 %v10011_v18, %v18179_v27  ;;  %v18184_v2 = vsub.f32 %v18182_v54, %v18183_v50  ;;  %v18189_v54 = vld [vmem:[#allocation62_spill] sm:$0xff] }
 0x79a   : > { %v15390_v36 = vpop.eup %10014  ;;  %10034 = vrcp.f32 %v5506_v34  ;;  %8945 = vmatprep.mubr.msk.bf16.mxu0 %vm1845_vm0, %v5766_v21  ;;  %v5503_v40 = vpop.xlane.xlu1 %5502  ;;  %v6447_v17 = vmul.f32 %v10013_v12, %v18177_v55  ;;  %v18185_v12 = vld [vmem:[#allocation58_spill] sm:$0xff] }
 0x79b   : > { %v15397_v3 = vpop.eup %10016  ;;  %10036 = vrcp.f32 %v5503_v40  ;;  %5607 = vadd.xlane.f32.xlu0 %v5606_v39  ;;  %8946 = vmatmul.mubr.msk.bf16.gmra.mrb[0].mxu0 %vm1845_vm0, %v5767_v57  ;;  %v6170_v56 = vmul.f32 1.442695, %v18184_v2  ;;  %v6503_v8 = vpack.c.bf16 %v6449_v46, %v6448_v42  ;;  %v6342_v14 = vsel %vm1845_vm0, %v15390_v36, 0.0  ;;  %v18186_v57 = vld [vmem:[#allocation14_spill] sm:$0xff] }
 0x79c   : > { %18178 = vst [vmem:[#allocation82_spill] sm:$0xff] %v15397_v3  ;;  %v15401_v28 = vpop.eup %10018  ;;  %10038 = vrcp.f32 %v6245_v62  ;;  %v6236_v34 = vpop.xlane.xlu0 %6235  ;;  %v6502_v32 = vpack.c.bf16 %v6447_v17, %v6446_v23  ;;  %v18187_v26 = vsub.f32 %v18185_v12, %v18186_v57  ;;  %v18191_v12 = vld [vmem:[#allocation158_spill] sm:$0xff] }
 0x79d   : > { %18180 = vst [vmem:[#allocation181_spill] sm:$0xff] %v15401_v28  ;;  %v15405_v25 = vpop.eup %10020  ;;  %10040 = vrcp.f32 %v6236_v34  ;;  %5610 = vadd.xlane.f32.xlu1 %v5609_v45  ;;  %v5624_v17 = vsel %vm1845_vm0, %v15401_v28, 0.0 }
 0x79e   : > { %18181 = vst [vmem:[#allocation132_spill] sm:$0xff] %v15405_v25  ;;  %v15410_v18 = vpop.eup %10022  ;;  %10042 = vrcp.f32 %v6242_v52  ;;  %9017 = vmatprep.mubr.msk.bf16.mxu1 %vm1845_vm0, %v6502_v32  ;;  %v6239_v62 = vpop.xlane.xlu1 %6238  ;;  %v6172_v40 = vmul.f32 1.442695, %v18187_v26  ;;  %v6345_v52 = vsel %vm1845_vm0, %v15397_v3, 0.0  ;;  %v5627_v45 = vsel %vm1845_vm0, %v15405_v25, 0.0 }
 0x79f   : > { %v15415_v21 = vpop.eup %10024  ;;  %10044 = vrcp.f32 %v6239_v62  ;;  %6343 = vadd.xlane.f32.xlu0 %v6342_v14  ;;  %9018 = vmatmul.mubr.msk.bf16.gmra.mrb[0].mxu1 %vm1845_vm0, %v6503_v8  ;;  %v5618_v8 = vsel %vm1845_vm0, %v15410_v18, 0.0  ;;  %v18190_v62 = vld [vmem:[#allocation123_spill] sm:$0xff] }
 0x7a0   : > { %v15421_v46 = vpop.eup %10026  ;;  %v5518_v39 = vpop.xlane.xlu0 %5517  ;;  %10046 = vpow2.f32 %v6170_v56 }
 0x7a1   : > { %v15425_v24 = vpop.eup %10028  ;;  %6346 = vadd.xlane.f32.xlu1 %v6345_v52  ;;  %10048 = vpow2.f32 %v6172_v40  ;;  %v18192_v40 = vld [vmem:[#allocation89_spill] sm:$0xff] }
 0x7a2   : > { %18188 = vst [vmem:[#allocation129_spill] sm:$0xff] %v15425_v24  ;;  %v10031_v23 = vpop.eup %10030  ;;  %v5521_v55 = vpop.xlane.xlu1 %5520 }
 0x7a3   : > { %v10033_v27 = vpop.eup %10032  ;;  %5625 = vadd.xlane.f32.xlu0 %v5624_v17  ;;  %v5717_v50 = vmul.f32 %v10031_v23, %v18189_v54  ;;  %10050 = vrcp.f32 %v5521_v55  ;;  %v5621_v23 = vsel %vm1845_vm0, %v15415_v21, 0.0 }
 0x7a4   : > { %v10035_v42 = vpop.eup %10034  ;;  %v6254_v34 = vpop.xlane.xlu0 %6253  ;;  %v5714_v14 = vmul.f32 %v10033_v27, %v18190_v62 }
 0x7a5   : > { %v10037_v32 = vpop.eup %10036  ;;  %5628 = vadd.xlane.f32.xlu1 %v5627_v45  ;;  %v5716_v52 = vmul.f32 %v10035_v42, %v18192_v40  ;;  %v6354_v42 = vsel %vm1845_vm0, %v15421_v46, 0.0 }
 0x7a6   : > { %v10039_v2 = vpop.eup %10038  ;;  %v6257_v56 = vpop.xlane.xlu1 %6256  ;;  %v5715_v57 = vmul.f32 %v10037_v32, %v18191_v12  ;;  %v18194_v32 = vld [vmem:[#allocation66_spill] sm:$0xff] }
 0x7a7   : > { %v10041_v26 = vpop.eup %10040  ;;  %5619 = vadd.xlane.f32.xlu0 %v5618_v8  ;;  %v5769_v25 = vpack.c.bf16 %v5717_v50, %v5716_v52  ;;  %v6453_v3 = vmul.f32 %v10039_v2, %v18193_v6  ;;  %v18195_v8 = vld [vmem:[#allocation119_spill] sm:$0xff] }
 0x7a8   : > { %v10043_v17 = vpop.eup %10042  ;;  %v5512_v28 = vpop.xlane.xlu0 %5511  ;;  %v5768_v45 = vpack.c.bf16 %v5715_v57, %v5714_v14  ;;  %v6450_v55 = vmul.f32 %v10041_v26, %v18194_v32  ;;  %v18197_v14 = vld [vmem:[#allocation75_spill] sm:$0xff] }
 0x7a9   : > { %v10045_v54 = vpop.eup %10044  ;;  %10052 = vrcp.f32 %v5512_v28  ;;  %5622 = vadd.xlane.f32.xlu1 %v5621_v23  ;;  %v6452_v57 = vmul.f32 %v10043_v17, %v18197_v14  ;;  %v6357_v28 = vsel %vm1845_vm0, %v15425_v24, 0.0 }
 0x7aa   : > { %10054 = vrcp.f32 %v5518_v39  ;;  %8949 = vmatprep.mubr.msk.bf16.mxu0 %vm1845_vm0, %v5768_v45  ;;  %v5515_v27 = vpop.xlane.xlu1 %5514  ;;  %v6451_v62 = vmul.f32 %v10045_v54, %v18195_v8  ;;  %v15445_v12 = vpop.eup %10046  ;;  %v18199_v54 = vld [vmem:[#allocation173_spill] sm:$0xff] }
 0x7ab   : > { %18196 = vst [vmem:[#allocation180_spill] sm:$0xff] %v15445_v12  ;;  %10056 = vrcp.f32 %v5515_v27  ;;  %6355 = vadd.xlane.f32.xlu0 %v6354_v42  ;;  %8950 = vmatmul.mubr.msk.bf16.gmra.mrb[4].mxu0 %vm1845_vm0, %v5769_v25  ;;  %v15451_v50 = vpop.eup %10048  ;;  %v6505_v2 = vpack.c.bf16 %v6453_v3, %v6452_v57  ;;  %v6360_v40 = vsel %vm1845_vm0, %v15445_v12, 0.0 }
 0x7ac   : > { %10058 = vrcp.f32 %v6257_v56  ;;  %v6248_v6 = vpop.xlane.xlu0 %6247  ;;  %v6504_v39 = vpack.c.bf16 %v6451_v62, %v6450_v55  ;;  %18198 = vst [vmem:[#allocation85_spill] sm:$0xff] %v15451_v50  ;;  %v6363_v56 = vsel %vm1845_vm0, %v15451_v50, 0.0  ;;  %v18200_v55 = vld [vmem:[#allocation122_spill] sm:$0xff]  ;;  %v18201_v62 = vld [vmem:[#allocation56_spill] sm:$0xff]  ;;  %v18203_v50 = vld [vmem:[#allocation51_spill] sm:$0xff] }
 0x7ad   : > { %10060 = vrcp.f32 %v6248_v6  ;;  %6358 = vadd.xlane.f32.xlu1 %v6357_v28  ;;  %v10051_v52 = vpop.eup %10050  ;;  %v18202_v6 = vld [vmem:[#allocation99_spill] sm:$0xff] }
 0x7ae   : > { %10062 = vrcp.f32 %v6254_v34  ;;  %9021 = vmatprep.mubr.msk.bf16.mxu1 %vm1845_vm0, %v6504_v39  ;;  %v6251_v26 = vpop.xlane.xlu1 %6250  ;;  %v5721_v27 = vmul.f32 %v10051_v52, %v18199_v54  ;;  %v18204_v54 = vld [vmem:[#allocation174_spill] sm:$0xff] }
 0x7af   : > { %10064 = vrcp.f32 %v6251_v26  ;;  %6361 = vadd.xlane.f32.xlu0 %v6360_v40  ;;  %9022 = vmatmul.mubr.msk.bf16.gmra.mrb[4].mxu1 %vm1845_vm0, %v6505_v2 }
 0x7b0   : > { %v5530_v25 = vpop.xlane.xlu0 %5529 }
 0x7b1   : > { %6364 = vadd.xlane.f32.xlu1 %v6363_v56 }
 0x7b2   : > { %v5533_v3 = vpop.xlane.xlu1 %5532 }
 0x7b3   : > { %v10053_v17 = vpop.eup %10052  ;;  %10066 = vrcp.f32 %v5533_v3 }
 0x7b4   : > { %v10055_v23 = vpop.eup %10054  ;;  %v6266_v34 = vpop.xlane.xlu0 %6265  ;;  %v5718_v8 = vmul.f32 %v10053_v17, %v18200_v55  ;;  %v18205_v55 = vld [vmem:[#allocation97_spill] sm:$0xff] }
 0x7b5   : > { %v10057_v45 = vpop.eup %10056  ;;  %v5720_v28 = vmul.f32 %v10055_v23, %v18202_v6 }
 0x7b6   : > { %v10059_v42 = vpop.eup %10058  ;;  %v6269_v32 = vpop.xlane.xlu1 %6268  ;;  %v5719_v14 = vmul.f32 %v10057_v45, %v18201_v62  ;;  %v18206_v62 = vld [vmem:[#allocation163_spill] sm:$0xff] }
 0x7b7   : > { %v10061_v57 = vpop.eup %10060  ;;  %v5771_v56 = vpack.c.bf16 %v5721_v27, %v5720_v28  ;;  %v6457_v12 = vmul.f32 %v10059_v42, %v18203_v50 }
 0x7b8   : > { %v10063_v39 = vpop.eup %10062  ;;  %v5524_v2 = vpop.xlane.xlu0 %5523  ;;  %v5770_v26 = vpack.c.bf16 %v5719_v14, %v5718_v8  ;;  %v6454_v17 = vmul.f32 %v10061_v57, %v18204_v54 }
 0x7b9   : > { %v10065_v40 = vpop.eup %10064  ;;  %10068 = vrcp.f32 %v5524_v2  ;;  %v6456_v24 = vmul.f32 %v10063_v39, %v18206_v62  ;;  %v18207_v39 = vld [vmem:[#allocation20_spill] sm:$0xff] }
 0x7ba   : > { %10070 = vrcp.f32 %v5530_v25  ;;  %8953 = vmatprep.mubr.msk.bf16.mxu0 %vm1845_vm0, %v5770_v26  ;;  %v5527_v52 = vpop.xlane.xlu1 %5526  ;;  %v6455_v45 = vmul.f32 %v10065_v40, %v18205_v55 }
 0x7bb   : > { %10072 = vrcp.f32 %v5527_v52  ;;  %8954 = vmatmul.mubr.msk.bf16.gmra.mrb[8].mxu0 %vm1845_vm0, %v5771_v56  ;;  %v6507_v27 = vpack.c.bf16 %v6457_v12, %v6456_v24  ;;  %v18208_v24 = vld [vmem:[#allocation175_spill] sm:$0xff]  ;;  %v18210_v52 = vld [vmem:[#allocation160_spill] sm:$0xff] }
 0x7bc   : > { %10074 = vrcp.f32 %v6269_v32  ;;  %v6260_v3 = vpop.xlane.xlu0 %6259  ;;  %v6506_v23 = vpack.c.bf16 %v6455_v45, %v6454_v17 }
 0x7bd   : > { %10076 = vrcp.f32 %v6260_v3  ;;  %v10067_v42 = vpop.eup %10066 }
 0x7be   : > { %10078 = vrcp.f32 %v6266_v34  ;;  %9025 = vmatprep.mubr.msk.bf16.mxu1 %vm1845_vm0, %v6506_v23  ;;  %v6263_v50 = vpop.xlane.xlu1 %6262  ;;  %v5725_v32 = vmul.f32 %v10067_v42, %v18207_v39  ;;  %v18209_v34 = vld [vmem:[#allocation19_spill] sm:$0xff]  ;;  %v18213_v39 = vld [vmem:[#allocation17_spill] sm:$0xff] }
 0x7bf   : > { %10080 = vrcp.f32 %v6263_v50  ;;  %9026 = vmatmul.mubr.msk.bf16.gmra.mrb[8].mxu1 %vm1845_vm0, %v6507_v27  ;;  %v18211_v23 = vld [vmem:[#allocation59_spill] sm:$0xff] }
 0x7c0   : > { %v5542_v25 = vpop.xlane.xlu0 %5541  ;;  %v18212_v42 = vld [vmem:[#allocation3_spill] sm:$0xff] }
 0x7c2   : > { %v5545_v8 = vpop.xlane.xlu1 %5544 }
 0x7c3   : > { %v10069_v14 = vpop.eup %10068  ;;  %10082 = vrcp.f32 %v5545_v8 }
 0x7c4   : > { %v10071_v57 = vpop.eup %10070  ;;  %v6278_v6 = vpop.xlane.xlu0 %6277  ;;  %v5722_v12 = vmul.f32 %v10069_v14, %v18208_v24  ;;  %v18214_v24 = vld [vmem:[#allocation70_spill] sm:$0xff] }
 0x7c5   : > { %v10073_v28 = vpop.eup %10072  ;;  %v5724_v54 = vmul.f32 %v10071_v57, %v18210_v52 }
 0x7c6   : > { %v10075_v2 = vpop.eup %10074  ;;  %v6281_v26 = vpop.xlane.xlu1 %6280  ;;  %v5723_v40 = vmul.f32 %v10073_v28, %v18209_v34 }
 0x7c7   : > { %v10077_v56 = vpop.eup %10076  ;;  %v5773_v3 = vpack.c.bf16 %v5725_v32, %v5724_v54  ;;  %v6461_v27 = vmul.f32 %v10075_v2, %v18211_v23 }
 0x7c8   : > { %v10079_v17 = vpop.eup %10078  ;;  %v5536_v55 = vpop.xlane.xlu0 %5535  ;;  %v5772_v45 = vpack.c.bf16 %v5723_v40, %v5722_v12  ;;  %v6458_v14 = vmul.f32 %v10077_v56, %v18212_v42  ;;  %v18218_v42 = vld [vmem:[#allocation121_spill] sm:$0xff] }
 0x7c9   : > { %v10081_v62 = vpop.eup %10080  ;;  %10084 = vrcp.f32 %v5536_v55  ;;  %v6460_v34 = vmul.f32 %v10079_v17, %v18214_v24  ;;  %v18215_v55 = vld [vmem:[#allocation7_spill] sm:$0xff] }
 0x7ca   : > { %10086 = vrcp.f32 %v5542_v25  ;;  %8957 = vmatprep.mubr.msk.bf16.mxu0 %vm1845_vm0, %v5772_v45  ;;  %v5539_v50 = vpop.xlane.xlu1 %5538  ;;  %v6459_v28 = vmul.f32 %v10081_v62, %v18213_v39 }
 0x7cb   : > { %10088 = vrcp.f32 %v5539_v50  ;;  %8958 = vmatmul.mubr.msk.bf16.gmra.mrb[12].mxu0 %vm1845_vm0, %v5773_v3  ;;  %v6509_v32 = vpack.c.bf16 %v6461_v27, %v6460_v34  ;;  %v18216_v3 = vld [vmem:[#allocation77_spill] sm:$0xff] }
 0x7cc   : > { %10090 = vrcp.f32 %v6281_v26  ;;  %v6272_v8 = vpop.xlane.xlu0 %6271  ;;  %v6508_v57 = vpack.c.bf16 %v6459_v28, %v6458_v14 }
 0x7cd   : > { %10092 = vrcp.f32 %v6272_v8  ;;  %v10083_v12 = vpop.eup %10082 }
 0x7ce   : > { %10094 = vrcp.f32 %v6278_v6  ;;  %9029 = vmatprep.mubr.msk.bf16.mxu1 %vm1845_vm0, %v6508_v57  ;;  %v6275_v25 = vpop.xlane.xlu1 %6274  ;;  %v5729_v26 = vmul.f32 %v10083_v12, %v18215_v55  ;;  %v18217_v6 = vld [vmem:[#allocation21_spill] sm:$0xff]  ;;  %v18219_v57 = vld [vmem:[#allocation139_spill] sm:$0xff]  ;;  %v18221_v55 = vld [vmem:[#allocation104_spill] sm:$0xff] }
 0x7cf   : > { %10096 = vrcp.f32 %v6275_v25  ;;  %9030 = vmatmul.mubr.msk.bf16.gmra.mrb[12].mxu1 %vm1845_vm0, %v6509_v32  ;;  %v18220_v12 = vld [vmem:[#allocation149_spill] sm:$0xff] }
 0x7d0   : > { %v5554_v2 = vpop.xlane.xlu0 %5553 }
 0x7d2   : > { %v5557_v40 = vpop.xlane.xlu1 %5556 }
 0x7d3   : > { %v10085_v56 = vpop.eup %10084  ;;  %10098 = vrcp.f32 %v5557_v40 }
 0x7d4   : > { %v10087_v52 = vpop.eup %10086  ;;  %v6290_v54 = vpop.xlane.xlu0 %6289  ;;  %v5726_v23 = vmul.f32 %v10085_v56, %v18216_v3  ;;  %v18222_v3 = vld [vmem:[#allocation12_spill] sm:$0xff] }
 0x7d5   : > { %v10089_v17 = vpop.eup %10088  ;;  %v5728_v14 = vmul.f32 %v10087_v52, %v18218_v42 }
 0x7d6   : > { %v10091_v45 = vpop.eup %10090  ;;  %v6293_v62 = vpop.xlane.xlu1 %6292  ;;  %v5727_v27 = vmul.f32 %v10089_v17, %v18217_v6 }
 0x7d7   : > { %v10093_v50 = vpop.eup %10092  ;;  %v5775_v8 = vpack.c.bf16 %v5729_v26, %v5728_v14  ;;  %v6465_v32 = vmul.f32 %v10091_v45, %v18219_v57 }
 0x7d8   : > { %v10095_v39 = vpop.eup %10094  ;;  %v5548_v28 = vpop.xlane.xlu0 %5547  ;;  %v5774_v24 = vpack.c.bf16 %v5727_v27, %v5726_v23  ;;  %v6462_v56 = vmul.f32 %v10093_v50, %v18220_v12  ;;  %v18226_v12 = vld [vmem:[#allocation159_spill] sm:$0xff] }
 0x7d9   : > { %v10097_v34 = vpop.eup %10096  ;;  %10100 = vrcp.f32 %v5548_v28  ;;  %v6464_v6 = vmul.f32 %v10095_v39, %v18222_v3  ;;  %v18223_v28 = vld [vmem:[#allocation148_spill] sm:$0xff] }
 0x7da   : > { %10102 = vrcp.f32 %v5554_v2  ;;  %8961 = vmatprep.mubr.msk.bf16.mxu0 %vm1845_vm0, %v5774_v24  ;;  %v5551_v25 = vpop.xlane.xlu1 %5550  ;;  %v6463_v17 = vmul.f32 %v10097_v34, %v18221_v55 }
 0x7db   : > { %10104 = vrcp.f32 %v5551_v25  ;;  %8962 = vmatmul.mubr.msk.bf16.gmra.mrb[16].mxu0 %vm1845_vm0, %v5775_v8  ;;  %v6511_v26 = vpack.c.bf16 %v6465_v32, %v6464_v6  ;;  %v18224_v8 = vld [vmem:[#allocation78_spill] sm:$0xff] }
 0x7dc   : > { %10106 = vrcp.f32 %v6293_v62  ;;  %v6284_v40 = vpop.xlane.xlu0 %6283  ;;  %v6510_v52 = vpack.c.bf16 %v6463_v17, %v6462_v56 }
 0x7dd   : > { %10108 = vrcp.f32 %v6284_v40  ;;  %v10099_v23 = vpop.eup %10098 }
 0x7de   : > { %10110 = vrcp.f32 %v6290_v54  ;;  %9033 = vmatprep.mubr.msk.bf16.mxu1 %vm1845_vm0, %v6510_v52  ;;  %v6287_v2 = vpop.xlane.xlu1 %6286  ;;  %v5733_v62 = vmul.f32 %v10099_v23, %v18223_v28  ;;  %v18225_v54 = vld [vmem:[#allocation153_spill] sm:$0xff]  ;;  %v18227_v52 = vld [vmem:[#allocation79_spill] sm:$0xff]  ;;  %v18228_v23 = vld [vmem:[#allocation80_spill] sm:$0xff] }
 0x7df   : > { %10112 = vrcp.f32 %v6287_v2  ;;  %9034 = vmatmul.mubr.msk.bf16.gmra.mrb[16].mxu1 %vm1845_vm0, %v6511_v26  ;;  %v18229_v28 = vld [vmem:[#allocation127_spill] sm:$0xff] }
 0x7e0   : > { %v5566_v45 = vpop.xlane.xlu0 %5565 }
 0x7e2   : > { %v5569_v27 = vpop.xlane.xlu1 %5568 }
 0x7e3   : > { %v10101_v50 = vpop.eup %10100  ;;  %10114 = vrcp.f32 %v5569_v27 }
 0x7e4   : > { %v10103_v42 = vpop.eup %10102  ;;  %v6302_v14 = vpop.xlane.xlu0 %6301  ;;  %v5730_v57 = vmul.f32 %v10101_v50, %v18224_v8  ;;  %v18230_v8 = vld [vmem:[#allocation18_spill] sm:$0xff] }
 0x7e5   : > { %v10105_v39 = vpop.eup %10104  ;;  %v5732_v56 = vmul.f32 %v10103_v42, %v18226_v12 }
 0x7e6   : > { %v10107_v24 = vpop.eup %10106  ;;  %v6305_v34 = vpop.xlane.xlu1 %6304  ;;  %v5731_v32 = vmul.f32 %v10105_v39, %v18225_v54 }
 0x7e7   : > { %v10109_v25 = vpop.eup %10108  ;;  %v5777_v40 = vpack.c.bf16 %v5733_v62, %v5732_v56  ;;  %v6469_v26 = vmul.f32 %v10107_v24, %v18227_v52 }
 0x7e8   : > { %v10111_v55 = vpop.eup %10110  ;;  %v5560_v17 = vpop.xlane.xlu0 %5559  ;;  %v5776_v3 = vpack.c.bf16 %v5731_v32, %v5730_v57  ;;  %v6466_v50 = vmul.f32 %v10109_v25, %v18228_v23 }
 0x7e9   : > { %v10113_v6 = vpop.eup %10112  ;;  %10116 = vrcp.f32 %v5560_v17  ;;  %v6468_v54 = vmul.f32 %v10111_v55, %v18230_v8  ;;  %v18231_v17 = vld [vmem:[#allocation179_spill] sm:$0xff] }
 0x7ea   : > { %10118 = vrcp.f32 %v5566_v45  ;;  %8965 = vmatprep.mubr.msk.bf16.mxu0 %vm1845_vm0, %v5776_v3  ;;  %v5563_v2 = vpop.xlane.xlu1 %5562  ;;  %v6467_v39 = vmul.f32 %v10113_v6, %v18229_v28 }
 0x7eb   : > { %10120 = vrcp.f32 %v5563_v2  ;;  %8966 = vmatmul.mubr.msk.bf16.gmra.mrb[20].mxu0 %vm1845_vm0, %v5777_v40  ;;  %v6513_v62 = vpack.c.bf16 %v6469_v26, %v6468_v54  ;;  %v18232_v26 = vld [vmem:[#allocation162_spill] sm:$0xff] }
 0x7ec   : > { %10122 = vrcp.f32 %v6305_v34  ;;  %v6296_v27 = vpop.xlane.xlu0 %6295  ;;  %v6512_v42 = vpack.c.bf16 %v6467_v39, %v6466_v50 }
 0x7ed   : > { %10124 = vrcp.f32 %v6296_v27  ;;  %v10115_v57 = vpop.eup %10114 }
 0x7ee   : > { %10126 = vrcp.f32 %v6302_v14  ;;  %9037 = vmatprep.mubr.msk.bf16.mxu1 %vm1845_vm0, %v6512_v42  ;;  %v6299_v45 = vpop.xlane.xlu1 %6298  ;;  %v5737_v34 = vmul.f32 %v10115_v57, %v18231_v17  ;;  %v18233_v42 = vld [vmem:[#allocation128_spill] sm:$0xff] }
 0x7ef   : > { %10128 = vrcp.f32 %v6299_v45  ;;  %9038 = vmatmul.mubr.msk.bf16.gmra.mrb[20].mxu1 %vm1845_vm0, %v6513_v62 }
 0x7f0   : > { %v5578_v24 = vpop.xlane.xlu0 %5577 }
 0x7f2   : > { %v5581_v32 = vpop.xlane.xlu1 %5580 }
 0x7f3   : > { %v10117_v25 = vpop.eup %10116  ;;  %10130 = vrcp.f32 %v5581_v32 }
 0x7f4   : > { %v10119_v12 = vpop.eup %10118  ;;  %v6314_v56 = vpop.xlane.xlu0 %6313  ;;  %v5734_v40 = vmul.f32 %v10117_v25, %v15087_v41 }
 0x7f5   : > { %v10121_v55 = vpop.eup %10120  ;;  %v5736_v2 = vmul.f32 %v10119_v12, %v18232_v26 }
 0x7f6   : > { %v10123_v3 = vpop.eup %10122  ;;  %v6317_v6 = vpop.xlane.xlu1 %6316  ;;  %v5735_v14 = vmul.f32 %v10121_v55, %v15094_v5 }
 0x7f7   : > { %v10125_v52 = vpop.eup %10124  ;;  %v5779_v8 = vpack.c.bf16 %v5737_v34, %v5736_v2  ;;  %v6473_v54 = vmul.f32 %v10123_v3, %v15082_v0 }
 0x7f8   : > { %v10127_v23 = vpop.eup %10126  ;;  %v5572_v50 = vpop.xlane.xlu0 %5571  ;;  %v5778_v28 = vpack.c.bf16 %v5735_v14, %v5734_v40  ;;  %v6470_v41 = vmul.f32 %v10125_v52, %v15118_v11 }
 0x7f9   : > { %v10129_v39 = vpop.eup %10128  ;;  %10132 = vrcp.f32 %v5572_v50  ;;  %v6472_v62 = vmul.f32 %v10127_v23, %v18233_v42 }
 0x7fa   : > { %10134 = vrcp.f32 %v5578_v24  ;;  %8969 = vmatprep.mubr.msk.bf16.mxu0 %vm1845_vm0, %v5778_v28  ;;  %v5575_v27 = vpop.xlane.xlu1 %5574  ;;  %v6471_v5 = vmul.f32 %v10129_v39, %v15125_v7 }
 0x7fb   : > { %10136 = vrcp.f32 %v5575_v27  ;;  %8970 = vmatmul.mubr.msk.bf16.gmra.mrb[24].mxu0 %vm1845_vm0, %v5779_v8  ;;  %v6515_v32 = vpack.c.bf16 %v6473_v54, %v6472_v62 }
 0x7fc   : > { %10138 = vrcp.f32 %v6317_v6  ;;  %v6308_v45 = vpop.xlane.xlu0 %6307  ;;  %v6514_v57 = vpack.c.bf16 %v6471_v5, %v6470_v41 }
 0x7fd   : > { %10140 = vrcp.f32 %v6308_v45  ;;  %v10131_v24 = vpop.eup %10130 }
 0x7fe   : > { %10142 = vrcp.f32 %v6314_v56  ;;  %9041 = vmatprep.mubr.msk.bf16.mxu1 %vm1845_vm0, %v6514_v57  ;;  %v6311_v0 = vpop.xlane.xlu1 %6310  ;;  %v5741_v34 = vmul.f32 %v10131_v24, %v15136_v51 }
 0x7ff   : > { %10144 = vrcp.f32 %v6311_v0  ;;  %9042 = vmatmul.mubr.msk.bf16.gmra.mrb[24].mxu1 %vm1845_vm0, %v6515_v32 }
 0x800   : > { %v5590_v11 = vpop.xlane.xlu0 %5589 }
 0x802   : > { %v5593_v7 = vpop.xlane.xlu1 %5592 }
 0x803   : > { %v10133_v25 = vpop.eup %10132  ;;  %10146 = vrcp.f32 %v5593_v7 }
 0x804   : > { %v10135_v12 = vpop.eup %10134  ;;  %v6326_v55 = vpop.xlane.xlu0 %6325  ;;  %v5738_v40 = vmul.f32 %v10133_v25, %v15155_v43 }
 0x805   : > { %v10137_v17 = vpop.eup %10136  ;;  %v5740_v52 = vmul.f32 %v10135_v12, %v15129_v63 }
 0x806   : > { %v10139_v3 = vpop.eup %10138  ;;  %v6329_v6 = vpop.xlane.xlu1 %6328  ;;  %v5739_v56 = vmul.f32 %v10137_v17, %v15162_v58 }
 0x807   : > { %v10141_v14 = vpop.eup %10140  ;;  %v5781_v28 = vpack.c.bf16 %v5741_v34, %v5740_v52  ;;  %v6477_v39 = vmul.f32 %v10139_v3, %v15149_v37 }
 0x808   : > { %v10143_v26 = vpop.eup %10142  ;;  %v5584_v2 = vpop.xlane.xlu0 %5583  ;;  %v5780_v23 = vpack.c.bf16 %v5739_v56, %v5738_v40  ;;  %v6474_v43 = vmul.f32 %v10141_v14, %v15186_v9 }
 0x809   : > { %v10145_v50 = vpop.eup %10144  ;;  %10148 = vrcp.f32 %v5584_v2  ;;  %v6476_v8 = vmul.f32 %v10143_v26, %v15141_v4 }
 0x80a   : > { %10150 = vrcp.f32 %v5590_v11  ;;  %8973 = vmatprep.mubr.msk.bf16.mxu0 %vm1845_vm0, %v5780_v23  ;;  %v5587_v51 = vpop.xlane.xlu1 %5586  ;;  %v6475_v58 = vmul.f32 %v10145_v50, %v15193_v35 }
 0x80b   : > { %10152 = vrcp.f32 %v5587_v51  ;;  %8974 = vmatmul.mubr.msk.bf16.gmra.mrb[28].mxu0 %vm1845_vm0, %v5781_v28  ;;  %v6517_v27 = vpack.c.bf16 %v6477_v39, %v6476_v8 }
 0x80c   : > { %10154 = vrcp.f32 %v6329_v6  ;;  %v6320_v63 = vpop.xlane.xlu0 %6319  ;;  %v6516_v54 = vpack.c.bf16 %v6475_v58, %v6474_v43 }
 0x80d   : > { %10156 = vrcp.f32 %v6320_v63  ;;  %v10147_v41 = vpop.eup %10146 }
 0x80e   : > { %10158 = vrcp.f32 %v6326_v55  ;;  %9045 = vmatprep.mubr.msk.bf16.mxu1 %vm1845_vm0, %v6516_v54  ;;  %v6323_v37 = vpop.xlane.xlu1 %6322  ;;  %v5745_v45 = vmul.f32 %v10147_v41, %v15204_v47 }
 0x80f   : > { %10160 = vrcp.f32 %v6323_v37  ;;  %9046 = vmatmul.mubr.msk.bf16.gmra.mrb[28].mxu1 %vm1845_vm0, %v6517_v27 }
 0x810   : > { %v5602_v9 = vpop.xlane.xlu0 %5601 }
 0x812   : > { %v5605_v35 = vpop.xlane.xlu1 %5604 }
 0x813   : > { %v10149_v5 = vpop.eup %10148  ;;  %10162 = vrcp.f32 %v5605_v35 }
 0x814   : > { %v10151_v4 = vpop.eup %10150  ;;  %v6338_v42 = vpop.xlane.xlu0 %6337  ;;  %v5742_v0 = vmul.f32 %v10149_v5, %v15223_v20 }
 0x815   : > { %v10153_v62 = vpop.eup %10152  ;;  %v5744_v7 = vmul.f32 %v10151_v4, %v15197_v33 }
 0x816   : > { %v10155_v57 = vpop.eup %10154  ;;  %v6341_v32 = vpop.xlane.xlu1 %6340  ;;  %v5743_v11 = vmul.f32 %v10153_v62, %v15230_v10 }
 0x817   : > { %v10157_v24 = vpop.eup %10156  ;;  %v5783_v34 = vpack.c.bf16 %v5745_v45, %v5744_v7  ;;  %v6481_v3 = vmul.f32 %v10155_v57, %v15217_v44 }
 0x818   : > { %v10159_v25 = vpop.eup %10158  ;;  %v5596_v12 = vpop.xlane.xlu0 %5595  ;;  %v5782_v55 = vpack.c.bf16 %v5743_v11, %v5742_v0  ;;  %v6478_v20 = vmul.f32 %v10157_v24, %v15254_v60 }
 0x819   : > { %v10161_v17 = vpop.eup %10160  ;;  %10164 = vrcp.f32 %v5596_v12  ;;  %v6480_v6 = vmul.f32 %v10159_v25, %v15209_v16 }
 0x81a   : > { %10166 = vrcp.f32 %v5602_v9  ;;  %8977 = vmatprep.mubr.msk.bf16.mxu0 %vm1845_vm0, %v5782_v55  ;;  %v5599_v47 = vpop.xlane.xlu1 %5598  ;;  %v6479_v10 = vmul.f32 %v10161_v17, %v15261_v49 }
 0x81b   : > { %10168 = vrcp.f32 %v5599_v47  ;;  %8978 = vmatmul.mubr.msk.bf16.gmra.mrb[32].mxu0 %vm1845_vm0, %v5783_v34  ;;  %v6519_v56 = vpack.c.bf16 %v6481_v3, %v6480_v6 }
 0x81c   : > { %10170 = vrcp.f32 %v6341_v32  ;;  %v6332_v33 = vpop.xlane.xlu0 %6331  ;;  %v6518_v40 = vpack.c.bf16 %v6479_v10, %v6478_v20 }
 0x81d   : > { %10172 = vrcp.f32 %v6332_v33  ;;  %v10163_v14 = vpop.eup %10162 }
 0x81e   : > { %10174 = vrcp.f32 %v6338_v42  ;;  %9049 = vmatprep.mubr.msk.bf16.mxu1 %vm1845_vm0, %v6518_v40  ;;  %v6335_v44 = vpop.xlane.xlu1 %6334  ;;  %v5749_v23 = vmul.f32 %v10163_v14, %v15272_v29 }
 0x81f   : > { %10176 = vrcp.f32 %v6335_v44  ;;  %9050 = vmatmul.mubr.msk.bf16.gmra.mrb[32].mxu1 %vm1845_vm0, %v6519_v56 }
 0x820   : > { %v5614_v60 = vpop.xlane.xlu0 %5613 }
 0x822   : > { %v5617_v49 = vpop.xlane.xlu1 %5616 }
 0x823   : > { %v10165_v52 = vpop.eup %10164  ;;  %10178 = vrcp.f32 %v5617_v49 }
 0x824   : > { %v10167_v16 = vpop.eup %10166  ;;  %v6350_v26 = vpop.xlane.xlu0 %6349  ;;  %v5746_v39 = vmul.f32 %v10165_v52, %v15291_v59 }
 0x825   : > { %v10169_v2 = vpop.eup %10168  ;;  %v5748_v58 = vmul.f32 %v10167_v16, %v15265_v30 }
 0x826   : > { %v10171_v50 = vpop.eup %10170  ;;  %v6353_v28 = vpop.xlane.xlu1 %6352  ;;  %v5747_v51 = vmul.f32 %v10169_v2, %v15298_v1 }
 0x827   : > { %v10173_v43 = vpop.eup %10172  ;;  %v5785_v37 = vpack.c.bf16 %v5749_v23, %v5748_v58  ;;  %v6485_v9 = vmul.f32 %v10171_v50, %v15285_v22 }
 0x828   : > { %v10175_v8 = vpop.eup %10174  ;;  %v5608_v63 = vpop.xlane.xlu0 %5607  ;;  %v5784_v54 = vpack.c.bf16 %v5747_v51, %v5746_v39  ;;  %v6482_v59 = vmul.f32 %v10173_v43, %v15322_v15  ;;  %v18236_v43 = vld [vmem:[#allocation132_spill] sm:$0xff] }
 0x829   : > { %v10177_v27 = vpop.eup %10176  ;;  %10180 = vrcp.f32 %v5608_v63  ;;  %v6484_v41 = vmul.f32 %v10175_v8, %v15277_v61 }
 0x82a   : > { %10182 = vrcp.f32 %v5614_v60  ;;  %8981 = vmatprep.mubr.msk.bf16.mxu0 %vm1845_vm0, %v5784_v54  ;;  %v5611_v29 = vpop.xlane.xlu1 %5610  ;;  %v6483_v1 = vmul.f32 %v10177_v27, %v15329_v13 }
 0x82b   : > { %10184 = vrcp.f32 %v5611_v29  ;;  %8982 = vmatmul.mubr.msk.bf16.gmra.mrb[36].mxu0 %vm1845_vm0, %v5785_v37  ;;  %v6521_v5 = vpack.c.bf16 %v6485_v9, %v6484_v41  ;;  %v18237_v9 = vld [vmem:[#allocation181_spill] sm:$0xff] }
 0x82c   : > { %10186 = vrcp.f32 %v6353_v28  ;;  %v6344_v30 = vpop.xlane.xlu0 %6343  ;;  %v6520_v35 = vpack.c.bf16 %v6483_v1, %v6482_v59 }
 0x82d   : > { %10188 = vrcp.f32 %v6344_v30  ;;  %v10179_v62 = vpop.eup %10178 }
 0x82e   : > { %10190 = vrcp.f32 %v6350_v26  ;;  %v15553_v22 = vpop.f32.mrb[240].mxu0  ;;  %9053 = vmatprep.mubr.msk.bf16.mxu1 %vm1845_vm0, %v6520_v35  ;;  %v6347_v4 = vpop.xlane.xlu1 %6346  ;;  %v5753_v12 = vmul.f32 %v10179_v62, %v15340_v48 }
 0x82f   : > { %10192 = vrcp.f32 %v6347_v4  ;;  %v15556_v15 = vpop.f32.mrb[241].mxu0  ;;  %9054 = vmatmul.mubr.msk.bf16.gmra.mrb[36].mxu1 %vm1845_vm0, %v6521_v5 }
 0x830   : > { %v5626_v61 = vpop.xlane.xlu0 %5625  ;;  %v15559_v13 = vpop.f32.mrb[242].mxu0 }
 0x831   : > { %v15561_v42 = vpop.f32.mrb[243].mxu0 }
 0x832   : > { %v15563_v45 = vpop.f32.mrb[240].mxu1  ;;  %v5629_v57 = vpop.xlane.xlu1 %5628 }
 0x833   : > { %v10181_v32 = vpop.eup %10180  ;;  %v15565_v0 = vpop.f32.mrb[241].mxu1  ;;  %10194 = vrcp.f32 %v5629_v57 }
 0x834   : > { %v10183_v11 = vpop.eup %10182  ;;  %v5620_v24 = vpop.xlane.xlu0 %5619  ;;  %v5750_v3 = vmul.f32 %v10181_v32, %v15359_v19  ;;  %v18234_v19 = vld [vmem:[#allocation82_spill] sm:$0xff]  ;;  %v18239_v32 = vld [vmem:[#allocation180_spill] sm:$0xff] }
 0x835   : > { %v15567_v7 = vpop.f32.mrb[242].mxu1  ;;  %v10185_v25 = vpop.eup %10184  ;;  %10196 = vrcp.f32 %v5620_v24  ;;  %v5752_v10 = vmul.f32 %v10183_v11, %v15333_v31  ;;  %v18240_v24 = vld [vmem:[#allocation85_spill] sm:$0xff] }
 0x836   : > { %v15570_v55 = vpop.f32.mrb[243].mxu1  ;;  %v10187_v17 = vpop.eup %10186  ;;  %10198 = vrcp.f32 %v5626_v61  ;;  %v5751_v47 = vmul.f32 %v10185_v25, %v15366_v38  ;;  %v18235_v38 = vld [vmem:[#allocation81_spill] sm:$0xff] }
 0x837   : > { %v5623_v34 = vpop.xlane.xlu1 %5622  ;;  %v10189_v20 = vpop.eup %10188  ;;  %v5787_v44 = vpack.c.bf16 %v5753_v12, %v5752_v10  ;;  %v6489_v48 = vmul.f32 %v10187_v17, %v15353_v53  ;;  %v18238_v61 = vld [vmem:[#allocation129_spill] sm:$0xff] }
 0x838   : > { %10200 = vrcp.f32 %v5623_v34  ;;  %v10191_v6 = vpop.eup %10190  ;;  %v6356_v33 = vpop.xlane.xlu0 %6355  ;;  %v5786_v40 = vpack.c.bf16 %v5751_v47, %v5750_v3  ;;  %v6486_v14 = vmul.f32 %v10189_v20, %v15390_v36  ;;  %v18241_v34 = vld [vmem:[#allocation71_spill] sm:$0xff]  ;;  %v18242_v3 = vld [vmem:[#allocation72_spill] sm:$0xff] }
 0x839   : > { %v10193_v56 = vpop.eup %10192  ;;  %10202 = vrcp.f32 %v6356_v33  ;;  %v6488_v52 = vmul.f32 %v10191_v6, %v18235_v38  ;;  %v7296_v10 = vmul.f32 %v15556_v15, %v18241_v34  ;;  %v7459_v15 = vmul.f32 %v15563_v45, %v18241_v34 }
 0x83a   : > { %8985 = vmatprep.mubr.msk.bf16.mxu0 %vm1845_vm0, %v5786_v40  ;;  %v6487_v49 = vmul.f32 %v10193_v56, %v18234_v19  ;;  %v7299_v40 = vmul.f32 %v15559_v13, %v18241_v34  ;;  %v7457_v13 = vmul.f32 %v15565_v0, %v18241_v34  ;;  %v7458_v45 = vmul.f32 %v15570_v55, %v18241_v34 }
 0x83b   : > { %v6359_v60 = vpop.xlane.xlu1 %6358  ;;  %8986 = vmatmul.mubr.msk.bf16.gmra.mrb[40].mxu0 %vm1845_vm0, %v5787_v44  ;;  %v6523_v26 = vpack.c.bf16 %v6489_v48, %v6488_v52 }
 0x83c   : > { %10204 = vrcp.f32 %v6359_v60  ;;  %v6362_v31 = vpop.xlane.xlu0 %6361  ;;  %v6522_v16 = vpack.c.bf16 %v6487_v49, %v6486_v14  ;;  %v7297_v60 = vmul.f32 %v15561_v42, %v18241_v34  ;;  %v7460_v42 = vmul.f32 %v15567_v7, %v18241_v34 }
 0x83d   : > { %10206 = vrcp.f32 %v6362_v31  ;;  %v10195_v2 = vpop.eup %10194 }
 0x83e   : > { %v15581_v23 = vpop.f32.mrb[244].mxu0  ;;  %9057 = vmatprep.mubr.msk.bf16.mxu1 %vm1845_vm0, %v6522_v16  ;;  %v5757_v58 = vmul.f32 %v10195_v2, %v18236_v43 }
 0x83f   : > { %v6365_v53 = vpop.xlane.xlu1 %6364  ;;  %v10197_v50 = vpop.eup %10196  ;;  %9058 = vmatmul.mubr.msk.bf16.gmra.mrb[40].mxu1 %vm1845_vm0, %v6523_v26 }
 0x840   : > { %10208 = vrcp.f32 %v6365_v53  ;;  %v15584_v36 = vpop.f32.mrb[245].mxu0  ;;  %v10199_v28 = vpop.eup %10198  ;;  %v5754_v54 = vmul.f32 %v10197_v50, %v15410_v18 }
 0x841   : > { %v15587_v39 = vpop.f32.mrb[246].mxu0  ;;  %v5756_v29 = vmul.f32 %v10199_v28, %v18237_v9  ;;  %v7300_v7 = vmul.f32 %v15584_v36, %v18241_v34 }
 0x842   : > { %v10201_v51 = vpop.eup %10200  ;;  %v15590_v8 = vpop.f32.mrb[247].mxu0  ;;  %v7303_v55 = vmul.f32 %v15587_v39, %v18241_v34 }
 0x843   : > { %v15592_v63 = vpop.f32.mrb[244].mxu1  ;;  %v5755_v27 = vmul.f32 %v10201_v51, %v15415_v21  ;;  %v10203_v37 = vpop.eup %10202  ;;  %v5789_v35 = vpack.c.bf16 %v5757_v58, %v5756_v29 }
 0x844   : > { %v15597_v59 = vpop.f32.mrb[245].mxu1  ;;  %v6490_v4 = vmul.f32 %v10203_v37, %v15421_v46  ;;  %v7298_v46 = vmul.f32 %v15553_v22, %v18241_v34  ;;  %v7463_v36 = vmul.f32 %v15592_v63, %v18241_v34 }
 0x845   : > { %v15599_v1 = vpop.f32.mrb[246].mxu1  ;;  %v5788_v41 = vpack.c.bf16 %v5755_v27, %v5754_v54  ;;  %v7302_v54 = vmul.f32 %v15581_v23, %v18241_v34  ;;  %v7461_v39 = vmul.f32 %v15597_v59, %v18241_v34 }
 0x846   : > { %v10205_v30 = vpop.eup %10204  ;;  %v15601_v5 = vpop.f32.mrb[247].mxu1 }
 0x847   : > { %8989 = vmatprep.mubr.msk.bf16.mxu0 %vm1845_vm0, %v5788_v41  ;;  %v6491_v18 = vmul.f32 %v10205_v30, %v18238_v61  ;;  %v10207_v62 = vpop.eup %10206  ;;  %v7462_v63 = vmul.f32 %v15601_v5, %v18241_v34 }
 0x848   : > { %8990 = vmatmul.mubr.msk.bf16.gmra.mrb[44].mxu0 %vm1845_vm0, %v5789_v35  ;;  %v6492_v11 = vmul.f32 %v10207_v62, %v18239_v32 }
 0x849   : > { %v6524_v21 = vpack.c.bf16 %v6491_v18, %v6490_v4  ;;  %v7301_v4 = vmul.f32 %v15590_v8, %v18241_v34  ;;  %v7464_v8 = vmul.f32 %v15599_v1, %v18241_v34 }
 0x84a   : > { %v10209_v57 = vpop.eup %10208 }
 0x84b   : > { %v6493_v25 = vmul.f32 %v10209_v57, %v18240_v24  ;;  %9061 = vmatprep.mubr.msk.bf16.mxu1 %vm1845_vm0, %v6524_v21 }
 0x84d   : > { %v6525_v12 = vpack.c.bf16 %v6493_v25, %v6492_v11 }
 0x84e   : > { %v8939_v17 = vpop.f32.mrb[248].mxu0 }
 0x84f   : > { %9062 = vmatmul.mubr.msk.bf16.gmra.mrb[44].mxu1 %vm1845_vm0, %v6525_v12  ;;  %v7306_v47 = vmul.f32 %v8939_v17, %v18242_v3  ;;  %v6688_v20 = vpop.f32.mrb[249].mxu0 }
 0x850   : > { %v7304_v6 = vmul.f32 %v6688_v20, %v18242_v3  ;;  %v8940_v33 = vpop.f32.mrb[250].mxu0 }
 0x851   : > { %v7374_v56 = vadd.f32 %v7306_v47, %v7298_v46  ;;  %v7307_v44 = vmul.f32 %v8940_v33, %v18242_v3  ;;  %v6691_v48 = vpop.f32.mrb[251].mxu0 }
 0x852   : > { %v7360_v22 = vadd.f32 %v7304_v6, %v7296_v10  ;;  %v7305_v14 = vmul.f32 %v6691_v48, %v18242_v3  ;;  %v9011_v19 = vpop.f32.mrb[248].mxu1  ;;  %v18243_v6 = vld [vmem:[#allocation131_spill] sm:$0xff] }
 0x853   : > { %v7381_v49 = vadd.f32 %v7307_v44, %v7299_v40  ;;  %v7467_v38 = vmul.f32 %v9011_v19, %v18242_v3  ;;  %v7073_v52 = vpop.f32.mrb[249].mxu1 }
 0x854   : > { %v7367_v31 = vadd.f32 %v7305_v14, %v7297_v60  ;;  %v7465_v16 = vmul.f32 %v7073_v52, %v18242_v3  ;;  %v9012_v26 = vpop.f32.mrb[250].mxu1 }
 0x855   : > { %v7535_v2 = vadd.f32 %v7467_v38, %v7459_v15  ;;  %v7468_v53 = vmul.f32 %v9012_v26, %v18242_v3  ;;  %v7076_v50 = vpop.f32.mrb[251].mxu1 }
 0x856   : > { %v7521_v28 = vadd.f32 %v7465_v16, %v7457_v13  ;;  %v7466_v51 = vmul.f32 %v7076_v50, %v18242_v3 }
 0x857   : > { %v7542_v43 = vadd.f32 %v7468_v53, %v7460_v42 }
 0x858   : > { %v7528_v58 = vadd.f32 %v7466_v51, %v7458_v45 }
 0x85e   : > { %v8943_v0 = vpop.f32.mrb[252].mxu0 }
 0x85f   : > { %v7310_v27 = vmul.f32 %v8943_v0, %v18242_v3  ;;  %v6704_v37 = vpop.f32.mrb[253].mxu0 }
 0x860   : > { %v7308_v9 = vmul.f32 %v6704_v37, %v18242_v3  ;;  %v8944_v29 = vpop.f32.mrb[254].mxu0 }
 0x861   : > { %v7402_v41 = vadd.f32 %v7310_v27, %v7302_v54  ;;  %v7311_v30 = vmul.f32 %v8944_v29, %v18242_v3  ;;  %v6707_v35 = vpop.f32.mrb[255].mxu0 }
 0x862   : > { %v7388_v23 = vadd.f32 %v7308_v9, %v7300_v7  ;;  %v7309_v61 = vmul.f32 %v6707_v35, %v18242_v3  ;;  %v9015_v18 = vpop.f32.mrb[252].mxu1 }
 0x863   : > { %v7409_v62 = vadd.f32 %v7311_v30, %v7303_v55  ;;  %v7471_v21 = vmul.f32 %v9015_v18, %v18242_v3  ;;  %v7089_v57 = vpop.f32.mrb[253].mxu1 }
 0x864   : > { %v7395_v32 = vadd.f32 %v7309_v61, %v7301_v4  ;;  %v7469_v11 = vmul.f32 %v7089_v57, %v18242_v3  ;;  %v9016_v24 = vpop.f32.mrb[254].mxu1 }
 0x865   : > { %v7563_v25 = vadd.f32 %v7471_v21, %v7463_v36  ;;  %v7472_v12 = vmul.f32 %v9016_v24, %v18242_v3  ;;  %v7092_v17 = vpop.f32.mrb[255].mxu1 }
 0x866   : > { %v7549_v46 = vadd.f32 %v7469_v11, %v7461_v39  ;;  %v7470_v47 = vmul.f32 %v7092_v17, %v18242_v3  ;;  %v18244_v39 = vld [vmem:[#allocation74_spill] sm:$0xff] }
 0x867   : > { %v7570_v20 = vadd.f32 %v7472_v12, %v7464_v8 }
 0x868   : > { %v7556_v10 = vadd.f32 %v7470_v47, %v7462_v63 }
 0x86e   : > { %v8947_v59 = vpop.f32.mrb[0].mxu0 }
 0x86f   : > { %v7314_v33 = vmul.f32 %v8947_v59, %v18243_v6  ;;  %v6720_v40 = vpop.f32.mrb[1].mxu0 }
 0x870   : > { %v7312_v44 = vmul.f32 %v6720_v40, %v18243_v6  ;;  %v8948_v48 = vpop.f32.mrb[2].mxu0 }
 0x871   : > { %v7375_v1 = vadd.f32 %v7374_v56, %v7314_v33  ;;  %v7315_v60 = vmul.f32 %v8948_v48, %v18243_v6  ;;  %v6723_v14 = vpop.f32.mrb[3].mxu0 }
 0x872   : > { %v7361_v19 = vadd.f32 %v7360_v22, %v7312_v44  ;;  %v7313_v15 = vmul.f32 %v6723_v14, %v18243_v6  ;;  %v9019_v5 = vpop.f32.mrb[0].mxu1 }
 0x873   : > { %v7382_v34 = vadd.f32 %v7381_v49, %v7315_v60  ;;  %v7475_v3 = vmul.f32 %v9019_v5, %v18243_v6  ;;  %v7105_v38 = vpop.f32.mrb[1].mxu1 }
 0x874   : > { %v7368_v52 = vadd.f32 %v7367_v31, %v7313_v15  ;;  %v7473_v13 = vmul.f32 %v7105_v38, %v18243_v6  ;;  %v9020_v16 = vpop.f32.mrb[2].mxu1 }
 0x875   : > { %v7536_v26 = vadd.f32 %v7535_v2, %v7475_v3  ;;  %v7476_v42 = vmul.f32 %v9020_v16, %v18243_v6  ;;  %v7108_v53 = vpop.f32.mrb[3].mxu1 }
 0x876   : > { %v7522_v56 = vadd.f32 %v7521_v28, %v7473_v13  ;;  %v7474_v50 = vmul.f32 %v7108_v53, %v18243_v6 }
 0x877   : > { %v7543_v45 = vadd.f32 %v7542_v43, %v7476_v42 }
 0x878   : > { %v7529_v22 = vadd.f32 %v7528_v58, %v7474_v50 }
 0x87e   : > { %v8951_v51 = vpop.f32.mrb[4].mxu0 }
 0x87f   : > { %v7318_v0 = vmul.f32 %v8951_v51, %v18243_v6  ;;  %v6736_v49 = vpop.f32.mrb[5].mxu0 }
 0x880   : > { %v7316_v54 = vmul.f32 %v6736_v49, %v18243_v6  ;;  %v8952_v27 = vpop.f32.mrb[6].mxu0 }
 0x881   : > { %v7403_v31 = vadd.f32 %v7402_v41, %v7318_v0  ;;  %v7319_v37 = vmul.f32 %v8952_v27, %v18243_v6  ;;  %v6739_v7 = vpop.f32.mrb[7].mxu0 }
 0x882   : > { %v7389_v2 = vadd.f32 %v7388_v23, %v7316_v54  ;;  %v7317_v9 = vmul.f32 %v6739_v7, %v18243_v6  ;;  %v9023_v29 = vpop.f32.mrb[4].mxu1 }
 0x883   : > { %v7410_v28 = vadd.f32 %v7409_v62, %v7319_v37  ;;  %v7479_v55 = vmul.f32 %v9023_v29, %v18243_v6  ;;  %v7121_v43 = vpop.f32.mrb[5].mxu1  ;;  %v18245_v29 = vld [vmem:[#allocation177_spill] sm:$0xff] }
 0x884   : > { %v7396_v58 = vadd.f32 %v7395_v32, %v7317_v9  ;;  %v7477_v30 = vmul.f32 %v7121_v43, %v18243_v6  ;;  %v9024_v35 = vpop.f32.mrb[6].mxu1 }
 0x885   : > { %v7564_v4 = vadd.f32 %v7563_v25, %v7479_v55  ;;  %v7480_v61 = vmul.f32 %v9024_v35, %v18243_v6  ;;  %v7124_v18 = vpop.f32.mrb[7].mxu1 }
 0x886   : > { %v7550_v41 = vadd.f32 %v7549_v46, %v7477_v30  ;;  %v7478_v36 = vmul.f32 %v7124_v18, %v18243_v6 }
 0x887   : > { %v7571_v21 = vadd.f32 %v7570_v20, %v7480_v61 }
 0x888   : > { %v7557_v23 = vadd.f32 %v7556_v10, %v7478_v36 }
 0x88e   : > { %v8955_v57 = vpop.f32.mrb[8].mxu0 }
 0x88f   : > { %v7322_v11 = vmul.f32 %v8955_v57, %v18244_v39  ;;  %v6752_v62 = vpop.f32.mrb[9].mxu0 }
 0x890   : > { %v7320_v24 = vmul.f32 %v6752_v62, %v18244_v39  ;;  %v8956_v8 = vpop.f32.mrb[10].mxu0 }
 0x891   : > { %v7376_v32 = vadd.f32 %v7375_v1, %v7322_v11  ;;  %v7323_v12 = vmul.f32 %v8956_v8, %v18244_v39  ;;  %v6755_v17 = vpop.f32.mrb[11].mxu0 }
 0x892   : > { %v7362_v25 = vadd.f32 %v7361_v19, %v7320_v24  ;;  %v7321_v63 = vmul.f32 %v6755_v17, %v18244_v39  ;;  %v9027_v47 = vpop.f32.mrb[8].mxu1 }
 0x893   : > { %v7383_v46 = vadd.f32 %v7382_v34, %v7323_v12  ;;  %v7483_v59 = vmul.f32 %v9027_v47, %v18244_v39  ;;  %v7137_v20 = vpop.f32.mrb[9].mxu1 }
 0x894   : > { %v7369_v10 = vadd.f32 %v7368_v52, %v7321_v63  ;;  %v7481_v6 = vmul.f32 %v7137_v20, %v18244_v39  ;;  %v9028_v33 = vpop.f32.mrb[10].mxu1 }
 0x895   : > { %v7537_v40 = vadd.f32 %v7536_v26, %v7483_v59  ;;  %v7484_v44 = vmul.f32 %v9028_v33, %v18244_v39  ;;  %v7140_v48 = vpop.f32.mrb[11].mxu1 }
 0x896   : > { %v7523_v1 = vadd.f32 %v7522_v56, %v7481_v6  ;;  %v7482_v60 = vmul.f32 %v7140_v48, %v18244_v39 }
 0x897   : > { %v7544_v14 = vadd.f32 %v7543_v45, %v7484_v44 }
 0x898   : > { %v7530_v19 = vadd.f32 %v7529_v22, %v7482_v60 }
 0x89e   : > { %v8959_v15 = vpop.f32.mrb[12].mxu0 }
 0x89f   : > { %v7326_v5 = vmul.f32 %v8959_v15, %v18244_v39  ;;  %v6768_v34 = vpop.f32.mrb[13].mxu0 }
 0x8a0   : > { %v7324_v3 = vmul.f32 %v6768_v34, %v18244_v39  ;;  %v8960_v38 = vpop.f32.mrb[14].mxu0 }
 0x8a1   : > { %v7404_v52 = vadd.f32 %v7403_v31, %v7326_v5  ;;  %v7327_v13 = vmul.f32 %v8960_v38, %v18244_v39  ;;  %v6771_v16 = vpop.f32.mrb[15].mxu0 }
 0x8a2   : > { %v7390_v26 = vadd.f32 %v7389_v2, %v7324_v3  ;;  %v7325_v42 = vmul.f32 %v6771_v16, %v18244_v39  ;;  %v9031_v53 = vpop.f32.mrb[12].mxu1 }
 0x8a3   : > { %v7411_v56 = vadd.f32 %v7410_v28, %v7327_v13  ;;  %v7487_v50 = vmul.f32 %v9031_v53, %v18244_v39  ;;  %v7153_v45 = vpop.f32.mrb[13].mxu1  ;;  %v18246_v53 = vld [vmem:[#allocation130_spill] sm:$0xff] }
 0x8a4   : > { %v7397_v22 = vadd.f32 %v7396_v58, %v7325_v42  ;;  %v7485_v51 = vmul.f32 %v7153_v45, %v18244_v39  ;;  %v9032_v0 = vpop.f32.mrb[14].mxu1 }
 0x8a5   : > { %v7565_v49 = vadd.f32 %v7564_v4, %v7487_v50  ;;  %v7488_v54 = vmul.f32 %v9032_v0, %v18244_v39  ;;  %v7156_v27 = vpop.f32.mrb[15].mxu1 }
 0x8a6   : > { %v7551_v31 = vadd.f32 %v7550_v41, %v7485_v51  ;;  %v7486_v37 = vmul.f32 %v7156_v27, %v18244_v39 }
 0x8a7   : > { %v7572_v7 = vadd.f32 %v7571_v21, %v7488_v54 }
 0x8a8   : > { %v7558_v2 = vadd.f32 %v7557_v23, %v7486_v37 }
 0x8ae   : > { %v8963_v9 = vpop.f32.mrb[16].mxu0 }
 0x8af   : > { %v7330_v55 = vmul.f32 %v8963_v9, %v18245_v29  ;;  %v6784_v28 = vpop.f32.mrb[17].mxu0 }
 0x8b0   : > { %v7328_v43 = vmul.f32 %v6784_v28, %v18245_v29  ;;  %v8964_v30 = vpop.f32.mrb[18].mxu0 }
 0x8b1   : > { %v7377_v58 = vadd.f32 %v7376_v32, %v7330_v55  ;;  %v7331_v35 = vmul.f32 %v8964_v30, %v18245_v29  ;;  %v6787_v61 = vpop.f32.mrb[19].mxu0 }
 0x8b2   : > { %v7363_v4 = vadd.f32 %v7362_v25, %v7328_v43  ;;  %v7329_v18 = vmul.f32 %v6787_v61, %v18245_v29  ;;  %v9035_v36 = vpop.f32.mrb[16].mxu1 }
 0x8b3   : > { %v7384_v41 = vadd.f32 %v7383_v46, %v7331_v35  ;;  %v7491_v57 = vmul.f32 %v9035_v36, %v18245_v29  ;;  %v7169_v21 = vpop.f32.mrb[17].mxu1 }
 0x8b4   : > { %v7370_v23 = vadd.f32 %v7369_v10, %v7329_v18  ;;  %v7489_v39 = vmul.f32 %v7169_v21, %v18245_v29  ;;  %v9036_v11 = vpop.f32.mrb[18].mxu1 }
 0x8b5   : > { %v7538_v62 = vadd.f32 %v7537_v40, %v7491_v57  ;;  %v7492_v24 = vmul.f32 %v9036_v11, %v18245_v29  ;;  %v7172_v8 = vpop.f32.mrb[19].mxu1 }
 0x8b6   : > { %v7524_v32 = vadd.f32 %v7523_v1, %v7489_v39  ;;  %v7490_v12 = vmul.f32 %v7172_v8, %v18245_v29 }
 0x8b7   : > { %v7545_v17 = vadd.f32 %v7544_v14, %v7492_v24 }
 0x8b8   : > { %v7531_v25 = vadd.f32 %v7530_v19, %v7490_v12 }
 0x8be   : > { %v8967_v63 = vpop.f32.mrb[20].mxu0 }
 0x8bf   : > { %v7334_v47 = vmul.f32 %v8967_v63, %v18245_v29  ;;  %v6800_v46 = vpop.f32.mrb[21].mxu0 }
 0x8c0   : > { %v7332_v59 = vmul.f32 %v6800_v46, %v18245_v29  ;;  %v8968_v20 = vpop.f32.mrb[22].mxu0 }
 0x8c1   : > { %v7405_v10 = vadd.f32 %v7404_v52, %v7334_v47  ;;  %v7335_v6 = vmul.f32 %v8968_v20, %v18245_v29  ;;  %v6803_v33 = vpop.f32.mrb[23].mxu0 }
 0x8c2   : > { %v7391_v40 = vadd.f32 %v7390_v26, %v7332_v59  ;;  %v7333_v44 = vmul.f32 %v6803_v33, %v18245_v29  ;;  %v9039_v48 = vpop.f32.mrb[20].mxu1 }
 0x8c3   : > { %v7412_v1 = vadd.f32 %v7411_v56, %v7335_v6  ;;  %v7495_v60 = vmul.f32 %v9039_v48, %v18245_v29  ;;  %v7185_v14 = vpop.f32.mrb[21].mxu1  ;;  %v18247_v48 = vld [vmem:[#allocation178_spill] sm:$0xff] }
 0x8c4   : > { %v7398_v19 = vadd.f32 %v7397_v22, %v7333_v44  ;;  %v7493_v15 = vmul.f32 %v7185_v14, %v18245_v29  ;;  %v9040_v5 = vpop.f32.mrb[22].mxu1 }
 0x8c5   : > { %v7566_v34 = vadd.f32 %v7565_v49, %v7495_v60  ;;  %v7496_v3 = vmul.f32 %v9040_v5, %v18245_v29  ;;  %v7188_v38 = vpop.f32.mrb[23].mxu1 }
 0x8c6   : > { %v7552_v52 = vadd.f32 %v7551_v31, %v7493_v15  ;;  %v7494_v13 = vmul.f32 %v7188_v38, %v18245_v29 }
 0x8c7   : > { %v7573_v16 = vadd.f32 %v7572_v7, %v7496_v3 }
 0x8c8   : > { %v7559_v26 = vadd.f32 %v7558_v2, %v7494_v13 }
 0x8ce   : > { %v8971_v42 = vpop.f32.mrb[24].mxu0 }
 0x8cf   : > { %v7338_v50 = vmul.f32 %v8971_v42, %v18246_v53  ;;  %v6816_v56 = vpop.f32.mrb[25].mxu0 }
 0x8d0   : > { %v7336_v45 = vmul.f32 %v6816_v56, %v18246_v53  ;;  %v8972_v51 = vpop.f32.mrb[26].mxu0 }
 0x8d1   : > { %v7378_v22 = vadd.f32 %v7377_v58, %v7338_v50  ;;  %v7339_v0 = vmul.f32 %v8972_v51, %v18246_v53  ;;  %v6819_v54 = vpop.f32.mrb[27].mxu0 }
 0x8d2   : > { %v7364_v49 = vadd.f32 %v7363_v4, %v7336_v45  ;;  %v7337_v27 = vmul.f32 %v6819_v54, %v18246_v53  ;;  %v9043_v37 = vpop.f32.mrb[24].mxu1 }
 0x8d3   : > { %v7385_v31 = vadd.f32 %v7384_v41, %v7339_v0  ;;  %v7499_v9 = vmul.f32 %v9043_v37, %v18246_v53  ;;  %v7201_v7 = vpop.f32.mrb[25].mxu1 }
 0x8d4   : > { %v7371_v2 = vadd.f32 %v7370_v23, %v7337_v27  ;;  %v7497_v29 = vmul.f32 %v7201_v7, %v18246_v53  ;;  %v9044_v55 = vpop.f32.mrb[26].mxu1 }
 0x8d5   : > { %v7539_v28 = vadd.f32 %v7538_v62, %v7499_v9  ;;  %v7500_v43 = vmul.f32 %v9044_v55, %v18246_v53  ;;  %v7204_v30 = vpop.f32.mrb[27].mxu1 }
 0x8d6   : > { %v7525_v58 = vadd.f32 %v7524_v32, %v7497_v29  ;;  %v7498_v35 = vmul.f32 %v7204_v30, %v18246_v53 }
 0x8d7   : > { %v7546_v61 = vadd.f32 %v7545_v17, %v7500_v43 }
 0x8d8   : > { %v7532_v4 = vadd.f32 %v7531_v25, %v7498_v35 }
 0x8de   : > { %v8975_v18 = vpop.f32.mrb[28].mxu0 }
 0x8df   : > { %v7342_v36 = vmul.f32 %v8975_v18, %v18246_v53  ;;  %v6832_v41 = vpop.f32.mrb[29].mxu0 }
 0x8e0   : > { %v7340_v57 = vmul.f32 %v6832_v41, %v18246_v53  ;;  %v8976_v21 = vpop.f32.mrb[30].mxu0 }
 0x8e1   : > { %v7406_v23 = vadd.f32 %v7405_v10, %v7342_v36  ;;  %v7343_v39 = vmul.f32 %v8976_v21, %v18246_v53  ;;  %v6835_v11 = vpop.f32.mrb[31].mxu0 }
 0x8e2   : > { %v7392_v62 = vadd.f32 %v7391_v40, %v7340_v57  ;;  %v7341_v24 = vmul.f32 %v6835_v11, %v18246_v53  ;;  %v9047_v8 = vpop.f32.mrb[28].mxu1 }
 0x8e3   : > { %v7413_v32 = vadd.f32 %v7412_v1, %v7343_v39  ;;  %v7503_v12 = vmul.f32 %v9047_v8, %v18246_v53  ;;  %v7217_v17 = vpop.f32.mrb[29].mxu1  ;;  %v18248_v8 = vld [vmem:[#allocation76_spill] sm:$0xff] }
 0x8e4   : > { %v7399_v25 = vadd.f32 %v7398_v19, %v7341_v24  ;;  %v7501_v63 = vmul.f32 %v7217_v17, %v18246_v53  ;;  %v9048_v47 = vpop.f32.mrb[30].mxu1 }
 0x8e5   : > { %v7567_v46 = vadd.f32 %v7566_v34, %v7503_v12  ;;  %v7504_v59 = vmul.f32 %v9048_v47, %v18246_v53  ;;  %v7220_v20 = vpop.f32.mrb[31].mxu1 }
 0x8e6   : > { %v7553_v10 = vadd.f32 %v7552_v52, %v7501_v63  ;;  %v7502_v6 = vmul.f32 %v7220_v20, %v18246_v53 }
 0x8e7   : > { %v7574_v33 = vadd.f32 %v7573_v16, %v7504_v59 }
 0x8e8   : > { %v7560_v40 = vadd.f32 %v7559_v26, %v7502_v6 }
 0x8ee   : > { %v8979_v44 = vpop.f32.mrb[32].mxu0 }
 0x8ef   : > { %v7346_v60 = vmul.f32 %v8979_v44, %v18247_v48  ;;  %v6848_v1 = vpop.f32.mrb[33].mxu0 }
 0x8f0   : > { %v7344_v14 = vmul.f32 %v6848_v1, %v18247_v48  ;;  %v8980_v15 = vpop.f32.mrb[34].mxu0 }
 0x8f1   : > { %v7379_v19 = vadd.f32 %v7378_v22, %v7346_v60  ;;  %v7347_v5 = vmul.f32 %v8980_v15, %v18247_v48  ;;  %v6851_v3 = vpop.f32.mrb[35].mxu0 }
 0x8f2   : > { %v7365_v34 = vadd.f32 %v7364_v49, %v7344_v14  ;;  %v7345_v38 = vmul.f32 %v6851_v3, %v18247_v48  ;;  %v9051_v13 = vpop.f32.mrb[32].mxu1 }
 0x8f3   : > { %v7386_v52 = vadd.f32 %v7385_v31, %v7347_v5  ;;  %v7507_v42 = vmul.f32 %v9051_v13, %v18247_v48  ;;  %v7233_v16 = vpop.f32.mrb[33].mxu1 }
 0x8f4   : > { %v7372_v26 = vadd.f32 %v7371_v2, %v7345_v38  ;;  %v7505_v53 = vmul.f32 %v7233_v16, %v18247_v48  ;;  %v9052_v50 = vpop.f32.mrb[34].mxu1 }
 0x8f5   : > { %v7540_v56 = vadd.f32 %v7539_v28, %v7507_v42  ;;  %v7508_v45 = vmul.f32 %v9052_v50, %v18247_v48  ;;  %v7236_v51 = vpop.f32.mrb[35].mxu1 }
 0x8f6   : > { %v7526_v22 = vadd.f32 %v7525_v58, %v7505_v53  ;;  %v7506_v0 = vmul.f32 %v7236_v51, %v18247_v48 }
 0x8f7   : > { %v7547_v54 = vadd.f32 %v7546_v61, %v7508_v45 }
 0x8f8   : > { %v7533_v49 = vadd.f32 %v7532_v4, %v7506_v0 }
 0x8fe   : > { %v8983_v27 = vpop.f32.mrb[36].mxu0 }
 0x8ff   : > { %v7350_v37 = vmul.f32 %v8983_v27, %v18247_v48  ;;  %v6864_v31 = vpop.f32.mrb[37].mxu0 }
 0x900   : > { %v7348_v9 = vmul.f32 %v6864_v31, %v18247_v48  ;;  %v8984_v7 = vpop.f32.mrb[38].mxu0 }
 0x901   : > { %v7407_v2 = vadd.f32 %v7406_v23, %v7350_v37  ;;  %v7351_v29 = vmul.f32 %v8984_v7, %v18247_v48  ;;  %v6867_v55 = vpop.f32.mrb[39].mxu0 }
 0x902   : > { %v7393_v28 = vadd.f32 %v7392_v62, %v7348_v9  ;;  %v7349_v43 = vmul.f32 %v6867_v55, %v18247_v48  ;;  %v9055_v30 = vpop.f32.mrb[36].mxu1 }
 0x903   : > { %v7414_v58 = vadd.f32 %v7413_v32, %v7351_v29  ;;  %v7511_v35 = vmul.f32 %v9055_v30, %v18247_v48  ;;  %v7249_v61 = vpop.f32.mrb[37].mxu1 }
 0x904   : > { %v7400_v4 = vadd.f32 %v7399_v25, %v7349_v43  ;;  %v7509_v18 = vmul.f32 %v7249_v61, %v18247_v48  ;;  %v9056_v36 = vpop.f32.mrb[38].mxu1 }
 0x905   : > { %v7568_v41 = vadd.f32 %v7567_v46, %v7511_v35  ;;  %v7512_v57 = vmul.f32 %v9056_v36, %v18247_v48  ;;  %v7252_v21 = vpop.f32.mrb[39].mxu1 }
 0x906   : > { %v7554_v23 = vadd.f32 %v7553_v10, %v7509_v18  ;;  %v7510_v39 = vmul.f32 %v7252_v21, %v18247_v48 }
 0x907   : > { %v7575_v11 = vadd.f32 %v7574_v33, %v7512_v57 }
 0x908   : > { %v7561_v62 = vadd.f32 %v7560_v40, %v7510_v39 }
 0x90e   : > { %v8987_v24 = vpop.f32.mrb[40].mxu0 }
 0x90f   : > { %v7354_v12 = vmul.f32 %v8987_v24, %v18248_v8  ;;  %v6880_v32 = vpop.f32.mrb[41].mxu0 }
 0x910   : > { %v7352_v17 = vmul.f32 %v6880_v32, %v18248_v8  ;;  %v8988_v63 = vpop.f32.mrb[42].mxu0 }
 0x911   : > { %v7380_v25 = vadd.f32 %v7379_v19, %v7354_v12  ;;  %v7355_v47 = vmul.f32 %v8988_v63, %v18248_v8  ;;  %v6883_v59 = vpop.f32.mrb[43].mxu0 }
 0x912   : > { %v7366_v46 = vadd.f32 %v7365_v34, %v7352_v17  ;;  %v7353_v20 = vmul.f32 %v6883_v59, %v18248_v8  ;;  %v9059_v10 = vpop.f32.mrb[40].mxu1 }
 0x913   : > { %v7387_v6 = vadd.f32 %v7386_v52, %v7355_v47  ;;  %v7515_v33 = vmul.f32 %v9059_v10, %v18248_v8  ;;  %v7265_v40 = vpop.f32.mrb[41].mxu1 }
 0x914   : > { %v7373_v44 = vadd.f32 %v7372_v26, %v7353_v20  ;;  %v7513_v48 = vmul.f32 %v7265_v40, %v18248_v8  ;;  %v9060_v60 = vpop.f32.mrb[42].mxu1 }
 0x915   : > { %v8059_v1 = vpack.c.bf16 %v7387_v6, %v7380_v25  ;;  %v7541_v14 = vadd.f32 %v7540_v56, %v7515_v33  ;;  %v7516_v15 = vmul.f32 %v9060_v60, %v18248_v8  ;;  %v7268_v19 = vpop.f32.mrb[43].mxu1 }
 0x916   : > { %v8054_v5 = vpack.c.bf16 %v7373_v44, %v7366_v46  ;;  %v7527_v3 = vadd.f32 %v7526_v22, %v7513_v48  ;;  %v7514_v34 = vmul.f32 %v7268_v19, %v18248_v8 }
 0x917   : > { %8098 = vst [vmem:[%s13436_s15 + $0x28] sm:$0xff] %v8059_v1   ;;  %v7548_v38 = vadd.f32 %v7547_v54, %v7516_v15 }
 0x918   : > { %8097 = vst [vmem:[%s13436_s15 + $0x20] sm:$0xff] %v8054_v5   ;;  %v7534_v13 = vadd.f32 %v7533_v49, %v7514_v34 }
 0x919   : > { %v8079_v52 = vpack.c.bf16 %v7548_v38, %v7541_v14 }
 0x91a   : > { %v8074_v42 = vpack.c.bf16 %v7534_v13, %v7527_v3 }
 0x91b   : > { %v8991_v16 = vpop.f32.mrb[44].mxu0  ;;  %8102 = vst [vmem:[%s13447_s19 + $0x28] sm:$0xff] %v8079_v52  }
 0x91c   : > { %v7358_v26 = vmul.f32 %v8991_v16, %v18248_v8  ;;  %v6896_v53 = vpop.f32.mrb[45].mxu0  ;;  %8101 = vst [vmem:[%s13447_s19 + $0x20] sm:$0xff] %v8074_v42  }
 0x91d   : > { %v7356_v50 = vmul.f32 %v6896_v53, %v18248_v8  ;;  %v8992_v56 = vpop.f32.mrb[46].mxu0 }
 0x91e   : > { %v7408_v45 = vadd.f32 %v7407_v2, %v7358_v26  ;;  %v7359_v51 = vmul.f32 %v8992_v56, %v18248_v8  ;;  %v6899_v22 = vpop.f32.mrb[47].mxu0 }
 0x91f   : > { %v7394_v0 = vadd.f32 %v7393_v28, %v7356_v50  ;;  %v7357_v54 = vmul.f32 %v6899_v22, %v18248_v8 }
 0x920   : > { %v7415_v49 = vadd.f32 %v7414_v58, %v7359_v51 }
 0x921   : > { %v7401_v27 = vadd.f32 %v7400_v4, %v7357_v54 }
 0x922   : > { %v8069_v37 = vpack.c.bf16 %v7415_v49, %v7408_v45  ;;  %v9063_v31 = vpop.f32.mrb[44].mxu1 }
 0x923   : > { %v8064_v9 = vpack.c.bf16 %v7401_v27, %v7394_v0  ;;  %v7519_v7 = vmul.f32 %v9063_v31, %v18248_v8  ;;  %v7281_v29 = vpop.f32.mrb[45].mxu1 }
 0x924   : > { %8100 = vst [vmem:[%s13436_s15 + $0x38] sm:$0xff] %v8069_v37   ;;  %v7517_v55 = vmul.f32 %v7281_v29, %v18248_v8  ;;  %v9064_v2 = vpop.f32.mrb[46].mxu1 }
 0x925   : > { %8099 = vst [vmem:[%s13436_s15 + $0x30] sm:$0xff] %v8064_v9   ;;  %v7569_v43 = vadd.f32 %v7568_v41, %v7519_v7  ;;  %v7520_v28 = vmul.f32 %v9064_v2, %v18248_v8  ;;  %v7284_v30 = vpop.f32.mrb[47].mxu1 }
 0x926   : > { %v7555_v35 = vadd.f32 %v7554_v23, %v7517_v55  ;;  %v7518_v58 = vmul.f32 %v7284_v30, %v18248_v8 }
 0x927   : > { %v7576_v61 = vadd.f32 %v7575_v11, %v7520_v28 }
 0x928   : > { %v7562_v4 = vadd.f32 %v7561_v62, %v7518_v58 }
 0x929   : > { %v8089_v18 = vpack.c.bf16 %v7576_v61, %v7569_v43 }
 0x92a   : > { %v8084_v36 = vpack.c.bf16 %v7562_v4, %v7555_v35 }
 0x92b   : > { %8104 = vst [vmem:[%s13447_s19 + $0x38] sm:$0xff] %v8089_v18  }
 0x92c   : > { %8103 = vst [vmem:[%s13447_s19 + $0x30] sm:$0xff] %v8084_v36  }
 0x92d PF: > { %s16_s18 = sadd.s32 1, %s10224_s18  }
 0x92e   : > { %p13_p4 = scmp.ge.s32.totalorder %s16_s18, 6  }
 0x930   :  { %15 = sbr.rel (!%p13_p4) target bundleno = 1 (0x1), region = 83 }

</bundles_post_ra>
